<compile_context>
chip_gen: v6e
topology: v6e:2x2x1
jax: 0.10.0
libtpu: 0.0.40
codegen_flags: <defaults>
</compile_context>

<pallas_src>
import functools

import jax
import jax.numpy as jnp
from jax import lax
from jax.experimental import pallas as pl
from jax.experimental.pallas import tpu as pltpu


def head_kernel(xpad_ref, xrow_ref, w1_ref, b1_ref, w2_ref, b2_ref,
                w3t_ref, b3_ref, alpha_ref, out_ref, pad_scr,
                *, H, W, C, Ch, compute_dtype):
    f32 = jnp.float32
    xp = xpad_ref[0]                                   # (H+2, W+2, 1) zero-padded input

    # Zero only the 1-px halo of the activation scratch; the interior is fully
    # overwritten below, so no full-tensor re-zeroing is needed.
    zrow = jnp.zeros((1, W + 2, Ch), f32)
    zcol = jnp.zeros((H + 2, 1, Ch), f32)
    pad_scr[0:1, :, :] = zrow
    pad_scr[H + 1:H + 2, :, :] = zrow
    pad_scr[:, 0:1, :] = zcol
    pad_scr[:, W + 1:W + 2, :] = zcol

    # ---- conv1 (1 -> Ch) + ReLU: nine shifted broadcast-FMAs on the VPU (f32) -------
    # (cin == 1: an im2col matmul would fill only K=9 of the MXU and need a lane-concat
    #  of nine single-lane slices; the VPU path is free next to the DMA/MXU work.)
    w1 = w1_ref[...]                                   # (9, Ch) f32, rows = (dy, dx) major
    b1 = b1_ref[...].reshape(1, 1, Ch)
    acc1 = jnp.zeros((H, W, Ch), f32)
    t = 0
    for dy in range(3):
        for dx in range(3):
            acc1 = acc1 + xp[dy:dy + H, dx:dx + W, :] * w1[t:t + 1, :].reshape(1, 1, Ch)
            t += 1
    y1 = jnp.maximum(acc1 + b1, 0.0)
    pad_scr[1:H + 1, 1:W + 1, :] = y1                  # straight into padded scratch

    def im2col(a):
        # a: (H+2, W+2, Ch) -> (H*W, 9*Ch); taps ordered (dy, dx) row-major,
        # channel minor -- matches the (9*Ch, cout) weight packing in the wrapper.
        taps = [a[dy:dy + H, dx:dx + W, :] for dy in range(3) for dx in range(3)]
        return jnp.concatenate(taps, axis=-1).reshape(H * W, 9 * Ch)

    # ---- conv2 (Ch -> Ch) + ReLU: packed-K matmul on the MXU -------------------------
    p2 = im2col(pad_scr[...]).astype(compute_dtype)                     # (H*W, 9*Ch)
    y2 = jnp.dot(p2, w2_ref[...], preferred_element_type=f32)           # (H*W, Ch)
    y2 = jnp.maximum(y2 + b2_ref[...], 0.0)

    # ---- conv3 (Ch -> C), NT matmul so the result is (C, H*W) ------------------------
    pad_scr[1:H + 1, 1:W + 1, :] = y2.reshape(H, W, Ch)
    p3 = im2col(pad_scr[...]).astype(compute_dtype)                     # (H*W, 9*Ch)
    y3t = lax.dot_general(w3t_ref[...], p3, (((1,), (1,)), ((), ())),
                          preferred_element_type=f32) + b3_ref[...]     # (C, H*W)

    # ---- residual: out = x + alpha * block(x) (x's single channel broadcast to C) ----
    out_ref[0] = (xrow_ref[0] + alpha_ref[...] * y3t).astype(out_ref.dtype)


def _vmem_limit_bytes(H, W, C, Ch):
    f32b, bf16b = 4, 2
    halo = (H + 2) * (W + 2)
    est = 0
    est += 2 * halo * f32b                                    # x_pad block (double-buffered)
    est += 2 * H * W * f32b                                   # x_row block
    est += 2 * (9 * Ch) * f32b                                # conv1 weight (f32)
    est += 2 * (9 * Ch * Ch + 9 * Ch * C) * bf16b             # conv2/conv3 weights (bf16)
    est += 2 * (2 * Ch + 2 * C) * f32b                        # biases + alpha
    est += 2 * C * H * W * f32b                               # output block (double-buffered)
    est += halo * Ch * f32b                                   # activation halo scratch
    est += 2 * H * W * 9 * Ch * (f32b + bf16b)                # live im2col patches
    est += H * W * (2 * Ch + 2 * C) * f32b                    # activations headroom
    return int(min(max(4 * est, 8 << 20), 112 << 20))


def head_forward(x_nchw, params, compute_dtype=jnp.bfloat16):
    N, Cin, H, W = x_nchw.shape
    assert Cin == 1, "Head takes a single-channel input"
    C = params["alpha"].shape[0]
    Ch = C // 2

    x_nhwc = x_nchw.reshape(N, H, W, 1).astype(jnp.float32)   # free: channel dim is 1
    x_pad = jnp.pad(x_nhwc, ((0, 0), (1, 1), (1, 1), (0, 0)))
    x_row = x_nchw.reshape(N, 1, H * W).astype(jnp.float32)   # lane-dense residual view

    # im2col weight packing: rows ordered (dy, dx) major, cin minor.
    w1 = params["w1"].reshape(9, Ch).astype(jnp.float32)                 # (9, Ch)  VPU path
    w2 = params["w2"].reshape(9 * Ch, Ch).astype(compute_dtype)          # (9*Ch, Ch)
    w3t = params["w3"].reshape(9 * Ch, C).T.astype(compute_dtype)        # (C, 9*Ch)
    b1 = params["b1"].reshape(1, Ch).astype(jnp.float32)
    b2 = params["b2"].reshape(1, Ch).astype(jnp.float32)
    b3 = params["b3"].reshape(C, 1).astype(jnp.float32)
    alpha = params["alpha"].reshape(C, 1).astype(jnp.float32)

    kernel = functools.partial(head_kernel, H=H, W=W, C=C, Ch=Ch,
                               compute_dtype=compute_dtype)

    out = pl.pallas_call(
        kernel,
        out_shape=jax.ShapeDtypeStruct((N, C, H * W), jnp.float32),
        grid_spec=pltpu.PrefetchScalarGridSpec(
            num_scalar_prefetch=0,
            grid=(N,),
            in_specs=[
                pl.BlockSpec((1, H + 2, W + 2, 1), lambda b: (b, 0, 0, 0)),  # x padded
                pl.BlockSpec((1, 1, H * W), lambda b: (b, 0, 0)),            # x residual row
                pl.BlockSpec((9, Ch), lambda b: (0, 0)),                     # conv1 weight
                pl.BlockSpec((1, Ch), lambda b: (0, 0)),                     # conv1 bias
                pl.BlockSpec((9 * Ch, Ch), lambda b: (0, 0)),                # conv2 weight
                pl.BlockSpec((1, Ch), lambda b: (0, 0)),                     # conv2 bias
                pl.BlockSpec((C, 9 * Ch), lambda b: (0, 0)),                 # conv3 weight^T
                pl.BlockSpec((C, 1), lambda b: (0, 0)),                      # conv3 bias
                pl.BlockSpec((C, 1), lambda b: (0, 0)),                      # alpha
            ],
            out_specs=pl.BlockSpec((1, C, H * W), lambda b: (b, 0, 0)),
            scratch_shapes=[pltpu.VMEM((H + 2, W + 2, Ch), jnp.float32)],
        ),
        compiler_params=pltpu.CompilerParams(
            dimension_semantics=("parallel",),
            vmem_limit_bytes=_vmem_limit_bytes(H, W, C, Ch),
        ),
    )(x_pad, x_row, w1, b1, w2, b2, w3t, b3, alpha)

    return out.reshape(N, C, H, W)                            # already NCHW-ordered


def head_reference(x_nchw, params):
    """Pure-JAX (XLA) reference with identical forward semantics."""
    x = jnp.transpose(x_nchw, (0, 2, 3, 1)).astype(jnp.float32)   # (N, H, W, 1)

    def conv(h, w_hwio, b):
        y = lax.conv_general_dilated(h, w_hwio, (1, 1), 'SAME',
                                     dimension_numbers=('NHWC', 'HWIO', 'NHWC'))
        return y + b

    y = jax.nn.relu(conv(x, params["w1"], params["b1"]))
    y = jax.nn.relu(conv(y, params["w2"], params["b2"]))
    y = conv(y, params["w3"], params["b3"])
    out = x + params["alpha"] * y          # single input channel broadcasts over C
    return jnp.transpose(out, (0, 3, 1, 2))


def init_params(key, embed_dim):
    """Deterministic init matching nn.Conv2d defaults; weights in HWIO layout."""
    Ch = embed_dim // 2
    ks = jax.random.split(key, 6)

    def conv_init(kw, kb, cin, cout):
        bound = 1.0 / (cin * 9) ** 0.5
        w = jax.random.uniform(kw, (3, 3, cin, cout), jnp.float32, -bound, bound)
        b = jax.random.uniform(kb, (cout,), jnp.float32, -bound, bound)
        return w, b

    w1, b1 = conv_init(ks[0], ks[1], 1, Ch)
    w2, b2 = conv_init(ks[2], ks[3], Ch, Ch)
    w3, b3 = conv_init(ks[4], ks[5], Ch, embed_dim)
    alpha = 0.01 * jnp.ones((embed_dim,), jnp.float32)
    return {"w1": w1, "b1": b1, "w2": w2, "b2": b2, "w3": w3, "b3": b3, "alpha": alpha}


if __name__ == "__main__":
    N, H, W = 2, 16, 16
    embed_dim = 24

    key = jax.random.PRNGKey(0)
    kx, kp = jax.random.split(key)
    x = jax.random.normal(kx, (N, 1, H, W), jnp.float32)
    params = init_params(kp, embed_dim)

    out = jax.block_until_ready(head_forward(x, params))
    ref = head_reference(x, params)

    assert out.shape == (N, embed_dim, H, W)
    max_err = jnp.max(jnp.abs(out - ref))
    assert jnp.allclose(out, ref, rtol=1e-3, atol=1e-3), f"max abs err {max_err}"

    print("KERNEL_OK")
</pallas_src>

<mosaic_0001>
module attributes {stable_mosaic.version = 11 : i64} {
  func.func @head_kernel(%arg0: i32, %arg1: memref<1x18x18x1xf32, #tpu.memory_space<vmem>>, %arg2: memref<1x1x256xf32, #tpu.memory_space<vmem>>, %arg3: memref<9x12xf32, #tpu.memory_space<vmem>>, %arg4: memref<1x12xf32, #tpu.memory_space<vmem>>, %arg5: memref<108x12xbf16, #tpu.memory_space<vmem>>, %arg6: memref<1x12xf32, #tpu.memory_space<vmem>>, %arg7: memref<24x108xbf16, #tpu.memory_space<vmem>>, %arg8: memref<24x1xf32, #tpu.memory_space<vmem>>, %arg9: memref<24x1xf32, #tpu.memory_space<vmem>>, %arg10: memref<1x24x256xf32, #tpu.memory_space<vmem>>, %arg11: memref<18x18x12xf32, #tpu.memory_space<vmem>>) attributes {dimension_semantics = [#tpu.dimension_semantics<parallel>], iteration_bounds = array<i64: 2>, scalar_prefetch = 0 : i64, scratch_operands = 1 : i64, tpu.core_type = #tpu.core_type<tc>, window_params = [{transform_indices = @transform_0, window_bounds = array<i64: 1, 18, 18, 1>}, {transform_indices = @transform_1, window_bounds = array<i64: 1, 1, 256>}, {pipeline_mode = #tpu.pipeline_mode<synchronous>, transform_indices = @transform_2, window_bounds = array<i64: 9, 12>}, {pipeline_mode = #tpu.pipeline_mode<synchronous>, transform_indices = @transform_3, window_bounds = array<i64: 1, 12>}, {pipeline_mode = #tpu.pipeline_mode<synchronous>, transform_indices = @transform_4, window_bounds = array<i64: 108, 12>}, {pipeline_mode = #tpu.pipeline_mode<synchronous>, transform_indices = @transform_5, window_bounds = array<i64: 1, 12>}, {pipeline_mode = #tpu.pipeline_mode<synchronous>, transform_indices = @transform_6, window_bounds = array<i64: 24, 108>}, {pipeline_mode = #tpu.pipeline_mode<synchronous>, transform_indices = @transform_7, window_bounds = array<i64: 24, 1>}, {pipeline_mode = #tpu.pipeline_mode<synchronous>, transform_indices = @transform_8, window_bounds = array<i64: 24, 1>}, {transform_indices = @transform_9, window_bounds = array<i64: 1, 24, 256>}]} {
    %c0 = arith.constant 0 : index
    %c0_0 = arith.constant 0 : index
    %c0_1 = arith.constant 0 : index
    %c0_2 = arith.constant 0 : index
    %0 = vector.load %arg1[%c0, %c0_0, %c0_1, %c0_2] : memref<1x18x18x1xf32, #tpu.memory_space<vmem>>, vector<1x18x18x1xf32>
    %1 = vector.shape_cast %0 : vector<1x18x18x1xf32> to vector<18x18x1xf32>
    %cst = arith.constant 0.000000e+00 : f32
    %2 = vector.broadcast %cst : f32 to vector<1x18x12xf32>
    %cst_3 = arith.constant 0.000000e+00 : f32
    %3 = vector.broadcast %cst_3 : f32 to vector<18x1x12xf32>
    %c0_4 = arith.constant 0 : index
    %c0_5 = arith.constant 0 : index
    %c0_6 = arith.constant 0 : index
    %4 = vector.load %arg11[%c0_4, %c0_5, %c0_6] : memref<18x18x12xf32, #tpu.memory_space<vmem>>, vector<1x18x12xf32>
    tpu.vector_store %arg11[%c0_4, %c0_5, %c0_6], %2 {strides = array<i32>} : memref<18x18x12xf32, #tpu.memory_space<vmem>>, vector<1x18x12xf32>,
    %c17 = arith.constant 17 : index
    %c0_7 = arith.constant 0 : index
    %c0_8 = arith.constant 0 : index
    %5 = vector.load %arg11[%c17, %c0_7, %c0_8] : memref<18x18x12xf32, #tpu.memory_space<vmem>>, vector<1x18x12xf32>
    tpu.vector_store %arg11[%c17, %c0_7, %c0_8], %2 {strides = array<i32>} : memref<18x18x12xf32, #tpu.memory_space<vmem>>, vector<1x18x12xf32>,
    %c0_9 = arith.constant 0 : index
    %c0_10 = arith.constant 0 : index
    %c0_11 = arith.constant 0 : index
    %6 = vector.load %arg11[%c0_9, %c0_10, %c0_11] : memref<18x18x12xf32, #tpu.memory_space<vmem>>, vector<18x1x12xf32>
    tpu.vector_store %arg11[%c0_9, %c0_10, %c0_11], %3 {strides = array<i32>} : memref<18x18x12xf32, #tpu.memory_space<vmem>>, vector<18x1x12xf32>,
    %c0_12 = arith.constant 0 : index
    %c17_13 = arith.constant 17 : index
    %c0_14 = arith.constant 0 : index
    %7 = vector.load %arg11[%c0_12, %c17_13, %c0_14] : memref<18x18x12xf32, #tpu.memory_space<vmem>>, vector<18x1x12xf32>
    tpu.vector_store %arg11[%c0_12, %c17_13, %c0_14], %3 {strides = array<i32>} : memref<18x18x12xf32, #tpu.memory_space<vmem>>, vector<18x1x12xf32>,
    %c0_15 = arith.constant 0 : index
    %c0_16 = arith.constant 0 : index
    %8 = vector.load %arg3[%c0_15, %c0_16] : memref<9x12xf32, #tpu.memory_space<vmem>>, vector<9x12xf32>
    %c0_17 = arith.constant 0 : index
    %c0_18 = arith.constant 0 : index
    %9 = vector.load %arg4[%c0_17, %c0_18] : memref<1x12xf32, #tpu.memory_space<vmem>>, vector<1x12xf32>
    %10 = vector.shape_cast %9 : vector<1x12xf32> to vector<1x1x12xf32>
    %cst_19 = arith.constant 0.000000e+00 : f32
    %11 = vector.broadcast %cst_19 : f32 to vector<16x16x12xf32>
    %12 = vector.extract_strided_slice %1 {offsets = [0, 0, 0], sizes = [16, 16, 1], strides = [1, 1, 1]} : vector<18x18x1xf32> to vector<16x16x1xf32>
    %13 = vector.extract_strided_slice %8 {offsets = [0, 0], sizes = [1, 12], strides = [1, 1]} : vector<9x12xf32> to vector<1x12xf32>
    %14 = vector.shape_cast %13 : vector<1x12xf32> to vector<1x1x12xf32>
    %15 = vector.broadcast %12 : vector<16x16x1xf32> to vector<16x16x12xf32>
    %16 = vector.broadcast %14 : vector<1x1x12xf32> to vector<16x16x12xf32>
    %17 = arith.mulf %15, %16 : vector<16x16x12xf32>
    %18 = arith.addf %11, %17 : vector<16x16x12xf32>
    %19 = vector.extract_strided_slice %1 {offsets = [0, 1, 0], sizes = [16, 16, 1], strides = [1, 1, 1]} : vector<18x18x1xf32> to vector<16x16x1xf32>
    %20 = vector.extract_strided_slice %8 {offsets = [1, 0], sizes = [1, 12], strides = [1, 1]} : vector<9x12xf32> to vector<1x12xf32>
    %21 = vector.shape_cast %20 : vector<1x12xf32> to vector<1x1x12xf32>
    %22 = vector.broadcast %19 : vector<16x16x1xf32> to vector<16x16x12xf32>
    %23 = vector.broadcast %21 : vector<1x1x12xf32> to vector<16x16x12xf32>
    %24 = arith.mulf %22, %23 : vector<16x16x12xf32>
    %25 = arith.addf %18, %24 : vector<16x16x12xf32>
    %26 = vector.extract_strided_slice %1 {offsets = [0, 2, 0], sizes = [16, 16, 1], strides = [1, 1, 1]} : vector<18x18x1xf32> to vector<16x16x1xf32>
    %27 = vector.extract_strided_slice %8 {offsets = [2, 0], sizes = [1, 12], strides = [1, 1]} : vector<9x12xf32> to vector<1x12xf32>
    %28 = vector.shape_cast %27 : vector<1x12xf32> to vector<1x1x12xf32>
    %29 = vector.broadcast %26 : vector<16x16x1xf32> to vector<16x16x12xf32>
    %30 = vector.broadcast %28 : vector<1x1x12xf32> to vector<16x16x12xf32>
    %31 = arith.mulf %29, %30 : vector<16x16x12xf32>
    %32 = arith.addf %25, %31 : vector<16x16x12xf32>
    %33 = vector.extract_strided_slice %1 {offsets = [1, 0, 0], sizes = [16, 16, 1], strides = [1, 1, 1]} : vector<18x18x1xf32> to vector<16x16x1xf32>
    %34 = vector.extract_strided_slice %8 {offsets = [3, 0], sizes = [1, 12], strides = [1, 1]} : vector<9x12xf32> to vector<1x12xf32>
    %35 = vector.shape_cast %34 : vector<1x12xf32> to vector<1x1x12xf32>
    %36 = vector.broadcast %33 : vector<16x16x1xf32> to vector<16x16x12xf32>
    %37 = vector.broadcast %35 : vector<1x1x12xf32> to vector<16x16x12xf32>
    %38 = arith.mulf %36, %37 : vector<16x16x12xf32>
    %39 = arith.addf %32, %38 : vector<16x16x12xf32>
    %40 = vector.extract_strided_slice %1 {offsets = [1, 1, 0], sizes = [16, 16, 1], strides = [1, 1, 1]} : vector<18x18x1xf32> to vector<16x16x1xf32>
    %41 = vector.extract_strided_slice %8 {offsets = [4, 0], sizes = [1, 12], strides = [1, 1]} : vector<9x12xf32> to vector<1x12xf32>
    %42 = vector.shape_cast %41 : vector<1x12xf32> to vector<1x1x12xf32>
    %43 = vector.broadcast %40 : vector<16x16x1xf32> to vector<16x16x12xf32>
    %44 = vector.broadcast %42 : vector<1x1x12xf32> to vector<16x16x12xf32>
    %45 = arith.mulf %43, %44 : vector<16x16x12xf32>
    %46 = arith.addf %39, %45 : vector<16x16x12xf32>
    %47 = vector.extract_strided_slice %1 {offsets = [1, 2, 0], sizes = [16, 16, 1], strides = [1, 1, 1]} : vector<18x18x1xf32> to vector<16x16x1xf32>
    %48 = vector.extract_strided_slice %8 {offsets = [5, 0], sizes = [1, 12], strides = [1, 1]} : vector<9x12xf32> to vector<1x12xf32>
    %49 = vector.shape_cast %48 : vector<1x12xf32> to vector<1x1x12xf32>
    %50 = vector.broadcast %47 : vector<16x16x1xf32> to vector<16x16x12xf32>
    %51 = vector.broadcast %49 : vector<1x1x12xf32> to vector<16x16x12xf32>
    %52 = arith.mulf %50, %51 : vector<16x16x12xf32>
    %53 = arith.addf %46, %52 : vector<16x16x12xf32>
    %54 = vector.extract_strided_slice %1 {offsets = [2, 0, 0], sizes = [16, 16, 1], strides = [1, 1, 1]} : vector<18x18x1xf32> to vector<16x16x1xf32>
    %55 = vector.extract_strided_slice %8 {offsets = [6, 0], sizes = [1, 12], strides = [1, 1]} : vector<9x12xf32> to vector<1x12xf32>
    %56 = vector.shape_cast %55 : vector<1x12xf32> to vector<1x1x12xf32>
    %57 = vector.broadcast %54 : vector<16x16x1xf32> to vector<16x16x12xf32>
    %58 = vector.broadcast %56 : vector<1x1x12xf32> to vector<16x16x12xf32>
    %59 = arith.mulf %57, %58 : vector<16x16x12xf32>
    %60 = arith.addf %53, %59 : vector<16x16x12xf32>
    %61 = vector.extract_strided_slice %1 {offsets = [2, 1, 0], sizes = [16, 16, 1], strides = [1, 1, 1]} : vector<18x18x1xf32> to vector<16x16x1xf32>
    %62 = vector.extract_strided_slice %8 {offsets = [7, 0], sizes = [1, 12], strides = [1, 1]} : vector<9x12xf32> to vector<1x12xf32>
    %63 = vector.shape_cast %62 : vector<1x12xf32> to vector<1x1x12xf32>
    %64 = vector.broadcast %61 : vector<16x16x1xf32> to vector<16x16x12xf32>
    %65 = vector.broadcast %63 : vector<1x1x12xf32> to vector<16x16x12xf32>
    %66 = arith.mulf %64, %65 : vector<16x16x12xf32>
    %67 = arith.addf %60, %66 : vector<16x16x12xf32>
    %68 = vector.extract_strided_slice %1 {offsets = [2, 2, 0], sizes = [16, 16, 1], strides = [1, 1, 1]} : vector<18x18x1xf32> to vector<16x16x1xf32>
    %69 = vector.extract_strided_slice %8 {offsets = [8, 0], sizes = [1, 12], strides = [1, 1]} : vector<9x12xf32> to vector<1x12xf32>
    %70 = vector.shape_cast %69 : vector<1x12xf32> to vector<1x1x12xf32>
    %71 = vector.broadcast %68 : vector<16x16x1xf32> to vector<16x16x12xf32>
    %72 = vector.broadcast %70 : vector<1x1x12xf32> to vector<16x16x12xf32>
    %73 = arith.mulf %71, %72 : vector<16x16x12xf32>
    %74 = arith.addf %67, %73 : vector<16x16x12xf32>
    %75 = vector.broadcast %10 : vector<1x1x12xf32> to vector<16x16x12xf32>
    %76 = arith.addf %74, %75 : vector<16x16x12xf32>
    %cst_20 = arith.constant 0.000000e+00 : f32
    %77 = vector.broadcast %cst_20 : f32 to vector<16x16x12xf32>
    %78 = arith.maximumf %76, %77 : vector<16x16x12xf32>
    %c1 = arith.constant 1 : index
    %c1_21 = arith.constant 1 : index
    %c0_22 = arith.constant 0 : index
    %79 = vector.load %arg11[%c1, %c1_21, %c0_22] : memref<18x18x12xf32, #tpu.memory_space<vmem>>, vector<16x16x12xf32>
    tpu.vector_store %arg11[%c1, %c1_21, %c0_22], %78 {strides = array<i32>} : memref<18x18x12xf32, #tpu.memory_space<vmem>>, vector<16x16x12xf32>,
    %c0_23 = arith.constant 0 : index
    %c0_24 = arith.constant 0 : index
    %c0_25 = arith.constant 0 : index
    %80 = vector.load %arg11[%c0_23, %c0_24, %c0_25] : memref<18x18x12xf32, #tpu.memory_space<vmem>>, vector<18x18x12xf32>
    %81 = vector.extract_strided_slice %80 {offsets = [0, 0, 0], sizes = [16, 16, 12], strides = [1, 1, 1]} : vector<18x18x12xf32> to vector<16x16x12xf32>
    %82 = vector.extract_strided_slice %80 {offsets = [0, 1, 0], sizes = [16, 16, 12], strides = [1, 1, 1]} : vector<18x18x12xf32> to vector<16x16x12xf32>
    %83 = vector.extract_strided_slice %80 {offsets = [0, 2, 0], sizes = [16, 16, 12], strides = [1, 1, 1]} : vector<18x18x12xf32> to vector<16x16x12xf32>
    %84 = vector.extract_strided_slice %80 {offsets = [1, 0, 0], sizes = [16, 16, 12], strides = [1, 1, 1]} : vector<18x18x12xf32> to vector<16x16x12xf32>
    %85 = vector.extract_strided_slice %80 {offsets = [1, 1, 0], sizes = [16, 16, 12], strides = [1, 1, 1]} : vector<18x18x12xf32> to vector<16x16x12xf32>
    %86 = vector.extract_strided_slice %80 {offsets = [1, 2, 0], sizes = [16, 16, 12], strides = [1, 1, 1]} : vector<18x18x12xf32> to vector<16x16x12xf32>
    %87 = vector.extract_strided_slice %80 {offsets = [2, 0, 0], sizes = [16, 16, 12], strides = [1, 1, 1]} : vector<18x18x12xf32> to vector<16x16x12xf32>
    %88 = vector.extract_strided_slice %80 {offsets = [2, 1, 0], sizes = [16, 16, 12], strides = [1, 1, 1]} : vector<18x18x12xf32> to vector<16x16x12xf32>
    %89 = vector.extract_strided_slice %80 {offsets = [2, 2, 0], sizes = [16, 16, 12], strides = [1, 1, 1]} : vector<18x18x12xf32> to vector<16x16x12xf32>
    %90 = tpu.concatenate %81, %82, %83, %84, %85, %86, %87, %88, %89 in 2 : vector<16x16x12xf32>, vector<16x16x12xf32>, vector<16x16x12xf32>, vector<16x16x12xf32>, vector<16x16x12xf32>, vector<16x16x12xf32>, vector<16x16x12xf32>, vector<16x16x12xf32>, vector<16x16x12xf32> -> vector<16x16x108xf32>
    %91 = vector.shape_cast %90 : vector<16x16x108xf32> to vector<256x108xf32>
    %92 = arith.truncf %91 : vector<256x108xf32> to vector<256x108xbf16>
    %c0_26 = arith.constant 0 : index
    %c0_27 = arith.constant 0 : index
    %93 = vector.load %arg5[%c0_26, %c0_27] : memref<108x12xbf16, #tpu.memory_space<vmem>>, vector<108x12xbf16>
    %cst_28 = arith.constant dense<0.000000e+00> : vector<256x12xf32>
    %94 = tpu.matmul %92, %93, %cst_28 {dimension_numbers = #tpu.dot_dimension_numbers<[1], [0], [0], [1], [0, 0, 1, 1], [], []>} : vector<256x108xbf16>, vector<108x12xbf16>, vector<256x12xf32> -> vector<256x12xf32>
    %c0_29 = arith.constant 0 : index
    %c0_30 = arith.constant 0 : index
    %95 = vector.load %arg6[%c0_29, %c0_30] : memref<1x12xf32, #tpu.memory_space<vmem>>, vector<1x12xf32>
    %96 = vector.broadcast %95 : vector<1x12xf32> to vector<256x12xf32>
    %97 = arith.addf %94, %96 : vector<256x12xf32>
    %cst_31 = arith.constant 0.000000e+00 : f32
    %98 = vector.broadcast %cst_31 : f32 to vector<256x12xf32>
    %99 = arith.maximumf %97, %98 : vector<256x12xf32>
    %100 = vector.shape_cast %99 : vector<256x12xf32> to vector<16x16x12xf32>
    %c1_32 = arith.constant 1 : index
    %c1_33 = arith.constant 1 : index
    %c0_34 = arith.constant 0 : index
    %101 = vector.load %arg11[%c1_32, %c1_33, %c0_34] : memref<18x18x12xf32, #tpu.memory_space<vmem>>, vector<16x16x12xf32>
    tpu.vector_store %arg11[%c1_32, %c1_33, %c0_34], %100 {strides = array<i32>} : memref<18x18x12xf32, #tpu.memory_space<vmem>>, vector<16x16x12xf32>,
    %c0_35 = arith.constant 0 : index
    %c0_36 = arith.constant 0 : index
    %c0_37 = arith.constant 0 : index
    %102 = vector.load %arg11[%c0_35, %c0_36, %c0_37] : memref<18x18x12xf32, #tpu.memory_space<vmem>>, vector<18x18x12xf32>
    %103 = vector.extract_strided_slice %102 {offsets = [0, 0, 0], sizes = [16, 16, 12], strides = [1, 1, 1]} : vector<18x18x12xf32> to vector<16x16x12xf32>
    %104 = vector.extract_strided_slice %102 {offsets = [0, 1, 0], sizes = [16, 16, 12], strides = [1, 1, 1]} : vector<18x18x12xf32> to vector<16x16x12xf32>
    %105 = vector.extract_strided_slice %102 {offsets = [0, 2, 0], sizes = [16, 16, 12], strides = [1, 1, 1]} : vector<18x18x12xf32> to vector<16x16x12xf32>
    %106 = vector.extract_strided_slice %102 {offsets = [1, 0, 0], sizes = [16, 16, 12], strides = [1, 1, 1]} : vector<18x18x12xf32> to vector<16x16x12xf32>
    %107 = vector.extract_strided_slice %102 {offsets = [1, 1, 0], sizes = [16, 16, 12], strides = [1, 1, 1]} : vector<18x18x12xf32> to vector<16x16x12xf32>
    %108 = vector.extract_strided_slice %102 {offsets = [1, 2, 0], sizes = [16, 16, 12], strides = [1, 1, 1]} : vector<18x18x12xf32> to vector<16x16x12xf32>
    %109 = vector.extract_strided_slice %102 {offsets = [2, 0, 0], sizes = [16, 16, 12], strides = [1, 1, 1]} : vector<18x18x12xf32> to vector<16x16x12xf32>
    %110 = vector.extract_strided_slice %102 {offsets = [2, 1, 0], sizes = [16, 16, 12], strides = [1, 1, 1]} : vector<18x18x12xf32> to vector<16x16x12xf32>
    %111 = vector.extract_strided_slice %102 {offsets = [2, 2, 0], sizes = [16, 16, 12], strides = [1, 1, 1]} : vector<18x18x12xf32> to vector<16x16x12xf32>
    %112 = tpu.concatenate %103, %104, %105, %106, %107, %108, %109, %110, %111 in 2 : vector<16x16x12xf32>, vector<16x16x12xf32>, vector<16x16x12xf32>, vector<16x16x12xf32>, vector<16x16x12xf32>, vector<16x16x12xf32>, vector<16x16x12xf32>, vector<16x16x12xf32>, vector<16x16x12xf32> -> vector<16x16x108xf32>
    %113 = vector.shape_cast %112 : vector<16x16x108xf32> to vector<256x108xf32>
    %114 = arith.truncf %113 : vector<256x108xf32> to vector<256x108xbf16>
    %c0_38 = arith.constant 0 : index
    %c0_39 = arith.constant 0 : index
    %115 = vector.load %arg7[%c0_38, %c0_39] : memref<24x108xbf16, #tpu.memory_space<vmem>>, vector<24x108xbf16>
    %cst_40 = arith.constant dense<0.000000e+00> : vector<24x256xf32>
    %116 = tpu.matmul %115, %114, %cst_40 {dimension_numbers = #tpu.dot_dimension_numbers<[1], [1], [0], [0], [0, 0, 1, 0], [], []>} : vector<24x108xbf16>, vector<256x108xbf16>, vector<24x256xf32> -> vector<24x256xf32>
    %c0_41 = arith.constant 0 : index
    %c0_42 = arith.constant 0 : index
    %117 = vector.load %arg8[%c0_41, %c0_42] : memref<24x1xf32, #tpu.memory_space<vmem>>, vector<24x1xf32>
    %118 = vector.broadcast %117 : vector<24x1xf32> to vector<24x256xf32>
    %119 = arith.addf %116, %118 : vector<24x256xf32>
    %c0_43 = arith.constant 0 : index
    %c0_44 = arith.constant 0 : index
    %c0_45 = arith.constant 0 : index
    %120 = vector.load %arg2[%c0_43, %c0_44, %c0_45] : memref<1x1x256xf32, #tpu.memory_space<vmem>>, vector<1x1x256xf32>
    %121 = vector.shape_cast %120 : vector<1x1x256xf32> to vector<1x256xf32>
    %c0_46 = arith.constant 0 : index
    %c0_47 = arith.constant 0 : index
    %122 = vector.load %arg9[%c0_46, %c0_47] : memref<24x1xf32, #tpu.memory_space<vmem>>, vector<24x1xf32>
    %123 = vector.broadcast %122 : vector<24x1xf32> to vector<24x256xf32>
    %124 = arith.mulf %123, %119 : vector<24x256xf32>
    %125 = vector.broadcast %121 : vector<1x256xf32> to vector<24x256xf32>
    %126 = arith.addf %125, %124 : vector<24x256xf32>
    %c0_48 = arith.constant 0 : index
    %c0_49 = arith.constant 0 : index
    %c0_50 = arith.constant 0 : index
    %127 = vector.load %arg10[%c0_48, %c0_49, %c0_50] : memref<1x24x256xf32, #tpu.memory_space<vmem>>, vector<1x24x256xf32>
    %128 = vector.shape_cast %127 : vector<1x24x256xf32> to vector<24x256xf32>
    %129 = vector.shape_cast %126 : vector<24x256xf32> to vector<1x24x256xf32>
    tpu.vector_store %arg10[%c0_48, %c0_49, %c0_50], %129 {strides = array<i32>} : memref<1x24x256xf32, #tpu.memory_space<vmem>>, vector<1x24x256xf32>,
    return
  }
  func.func @transform_0(%arg0: i32) -> (i32, i32, i32, i32) {
    %c0_i32 = arith.constant 0 : i32
    %c0_i32_0 = arith.constant 0 : i32
    %c0_i32_1 = arith.constant 0 : i32
    %c0_i32_2 = arith.constant 0 : i32
    return %arg0, %c0_i32, %c0_i32_0, %c0_i32_1 : i32, i32, i32, i32
  }
  func.func @transform_1(%arg0: i32) -> (i32, i32, i32) {
    %c0_i32 = arith.constant 0 : i32
    %c0_i32_0 = arith.constant 0 : i32
    %c0_i32_1 = arith.constant 0 : i32
    return %arg0, %c0_i32, %c0_i32_0 : i32, i32, i32
  }
  func.func @transform_2(%arg0: i32) -> (i32, i32) {
    %c0_i32 = arith.constant 0 : i32
    %c0_i32_0 = arith.constant 0 : i32
    %c0_i32_1 = arith.constant 0 : i32
    return %c0_i32, %c0_i32_0 : i32, i32
  }
  func.func @transform_3(%arg0: i32) -> (i32, i32) {
    %c0_i32 = arith.constant 0 : i32
    %c0_i32_0 = arith.constant 0 : i32
    %c0_i32_1 = arith.constant 0 : i32
    return %c0_i32, %c0_i32_0 : i32, i32
  }
  func.func @transform_4(%arg0: i32) -> (i32, i32) {
    %c0_i32 = arith.constant 0 : i32
    %c0_i32_0 = arith.constant 0 : i32
    %c0_i32_1 = arith.constant 0 : i32
    return %c0_i32, %c0_i32_0 : i32, i32
  }
  func.func @transform_5(%arg0: i32) -> (i32, i32) {
    %c0_i32 = arith.constant 0 : i32
    %c0_i32_0 = arith.constant 0 : i32
    %c0_i32_1 = arith.constant 0 : i32
    return %c0_i32, %c0_i32_0 : i32, i32
  }
  func.func @transform_6(%arg0: i32) -> (i32, i32) {
    %c0_i32 = arith.constant 0 : i32
    %c0_i32_0 = arith.constant 0 : i32
    %c0_i32_1 = arith.constant 0 : i32
    return %c0_i32, %c0_i32_0 : i32, i32
  }
  func.func @transform_7(%arg0: i32) -> (i32, i32) {
    %c0_i32 = arith.constant 0 : i32
    %c0_i32_0 = arith.constant 0 : i32
    %c0_i32_1 = arith.constant 0 : i32
    return %c0_i32, %c0_i32_0 : i32, i32
  }
  func.func @transform_8(%arg0: i32) -> (i32, i32) {
    %c0_i32 = arith.constant 0 : i32
    %c0_i32_0 = arith.constant 0 : i32
    %c0_i32_1 = arith.constant 0 : i32
    return %c0_i32, %c0_i32_0 : i32, i32
  }
  func.func @transform_9(%arg0: i32) -> (i32, i32, i32) {
    %c0_i32 = arith.constant 0 : i32
    %c0_i32_0 = arith.constant 0 : i32
    %c0_i32_1 = arith.constant 0 : i32
    return %arg0, %c0_i32, %c0_i32_0 : i32, i32, i32
  }
}

</mosaic_0001>

<bundles_post_ra>
// kernel: tpu_custom_call.1
= control target key start
LH: loop header
LB: loop body
LE: loop exit
PB: predicated region body
PF: predicated region fallthrough
CT: control target
= control target key end

     0   :  { %14 = vsyncpa [#allocation4], 0  ;;  %s12629_s0 = inlined_call_operand.vmem [shape: f32[2,18,18,1], index: 0, kind: input, shape index: {}]   ;;  %s12630_s1 = inlined_call_operand.vmem [shape: f32[2,1,256], index: 1, kind: input, shape index: {}]   ;;  %s12631_s2 = inlined_call_operand.vmem [shape: f32[9,12], index: 2, kind: input, shape index: {}]   ;;  %s12632_s3 = inlined_call_operand.vmem [shape: f32[1,12], index: 3, kind: input, shape index: {}]   ;;  %s12633_s4 = inlined_call_operand.vmem [shape: bf16[108,12], index: 4, kind: input, shape index: {}]   ;;  %s12634_s5 = inlined_call_operand.vmem [shape: f32[1,12], index: 5, kind: input, shape index: {}]   ;;  %s12635_s6 = inlined_call_operand.vmem [shape: bf16[24,108], index: 6, kind: input, shape index: {}]   ;;  %s12636_s7 = inlined_call_operand.vmem [shape: f32[24,1], index: 7, kind: input, shape index: {}]   ;;  %s12637_s8 = inlined_call_operand.vmem [shape: f32[24,1], index: 8, kind: input, shape index: {}]   ;;  %s12638_s9 = inlined_call_operand.hbm [shape: f32[2,24,256], index: 9, kind: output, shape index: {}]  }
   0x1   :  { %16 = vsyncpa [#allocation4 + $0x1], 0  ;;  %s7433_s30 = smov 0   ;;  %s7435_s10 = smov 0  }
   0x2   :  { %s7437_s11 = smov 0   ;;  %s7439_s12 = smov 0  }
   0x3 LB: > { %s7454_s13 = sadd.s32 4294967295, %s7368_s12   ;;  %s5767_s14 = sadd.s32 4294967294, %s7368_s12   ;;  %s7368_s12 = sphi %s7439_s12, %s13483_s12   ;;  %s7364_s11 = sphi %s7437_s11, %s13482_s11   ;;  %s7360_s10 = sphi %s7435_s10, %s13481_s10   ;;  %s7356_s30 = sphi %s7433_s30, %s13480_s30  }
   0x4   : > { %s7458_s15 = sadd.s32 1, %s7368_s12   ;;  %s228_s16 = sadd.s32 1, %s7364_s11 }
   0x5   : > { %s225_s17 = ssub.s32 %s7368_s12, %s7458_s15  ;;  %p238_p0 = scmp.ne.s32.totalorder %s7364_s11, %s7360_s10 }
   0x6   : > { %p226_p1 = scmp.eq.s32.totalorder %s225_s17, 0  ;;  %p239_p2 = scmp.eq.s32.totalorder %s7454_s13, 1 }
   0x7   : > { %p244_p3 = scmp.ne.s32.totalorder %s7360_s10, %s7356_s30  ;;  %p245_p4 = scmp.eq.s32.totalorder %s5767_s14, 1 }
   0x8   : > { %s7469_s18 = scalar_select %p226_p1, %s7364_s11, %s228_s16  }
   0x9   : > { %p7471_p5 = por %p239_p2, %p238_p0  ;;  %p7475_p6 = por %p245_p4, %p244_p3 }
   0xa   : > { %p5770_p7 = scmp.ge.s32.totalorder %s7368_s12, 1  ;;  %p299_p8 = scmp.lt.s32.totalorder %s7368_s12, 3 }
   0xc   : > { %p300_p9 = pnand %p5770_p7, %p299_p8 }
   0xe   : > { %303 = sbr.rel (%p300_p9) target bundleno = 1621 (0x655), region = 56 }
  0x13   : > { %p339_p10 = scmp.lt.s32.totalorder %s7454_s13, 1  ;;  %v7370_v0 = vmov 0   ;;  %v612_v55 = vlaneseq  ;;  %v449_v60 = vld [vmem:[%s12631_s2] sm:$0xff]  ;;  %vm860_vm0 = vcmask 1046528   ;;  %vm1105_vm1 = vcmask 1045504   ;;  %s7372_s27 = smov 12  }
  0x14   : > { %5959 = vset.pattern.permute.xlu1 %v7370_v0  ;;  %5958 = vset.pattern.permute.xlu0 %v7370_v0  ;;  %vm403_vm2 = vcmask 97280   ;;  %vm406_vm3 = vcmask 91136   ;;  %vm412_vm4 = vcmask 90112   ;;  %s7373_s28 = smov 24   ;;  %s7374_s16 = smov 36   ;;  %vm3583_vm5 = vcmask 195584  }
  0x15   : > { %s7483_s21 = scalar_select %p339_p10, %s7454_s13, 1  ;;  %v7545_v56 = vshrl.u32 %v612_v55, 7  ;;  %vm3616_vm6 = vcmask 293888   ;;  %vm3649_vm7 = vcmask 392192   ;;  %vm3682_vm8 = vcmask 490496  }
  0x16   : > { %s7375_s17 = smov 48   ;;  %s7377_s23 = smov 72   ;;  %vm3715_vm9 = vcmask 588800   ;;  %vm3748_vm10 = vcmask 687104   ;;  %vm3781_vm11 = vcmask 785408   ;;  %vm3892_vm12 = vcmask 883712  }
  0x17   : > { %s5905_s22 = smul.u32 432, %s7483_s21  ;;  %12858 = vst [vmem:[#allocation6_spill] sm:$0xff] %v7545_v56  ;;  %v12639_v57 = vsub.s32 1, %v7545_v56  ;;  %v1335_v58 = vsub.s32 4, %v7545_v56  ;;  %v1579_v59 = vsub.s32 5, %v7545_v56  ;;  %v12640_v61 = vsub.s32 0, %v7545_v56 }
  0x18   : > { %v1007_v62 = vsub.s32 2, %v7545_v56  ;;  %v1262_v63 = vsub.s32 3, %v7545_v56  ;;  %v1833_v0 = vsub.s32 6, %v7545_v56  ;;  %s7378_s26 = smov 84   ;;  %s7379_s24 = smov 96  }
  0x19   : > { %s7489_s25 = scalar_lea.vmem %s12629_s0, %s5905_s22  ;;  %s7376_s22 = smov 60  }
  0x1a   : > { %v352_v1 = vld [vmem:[%s7489_s25 + $0x18] sm:$0xff]  ;;  %v349_v2 = vld [vmem:[%s7489_s25] sm:$0xff]  ;;  %v350_v4 = vld [vmem:[%s7489_s25 + $0x8] sm:$0xff]  ;;  %s5772_s14 = sshll.u32 %s7483_s21, 1 }
  0x1b   : > { %464 = vperm.xlu1 %5959, %v352_v1   ;;  %454 = vperm.xlu0 %5958, %v349_v2   ;;  %v353_v3 = vld [vmem:[%s7489_s25 + $0x20] sm:$0xff]  ;;  %v356_v5 = vld [vmem:[%s7489_s25 + $0x38] sm:$0xff]  ;;  %v355_v6 = vld [vmem:[%s7489_s25 + $0x30] sm:$0xff]  ;;  %v7559_v1 = vrot.slane %v449_v60, %v12639_v57  ;;  %v7561_v2 = vrot.slane %v449_v60, %v1335_v58  ;;  %s347_s29 = scalar_lea.vmem %s12630_s1, %s5772_s14 }
  0x1c   : > { %v359_v7 = vld [vmem:[%s7489_s25 + $0x50] sm:$0xff]  ;;  %v358_v8 = vld [vmem:[%s7489_s25 + $0x48] sm:$0xff]  ;;  %v361_v10 = vld [vmem:[%s7489_s25 + $0x60] sm:$0xff] }
  0x1d   : > { %v362_v9 = vld [vmem:[%s7489_s25 + $0x68] sm:$0xff]  ;;  %v365_v11 = vld [vmem:[%s7489_s25 + $0x80] sm:$0xff]  ;;  %v364_v12 = vld [vmem:[%s7489_s25 + $0x78] sm:$0xff] }
  0x1e   : > { %v368_v13 = vld [vmem:[%s7489_s25 + $0x98] sm:$0xff]  ;;  %v367_v14 = vld [vmem:[%s7489_s25 + $0x90] sm:$0xff]  ;;  %v370_v16 = vld [vmem:[%s7489_s25 + $0xa8] sm:$0xff] }
  0x1f   : > { %469 = vperm.xlu1 %5959, %v353_v3   ;;  %459 = vperm.xlu0 %5958, %v350_v4   ;;  %v371_v15 = vld [vmem:[%s7489_s25 + $0xb0] sm:$0xff]  ;;  %v374_v17 = vld [vmem:[%s7489_s25 + $0xc8] sm:$0xff]  ;;  %v373_v18 = vld [vmem:[%s7489_s25 + $0xc0] sm:$0xff]  ;;  %v7563_v3 = vrot.slane %v449_v60, %v1579_v59  ;;  %v1906_v4 = vsub.s32 7, %v7545_v56 }
  0x20   : > { %v377_v19 = vld [vmem:[%s7489_s25 + $0xe0] sm:$0xff]  ;;  %v376_v20 = vld [vmem:[%s7489_s25 + $0xd8] sm:$0xff]  ;;  %v379_v22 = vld [vmem:[%s7489_s25 + $0xf0] sm:$0xff] }
  0x21   : > { %v380_v21 = vld [vmem:[%s7489_s25 + $0xf8] sm:$0xff]  ;;  %v383_v23 = vld [vmem:[%s7489_s25 + $0x110] sm:$0xff]  ;;  %v382_v24 = vld [vmem:[%s7489_s25 + $0x108] sm:$0xff] }
  0x22   : > { %v386_v25 = vld [vmem:[%s7489_s25 + $0x128] sm:$0xff]  ;;  %v385_v26 = vld [vmem:[%s7489_s25 + $0x120] sm:$0xff]  ;;  %v388_v28 = vld [vmem:[%s7489_s25 + $0x138] sm:$0xff] }
  0x23   : > { %479 = vperm.xlu1 %5959, %v356_v5   ;;  %474 = vperm.xlu0 %5958, %v355_v6   ;;  %v389_v27 = vld [vmem:[%s7489_s25 + $0x140] sm:$0xff]  ;;  %v392_v29 = vld [vmem:[%s7489_s25 + $0x158] sm:$0xff]  ;;  %v391_v30 = vld [vmem:[%s7489_s25 + $0x150] sm:$0xff]  ;;  %v7568_v5 = vrot.slane %v449_v60, %v12640_v61  ;;  %v7570_v6 = vrot.slane %v449_v60, %v1007_v62 }
  0x24   : > { %v395_v31 = vld [vmem:[%s7489_s25 + $0x170] sm:$0xff]  ;;  %v394_v32 = vld [vmem:[%s7489_s25 + $0x168] sm:$0xff]  ;;  %v360_v35 = vld [vmem:[%s7489_s25 + $0x58] sm:$0x3] }
  0x25   : > { %v354_v33 = vld [vmem:[%s7489_s25 + $0x28] sm:$0x3]  ;;  %v351_v34 = vld [vmem:[%s7489_s25 + $0x10] sm:$0x3]  ;;  %v357_v36 = vld [vmem:[%s7489_s25 + $0x40] sm:$0x3] }
  0x26   : > { %v366_v37 = vld [vmem:[%s7489_s25 + $0x88] sm:$0x3]  ;;  %v363_v38 = vld [vmem:[%s7489_s25 + $0x70] sm:$0x3]  ;;  %v372_v39 = vld [vmem:[%s7489_s25 + $0xb8] sm:$0x3] }
  0x27   : > { %489 = vperm.xlu1 %5959, %v359_v7   ;;  %484 = vperm.xlu0 %5958, %v358_v8   ;;  %v369_v40 = vld [vmem:[%s7489_s25 + $0xa0] sm:$0x3]  ;;  %v378_v41 = vld [vmem:[%s7489_s25 + $0xe8] sm:$0x3]  ;;  %v375_v42 = vld [vmem:[%s7489_s25 + $0xd0] sm:$0x3]  ;;  %v7572_v7 = vrot.slane %v449_v60, %v1262_v63 }
  0x28   : > { %v384_v43 = vld [vmem:[%s7489_s25 + $0x118] sm:$0x3]  ;;  %v381_v44 = vld [vmem:[%s7489_s25 + $0x100] sm:$0x3]  ;;  %v390_v45 = vld [vmem:[%s7489_s25 + $0x148] sm:$0x3] }
  0x29   : > { %v387_v46 = vld [vmem:[%s7489_s25 + $0x130] sm:$0x3]  ;;  %v396_v47 = vld [vmem:[%s7489_s25 + $0x178] sm:$0x3]  ;;  %v393_v48 = vld [vmem:[%s7489_s25 + $0x160] sm:$0x3] }
  0x2a   : > { %v398_v49 = vld [vmem:[%s7489_s25 + $0x188] sm:$0xff]  ;;  %v397_v50 = vld [vmem:[%s7489_s25 + $0x180] sm:$0xff]  ;;  %v400_v51 = vld [vmem:[%s7489_s25 + $0x198] sm:$0xff] }
  0x2b   : > { %499 = vperm.xlu1 %5959, %v362_v9   ;;  %494 = vperm.xlu0 %5958, %v361_v10   ;;  %v399_v52 = vld [vmem:[%s7489_s25 + $0x190] sm:$0x3]  ;;  %v402_v53 = vld [vmem:[%s7489_s25 + $0x1a8] sm:$0x3]  ;;  %v401_v54 = vld [vmem:[%s7489_s25 + $0x1a0] sm:$0xff] }
  0x2f   : > { %509 = vperm.xlu1 %5959, %v365_v11   ;;  %504 = vperm.xlu0 %5958, %v364_v12   ;;  %v7576_v12 = vrot.slane %v449_v60, %v1833_v0 }
  0x33   : > { %519 = vperm.xlu1 %5959, %v368_v13   ;;  %514 = vperm.xlu0 %5958, %v367_v14  }
  0x37   : > { %529 = vperm.xlu1 %5959, %v371_v15   ;;  %524 = vperm.xlu0 %5958, %v370_v16   ;;  %v7581_v16 = vrot.slane %v449_v60, %v1906_v4  ;;  %v7652_v60 = vld [vmem:[%s12631_s2 + $0x8] ss:$0 sm:$0xff] }
  0x3b   : > { %539 = vperm.xlu1 %5959, %v374_v17   ;;  %534 = vperm.xlu0 %5958, %v373_v18  }
  0x3f   : > { %549 = vperm.xlu1 %5959, %v377_v19   ;;  %544 = vperm.xlu0 %5958, %v376_v20  }
  0x43   : > { %559 = vperm.xlu1 %5959, %v380_v21   ;;  %554 = vperm.xlu0 %5958, %v379_v22  }
  0x47   : > { %569 = vperm.xlu1 %5959, %v383_v23   ;;  %564 = vperm.xlu0 %5958, %v382_v24  }
  0x4b   : > { %579 = vperm.xlu1 %5959, %v386_v25   ;;  %574 = vperm.xlu0 %5958, %v385_v26  }
  0x4f   : > { %589 = vperm.xlu1 %5959, %v389_v27   ;;  %584 = vperm.xlu0 %5958, %v388_v28  }
  0x53   : > { %599 = vperm.xlu1 %5959, %v392_v29   ;;  %594 = vperm.xlu0 %5958, %v391_v30  }
  0x57   : > { %609 = vperm.xlu1 %5959, %v395_v31   ;;  %604 = vperm.xlu0 %5958, %v394_v32  }
  0x5b   : > { %687 = vperm.xlu1 %5959, %v354_v33   ;;  %682 = vperm.xlu0 %5958, %v351_v34  }
  0x5f   : > { %697 = vperm.xlu1 %5959, %v360_v35   ;;  %692 = vperm.xlu0 %5958, %v357_v36  }
  0x63   : > { %707 = vperm.xlu1 %5959, %v366_v37   ;;  %702 = vperm.xlu0 %5958, %v363_v38  }
  0x67   : > { %717 = vperm.xlu1 %5959, %v372_v39   ;;  %712 = vperm.xlu0 %5958, %v369_v40  }
  0x6b   : > { %727 = vperm.xlu1 %5959, %v378_v41   ;;  %722 = vperm.xlu0 %5958, %v375_v42  }
  0x6f   : > { %737 = vperm.xlu1 %5959, %v384_v43   ;;  %732 = vperm.xlu0 %5958, %v381_v44  }
  0x73   : > { %747 = vperm.xlu1 %5959, %v390_v45   ;;  %742 = vperm.xlu0 %5958, %v387_v46  }
  0x77   : > { %757 = vperm.xlu1 %5959, %v396_v47   ;;  %752 = vperm.xlu0 %5958, %v393_v48  }
  0x7b   : > { %1257 = vperm.xlu1 %5959, %v398_v49   ;;  %1252 = vperm.xlu0 %5958, %v397_v50  }
  0x7f   : > { %1823 = vperm.xlu1 %5959, %v400_v51   ;;  %1330 = vperm.xlu0 %5958, %v399_v52  }
  0x83   : > { %1901 = vperm.xlu1 %5959, %v402_v53   ;;  %1828 = vperm.xlu0 %5958, %v401_v54  }
  0x96   : > { %v465_v8 = vpop.permute.xlu1 %464  ;;  %v455_v9 = vpop.permute.xlu0 %454 }
  0x97   : > { %v767_v10 = vmul.f32 %v7559_v1, %v465_v8  ;;  %v1012_v11 = vmul.f32 %v7570_v6, %v465_v8  ;;  %v1337_v13 = vmul.f32 %v7561_v2, %v465_v8  ;;  %v1581_v14 = vmul.f32 %v7563_v3, %v465_v8 }
  0x98   : > { %v764_v15 = vmul.f32 %v7559_v1, %v455_v9  ;;  %v618_v17 = vmul.f32 %v7568_v5, %v465_v8  ;;  %v1264_v18 = vmul.f32 %v7572_v7, %v465_v8  ;;  %v616_v19 = vmul.f32 %v7568_v5, %v455_v9 }
  0x99   : > { %v1009_v20 = vmul.f32 %v7570_v6, %v455_v9  ;;  %v866_v21 = vrot.slane %v767_v10, 1  ;;  %v1111_v22 = vrot.slane %v1012_v11, 2  ;;  %v1433_v23 = vrot.slane %v1337_v13, 1 }
  0x9a   : > { %v1677_v24 = vrot.slane %v1581_v14, 2  ;;  %v470_v25 = vpop.permute.xlu1 %469  ;;  %v460_v26 = vpop.permute.xlu0 %459  ;;  %v861_v27 = vrot.slane %v764_v15, 1 }
  0x9b   : > { %v1106_v28 = vrot.slane %v1009_v20, 2  ;;  %v7588_v29 = vmul.f32 %v7559_v1, %v470_v25  ;;  %v7591_v30 = vmul.f32 %v7570_v6, %v470_v25  ;;  %v7594_v31 = vmul.f32 %v7568_v5, %v470_v25 }
  0x9c   : > { %v7597_v32 = vmul.f32 %v7561_v2, %v470_v25  ;;  %v7600_v33 = vmul.f32 %v7563_v3, %v470_v25  ;;  %v7603_v34 = vmul.f32 %v7559_v1, %v460_v26  ;;  %v7608_v37 = vmul.f32 %v7568_v5, %v460_v26 }
  0x9d   : > { %v12646_v35 = vrot.slane %v7588_v29, 1  ;;  %v12645_v36 = vrot.slane %v7591_v30, 2  ;;  %v7611_v38 = vmul.f32 %v7570_v6, %v460_v26  ;;  %v7619_v44 = vmul.f32 %v7572_v7, %v470_v25 }
  0x9e   : > { %v12644_v39 = vrot.slane %v7597_v32, 1  ;;  %v12643_v40 = vrot.slane %v7600_v33, 2  ;;  %v12642_v41 = vrot.slane %v7603_v34, 1  ;;  %v7616_v42 = vpop.permute.xlu1 %479  ;;  %v475_v43 = vpop.permute.xlu0 %474 }
  0x9f   : > { %v868_v45 = vsel %vm860_vm0, %v866_v21, %v12646_v35  ;;  %v1113_v46 = vsel %vm1105_vm1, %v1111_v22, %v12645_v36  ;;  %v12641_v47 = vrot.slane %v7611_v38, 2  ;;  %v7629_v48 = vmul.f32 %v7568_v5, %v475_v43 }
  0xa0   : > { %v975_v49 = vadd.f32 %v868_v45, %v618_v17  ;;  %v1435_v50 = vsel %vm860_vm0, %v1433_v23, %v12644_v39  ;;  %v1679_v51 = vsel %vm1105_vm1, %v1677_v24, %v12643_v40  ;;  %v863_v52 = vsel %vm860_vm0, %v861_v27, %v12642_v41 }
  0xa1   : > { %v973_v53 = vadd.f32 %v863_v52, %v616_v19  ;;  %v1108_v54 = vsel %vm1105_vm1, %v1106_v28, %v12641_v47  ;;  %v7644_v55 = vmul.f32 %v7559_v1, %v475_v43  ;;  %v7647_v58 = vmul.f32 %v7570_v6, %v475_v43 }
  0xa2   : > { %v1220_v59 = vadd.f32 %v1113_v46, %v975_v49  ;;  %v1266_v62 = vmul.f32 %v7572_v7, %v475_v43  ;;  %v7656_v63 = vmul.f32 %v7561_v2, %v475_v43  ;;  %v7659_v0 = vmul.f32 %v7563_v3, %v475_v43  ;;  %v7661_v4 = vpop.permute.xlu1 %489  ;;  %v485_v8 = vpop.permute.xlu0 %484 }
  0xa3   : > { %v1218_v9 = vadd.f32 %v1108_v54, %v973_v53  ;;  %v1835_v13 = vmul.f32 %v7576_v12, %v475_v43  ;;  %v7671_v19 = vmul.f32 %v7581_v16, %v475_v43  ;;  %v7674_v21 = vmul.f32 %v7652_v60, %v475_v43 }
  0xa4   : > { %v7666_v14 = vadd.f32 %v1266_v62, %v1220_v59  ;;  %v7677_v22 = vmul.f32 %v7568_v5, %v485_v8  ;;  %v7680_v23 = vmul.f32 %v7559_v1, %v485_v8  ;;  %v7684_v25 = vmul.f32 %v7570_v6, %v485_v8 }
  0xa5   : > { %12859 = vst [vmem:[#allocation7_spill] sm:$0xff] %v7671_v19  ;;  %v1296_v20 = vadd.f32 %v1264_v18, %v1218_v9  ;;  %12860 = vst [vmem:[#allocation8_spill] sm:$0xff] %v7674_v21  ;;  %v7687_v26 = vmul.f32 %v7572_v7, %v485_v8  ;;  %v7690_v27 = vmul.f32 %v7561_v2, %v485_v8  ;;  %v12979_v21 = vrot.slane %v7588_v29, 1 }
  0xa6   : > { %v7692_v18 = vpop.permute.xlu1 %499  ;;  %v495_v28 = vpop.permute.xlu0 %494  ;;  %v7697_v49 = vmul.f32 %v7563_v3, %v485_v8  ;;  %v7702_v54 = vmul.f32 %v7576_v12, %v485_v8  ;;  %v7705_v59 = vmul.f32 %v7581_v16, %v485_v8  ;;  %v7709_v9 = vmul.f32 %v7652_v60, %v485_v8 }
  0xa7   : > { %12861 = vst [vmem:[#allocation9_spill] sm:$0xff] %v7687_v26  ;;  %12862 = vst [vmem:[#allocation10_spill] sm:$0xff] %v7692_v18  ;;  %v1545_v43 = vadd.f32 %v1435_v50, %v1296_v20  ;;  %v7712_v20 = vmul.f32 %v7568_v5, %v495_v28  ;;  %v7716_v61 = vmul.f32 %v7559_v1, %v495_v28 }
  0xa8   : > { %12863 = vst [vmem:[#allocation11_spill] sm:$0xff] %v7702_v54  ;;  %v7719_v45 = vmul.f32 %v7570_v6, %v495_v28  ;;  %v7722_v24 = vmul.f32 %v7572_v7, %v495_v28  ;;  %v7730_v15 = vmul.f32 %v7561_v2, %v495_v28  ;;  %v7733_v11 = vmul.f32 %v7563_v3, %v495_v28 }
  0xa9   : > { %v1789_v62 = vadd.f32 %v1679_v51, %v1545_v43  ;;  %12864 = vst [vmem:[#allocation12_spill] sm:$0xff] %v7712_v20  ;;  %12865 = vst [vmem:[#allocation13_spill] sm:$0xff] %v7716_v61  ;;  %v7738_v50 = vmul.f32 %v7576_v12, %v495_v28  ;;  %v7741_v53 = vmul.f32 %v7581_v16, %v495_v28 }
  0xaa   : > { %12866 = vst [vmem:[#allocation14_spill] sm:$0xff] %v7719_v45  ;;  %12867 = vst [vmem:[#allocation15_spill] sm:$0xff] %v7722_v24  ;;  %v7724_v51 = vpop.permute.xlu1 %509  ;;  %v505_v43 = vpop.permute.xlu0 %504  ;;  %v7746_v8 = vmul.f32 %v7652_v60, %v495_v28 }
  0xab   : > { %12868 = vst [vmem:[#allocation16_spill] sm:$0xff] %v7724_v51  ;;  %v7726_v17 = vadd.f32 %v1835_v13, %v1789_v62  ;;  %12870 = vst [vmem:[#allocation18_spill] sm:$0xff] %v7730_v15  ;;  %v7749_v52 = vmul.f32 %v7568_v5, %v505_v43  ;;  %v7753_v57 = vmul.f32 %v7559_v1, %v505_v43 }
  0xac   : > { %12871 = vst [vmem:[#allocation19_spill] sm:$0xff] %v7733_v11  ;;  %12872 = vst [vmem:[#allocation20_spill] sm:$0xff] %v7738_v50  ;;  %v7756_v46 = vmul.f32 %v7570_v6, %v505_v43  ;;  %v7759_v47 = vmul.f32 %v7572_v7, %v505_v43  ;;  %v7765_v41 = vmul.f32 %v7561_v2, %v505_v43 }
  0xad   : > { %12869 = vst [vmem:[#allocation17_spill] sm:$0xff] %v7726_v17  ;;  %12873 = vst [vmem:[#allocation21_spill] sm:$0xff] %v7741_v53  ;;  %v7768_v40 = vmul.f32 %v7563_v3, %v505_v43  ;;  %v7771_v10 = vmul.f32 %v7576_v12, %v505_v43  ;;  %v7776_v35 = vmul.f32 %v7581_v16, %v505_v43 }
  0xae   : > { %12874 = vst [vmem:[#allocation22_spill] sm:$0xff] %v7746_v8  ;;  %12875 = vst [vmem:[#allocation23_spill] sm:$0xff] %v7749_v52  ;;  %v7761_v13 = vpop.permute.xlu1 %519  ;;  %v515_v62 = vpop.permute.xlu0 %514  ;;  %v7779_v56 = vmul.f32 %v7652_v60, %v505_v43 }
  0xaf   : > { %12876 = vst [vmem:[#allocation24_spill] sm:$0xff] %v7753_v57  ;;  %12877 = vst [vmem:[#allocation25_spill] sm:$0xff] %v7756_v46  ;;  %v7784_v8 = vmul.f32 %v7568_v5, %v515_v62  ;;  %v7787_v53 = vmul.f32 %v7559_v1, %v515_v62  ;;  %v7795_v43 = vmul.f32 %v7572_v7, %v515_v62 }
  0xb0   : > { %12878 = vst [vmem:[#allocation26_spill] sm:$0xff] %v7759_v47  ;;  %12879 = vst [vmem:[#allocation27_spill] sm:$0xff] %v7761_v13  ;;  %v7804_v11 = vmul.f32 %v7563_v3, %v515_v62  ;;  %v7807_v39 = vmul.f32 %v7576_v12, %v515_v62  ;;  %v7811_v15 = vmul.f32 %v7581_v16, %v515_v62 }
  0xb1   : > { %12880 = vst [vmem:[#allocation28_spill] sm:$0xff] %v7765_v41  ;;  %12881 = vst [vmem:[#allocation29_spill] sm:$0xff] %v7768_v40 }
  0xb2   : > { %12882 = vst [vmem:[#allocation30_spill] sm:$0xff] %v7771_v10  ;;  %12883 = vst [vmem:[#allocation31_spill] sm:$0xff] %v7776_v35  ;;  %v7792_v10 = vmul.f32 %v7570_v6, %v515_v62  ;;  %v7797_v47 = vpop.permute.xlu1 %529  ;;  %v525_v28 = vpop.permute.xlu0 %524 }
  0xb3   : > { %12884 = vst [vmem:[#allocation32_spill] sm:$0xff] %v7779_v56  ;;  %12885 = vst [vmem:[#allocation33_spill] sm:$0xff] %v7784_v8  ;;  %v7801_v8 = vmul.f32 %v7561_v2, %v515_v62  ;;  %v7822_v50 = vmul.f32 %v7559_v1, %v525_v28  ;;  %v7833_v20 = vmul.f32 %v7561_v2, %v525_v28 }
  0xb4   : > { %12886 = vst [vmem:[#allocation34_spill] sm:$0xff] %v7787_v53  ;;  %12887 = vst [vmem:[#allocation35_spill] sm:$0xff] %v7792_v10  ;;  %v7843_v36 = vmul.f32 %v7576_v12, %v525_v28 }
  0xb5   : > { %12888 = vst [vmem:[#allocation36_spill] sm:$0xff] %v7795_v43  ;;  %12889 = vst [vmem:[#allocation37_spill] sm:$0xff] %v7797_v47  ;;  %v7814_v43 = vmul.f32 %v7652_v60, %v515_v62  ;;  %v7817_v47 = vmul.f32 %v7568_v5, %v525_v28  ;;  %v7830_v62 = vmul.f32 %v7572_v7, %v525_v28 }
  0xb6   : > { %12890 = vst [vmem:[#allocation38_spill] sm:$0xff] %v7801_v8  ;;  %12891 = vst [vmem:[#allocation39_spill] sm:$0xff] %v7804_v11  ;;  %v535_v13 = vpop.permute.xlu0 %534  ;;  %v7840_v8 = vmul.f32 %v7563_v3, %v525_v28 }
  0xb7   : > { %12892 = vst [vmem:[#allocation40_spill] sm:$0xff] %v7807_v39  ;;  %12893 = vst [vmem:[#allocation41_spill] sm:$0xff] %v7811_v15  ;;  %v7825_v39 = vmul.f32 %v7570_v6, %v525_v28  ;;  %v7850_v15 = vmul.f32 %v7652_v60, %v525_v28  ;;  %v7857_v11 = vmul.f32 %v7559_v1, %v535_v13 }
  0xb8   : > { %12894 = vst [vmem:[#allocation42_spill] sm:$0xff] %v7814_v43  ;;  %12895 = vst [vmem:[#allocation43_spill] sm:$0xff] %v7817_v47  ;;  %v7835_v47 = vpop.permute.xlu1 %539  ;;  %v7847_v43 = vmul.f32 %v7581_v16, %v525_v28  ;;  %v7868_v28 = vmul.f32 %v7561_v2, %v535_v13  ;;  %v7878_v45 = vmul.f32 %v7576_v12, %v535_v13 }
  0xb9   : > { %12896 = vst [vmem:[#allocation44_spill] sm:$0xff] %v7822_v50  ;;  %12897 = vst [vmem:[#allocation45_spill] sm:$0xff] %v7825_v39  ;;  %v7881_v10 = vmul.f32 %v7581_v16, %v535_v13 }
  0xba   : > { %12898 = vst [vmem:[#allocation46_spill] sm:$0xff] %v7830_v62  ;;  %12899 = vst [vmem:[#allocation47_spill] sm:$0xff] %v7833_v20  ;;  %v7860_v62 = vmul.f32 %v7570_v6, %v535_v13 }
  0xbb   : > { %12900 = vst [vmem:[#allocation48_spill] sm:$0xff] %v7835_v47  ;;  %12901 = vst [vmem:[#allocation49_spill] sm:$0xff] %v7840_v8  ;;  %v7853_v47 = vmul.f32 %v7568_v5, %v535_v13  ;;  %v545_v8 = vpop.permute.xlu0 %544 }
  0xbc   : > { %12902 = vst [vmem:[#allocation50_spill] sm:$0xff] %v7843_v36  ;;  %12903 = vst [vmem:[#allocation51_spill] sm:$0xff] %v7847_v43  ;;  %v7863_v36 = vmul.f32 %v7572_v7, %v535_v13  ;;  %v7873_v53 = vpop.permute.xlu1 %549  ;;  %v7893_v50 = vmul.f32 %v7559_v1, %v545_v8  ;;  %v7919_v20 = vmul.f32 %v7652_v60, %v545_v8 }
  0xbd   : > { %12904 = vst [vmem:[#allocation52_spill] sm:$0xff] %v7850_v15  ;;  %12905 = vst [vmem:[#allocation53_spill] sm:$0xff] %v7853_v47  ;;  %v7871_v47 = vmul.f32 %v7563_v3, %v535_v13  ;;  %v7886_v15 = vmul.f32 %v7652_v60, %v535_v13  ;;  %v7906_v13 = vmul.f32 %v7563_v3, %v545_v8 }
  0xbe   : > { %12906 = vst [vmem:[#allocation54_spill] sm:$0xff] %v7857_v11  ;;  %12907 = vst [vmem:[#allocation55_spill] sm:$0xff] %v7860_v62  ;;  %v7899_v62 = vmul.f32 %v7572_v7, %v545_v8 }
  0xbf   : > { %12908 = vst [vmem:[#allocation56_spill] sm:$0xff] %v7863_v36  ;;  %12909 = vst [vmem:[#allocation57_spill] sm:$0xff] %v7868_v28  ;;  %v7903_v36 = vmul.f32 %v7561_v2, %v545_v8 }
  0xc0   : > { %12910 = vst [vmem:[#allocation58_spill] sm:$0xff] %v7871_v47  ;;  %12911 = vst [vmem:[#allocation59_spill] sm:$0xff] %v7873_v53  ;;  %v7889_v53 = vmul.f32 %v7568_v5, %v545_v8  ;;  %v7909_v47 = vmul.f32 %v7576_v12, %v545_v8  ;;  %v7911_v39 = vpop.permute.xlu1 %559 }
  0xc1   : > { %12912 = vst [vmem:[#allocation60_spill] sm:$0xff] %v7878_v45  ;;  %12913 = vst [vmem:[#allocation61_spill] sm:$0xff] %v7881_v10  ;;  %v7896_v45 = vmul.f32 %v7570_v6, %v545_v8  ;;  %v555_v10 = vpop.permute.xlu0 %554 }
  0xc2   : > { %12914 = vst [vmem:[#allocation62_spill] sm:$0xff] %v7886_v15  ;;  %12915 = vst [vmem:[#allocation63_spill] sm:$0xff] %v7889_v53  ;;  %v7924_v43 = vmul.f32 %v7568_v5, %v555_v10  ;;  %v7939_v53 = vmul.f32 %v7561_v2, %v555_v10 }
  0xc3   : > { %12916 = vst [vmem:[#allocation64_spill] sm:$0xff] %v7893_v50  ;;  %12917 = vst [vmem:[#allocation65_spill] sm:$0xff] %v7896_v45 }
  0xc4   : > { %12918 = vst [vmem:[#allocation66_spill] sm:$0xff] %v7899_v62  ;;  %12919 = vst [vmem:[#allocation67_spill] sm:$0xff] %v7903_v36  ;;  %v7916_v62 = vmul.f32 %v7581_v16, %v545_v8  ;;  %v7935_v8 = vmul.f32 %v7572_v7, %v555_v10  ;;  %v7947_v28 = vpop.permute.xlu1 %569 }
  0xc5   : > { %12920 = vst [vmem:[#allocation68_spill] sm:$0xff] %v7906_v13  ;;  %12921 = vst [vmem:[#allocation69_spill] sm:$0xff] %v7909_v47  ;;  %v7932_v47 = vmul.f32 %v7570_v6, %v555_v10  ;;  %v7945_v13 = vmul.f32 %v7576_v12, %v555_v10  ;;  %v565_v11 = vpop.permute.xlu0 %564 }
  0xc6   : > { %12922 = vst [vmem:[#allocation70_spill] sm:$0xff] %v7911_v39  ;;  %12923 = vst [vmem:[#allocation71_spill] sm:$0xff] %v7916_v62  ;;  %v7927_v39 = vmul.f32 %v7559_v1, %v555_v10  ;;  %v7951_v62 = vmul.f32 %v7581_v16, %v555_v10  ;;  %v7957_v15 = vmul.f32 %v7568_v5, %v565_v11 }
  0xc7   : > { %12924 = vst [vmem:[#allocation72_spill] sm:$0xff] %v7919_v20  ;;  %12925 = vst [vmem:[#allocation73_spill] sm:$0xff] %v7924_v43  ;;  %v7942_v43 = vmul.f32 %v7563_v3, %v555_v10  ;;  %v7973_v45 = vmul.f32 %v7561_v2, %v565_v11 }
  0xc8   : > { %12926 = vst [vmem:[#allocation74_spill] sm:$0xff] %v7927_v39  ;;  %12927 = vst [vmem:[#allocation75_spill] sm:$0xff] %v7932_v47 }
  0xc9   : > { %12928 = vst [vmem:[#allocation76_spill] sm:$0xff] %v7935_v8  ;;  %12929 = vst [vmem:[#allocation77_spill] sm:$0xff] %v7939_v53  ;;  %v7954_v8 = vmul.f32 %v7652_v60, %v555_v10  ;;  %v7970_v10 = vmul.f32 %v7572_v7, %v565_v11  ;;  %v7981_v53 = vmul.f32 %v7576_v12, %v565_v11  ;;  %v575_v20 = vpop.permute.xlu0 %574 }
  0xca   : > { %12930 = vst [vmem:[#allocation78_spill] sm:$0xff] %v7942_v43  ;;  %12931 = vst [vmem:[#allocation79_spill] sm:$0xff] %v7945_v13  ;;  %v7962_v13 = vmul.f32 %v7559_v1, %v565_v11  ;;  %v7978_v43 = vmul.f32 %v7563_v3, %v565_v11  ;;  %v7993_v39 = vmul.f32 %v7568_v5, %v575_v20 }
  0xcb   : > { %12932 = vst [vmem:[#allocation80_spill] sm:$0xff] %v7947_v28  ;;  %12933 = vst [vmem:[#allocation81_spill] sm:$0xff] %v7951_v62  ;;  %v7965_v28 = vmul.f32 %v7570_v6, %v565_v11  ;;  %v7990_v62 = vmul.f32 %v7652_v60, %v565_v11 }
  0xcc   : > { %12934 = vst [vmem:[#allocation82_spill] sm:$0xff] %v7954_v8  ;;  %12935 = vst [vmem:[#allocation83_spill] sm:$0xff] %v7957_v15  ;;  %v7983_v15 = vpop.permute.xlu1 %579  ;;  %v7987_v8 = vmul.f32 %v7581_v16, %v565_v11  ;;  %v8008_v11 = vmul.f32 %v7561_v2, %v575_v20 }
  0xcd   : > { %12936 = vst [vmem:[#allocation84_spill] sm:$0xff] %v7962_v13  ;;  %12937 = vst [vmem:[#allocation85_spill] sm:$0xff] %v7965_v28  ;;  %v8016_v28 = vmul.f32 %v7576_v12, %v575_v20  ;;  %v8019_v13 = vmul.f32 %v7581_v16, %v575_v20  ;;  %v585_v47 = vpop.permute.xlu0 %584 }
  0xce   : > { %12938 = vst [vmem:[#allocation86_spill] sm:$0xff] %v7970_v10  ;;  %12939 = vst [vmem:[#allocation87_spill] sm:$0xff] %v7973_v45  ;;  %v7997_v10 = vmul.f32 %v7559_v1, %v575_v20  ;;  %v8029_v36 = vmul.f32 %v7568_v5, %v585_v47 }
  0xcf   : > { %12940 = vst [vmem:[#allocation88_spill] sm:$0xff] %v7978_v43  ;;  %12941 = vst [vmem:[#allocation89_spill] sm:$0xff] %v7981_v53  ;;  %v8000_v53 = vmul.f32 %v7570_v6, %v575_v20 }
  0xd0   : > { %12942 = vst [vmem:[#allocation90_spill] sm:$0xff] %v7983_v15  ;;  %12943 = vst [vmem:[#allocation91_spill] sm:$0xff] %v7987_v8  ;;  %v8003_v15 = vmul.f32 %v7572_v7, %v575_v20  ;;  %v8026_v8 = vmul.f32 %v7652_v60, %v575_v20 }
  0xd1   : > { %12944 = vst [vmem:[#allocation92_spill] sm:$0xff] %v7990_v62  ;;  %12945 = vst [vmem:[#allocation93_spill] sm:$0xff] %v7993_v39  ;;  %v8011_v39 = vmul.f32 %v7563_v3, %v575_v20  ;;  %v8043_v62 = vmul.f32 %v7561_v2, %v585_v47  ;;  %v8046_v20 = vmul.f32 %v7563_v3, %v585_v47 }
  0xd2   : > { %12946 = vst [vmem:[#allocation94_spill] sm:$0xff] %v7997_v10  ;;  %12947 = vst [vmem:[#allocation95_spill] sm:$0xff] %v8000_v53  ;;  %v8036_v53 = vmul.f32 %v7570_v6, %v585_v47  ;;  %v8039_v10 = vmul.f32 %v7572_v7, %v585_v47 }
  0xd3   : > { %12948 = vst [vmem:[#allocation96_spill] sm:$0xff] %v8003_v15  ;;  %12949 = vst [vmem:[#allocation97_spill] sm:$0xff] %v8008_v11  ;;  %v8021_v15 = vpop.permute.xlu1 %589  ;;  %v8054_v11 = vmul.f32 %v7581_v16, %v585_v47 }
  0xd4   : > { %12950 = vst [vmem:[#allocation98_spill] sm:$0xff] %v8011_v39  ;;  %12951 = vst [vmem:[#allocation99_spill] sm:$0xff] %v8016_v28  ;;  %v8033_v28 = vmul.f32 %v7559_v1, %v585_v47  ;;  %v8049_v39 = vmul.f32 %v7576_v12, %v585_v47 }
  0xd5   : > { %12952 = vst [vmem:[#allocation100_spill] sm:$0xff] %v8019_v13  ;;  %12953 = vst [vmem:[#allocation101_spill] sm:$0xff] %v8021_v15 }
  0xd6   : > { %12954 = vst [vmem:[#allocation102_spill] sm:$0xff] %v8026_v8  ;;  %12955 = vst [vmem:[#allocation103_spill] sm:$0xff] %v8029_v36  ;;  %v8061_v8 = vpop.permute.xlu0 %594 }
  0xd7   : > { %12956 = vst [vmem:[#allocation104_spill] sm:$0xff] %v8033_v28  ;;  %12957 = vst [vmem:[#allocation105_spill] sm:$0xff] %v8036_v53  ;;  %v8059_v45 = vpop.permute.xlu1 %599  ;;  %v8071_v13 = vmul.f32 %v7570_v6, %v8061_v8  ;;  %v8081_v36 = vmul.f32 %v7561_v2, %v8061_v8  ;;  %v8091_v43 = vmul.f32 %v7576_v12, %v8061_v8 }
  0xd8   : > { %12958 = vst [vmem:[#allocation106_spill] sm:$0xff] %v8039_v10  ;;  %12959 = vst [vmem:[#allocation107_spill] sm:$0xff] %v8043_v62  ;;  %v8057_v10 = vmul.f32 %v7652_v60, %v585_v47  ;;  %v8087_v62 = vmul.f32 %v7563_v3, %v8061_v8  ;;  %v774_v53 = vmul.f32 %v7559_v1, %v7661_v4 }
  0xd9   : > { %12960 = vst [vmem:[#allocation108_spill] sm:$0xff] %v8046_v20  ;;  %12961 = vst [vmem:[#allocation109_spill] sm:$0xff] %v8049_v39  ;;  %v8067_v39 = vmul.f32 %v7559_v1, %v8061_v8  ;;  %v8141_v28 = vmul.f32 %v7581_v16, %v7661_v4 }
  0xda   : > { %12962 = vst [vmem:[#allocation110_spill] sm:$0xff] %v8054_v11  ;;  %12963 = vst [vmem:[#allocation111_spill] sm:$0xff] %v8057_v10  ;;  %v8100_v10 = vmul.f32 %v7652_v60, %v8061_v8  ;;  %v8104_v20 = vpop.permute.xlu0 %604  ;;  %v8125_v11 = vmul.f32 %v7576_v12, %v7616_v42  ;;  %v877_v18 = vrot.slane %v774_v53, 1 }
  0xdb   : > { %12964 = vst [vmem:[#allocation112_spill] sm:$0xff] %v8059_v45  ;;  %12965 = vst [vmem:[#allocation113_spill] sm:$0xff] %v8061_v8  ;;  %v8077_v45 = vmul.f32 %v7572_v7, %v8061_v8  ;;  %v8102_v15 = vpop.permute.xlu1 %609  ;;  %v8111_v47 = vmul.f32 %v7576_v12, %v8104_v20 }
  0xdc   : > { %12966 = vst [vmem:[#allocation114_spill] sm:$0xff] %v8067_v39  ;;  %12967 = vst [vmem:[#allocation115_spill] sm:$0xff] %v8071_v13  ;;  %v1267_v13 = vmul.f32 %v7572_v7, %v7616_v42  ;;  %v623_v39 = vmul.f32 %v7568_v5, %v7661_v4 }
  0xdd   : > { %12968 = vst [vmem:[#allocation116_spill] sm:$0xff] %v8077_v45  ;;  %12969 = vst [vmem:[#allocation117_spill] sm:$0xff] %v8081_v36  ;;  %v8096_v45 = vmul.f32 %v7581_v16, %v8061_v8  ;;  %v8115_v36 = vmul.f32 %v7581_v16, %v8104_v20  ;;  %v8119_v8 = vmul.f32 %v7652_v60, %v8104_v20 }
  0xde   : > { %12970 = vst [vmem:[#allocation118_spill] sm:$0xff] %v8087_v62  ;;  %12971 = vst [vmem:[#allocation119_spill] sm:$0xff] %v8091_v43  ;;  %v8145_v62 = vmul.f32 %v7652_v60, %v7661_v4 }
  0xdf   : > { %12972 = vst [vmem:[#allocation120_spill] sm:$0xff] %v8096_v45  ;;  %12973 = vst [vmem:[#allocation121_spill] sm:$0xff] %v8100_v10  ;;  %v688_v43 = vpop.permute.xlu1 %687  ;;  %v683_v45 = vpop.permute.xlu0 %682  ;;  %v1588_v10 = vmul.f32 %v7563_v3, %v7661_v4 }
  0xe0   : > { %12974 = vst [vmem:[#allocation122_spill] sm:$0xff] %v8102_v15  ;;  %12975 = vst [vmem:[#allocation123_spill] sm:$0xff] %v8104_v20  ;;  %v1019_v20 = vmul.f32 %v7570_v6, %v7661_v4  ;;  %v1344_v15 = vmul.f32 %v7561_v2, %v7661_v4  ;;  %v1583_v50 = vmul.f32 %v7563_v3, %v688_v43 }
  0xe1   : > { %12976 = vst [vmem:[#allocation124_spill] sm:$0xff] %v8111_v47  ;;  %12977 = vst [vmem:[#allocation125_spill] sm:$0xff] %v8115_v36  ;;  %v769_v47 = vmul.f32 %v7559_v1, %v688_v43  ;;  %v1339_v36 = vmul.f32 %v7561_v2, %v688_v43  ;;  %v766_v61 = vmul.f32 %v7559_v1, %v683_v45  ;;  %v1688_v54 = vrot.slane %v1588_v10, 2 }
  0xe2   : > { %12978 = vst [vmem:[#allocation126_spill] sm:$0xff] %v8119_v8  ;;  %v1014_v8 = vmul.f32 %v7570_v6, %v688_v43  ;;  %v1011_v24 = vmul.f32 %v7570_v6, %v683_v45  ;;  %v1122_v56 = vrot.slane %v1019_v20, 2  ;;  %v1680_v46 = vrot.slane %v1583_v50, 2 }
  0xe3   : > { %v869_v35 = vrot.slane %v769_v47, 1  ;;  %v1436_v41 = vrot.slane %v1339_v36, 1  ;;  %v864_v52 = vrot.slane %v766_v61, 1  ;;  %v1444_v51 = vrot.slane %v1344_v15, 1  ;;  %v698_v26 = vpop.permute.xlu1 %697 }
  0xe4   : > { %v1114_v40 = vrot.slane %v1014_v8, 2  ;;  %v1109_v57 = vrot.slane %v1011_v24, 2  ;;  %v12980_v43 = vrot.slane %v7591_v30, 2  ;;  %v12981_v45 = vrot.slane %v7597_v32, 1 }
  0xe5   : > { %v870_v17 = vsel %vm860_vm0, %v12979_v21, %v869_v35  ;;  %v12982_v36 = vrot.slane %v7600_v33, 2  ;;  %v12983_v24 = vrot.slane %v7603_v34, 1  ;;  %v12984_v35 = vrot.slane %v7611_v38, 2 }
  0xe6   : > { %v1115_v19 = vsel %vm1105_vm1, %v12980_v43, %v1114_v40  ;;  %v1437_v53 = vsel %vm860_vm0, %v12981_v45, %v1436_v41  ;;  %v976_v15 = vadd.f32 %v870_v17, %v7594_v31  ;;  %v2010_v40 = vrot.slane %v8141_v28, 1 }
  0xe7   : > { %v1681_v61 = vsel %vm1105_vm1, %v12982_v36, %v1680_v46  ;;  %v865_v29 = vsel %vm860_vm0, %v12983_v24, %v864_v52  ;;  %v1110_v30 = vsel %vm1105_vm1, %v12984_v35, %v1109_v57  ;;  %v2254_v41 = vrot.slane %v8145_v62, 2 }
  0xe8   : > { %v974_v32 = vadd.f32 %v865_v29, %v7608_v37  ;;  %v775_v33 = vmul.f32 %v7559_v1, %v698_v26  ;;  %v12985_v21 = vrot.slane %v7680_v23, 1  ;;  %v1221_v17 = vadd.f32 %v1115_v19, %v976_v15 }
  0xe9   : > { %v1020_v46 = vmul.f32 %v7570_v6, %v698_v26  ;;  %v12986_v38 = vrot.slane %v7684_v25, 2  ;;  %v1345_v37 = vmul.f32 %v7561_v2, %v698_v26  ;;  %v12987_v62 = vrot.slane %v7690_v27, 1 }
  0xea   : > { %v878_v31 = vsel %vm860_vm0, %v12985_v21, %v877_v18  ;;  %v1219_v52 = vadd.f32 %v1110_v30, %v974_v32  ;;  %v879_v50 = vrot.slane %v775_v33, 1  ;;  %v8190_v23 = vadd.f32 %v1267_v13, %v1221_v17 }
  0xeb   : > { %v979_v34 = vadd.f32 %v878_v31, %v7677_v22  ;;  %v1123_v57 = vsel %vm1105_vm1, %v12986_v38, %v1122_v56  ;;  %v8188_v28 = vsel %vm860_vm0, %v12987_v62, %v1444_v51  ;;  %v1124_v19 = vrot.slane %v1020_v46, 2 }
  0xec   : > { %v1589_v22 = vmul.f32 %v7563_v3, %v698_v26  ;;  %v1297_v25 = vadd.f32 %v7619_v44, %v1219_v52  ;;  %v880_v10 = vsel %vm860_vm0, %v877_v18, %v879_v50  ;;  %v1446_v20 = vrot.slane %v1345_v37, 1 }
  0xed   : > { %v8192_v8 = vadd.f32 %v1123_v57, %v979_v34  ;;  %v12988_v47 = vrot.slane %v7697_v49, 2  ;;  %v980_v27 = vadd.f32 %v880_v10, %v623_v39  ;;  %v1125_v45 = vsel %vm1105_vm1, %v1122_v56, %v1124_v19 }
  0xee   : > { %v1690_v13 = vrot.slane %v1589_v22, 2  ;;  %v1913_v36 = vmul.f32 %v7581_v16, %v698_v26  ;;  %v1546_v15 = vadd.f32 %v1437_v53, %v1297_v25  ;;  %v8205_v24 = vsel %vm860_vm0, %v1444_v51, %v1446_v20 }
  0xef   : > { %v8200_v43 = vsel %vm1105_vm1, %v12988_v47, %v1688_v54  ;;  %v12989_v44 = vrot.slane %v7705_v59, 1  ;;  %v2157_v29 = vmul.f32 %v7652_v60, %v698_v26  ;;  %v8211_v49 = vadd.f32 %v1125_v45, %v980_v27 }
  0xf0   : > { %v8214_v35 = vsel %vm1105_vm1, %v1688_v54, %v1690_v13  ;;  %v2012_v39 = vrot.slane %v1913_v36, 1  ;;  %v12990_v56 = vrot.slane %v7709_v9, 2  ;;  %v1790_v53 = vadd.f32 %v1681_v61, %v1546_v15  ;;  %v693_v61 = vpop.permute.xlu0 %692  ;;  %v12995_v13 = vld [vmem:[#allocation7_spill] sm:$0xff] }
  0xf1   : > { %v2011_v18 = vsel %vm860_vm0, %v12989_v44, %v2010_v40  ;;  %v2256_v32 = vrot.slane %v2157_v29, 2  ;;  %v621_v51 = vmul.f32 %v7568_v5, %v7616_v42  ;;  %v771_v59 = vmul.f32 %v7559_v1, %v7616_v42  ;;  %v12997_v44 = vld [vmem:[#allocation17_spill] sm:$0xff] }
  0xf2   : > { %v2255_v30 = vsel %vm1105_vm1, %v12990_v56, %v2254_v41  ;;  %v8224_v26 = vsel %vm860_vm0, %v2010_v40, %v2012_v39  ;;  %v1016_v54 = vmul.f32 %v7570_v6, %v7616_v42  ;;  %v1269_v33 = vmul.f32 %v7572_v7, %v7661_v4  ;;  %v12998_v39 = vld [vmem:[#allocation8_spill] sm:$0xff] }
  0xf3   : > { %v1341_v9 = vmul.f32 %v7561_v2, %v7616_v42  ;;  %v1868_v21 = vadd.f32 %v8125_v11, %v1790_v53  ;;  %v8234_v31 = vsel %vm1105_vm1, %v2254_v41, %v2256_v32  ;;  %v872_v17 = vrot.slane %v771_v59, 1  ;;  %v8274_v53 = vld [vmem:[%s12632_s3] ss:$0 sm:$0xff]  ;;  %v13000_v32 = vld [vmem:[#allocation9_spill] sm:$0xff] }
  0xf4   : > { %v1585_v40 = vmul.f32 %v7563_v3, %v7616_v42  ;;  %v1117_v34 = vrot.slane %v1016_v54, 2  ;;  %v8240_v38 = vmul.f32 %v7576_v12, %v7661_v4  ;;  %v1909_v57 = vmul.f32 %v7581_v16, %v7616_v42 }
  0xf5   : > { %v1439_v46 = vrot.slane %v1341_v9, 1  ;;  %v12991_v52 = vrot.slane %v7644_v55, 1  ;;  %v2153_v41 = vmul.f32 %v7652_v60, %v7616_v42  ;;  %v772_v37 = vmul.f32 %v7559_v1, %v693_v61 }
  0xf6   : > { %v1683_v50 = vrot.slane %v1585_v40, 2  ;;  %v12992_v19 = vrot.slane %v7647_v58, 2  ;;  %v12993_v22 = vrot.slane %v7656_v63, 1  ;;  %v2005_v55 = vrot.slane %v1909_v57, 1  ;;  %v13001_v57 = vld [vmem:[#allocation11_spill] sm:$0xff] }
  0xf7   : > { %v873_v11 = vsel %vm860_vm0, %v12991_v52, %v872_v17  ;;  %v12994_v20 = vrot.slane %v7659_v0, 2  ;;  %v2249_v47 = vrot.slane %v2153_v41, 2  ;;  %v874_v27 = vrot.slane %v772_v37, 1 }
  0xf8   : > { %v977_v62 = vadd.f32 %v873_v11, %v7629_v48  ;;  %v1118_v4 = vsel %vm1105_vm1, %v12992_v19, %v1117_v34  ;;  %v1440_v25 = vsel %vm860_vm0, %v12993_v22, %v1439_v46  ;;  %v12996_v48 = vrot.slane %v12995_v13, 1 }
  0xf9   : > { %v1547_v10 = vadd.f32 %v1440_v25, %v7666_v14  ;;  %v1684_v42 = vsel %vm1105_vm1, %v12994_v20, %v1683_v50  ;;  %v1017_v36 = vmul.f32 %v7570_v6, %v693_v61  ;;  %v1342_v63 = vmul.f32 %v7561_v2, %v693_v61 }
  0xfa   : > { %v1222_v45 = vadd.f32 %v1118_v4, %v977_v62  ;;  %v2006_v58 = vsel %vm860_vm0, %v12996_v48, %v2005_v55  ;;  %v12999_v14 = vrot.slane %v12998_v39, 2  ;;  %v875_v56 = vsel %vm860_vm0, %v872_v17, %v874_v27 }
  0xfb   : > { %v1791_v15 = vadd.f32 %v1684_v42, %v1547_v10  ;;  %v2116_v29 = vadd.f32 %v2006_v58, %v12997_v44  ;;  %v978_v54 = vadd.f32 %v875_v56, %v621_v51  ;;  %v1119_v9 = vrot.slane %v1017_v36, 2 }
  0xfc   : > { %v2250_v0 = vsel %vm1105_vm1, %v12999_v14, %v2249_v47  ;;  %v1300_v59 = vadd.f32 %v13000_v32, %v1222_v45  ;;  %v1441_v40 = vrot.slane %v1342_v63, 1  ;;  %v1586_v41 = vmul.f32 %v7563_v3, %v693_v61  ;;  %v13002_v45 = vld [vmem:[#allocation16_spill] sm:$0xff] }
  0xfd   : > { %v1869_v52 = vadd.f32 %v13001_v57, %v1791_v15  ;;  %v2360_v11 = vadd.f32 %v2250_v0, %v2116_v29  ;;  %v1910_v37 = vmul.f32 %v7581_v16, %v693_v61  ;;  %v1120_v17 = vsel %vm1105_vm1, %v1117_v34, %v1119_v9  ;;  %v708_v15 = vpop.permute.xlu1 %707 }
  0xfe   : > { %v8281_v62 = vadd.f32 %v8188_v28, %v1300_v59  ;;  %v1442_v19 = vsel %vm860_vm0, %v1439_v46, %v1441_v40  ;;  %v2154_v4 = vmul.f32 %v7652_v60, %v693_v61  ;;  %v1223_v25 = vadd.f32 %v1120_v17, %v978_v54  ;;  %v13003_v40 = vld [vmem:[#allocation24_spill] sm:$0xff] }
  0xff   : > { %v2118_v22 = vadd.f32 %v2011_v18, %v1869_v52  ;;  %v2398_v51 = vadd.f32 %v8274_v53, %v2360_v11  ;;  %v1548_v10 = vadd.f32 %v1442_v19, %v8190_v23  ;;  %v1685_v20 = vrot.slane %v1586_v41, 2  ;;  %v13005_v41 = vld [vmem:[#allocation23_spill] sm:$0xff] }
 0x100   : > { %v2007_v42 = vrot.slane %v1910_v37, 1  ;;  %v2251_v27 = vrot.slane %v2154_v4, 2  ;;  %v627_v13 = vmul.f32 %v7568_v5, %v13002_v45  ;;  %v1301_v58 = vadd.f32 %v1269_v33, %v1223_v25 }
 0x101   : > { %v2362_v28 = vadd.f32 %v2255_v30, %v2118_v22  ;;  %v2430_v48 = vmax.f32 %v2398_v51, 0.0  ;;  %v780_v34 = vmul.f32 %v7559_v1, %v13002_v45  ;;  %v1686_v61 = vsel %vm1105_vm1, %v1683_v50, %v1685_v20  ;;  %v13006_v22 = vld [vmem:[#allocation25_spill] sm:$0xff] }
 0x102   : > { %v2008_v18 = vsel %vm860_vm0, %v2005_v55, %v2007_v42  ;;  %v2252_v46 = vsel %vm1105_vm1, %v2249_v47, %v2251_v27  ;;  %v1025_v23 = vmul.f32 %v7570_v6, %v13002_v45  ;;  %v8300_v30 = vadd.f32 %v8205_v24, %v1301_v58  ;;  %v13008_v27 = vld [vmem:[#allocation28_spill] sm:$0xff] }
 0x103   : > { %v2400_v36 = vadd.f32 %v8274_v53, %v2362_v28  ;;  %2463 = vst.msk [vmem:[#allocation2 + $0x19] sm:$0xff] %vm403_vm2, %v2430_v48  ;;  %v1792_v33 = vadd.f32 %v1686_v61, %v1548_v10  ;;  %v2117_v63 = vadd.f32 %v2008_v18, %v1868_v21  ;;  %v887_v44 = vrot.slane %v780_v34, 1 }
 0x104   : > { %v1132_v29 = vrot.slane %v1025_v23, 2  ;;  %v1350_v50 = vmul.f32 %v7561_v2, %v13002_v45  ;;  %v1594_v55 = vmul.f32 %v7563_v3, %v13002_v45  ;;  %v1918_v0 = vmul.f32 %v7581_v16, %v13002_v45 }
 0x105   : > { %v2432_v47 = vmax.f32 %v2400_v36, 0.0  ;;  %v1870_v39 = vadd.f32 %v8240_v38, %v1792_v33  ;;  %v2361_v14 = vadd.f32 %v2252_v46, %v2117_v63  ;;  %v2162_v21 = vmul.f32 %v7652_v60, %v13002_v45  ;;  %v13010_v46 = vld [vmem:[#allocation29_spill] sm:$0xff]  ;;  %v13012_v63 = vld [vmem:[#allocation31_spill] sm:$0xff] }
 0x106   : > { %v1454_v24 = vrot.slane %v1350_v50, 1  ;;  %v1698_v56 = vrot.slane %v1594_v55, 2  ;;  %v781_v32 = vmul.f32 %v7559_v1, %v708_v15  ;;  %v2020_v9 = vrot.slane %v1918_v0, 1  ;;  %v13014_v0 = vld [vmem:[#allocation32_spill] sm:$0xff] }
 0x107   : > { %2465 = vst.msk [vmem:[#allocation2 + $0x31] sm:$0xff] %vm403_vm2, %v2432_v47  ;;  %v2119_v59 = vadd.f32 %v8224_v26, %v1870_v39  ;;  %v2399_v54 = vadd.f32 %v8274_v53, %v2361_v14  ;;  %v13004_v38 = vrot.slane %v13003_v40, 1  ;;  %v2264_v52 = vrot.slane %v2162_v21, 2 }
 0x108   : > { %v889_v11 = vrot.slane %v781_v32, 1  ;;  %v1026_v17 = vmul.f32 %v7570_v6, %v708_v15  ;;  %v13007_v51 = vrot.slane %v13006_v22, 2  ;;  %v1351_v25 = vmul.f32 %v7561_v2, %v708_v15 }
 0x109   : > { %v888_v57 = vsel %vm860_vm0, %v13004_v38, %v887_v44  ;;  %v2363_v19 = vadd.f32 %v8234_v31, %v2119_v59  ;;  %v2431_v4 = vmax.f32 %v2399_v54, 0.0  ;;  %v13009_v28 = vrot.slane %v13008_v27, 1  ;;  %v13016_v59 = vld [vmem:[#allocation10_spill] sm:$0xff] }
 0x10a   : > { %v983_v37 = vadd.f32 %v888_v57, %v13005_v41  ;;  %v1133_v26 = vsel %vm1105_vm1, %v13007_v51, %v1132_v29  ;;  %v890_v10 = vsel %vm860_vm0, %v887_v44, %v889_v11  ;;  %v1134_v20 = vrot.slane %v1026_v17, 2 }
 0x10b   : > { %v8331_v48 = vsel %vm860_vm0, %v13009_v28, %v1454_v24  ;;  %v2401_v58 = vadd.f32 %v8274_v53, %v2363_v19  ;;  %2464 = vst.msk [vmem:[#allocation2 + $0x21] sm:$0xff] %vm403_vm2, %v2431_v4  ;;  %v984_v31 = vadd.f32 %v890_v10, %v627_v13  ;;  %v1456_v34 = vrot.slane %v1351_v25, 1 }
 0x10c   : > { %v8326_v42 = vadd.f32 %v1133_v26, %v983_v37  ;;  %v1595_v61 = vmul.f32 %v7563_v3, %v708_v15  ;;  %v1135_v18 = vsel %vm1105_vm1, %v1132_v29, %v1134_v20  ;;  %v13011_v23 = vrot.slane %v13010_v46, 2  ;;  %v13017_v37 = vld [vmem:[#allocation15_spill] sm:$0xff] }
 0x10d   : > { %v1919_v33 = vmul.f32 %v7581_v16, %v708_v15  ;;  %v13013_v44 = vrot.slane %v13012_v63, 1  ;;  %v2433_v55 = vmax.f32 %v2401_v58, 0.0  ;;  %v8348_v47 = vadd.f32 %v1135_v18, %v984_v31  ;;  %v703_v31 = vpop.permute.xlu0 %702 }
 0x10e   : > { %v8340_v36 = vsel %vm1105_vm1, %v13011_v23, %v1698_v56  ;;  %v8351_v13 = vsel %vm860_vm0, %v1454_v24, %v1456_v34  ;;  %v1700_v39 = vrot.slane %v1595_v61, 2  ;;  %v2163_v14 = vmul.f32 %v7652_v60, %v708_v15  ;;  %v13022_v34 = vld [vmem:[#allocation12_spill] sm:$0xff] }
 0x10f   : > { %v8346_v50 = vsel %vm860_vm0, %v13013_v44, %v2020_v9  ;;  %v2022_v29 = vrot.slane %v1919_v33, 1  ;;  %v13015_v21 = vrot.slane %v13014_v0, 2  ;;  %v625_v54 = vmul.f32 %v7568_v5, %v13016_v59  ;;  %2466 = vst.msk [vmem:[#allocation2 + $0x39] sm:$0xff] %vm403_vm2, %v2433_v55 }
 0x110   : > { %v8363_v40 = vsel %vm1105_vm1, %v1698_v56, %v1700_v39  ;;  %v777_v24 = vmul.f32 %v7559_v1, %v13016_v59  ;;  %v1022_v38 = vmul.f32 %v7570_v6, %v13016_v59  ;;  %v1271_v15 = vmul.f32 %v7572_v7, %v13016_v59 }
 0x111   : > { %v8357_v32 = vsel %vm1105_vm1, %v13015_v21, %v2264_v52  ;;  %v8372_v57 = vsel %vm860_vm0, %v2020_v9, %v2022_v29  ;;  %v2266_v11 = vrot.slane %v2163_v14, 2  ;;  %v1273_v41 = vmul.f32 %v7572_v7, %v13002_v45  ;;  %v13026_v29 = vld [vmem:[#allocation19_spill] sm:$0xff] }
 0x112   : > { %v1302_v56 = vadd.f32 %v13017_v37, %v8192_v8  ;;  %v882_v17 = vrot.slane %v777_v24, 1  ;;  %v1127_v19 = vrot.slane %v1022_v38, 2  ;;  %v1303_v4 = vadd.f32 %v1271_v15, %v8211_v49  ;;  %v13018_v8 = vld [vmem:[#allocation13_spill] sm:$0xff]  ;;  %v13020_v49 = vld [vmem:[#allocation14_spill] sm:$0xff] }
 0x113   : > { %v1347_v22 = vmul.f32 %v7561_v2, %v13016_v59  ;;  %v8382_v51 = vsel %vm1105_vm1, %v2264_v52, %v2266_v11  ;;  %v1591_v9 = vmul.f32 %v7563_v3, %v13016_v59  ;;  %v1793_v26 = vadd.f32 %v8200_v43, %v8281_v62  ;;  %v13028_v11 = vld [vmem:[#allocation26_spill] sm:$0xff] }
 0x114   : > { %v1794_v25 = vadd.f32 %v8214_v35, %v8300_v30  ;;  %v13019_v10 = vrot.slane %v13018_v8, 1  ;;  %v13021_v27 = vrot.slane %v13020_v49, 2  ;;  %v1840_v52 = vmul.f32 %v7576_v12, %v13016_v59  ;;  %v13023_v35 = vld [vmem:[#allocation20_spill] sm:$0xff]  ;;  %v13024_v30 = vld [vmem:[#allocation18_spill] sm:$0xff] }
 0x115   : > { %v1449_v58 = vrot.slane %v1347_v22, 1  ;;  %v1693_v18 = vrot.slane %v1591_v9, 2  ;;  %v1842_v43 = vmul.f32 %v7576_v12, %v13002_v45  ;;  %v1871_v62 = vadd.f32 %v13023_v35, %v1793_v26  ;;  %v13029_v26 = vld [vmem:[#allocation21_spill] sm:$0xff]  ;;  %v13031_v8 = vld [vmem:[#allocation22_spill] sm:$0xff] }
 0x116   : > { %v883_v20 = vsel %vm860_vm0, %v13019_v10, %v882_v17  ;;  %v1128_v28 = vsel %vm1105_vm1, %v13021_v27, %v1127_v19  ;;  %v13025_v46 = vrot.slane %v13024_v30, 1  ;;  %v1872_v33 = vadd.f32 %v1840_v52, %v1794_v25  ;;  %v13033_v52 = vld [vmem:[#allocation30_spill] sm:$0xff] }
 0x117   : > { %v981_v61 = vadd.f32 %v883_v20, %v13022_v34  ;;  %v1915_v63 = vmul.f32 %v7581_v16, %v13016_v59  ;;  %v2159_v44 = vmul.f32 %v7652_v60, %v13016_v59  ;;  %v13027_v14 = vrot.slane %v13026_v29, 2 }
 0x118   : > { %v1450_v23 = vsel %vm860_vm0, %v13025_v46, %v1449_v58  ;;  %v778_v45 = vmul.f32 %v7559_v1, %v703_v31  ;;  %v1023_v38 = vmul.f32 %v7570_v6, %v703_v31  ;;  %v1348_v15 = vmul.f32 %v7561_v2, %v703_v31 }
 0x119   : > { %v1226_v55 = vadd.f32 %v1128_v28, %v981_v61  ;;  %v1551_v39 = vadd.f32 %v1450_v23, %v1302_v56  ;;  %v1694_v0 = vsel %vm1105_vm1, %v13027_v14, %v1693_v18  ;;  %v2015_v21 = vrot.slane %v1915_v63, 1 }
 0x11a   : > { %v2259_v24 = vrot.slane %v2159_v44, 2  ;;  %v884_v9 = vrot.slane %v778_v45, 1  ;;  %v1592_v59 = vmul.f32 %v7563_v3, %v703_v31  ;;  %v13030_v56 = vrot.slane %v13029_v26, 1 }
 0x11b   : > { %v1304_v37 = vadd.f32 %v13028_v11, %v1226_v55  ;;  %v1795_v22 = vadd.f32 %v1694_v0, %v1551_v39  ;;  %v13032_v10 = vrot.slane %v13031_v8, 2  ;;  %v1129_v49 = vrot.slane %v1023_v38, 2 }
 0x11c   : > { %v2016_v25 = vsel %vm860_vm0, %v13030_v56, %v2015_v21  ;;  %v1451_v27 = vrot.slane %v1348_v15, 1  ;;  %v885_v35 = vsel %vm860_vm0, %v882_v17, %v884_v9  ;;  %v1695_v63 = vrot.slane %v1592_v59, 2  ;;  %v718_v59 = vpop.permute.xlu1 %717 }
 0x11d   : > { %v2260_v20 = vsel %vm1105_vm1, %v13032_v10, %v2259_v24  ;;  %v8424_v28 = vadd.f32 %v8331_v48, %v1304_v37  ;;  %v1873_v34 = vadd.f32 %v13033_v52, %v1795_v22  ;;  %v2120_v61 = vadd.f32 %v2016_v25, %v1871_v62  ;;  %v13034_v62 = vld [vmem:[#allocation37_spill] sm:$0xff] }
 0x11e   : > { %v982_v30 = vadd.f32 %v885_v35, %v625_v54  ;;  %v1130_v46 = vsel %vm1105_vm1, %v1127_v19, %v1129_v49  ;;  %v1452_v23 = vsel %vm860_vm0, %v1449_v58, %v1451_v27  ;;  %v1916_v29 = vmul.f32 %v7581_v16, %v703_v31 }
 0x11f   : > { %v2122_v44 = vadd.f32 %v8346_v50, %v1873_v34  ;;  %v2364_v55 = vadd.f32 %v2260_v20, %v2120_v61  ;;  %v1552_v39 = vadd.f32 %v1452_v23, %v1303_v4  ;;  %v1696_v48 = vsel %vm1105_vm1, %v1693_v18, %v1695_v63  ;;  %v13035_v20 = vld [vmem:[#allocation44_spill] sm:$0xff] }
 0x120   : > { %v1227_v14 = vadd.f32 %v1130_v46, %v982_v30  ;;  %v2160_v0 = vmul.f32 %v7652_v60, %v703_v31  ;;  %v631_v17 = vmul.f32 %v7568_v5, %v13034_v62  ;;  %v2017_v45 = vrot.slane %v1916_v29, 1 }
 0x121   : > { %v2366_v54 = vadd.f32 %v8357_v32, %v2122_v44  ;;  %v2402_v19 = vadd.f32 %v8274_v53, %v2364_v55  ;;  %v1796_v58 = vadd.f32 %v1696_v48, %v1552_v39  ;;  %v786_v4 = vmul.f32 %v7559_v1, %v13034_v62  ;;  %v13038_v44 = vld [vmem:[#allocation45_spill] sm:$0xff] }
 0x122   : > { %v1305_v38 = vadd.f32 %v1273_v41, %v1227_v14  ;;  %v2261_v50 = vrot.slane %v2160_v0, 2  ;;  %v1031_v15 = vmul.f32 %v7570_v6, %v13034_v62  ;;  %v2018_v37 = vsel %vm860_vm0, %v2015_v21, %v2017_v45  ;;  %v13040_v14 = vld [vmem:[#allocation47_spill] sm:$0xff] }
 0x123   : > { %v2404_v18 = vadd.f32 %v8274_v53, %v2366_v54  ;;  %v2434_v31 = vmax.f32 %v2402_v19, 0.0  ;;  %v1874_v11 = vadd.f32 %v1842_v43, %v1796_v58  ;;  %v2121_v22 = vadd.f32 %v2018_v37, %v1872_v33 }
 0x124   : > { %v8445_v32 = vadd.f32 %v8351_v13, %v1305_v38  ;;  %v2262_v9 = vsel %vm1105_vm1, %v2259_v24, %v2261_v50  ;;  %v897_v41 = vrot.slane %v786_v4, 1  ;;  %v1142_v25 = vrot.slane %v1031_v15, 2  ;;  %v13042_v15 = vld [vmem:[#allocation49_spill] sm:$0xff] }
 0x125   : > { %v2436_v26 = vmax.f32 %v2404_v18, 0.0  ;;  %2467 = vst.msk [vmem:[#allocation2 + $0x49] sm:$0xff] %vm403_vm2, %v2434_v31  ;;  %v2123_v56 = vadd.f32 %v8372_v57, %v1874_v11  ;;  %v1356_v8 = vmul.f32 %v7561_v2, %v13034_v62  ;;  %v2365_v43 = vadd.f32 %v2262_v9, %v2121_v22  ;;  %v13044_v22 = vld [vmem:[#allocation51_spill] sm:$0xff] }
 0x126   : > { %v1600_v21 = vmul.f32 %v7563_v3, %v13034_v62  ;;  %v1924_v13 = vmul.f32 %v7581_v16, %v13034_v62  ;;  %v2168_v33 = vmul.f32 %v7652_v60, %v13034_v62  ;;  %v787_v57 = vmul.f32 %v7559_v1, %v718_v59  ;;  %v13037_v60 = vld [vmem:[#allocation43_spill] sm:$0xff] }
 0x127   : > { %2469 = vst.msk [vmem:[#allocation2 + $0x61] sm:$0xff] %vm403_vm2, %v2436_v26  ;;  %v2367_v24 = vadd.f32 %v8382_v51, %v2123_v56  ;;  %v1464_v10 = vrot.slane %v1356_v8, 1  ;;  %v13036_v49 = vrot.slane %v13035_v20, 1  ;;  %v2403_v52 = vadd.f32 %v8274_v53, %v2365_v43  ;;  %v13046_v43 = vld [vmem:[#allocation52_spill] sm:$0xff] }
 0x128   : > { %v1708_v34 = vrot.slane %v1600_v21, 2  ;;  %v2030_v61 = vrot.slane %v1924_v13, 1  ;;  %v2274_v35 = vrot.slane %v2168_v33, 2  ;;  %v899_v46 = vrot.slane %v787_v57, 1  ;;  %v13048_v57 = vld [vmem:[#allocation27_spill] sm:$0xff] }
 0x129   : > { %v898_v27 = vsel %vm860_vm0, %v13036_v49, %v897_v41  ;;  %v2405_v30 = vadd.f32 %v8274_v53, %v2367_v24  ;;  %v1032_v63 = vmul.f32 %v7570_v6, %v718_v59  ;;  %v2435_v51 = vmax.f32 %v2403_v52, 0.0 }
 0x12a   : > { %v987_v23 = vadd.f32 %v898_v27, %v13037_v60  ;;  %v13039_v55 = vrot.slane %v13038_v44, 2  ;;  %v1357_v29 = vmul.f32 %v7561_v2, %v718_v59  ;;  %v13041_v48 = vrot.slane %v13040_v14, 1 }
 0x12b   : > { %v2437_v54 = vmax.f32 %v2405_v30, 0.0  ;;  %v900_v19 = vsel %vm860_vm0, %v897_v41, %v899_v46  ;;  %v1144_v58 = vrot.slane %v1032_v63, 2  ;;  %2468 = vst.msk [vmem:[#allocation2 + $0x51] sm:$0xff] %vm403_vm2, %v2435_v51  ;;  %v1601_v4 = vmul.f32 %v7563_v3, %v718_v59 }
 0x12c   : > { %v1143_v39 = vsel %vm1105_vm1, %v13039_v55, %v1142_v25  ;;  %v8475_v0 = vsel %vm860_vm0, %v13041_v48, %v1464_v10  ;;  %v988_v38 = vadd.f32 %v900_v19, %v631_v17  ;;  %v1466_v50 = vrot.slane %v1357_v29, 1  ;;  %v8498_v17 = vld [vmem:[%s12631_s2 + $0x8] ss:$0 sm:$0xff] }
 0x12d   : > { %v8478_v45 = vadd.f32 %v1143_v39, %v987_v23  ;;  %v13043_v18 = vrot.slane %v13042_v15, 2  ;;  %2470 = vst.msk [vmem:[#allocation2 + $0x69] sm:$0xff] %vm403_vm2, %v2437_v54  ;;  %v1145_v11 = vsel %vm1105_vm1, %v1142_v25, %v1144_v58  ;;  %v1925_v37 = vmul.f32 %v7581_v16, %v718_v59  ;;  %v13050_v39 = vld [vmem:[#allocation34_spill] sm:$0xff]  ;;  %v13053_v54 = vld [vmem:[#allocation35_spill] sm:$0xff] }
 0x12e   : > { %v13045_v9 = vrot.slane %v13044_v22, 1  ;;  %v2169_v26 = vmul.f32 %v8498_v17, %v718_v59  ;;  %v8501_v56 = vadd.f32 %v1145_v11, %v988_v38  ;;  %v8504_v8 = vsel %vm860_vm0, %v1464_v10, %v1466_v50  ;;  %v13056_v11 = vld [vmem:[#allocation38_spill] sm:$0xff] }
 0x12f   : > { %v8485_v31 = vsel %vm1105_vm1, %v13043_v18, %v1708_v34  ;;  %v1710_v25 = vrot.slane %v1601_v4, 2  ;;  %v13047_v21 = vrot.slane %v13046_v43, 2  ;;  %v2032_v33 = vrot.slane %v1925_v37, 1  ;;  %v713_v4 = vpop.permute.xlu0 %712  ;;  %v13055_v18 = vld [vmem:[#allocation40_spill] sm:$0xff] }
 0x130   : > { %v8493_v41 = vsel %vm860_vm0, %v13045_v9, %v2030_v61  ;;  %v2276_v24 = vrot.slane %v2169_v26, 2  ;;  %v629_v20 = vmul.f32 %v7568_v5, %v13048_v57  ;;  %v783_v49 = vmul.f32 %v7559_v1, %v13048_v57  ;;  %v13058_v9 = vld [vmem:[#allocation39_spill] sm:$0xff] }
 0x131   : > { %v8509_v13 = vsel %vm1105_vm1, %v13047_v21, %v2274_v35  ;;  %v8516_v59 = vsel %vm1105_vm1, %v1708_v34, %v1710_v25  ;;  %v1028_v10 = vmul.f32 %v7570_v6, %v13048_v57  ;;  %v1275_v27 = vmul.f32 %v7572_v7, %v13048_v57  ;;  %v13049_v34 = vld [vmem:[#allocation36_spill] sm:$0xff] }
 0x132   : > { %v8524_v52 = vmul.f32 %v7572_v7, %v13034_v62  ;;  %v8527_v30 = vsel %vm860_vm0, %v2030_v61, %v2032_v33  ;;  %v8530_v46 = vsel %vm1105_vm1, %v2274_v35, %v2276_v24  ;;  %v892_v60 = vrot.slane %v783_v49, 1  ;;  %v13060_v49 = vld [vmem:[#allocation46_spill] sm:$0xff] }
 0x133   : > { %v1306_v23 = vadd.f32 %v13049_v34, %v8326_v42  ;;  %v1137_v63 = vrot.slane %v1028_v10, 2  ;;  %v1307_v51 = vadd.f32 %v1275_v27, %v8348_v47  ;;  %v1353_v44 = vmul.f32 %v7561_v2, %v13048_v57  ;;  %v13052_v47 = vld [vmem:[#allocation33_spill] sm:$0xff] }
 0x134   : > { %v1597_v55 = vmul.f32 %v7563_v3, %v13048_v57  ;;  %v13051_v29 = vrot.slane %v13050_v39, 1  ;;  %v1797_v35 = vadd.f32 %v8340_v36, %v8424_v28  ;;  %v1798_v14 = vadd.f32 %v8363_v40, %v8445_v32  ;;  %v13061_v39 = vld [vmem:[#allocation41_spill] sm:$0xff] }
 0x135   : > { %v1844_v42 = vmul.f32 %v7576_v12, %v13048_v57  ;;  %v13054_v19 = vrot.slane %v13053_v54, 2  ;;  %v1459_v38 = vrot.slane %v1353_v44, 1  ;;  %v1846_v15 = vmul.f32 %v7576_v12, %v13034_v62 }
 0x136   : > { %v893_v61 = vsel %vm860_vm0, %v13051_v29, %v892_v60  ;;  %v1703_v50 = vrot.slane %v1597_v55, 2  ;;  %v1875_v36 = vadd.f32 %v13055_v18, %v1797_v35  ;;  %v1921_v40 = vmul.f32 %v7581_v16, %v13048_v57 }
 0x137   : > { %v985_v48 = vadd.f32 %v893_v61, %v13052_v47  ;;  %v1138_v58 = vsel %vm1105_vm1, %v13054_v19, %v1137_v63  ;;  %v1876_v28 = vadd.f32 %v1844_v42, %v1798_v14  ;;  %v13057_v37 = vrot.slane %v13056_v11, 1  ;;  %v13063_v42 = vld [vmem:[#allocation42_spill] sm:$0xff] }
 0x138   : > { %v13059_v26 = vrot.slane %v13058_v9, 2  ;;  %v2165_v43 = vmul.f32 %v8498_v17, %v13048_v57  ;;  %v2025_v62 = vrot.slane %v1921_v40, 1  ;;  %v784_v33 = vmul.f32 %v7559_v1, %v713_v4  ;;  %v13065_v19 = vld [vmem:[#allocation50_spill] sm:$0xff] }
 0x139   : > { %v1230_v32 = vadd.f32 %v1138_v58, %v985_v48  ;;  %v1460_v22 = vsel %vm860_vm0, %v13057_v37, %v1459_v38  ;;  %v1029_v24 = vmul.f32 %v7570_v6, %v713_v4  ;;  %v1354_v34 = vmul.f32 %v7561_v2, %v713_v4 }
 0x13a   : > { %v1704_v25 = vsel %vm1105_vm1, %v13059_v26, %v1703_v50  ;;  %v1555_v21 = vadd.f32 %v1460_v22, %v1306_v23  ;;  %v2269_v27 = vrot.slane %v2165_v43, 2  ;;  %v1598_v44 = vmul.f32 %v7563_v3, %v713_v4 }
 0x13b   : > { %v1308_v10 = vadd.f32 %v13060_v49, %v1230_v32  ;;  %v13062_v29 = vrot.slane %v13061_v39, 1  ;;  %v894_v35 = vrot.slane %v784_v33, 1  ;;  %v1139_v57 = vrot.slane %v1029_v24, 2  ;;  %v13066_v33 = vld [vmem:[#allocation59_spill] sm:$0xff] }
 0x13c   : > { %v1799_v55 = vadd.f32 %v1704_v25, %v1555_v21  ;;  %v13064_v47 = vrot.slane %v13063_v42, 2  ;;  %v1461_v54 = vrot.slane %v1354_v34, 1  ;;  %v1705_v32 = vrot.slane %v1598_v44, 2 }
 0x13d   : > { %v2026_v61 = vsel %vm860_vm0, %v13062_v29, %v2025_v62  ;;  %v8574_v23 = vadd.f32 %v8475_v0, %v1308_v10  ;;  %v895_v18 = vsel %vm860_vm0, %v892_v60, %v894_v35  ;;  %v1140_v40 = vsel %vm1105_vm1, %v1137_v63, %v1139_v57 }
 0x13e   : > { %v2124_v14 = vadd.f32 %v2026_v61, %v1875_v36  ;;  %v2270_v48 = vsel %vm1105_vm1, %v13064_v47, %v2269_v27  ;;  %v1877_v58 = vadd.f32 %v13065_v19, %v1799_v55  ;;  %v986_v37 = vadd.f32 %v895_v18, %v629_v20 }
 0x13f   : > { %v1462_v22 = vsel %vm860_vm0, %v1459_v38, %v1461_v54  ;;  %v1922_v0 = vmul.f32 %v7581_v16, %v713_v4  ;;  %v1706_v26 = vsel %vm1105_vm1, %v1703_v50, %v1705_v32  ;;  %v2166_v25 = vmul.f32 %v8498_v17, %v713_v4  ;;  %v13069_v32 = vld [vmem:[#allocation63_spill] sm:$0xff] }
 0x140   : > { %v2368_v11 = vadd.f32 %v2270_v48, %v2124_v14  ;;  %v2126_v36 = vadd.f32 %v8493_v41, %v1877_v58  ;;  %v1556_v9 = vadd.f32 %v1462_v22, %v1307_v51  ;;  %v1231_v21 = vadd.f32 %v1140_v40, %v986_v37  ;;  %v13067_v48 = vld [vmem:[#allocation64_spill] sm:$0xff] }
 0x141   : > { %v2027_v60 = vrot.slane %v1922_v0, 1  ;;  %v635_v63 = vmul.f32 %v7568_v5, %v13066_v33  ;;  %v2271_v38 = vrot.slane %v2166_v25, 2  ;;  %v792_v49 = vmul.f32 %v7559_v1, %v13066_v33 }
 0x142   : > { %v2406_v43 = vadd.f32 %v8274_v53, %v2368_v11  ;;  %v2370_v20 = vadd.f32 %v8509_v13, %v2126_v36  ;;  %v1800_v24 = vadd.f32 %v1706_v26, %v1556_v9  ;;  %v1309_v51 = vadd.f32 %v8524_v52, %v1231_v21  ;;  %v728_v13 = vpop.permute.xlu1 %727  ;;  %v13070_v36 = vld [vmem:[#allocation65_spill] sm:$0xff]  ;;  %v13072_v21 = vld [vmem:[#allocation67_spill] sm:$0xff] }
 0x143   : > { %v2028_v50 = vsel %vm860_vm0, %v2025_v62, %v2027_v60  ;;  %v1037_v4 = vmul.f32 %v7570_v6, %v13066_v33  ;;  %v2272_v55 = vsel %vm1105_vm1, %v2269_v27, %v2271_v38  ;;  %v907_v29 = vrot.slane %v792_v49, 1 }
 0x144   : > { %v2438_v41 = vmax.f32 %v2406_v43, 0.0  ;;  %v2408_v10 = vadd.f32 %v8274_v53, %v2370_v20  ;;  %v1878_v34 = vadd.f32 %v1846_v15, %v1800_v24  ;;  %v2125_v44 = vadd.f32 %v2028_v50, %v1876_v28  ;;  %v13074_v50 = vld [vmem:[#allocation68_spill] sm:$0xff] }
 0x145   : > { %v1558_v39 = vadd.f32 %v8504_v8, %v1309_v51  ;;  %v1152_v61 = vrot.slane %v1037_v4, 2  ;;  %v1362_v52 = vmul.f32 %v7561_v2, %v13066_v33  ;;  %v1606_v15 = vmul.f32 %v7563_v3, %v13066_v33 }
 0x146   : > { %2471 = vst.msk [vmem:[#allocation2 + $0x79] sm:$0xff] %vm403_vm2, %v2438_v41  ;;  %v2440_v62 = vmax.f32 %v2408_v10, 0.0  ;;  %v2127_v35 = vadd.f32 %v8527_v30, %v1878_v34  ;;  %v2369_v57 = vadd.f32 %v2272_v55, %v2125_v44  ;;  %v1930_v27 = vmul.f32 %v7581_v16, %v13066_v33  ;;  %v13076_v44 = vld [vmem:[#allocation71_spill] sm:$0xff] }
 0x147   : > { %v1474_v28 = vrot.slane %v1362_v52, 1  ;;  %v2174_v14 = vmul.f32 %v8498_v17, %v13066_v33  ;;  %v793_v8 = vmul.f32 %v7559_v1, %v728_v13  ;;  %v1718_v30 = vrot.slane %v1606_v15, 2 }
 0x148   : > { %2473 = vst.msk [vmem:[#allocation2 + $0x91] sm:$0xff] %vm403_vm2, %v2440_v62  ;;  %v2371_v42 = vadd.f32 %v8530_v46, %v2127_v35  ;;  %v2407_v47 = vadd.f32 %v8274_v53, %v2369_v57  ;;  %v13068_v54 = vrot.slane %v13067_v48, 1  ;;  %v2040_v58 = vrot.slane %v1930_v27, 1  ;;  %v13078_v35 = vld [vmem:[#allocation72_spill] sm:$0xff] }
 0x149   : > { %v2284_v18 = vrot.slane %v2174_v14, 2  ;;  %v909_v40 = vrot.slane %v793_v8, 1  ;;  %v1038_v0 = vmul.f32 %v7570_v6, %v728_v13  ;;  %v13071_v9 = vrot.slane %v13070_v36, 2 }
 0x14a   : > { %v908_v19 = vsel %vm860_vm0, %v13068_v54, %v907_v29  ;;  %v2409_v37 = vadd.f32 %v8274_v53, %v2371_v42  ;;  %v2439_v22 = vmax.f32 %v2407_v47, 0.0  ;;  %v1363_v43 = vmul.f32 %v7561_v2, %v728_v13  ;;  %v13080_v42 = vld [vmem:[#allocation48_spill] sm:$0xff] }
 0x14b   : > { %v991_v11 = vadd.f32 %v908_v19, %v13069_v32  ;;  %v1153_v46 = vsel %vm1105_vm1, %v13071_v9, %v1152_v61  ;;  %v910_v26 = vsel %vm860_vm0, %v907_v29, %v909_v40  ;;  %v13073_v60 = vrot.slane %v13072_v21, 1  ;;  %v13081_v32 = vld [vmem:[#allocation56_spill] sm:$0xff] }
 0x14c   : > { %v2441_v24 = vmax.f32 %v2409_v37, 0.0  ;;  %2472 = vst.msk [vmem:[#allocation2 + $0x81] sm:$0xff] %vm403_vm2, %v2439_v22  ;;  %v992_v38 = vadd.f32 %v910_v26, %v635_v63  ;;  %v1154_v49 = vrot.slane %v1038_v0, 2  ;;  %v1607_v41 = vmul.f32 %v7563_v3, %v728_v13  ;;  %v13082_v26 = vld [vmem:[#allocation54_spill] sm:$0xff] }
 0x14d   : > { %v8624_v25 = vadd.f32 %v1153_v46, %v991_v11  ;;  %v8630_v20 = vsel %vm860_vm0, %v13073_v60, %v1474_v28  ;;  %v1476_v51 = vrot.slane %v1363_v43, 1  ;;  %v13075_v4 = vrot.slane %v13074_v50, 2  ;;  %v13084_v43 = vld [vmem:[#allocation55_spill] sm:$0xff] }
 0x14e   : > { %v1931_v34 = vmul.f32 %v7581_v16, %v728_v13  ;;  %v13077_v55 = vrot.slane %v13076_v44, 1  ;;  %2474 = vst.msk [vmem:[#allocation2 + $0x99] sm:$0xff] %vm403_vm2, %v2441_v24  ;;  %v1155_v63 = vsel %vm1105_vm1, %v1152_v61, %v1154_v49  ;;  %v1720_v52 = vrot.slane %v1607_v41, 2  ;;  %v13086_v49 = vld [vmem:[#allocation53_spill] sm:$0xff] }
 0x14f   : > { %v8637_v10 = vsel %vm1105_vm1, %v13075_v4, %v1718_v30  ;;  %v2175_v62 = vmul.f32 %v8498_v17, %v728_v13  ;;  %v13079_v57 = vrot.slane %v13078_v35, 2  ;;  %v8653_v27 = vadd.f32 %v1155_v63, %v992_v38  ;;  %v723_v38 = vpop.permute.xlu0 %722 }
 0x150   : > { %v8643_v29 = vsel %vm860_vm0, %v13077_v55, %v2040_v58  ;;  %v8656_v14 = vsel %vm860_vm0, %v1474_v28, %v1476_v51  ;;  %v2042_v8 = vrot.slane %v1931_v34, 1  ;;  %v633_v47 = vmul.f32 %v7568_v5, %v13080_v42 }
 0x151   : > { %v8651_v15 = vsel %vm1105_vm1, %v13079_v57, %v2284_v18  ;;  %v8661_v48 = vsel %vm1105_vm1, %v1718_v30, %v1720_v52  ;;  %v2286_v61 = vrot.slane %v2175_v62, 2  ;;  %v789_v13 = vmul.f32 %v7559_v1, %v13080_v42  ;;  %v13090_v62 = vld [vmem:[#allocation58_spill] sm:$0xff] }
 0x152   : > { %v1034_v54 = vmul.f32 %v7570_v6, %v13080_v42  ;;  %v8668_v19 = vsel %vm860_vm0, %v2040_v58, %v2042_v8  ;;  %v1279_v28 = vmul.f32 %v7572_v7, %v13080_v42  ;;  %v1281_v40 = vmul.f32 %v7572_v7, %v13066_v33 }
 0x153   : > { %v1310_v30 = vadd.f32 %v13081_v32, %v8478_v45  ;;  %v8677_v11 = vsel %vm1105_vm1, %v2284_v18, %v2286_v61  ;;  %v902_v37 = vrot.slane %v789_v13, 1  ;;  %v1359_v0 = vmul.f32 %v7561_v2, %v13080_v42 }
 0x154   : > { %v1147_v22 = vrot.slane %v1034_v54, 2  ;;  %v1311_v58 = vadd.f32 %v1279_v28, %v8501_v56  ;;  %v1603_v36 = vmul.f32 %v7563_v3, %v13080_v42  ;;  %v1801_v9 = vadd.f32 %v8485_v31, %v8574_v23  ;;  %v13092_v28 = vld [vmem:[#allocation66_spill] sm:$0xff] }
 0x155   : > { %v1802_v46 = vadd.f32 %v8516_v59, %v1558_v39  ;;  %v13083_v45 = vrot.slane %v13082_v26, 1  ;;  %v13085_v21 = vrot.slane %v13084_v43, 2  ;;  %v1469_v24 = vrot.slane %v1359_v0, 1  ;;  %v13087_v59 = vld [vmem:[#allocation60_spill] sm:$0xff]  ;;  %v13088_v39 = vld [vmem:[#allocation57_spill] sm:$0xff]  ;;  %v13095_v26 = vld [vmem:[#allocation62_spill] sm:$0xff] }
 0x156   : > { %v1848_v56 = vmul.f32 %v7576_v12, %v13080_v42  ;;  %v1713_v51 = vrot.slane %v1603_v36, 2  ;;  %v1850_v31 = vmul.f32 %v7576_v12, %v13066_v33  ;;  %v1879_v23 = vadd.f32 %v13087_v59, %v1801_v9  ;;  %v13093_v9 = vld [vmem:[#allocation61_spill] sm:$0xff] }
 0x157   : > { %v903_v18 = vsel %vm860_vm0, %v13083_v45, %v902_v37  ;;  %v1148_v60 = vsel %vm1105_vm1, %v13085_v21, %v1147_v22  ;;  %v13089_v50 = vrot.slane %v13088_v39, 1  ;;  %v1927_v44 = vmul.f32 %v7581_v16, %v13080_v42 }
 0x158   : > { %v989_v41 = vadd.f32 %v903_v18, %v13086_v49  ;;  %v1880_v34 = vadd.f32 %v1848_v56, %v1802_v46  ;;  %v2171_v55 = vmul.f32 %v8498_v17, %v13080_v42  ;;  %v13091_v35 = vrot.slane %v13090_v62, 2  ;;  %v13097_v56 = vld [vmem:[#allocation69_spill] sm:$0xff] }
 0x159   : > { %v1470_v4 = vsel %vm860_vm0, %v13089_v50, %v1469_v24  ;;  %v790_v33 = vmul.f32 %v7559_v1, %v723_v38  ;;  %v2035_v8 = vrot.slane %v1927_v44, 1  ;;  %v1035_v13 = vmul.f32 %v7570_v6, %v723_v38 }
 0x15a   : > { %v1234_v63 = vadd.f32 %v1148_v60, %v989_v41  ;;  %v1559_v52 = vadd.f32 %v1470_v4, %v1310_v30  ;;  %v1714_v57 = vsel %vm1105_vm1, %v13091_v35, %v1713_v51  ;;  %v2279_v61 = vrot.slane %v2171_v55, 2 }
 0x15b   : > { %v1360_v54 = vmul.f32 %v7561_v2, %v723_v38  ;;  %v904_v36 = vrot.slane %v790_v33, 1  ;;  %v1604_v42 = vmul.f32 %v7563_v3, %v723_v38  ;;  %v13094_v30 = vrot.slane %v13093_v9, 1 }
 0x15c   : > { %v1312_v32 = vadd.f32 %v13092_v28, %v1234_v63  ;;  %v1803_v0 = vadd.f32 %v1714_v57, %v1559_v52  ;;  %v13096_v45 = vrot.slane %v13095_v26, 2  ;;  %v1149_v43 = vrot.slane %v1035_v13, 2 }
 0x15d   : > { %v2036_v46 = vsel %vm860_vm0, %v13094_v30, %v2035_v8  ;;  %v1471_v21 = vrot.slane %v1360_v54, 1  ;;  %v905_v59 = vsel %vm860_vm0, %v902_v37, %v904_v36  ;;  %v1715_v44 = vrot.slane %v1604_v42, 2  ;;  %v738_v42 = vpop.permute.xlu1 %737 }
 0x15e   : > { %v2280_v18 = vsel %vm1105_vm1, %v13096_v45, %v2279_v61  ;;  %v8721_v60 = vadd.f32 %v8630_v20, %v1312_v32  ;;  %v1881_v49 = vadd.f32 %v13097_v56, %v1803_v0  ;;  %v2128_v41 = vadd.f32 %v2036_v46, %v1879_v23  ;;  %v13098_v23 = vld [vmem:[#allocation80_spill] sm:$0xff] }
 0x15f   : > { %v990_v39 = vadd.f32 %v905_v59, %v633_v47  ;;  %v1150_v50 = vsel %vm1105_vm1, %v1147_v22, %v1149_v43  ;;  %v1472_v4 = vsel %vm860_vm0, %v1469_v24, %v1471_v21  ;;  %v1928_v62 = vmul.f32 %v7581_v16, %v723_v38 }
 0x160   : > { %v2130_v55 = vadd.f32 %v8643_v29, %v1881_v49  ;;  %v2372_v63 = vadd.f32 %v2280_v18, %v2128_v41  ;;  %v1560_v52 = vadd.f32 %v1472_v4, %v1311_v58  ;;  %v1716_v20 = vsel %vm1105_vm1, %v1713_v51, %v1715_v44  ;;  %v13099_v18 = vld [vmem:[#allocation84_spill] sm:$0xff]  ;;  %v13101_v4 = vld [vmem:[#allocation83_spill] sm:$0xff] }
 0x161   : > { %v1235_v35 = vadd.f32 %v1150_v50, %v990_v39  ;;  %v2172_v57 = vmul.f32 %v8498_v17, %v723_v38  ;;  %v639_v37 = vmul.f32 %v7568_v5, %v13098_v23  ;;  %v2037_v33 = vrot.slane %v1928_v62, 1 }
 0x162   : > { %v2374_v47 = vadd.f32 %v8651_v15, %v2130_v55  ;;  %v2410_v22 = vadd.f32 %v8274_v53, %v2372_v63  ;;  %v1804_v24 = vadd.f32 %v1716_v20, %v1560_v52  ;;  %v798_v58 = vmul.f32 %v7559_v1, %v13098_v23  ;;  %v13102_v63 = vld [vmem:[#allocation85_spill] sm:$0xff]  ;;  %v13104_v20 = vld [vmem:[#allocation87_spill] sm:$0xff] }
 0x163   : > { %v1313_v13 = vadd.f32 %v1281_v40, %v1235_v35  ;;  %v2281_v29 = vrot.slane %v2172_v57, 2  ;;  %v1043_v54 = vmul.f32 %v7570_v6, %v13098_v23  ;;  %v2038_v32 = vsel %vm860_vm0, %v2035_v8, %v2037_v33 }
 0x164   : > { %v2412_v51 = vadd.f32 %v8274_v53, %v2374_v47  ;;  %v2442_v38 = vmax.f32 %v2410_v22, 0.0  ;;  %v1882_v28 = vadd.f32 %v1850_v31, %v1804_v24  ;;  %v2129_v0 = vadd.f32 %v2038_v32, %v1880_v34 }
 0x165   : > { %v8742_v15 = vadd.f32 %v8656_v14, %v1313_v13  ;;  %v2282_v36 = vsel %vm1105_vm1, %v2279_v61, %v2281_v29  ;;  %v917_v40 = vrot.slane %v798_v58, 1  ;;  %v1162_v46 = vrot.slane %v1043_v54, 2  ;;  %v13106_v54 = vld [vmem:[#allocation88_spill] sm:$0xff] }
 0x166   : > { %v2444_v9 = vmax.f32 %v2412_v51, 0.0  ;;  %2475 = vst.msk [vmem:[#allocation2 + $0xa9] sm:$0xff] %vm403_vm2, %v2442_v38  ;;  %v2131_v30 = vadd.f32 %v8668_v19, %v1882_v28  ;;  %v1368_v26 = vmul.f32 %v7561_v2, %v13098_v23  ;;  %v2373_v31 = vadd.f32 %v2282_v36, %v2129_v0  ;;  %v13108_v0 = vld [vmem:[#allocation91_spill] sm:$0xff] }
 0x167   : > { %v1612_v8 = vmul.f32 %v7563_v3, %v13098_v23  ;;  %v1936_v14 = vmul.f32 %v7581_v16, %v13098_v23  ;;  %v2180_v34 = vmul.f32 %v8498_v17, %v13098_v23  ;;  %v799_v19 = vmul.f32 %v7559_v1, %v738_v42 }
 0x168   : > { %2477 = vst.msk [vmem:[#allocation2 + $0xc1] sm:$0xff] %vm403_vm2, %v2444_v9  ;;  %v2375_v61 = vadd.f32 %v8677_v11, %v2131_v30  ;;  %v1484_v45 = vrot.slane %v1368_v26, 1  ;;  %v13100_v43 = vrot.slane %v13099_v18, 1  ;;  %v2411_v56 = vadd.f32 %v8274_v53, %v2373_v31  ;;  %v13110_v31 = vld [vmem:[#allocation92_spill] sm:$0xff] }
 0x169   : > { %v1728_v49 = vrot.slane %v1612_v8, 2  ;;  %v2050_v41 = vrot.slane %v1936_v14, 1  ;;  %v2294_v59 = vrot.slane %v2180_v34, 2  ;;  %v919_v50 = vrot.slane %v799_v19, 1 }
 0x16a   : > { %v918_v21 = vsel %vm860_vm0, %v13100_v43, %v917_v40  ;;  %v2413_v39 = vadd.f32 %v8274_v53, %v2375_v61  ;;  %v1044_v55 = vmul.f32 %v7570_v6, %v738_v42  ;;  %v2443_v11 = vmax.f32 %v2411_v56, 0.0  ;;  %v13112_v61 = vld [vmem:[#allocation70_spill] sm:$0xff] }
 0x16b   : > { %v995_v44 = vadd.f32 %v918_v21, %v13101_v4  ;;  %v13103_v52 = vrot.slane %v13102_v63, 2  ;;  %v1369_v35 = vmul.f32 %v7561_v2, %v738_v42  ;;  %v13105_v57 = vrot.slane %v13104_v20, 1 }
 0x16c   : > { %v2445_v22 = vmax.f32 %v2413_v39, 0.0  ;;  %v920_v53 = vsel %vm860_vm0, %v917_v40, %v919_v50  ;;  %v1164_v24 = vrot.slane %v1044_v55, 2  ;;  %2476 = vst.msk [vmem:[#allocation2 + $0xb1] sm:$0xff] %vm403_vm2, %v2443_v11  ;;  %v1613_v58 = vmul.f32 %v7563_v3, %v738_v42 }
 0x16d   : > { %v1163_v62 = vsel %vm1105_vm1, %v13103_v52, %v1162_v46  ;;  %v8772_v47 = vsel %vm860_vm0, %v13105_v57, %v1484_v45  ;;  %v996_v13 = vadd.f32 %v920_v53, %v639_v37  ;;  %v1486_v29 = vrot.slane %v1369_v35, 1  ;;  %v13114_v52 = vld [vmem:[#allocation74_spill] sm:$0xff]  ;;  %v13117_v57 = vld [vmem:[#allocation75_spill] sm:$0xff] }
 0x16e   : > { %v8775_v33 = vadd.f32 %v1163_v62, %v995_v44  ;;  %v13107_v51 = vrot.slane %v13106_v54, 2  ;;  %2478 = vst.msk [vmem:[#allocation2 + $0xc9] sm:$0xff] %vm403_vm2, %v2445_v22  ;;  %v1165_v28 = vsel %vm1105_vm1, %v1162_v46, %v1164_v24  ;;  %v1937_v32 = vmul.f32 %v7581_v16, %v738_v42  ;;  %v13119_v54 = vld [vmem:[#allocation79_spill] sm:$0xff] }
 0x16f   : > { %v13109_v36 = vrot.slane %v13108_v0, 1  ;;  %v2181_v37 = vmul.f32 %v8498_v17, %v738_v42  ;;  %v8793_v9 = vadd.f32 %v1165_v28, %v996_v13  ;;  %v8796_v30 = vsel %vm860_vm0, %v1484_v45, %v1486_v29  ;;  %v733_v29 = vpop.permute.xlu0 %732  ;;  %v13122_v0 = vld [vmem:[#allocation78_spill] sm:$0xff] }
 0x170   : > { %v8782_v38 = vsel %vm1105_vm1, %v13107_v51, %v1728_v49  ;;  %v1730_v26 = vrot.slane %v1613_v58, 2  ;;  %v13111_v8 = vrot.slane %v13110_v31, 2  ;;  %v2052_v46 = vrot.slane %v1937_v32, 1  ;;  %v13120_v51 = vld [vmem:[#allocation77_spill] sm:$0xff] }
 0x171   : > { %v8790_v40 = vsel %vm860_vm0, %v13109_v36, %v2050_v41  ;;  %v2296_v34 = vrot.slane %v2181_v37, 2  ;;  %v637_v19 = vmul.f32 %v7568_v5, %v13112_v61  ;;  %v795_v18 = vmul.f32 %v7559_v1, %v13112_v61 }
 0x172   : > { %v8801_v14 = vsel %vm1105_vm1, %v13111_v8, %v2294_v59  ;;  %v8808_v42 = vsel %vm1105_vm1, %v1728_v49, %v1730_v26  ;;  %v1040_v45 = vmul.f32 %v7570_v6, %v13112_v61  ;;  %v1283_v43 = vmul.f32 %v7572_v7, %v13112_v61  ;;  %v13113_v49 = vld [vmem:[#allocation76_spill] sm:$0xff] }
 0x173   : > { %v8816_v21 = vmul.f32 %v7572_v7, %v13098_v23  ;;  %v8819_v56 = vsel %vm860_vm0, %v2050_v41, %v2052_v46  ;;  %v8822_v39 = vsel %vm1105_vm1, %v2294_v59, %v2296_v34  ;;  %v912_v50 = vrot.slane %v795_v18, 1  ;;  %v13124_v34 = vld [vmem:[#allocation86_spill] sm:$0xff] }
 0x174   : > { %v1314_v4 = vadd.f32 %v13113_v49, %v8624_v25  ;;  %v1157_v44 = vrot.slane %v1040_v45, 2  ;;  %v1315_v55 = vadd.f32 %v1283_v43, %v8653_v27  ;;  %v1365_v11 = vmul.f32 %v7561_v2, %v13112_v61  ;;  %v13116_v27 = vld [vmem:[#allocation73_spill] sm:$0xff] }
 0x175   : > { %v1609_v63 = vmul.f32 %v7563_v3, %v13112_v61  ;;  %v13115_v62 = vrot.slane %v13114_v52, 1  ;;  %v1805_v59 = vadd.f32 %v8637_v10, %v8721_v60  ;;  %v1806_v35 = vadd.f32 %v8661_v48, %v8742_v15 }
 0x176   : > { %v1852_v25 = vmul.f32 %v7576_v12, %v13112_v61  ;;  %v13118_v22 = vrot.slane %v13117_v57, 2  ;;  %v1479_v24 = vrot.slane %v1365_v11, 1  ;;  %v1854_v58 = vmul.f32 %v7576_v12, %v13098_v23  ;;  %v13129_v57 = vld [vmem:[#allocation89_spill] sm:$0xff] }
 0x177   : > { %v913_v41 = vsel %vm860_vm0, %v13115_v62, %v912_v50  ;;  %v1723_v13 = vrot.slane %v1609_v63, 2  ;;  %v1883_v10 = vadd.f32 %v13119_v54, %v1805_v59  ;;  %v1933_v48 = vmul.f32 %v7581_v16, %v13112_v61  ;;  %v13125_v63 = vld [vmem:[#allocation81_spill] sm:$0xff] }
 0x178   : > { %v993_v20 = vadd.f32 %v913_v41, %v13116_v27  ;;  %v1158_v53 = vsel %vm1105_vm1, %v13118_v22, %v1157_v44  ;;  %v1884_v60 = vadd.f32 %v1852_v25, %v1806_v35  ;;  %v13121_v28 = vrot.slane %v13120_v51, 1  ;;  %v13127_v35 = vld [vmem:[#allocation82_spill] sm:$0xff] }
 0x179   : > { %v13123_v36 = vrot.slane %v13122_v0, 2  ;;  %v2177_v26 = vmul.f32 %v8498_v17, %v13112_v61  ;;  %v2045_v23 = vrot.slane %v1933_v48, 1  ;;  %v796_v8 = vmul.f32 %v7559_v1, %v733_v29 }
 0x17a   : > { %v1238_v15 = vadd.f32 %v1158_v53, %v993_v20  ;;  %v1480_v32 = vsel %vm860_vm0, %v13121_v28, %v1479_v24  ;;  %v1041_v46 = vmul.f32 %v7570_v6, %v733_v29  ;;  %v1366_v43 = vmul.f32 %v7561_v2, %v733_v29 }
 0x17b   : > { %v1724_v37 = vsel %vm1105_vm1, %v13123_v36, %v1723_v13  ;;  %v1563_v31 = vadd.f32 %v1480_v32, %v1314_v4  ;;  %v2289_v45 = vrot.slane %v2177_v26, 2  ;;  %v1610_v49 = vmul.f32 %v7563_v3, %v733_v29  ;;  %v13130_v26 = vld [vmem:[#allocation101_spill] sm:$0xff] }
 0x17c   : > { %v1316_v18 = vadd.f32 %v13124_v34, %v1238_v15  ;;  %v13126_v52 = vrot.slane %v13125_v63, 1  ;;  %v914_v41 = vrot.slane %v796_v8, 1  ;;  %v1159_v61 = vrot.slane %v1041_v46, 2 }
 0x17d   : > { %v1807_v11 = vadd.f32 %v1724_v37, %v1563_v31  ;;  %v13128_v25 = vrot.slane %v13127_v35, 2  ;;  %v1481_v20 = vrot.slane %v1366_v43, 1  ;;  %v1725_v48 = vrot.slane %v1610_v49, 2 }
 0x17e   : > { %v2046_v62 = vsel %vm860_vm0, %v13126_v52, %v2045_v23  ;;  %v8866_v4 = vadd.f32 %v8772_v47, %v1316_v18  ;;  %v915_v53 = vsel %vm860_vm0, %v912_v50, %v914_v41  ;;  %v1160_v54 = vsel %vm1105_vm1, %v1157_v44, %v1159_v61  ;;  %v8882_v50 = vld [vmem:[%s12632_s3] ss:$0 sm:$0xff] }
 0x17f   : > { %v2132_v59 = vadd.f32 %v2046_v62, %v1883_v10  ;;  %v2290_v27 = vsel %vm1105_vm1, %v13128_v25, %v2289_v45  ;;  %v1885_v22 = vadd.f32 %v13129_v57, %v1807_v11  ;;  %v994_v51 = vadd.f32 %v915_v53, %v637_v19 }
 0x180   : > { %v1482_v28 = vsel %vm860_vm0, %v1479_v24, %v1481_v20  ;;  %v1934_v47 = vmul.f32 %v7581_v16, %v733_v29  ;;  %v1726_v0 = vsel %vm1105_vm1, %v1723_v13, %v1725_v48  ;;  %v2178_v36 = vmul.f32 %v8498_v17, %v733_v29  ;;  %v13133_v48 = vld [vmem:[#allocation103_spill] sm:$0xff] }
 0x181   : > { %v2376_v15 = vadd.f32 %v2290_v27, %v2132_v59  ;;  %v2134_v10 = vadd.f32 %v8790_v40, %v1885_v22  ;;  %v1564_v32 = vadd.f32 %v1482_v28, %v1315_v55  ;;  %v1239_v37 = vadd.f32 %v1160_v54, %v994_v51  ;;  %v13131_v27 = vld [vmem:[#allocation104_spill] sm:$0xff] }
 0x182   : > { %v2047_v19 = vrot.slane %v1934_v47, 1  ;;  %v643_v24 = vmul.f32 %v7568_v5, %v13130_v26  ;;  %v2291_v55 = vrot.slane %v2178_v36, 2  ;;  %v804_v13 = vmul.f32 %v7559_v1, %v13130_v26 }
 0x183   : > { %v2414_v44 = vadd.f32 %v8882_v50, %v2376_v15  ;;  %v2378_v31 = vadd.f32 %v8801_v14, %v2134_v10  ;;  %v1808_v40 = vadd.f32 %v1726_v0, %v1564_v32  ;;  %v1317_v8 = vadd.f32 %v8816_v21, %v1239_v37  ;;  %v748_v14 = vpop.permute.xlu1 %747  ;;  %v13134_v10 = vld [vmem:[#allocation105_spill] sm:$0xff]  ;;  %v13136_v37 = vld [vmem:[#allocation107_spill] sm:$0xff] }
 0x184   : > { %v2048_v46 = vsel %vm860_vm0, %v2045_v23, %v2047_v19  ;;  %v1049_v34 = vmul.f32 %v7570_v6, %v13130_v26  ;;  %v2292_v11 = vsel %vm1105_vm1, %v2289_v45, %v2291_v55  ;;  %v927_v52 = vrot.slane %v804_v13, 1 }
 0x185   : > { %v2446_v29 = vmax.f32 %v2414_v44, 0.0  ;;  %v2416_v18 = vadd.f32 %v8882_v50, %v2378_v31  ;;  %v1886_v43 = vadd.f32 %v1854_v58, %v1808_v40  ;;  %v2133_v49 = vadd.f32 %v2048_v46, %v1884_v60  ;;  %v13138_v46 = vld [vmem:[#allocation108_spill] sm:$0xff] }
 0x186   : > { %v1566_v63 = vadd.f32 %v8796_v30, %v1317_v8  ;;  %v1172_v62 = vrot.slane %v1049_v34, 2  ;;  %v1374_v21 = vmul.f32 %v7561_v2, %v13130_v26  ;;  %v1618_v58 = vmul.f32 %v7563_v3, %v13130_v26 }
 0x187   : > { %2479 = vst.msk [vmem:[#allocation2 + $0xd9] sm:$0xff] %vm403_vm2, %v2446_v29  ;;  %v2448_v23 = vmax.f32 %v2416_v18, 0.0  ;;  %v2135_v41 = vadd.f32 %v8819_v56, %v1886_v43  ;;  %v2377_v61 = vadd.f32 %v2292_v11, %v2133_v49  ;;  %v1942_v45 = vmul.f32 %v7581_v16, %v13130_v26  ;;  %v13140_v49 = vld [vmem:[#allocation110_spill] sm:$0xff] }
 0x188   : > { %v1494_v60 = vrot.slane %v1374_v21, 1  ;;  %v2186_v59 = vmul.f32 %v8498_v17, %v13130_v26  ;;  %v805_v30 = vmul.f32 %v7559_v1, %v748_v14  ;;  %v1738_v56 = vrot.slane %v1618_v58, 2 }
 0x189   : > { %2481 = vst.msk [vmem:[#allocation2 + $0xf1] sm:$0xff] %vm403_vm2, %v2448_v23  ;;  %v2379_v35 = vadd.f32 %v8822_v39, %v2135_v41  ;;  %v2415_v25 = vadd.f32 %v8882_v50, %v2377_v61  ;;  %v13132_v20 = vrot.slane %v13131_v27, 1  ;;  %v2060_v22 = vrot.slane %v1942_v45, 1  ;;  %v13142_v41 = vld [vmem:[#allocation111_spill] sm:$0xff] }
 0x18a   : > { %v2304_v53 = vrot.slane %v2186_v59, 2  ;;  %v929_v54 = vrot.slane %v805_v30, 1  ;;  %v1050_v47 = vmul.f32 %v7570_v6, %v748_v14  ;;  %v13135_v32 = vrot.slane %v13134_v10, 2 }
 0x18b   : > { %v928_v57 = vsel %vm860_vm0, %v13132_v20, %v927_v52  ;;  %v2417_v51 = vadd.f32 %v8882_v50, %v2379_v35  ;;  %v2447_v28 = vmax.f32 %v2415_v25, 0.0  ;;  %v1375_v44 = vmul.f32 %v7561_v2, %v748_v14  ;;  %v13144_v35 = vld [vmem:[#allocation90_spill] sm:$0xff] }
 0x18c   : > { %v999_v15 = vadd.f32 %v928_v57, %v13133_v48  ;;  %v1173_v39 = vsel %vm1105_vm1, %v13135_v32, %v1172_v62  ;;  %v930_v0 = vsel %vm860_vm0, %v927_v52, %v929_v54  ;;  %v13137_v19 = vrot.slane %v13136_v37, 1  ;;  %v13145_v48 = vld [vmem:[#allocation96_spill] sm:$0xff] }
 0x18d   : > { %v2449_v40 = vmax.f32 %v2417_v51, 0.0  ;;  %2480 = vst.msk [vmem:[#allocation2 + $0xe1] sm:$0xff] %vm403_vm2, %v2447_v28  ;;  %v1000_v55 = vadd.f32 %v930_v0, %v643_v24  ;;  %v1174_v13 = vrot.slane %v1050_v47, 2  ;;  %v1619_v29 = vmul.f32 %v7563_v3, %v748_v14  ;;  %v13146_v0 = vld [vmem:[#allocation94_spill] sm:$0xff] }
 0x18e   : > { %v8921_v36 = vadd.f32 %v1173_v39, %v999_v15  ;;  %v8927_v31 = vsel %vm860_vm0, %v13137_v19, %v1494_v60  ;;  %v1496_v8 = vrot.slane %v1375_v44, 1  ;;  %v13139_v34 = vrot.slane %v13138_v46, 2  ;;  %v13148_v44 = vld [vmem:[#allocation95_spill] sm:$0xff] }
 0x18f   : > { %v1943_v43 = vmul.f32 %v7581_v16, %v748_v14  ;;  %v13141_v11 = vrot.slane %v13140_v49, 1  ;;  %2482 = vst.msk [vmem:[#allocation2 + $0xf9] sm:$0xff] %vm403_vm2, %v2449_v40  ;;  %v1175_v24 = vsel %vm1105_vm1, %v1172_v62, %v1174_v13  ;;  %v1740_v21 = vrot.slane %v1619_v29, 2  ;;  %v13150_v13 = vld [vmem:[#allocation93_spill] sm:$0xff] }
 0x190   : > { %v8934_v18 = vsel %vm1105_vm1, %v13139_v34, %v1738_v56  ;;  %v2187_v23 = vmul.f32 %v8498_v17, %v748_v14  ;;  %v13143_v61 = vrot.slane %v13142_v41, 2  ;;  %v8950_v45 = vadd.f32 %v1175_v24, %v1000_v55  ;;  %v743_v55 = vpop.permute.xlu0 %742 }
 0x191   : > { %v8940_v52 = vsel %vm860_vm0, %v13141_v11, %v2060_v22  ;;  %v8953_v59 = vsel %vm860_vm0, %v1494_v60, %v1496_v8  ;;  %v2062_v30 = vrot.slane %v1943_v43, 1  ;;  %v641_v25 = vmul.f32 %v7568_v5, %v13144_v35 }
 0x192   : > { %v8948_v58 = vsel %vm1105_vm1, %v13143_v61, %v2304_v53  ;;  %v8958_v27 = vsel %vm1105_vm1, %v1738_v56, %v1740_v21  ;;  %v2306_v62 = vrot.slane %v2187_v23, 2  ;;  %v801_v14 = vmul.f32 %v7559_v1, %v13144_v35  ;;  %v13154_v23 = vld [vmem:[#allocation98_spill] sm:$0xff] }
 0x193   : > { %v1046_v20 = vmul.f32 %v7570_v6, %v13144_v35  ;;  %v8965_v57 = vsel %vm860_vm0, %v2060_v22, %v2062_v30  ;;  %v1287_v60 = vmul.f32 %v7572_v7, %v13144_v35  ;;  %v1289_v54 = vmul.f32 %v7572_v7, %v13130_v26 }
 0x194   : > { %v1318_v56 = vadd.f32 %v13145_v48, %v8775_v33  ;;  %v8974_v15 = vsel %vm1105_vm1, %v2304_v53, %v2306_v62  ;;  %v922_v51 = vrot.slane %v801_v14, 1  ;;  %v1371_v47 = vmul.f32 %v7561_v2, %v13144_v35 }
 0x195   : > { %v1167_v28 = vrot.slane %v1046_v20, 2  ;;  %v1319_v22 = vadd.f32 %v1287_v60, %v8793_v9  ;;  %v1615_v10 = vmul.f32 %v7563_v3, %v13144_v35  ;;  %v1809_v32 = vadd.f32 %v8782_v38, %v8866_v4  ;;  %v13156_v60 = vld [vmem:[#allocation106_spill] sm:$0xff] }
 0x196   : > { %v1810_v39 = vadd.f32 %v8808_v42, %v1566_v63  ;;  %v13147_v33 = vrot.slane %v13146_v0, 1  ;;  %v13149_v37 = vrot.slane %v13148_v44, 2  ;;  %v1489_v40 = vrot.slane %v1371_v47, 1  ;;  %v13151_v42 = vld [vmem:[#allocation99_spill] sm:$0xff]  ;;  %v13152_v63 = vld [vmem:[#allocation97_spill] sm:$0xff]  ;;  %v13159_v0 = vld [vmem:[#allocation102_spill] sm:$0xff] }
 0x197   : > { %v1856_v9 = vmul.f32 %v7576_v12, %v13144_v35  ;;  %v1733_v8 = vrot.slane %v1615_v10, 2  ;;  %v1858_v38 = vmul.f32 %v7576_v12, %v13130_v26  ;;  %v1887_v4 = vadd.f32 %v13151_v42, %v1809_v32  ;;  %v13157_v32 = vld [vmem:[#allocation100_spill] sm:$0xff] }
 0x198   : > { %v923_v53 = vsel %vm860_vm0, %v13147_v33, %v922_v51  ;;  %v1168_v19 = vsel %vm1105_vm1, %v13149_v37, %v1167_v28  ;;  %v13153_v46 = vrot.slane %v13152_v63, 1  ;;  %v1939_v49 = vmul.f32 %v7581_v16, %v13144_v35 }
 0x199   : > { %v997_v29 = vadd.f32 %v923_v53, %v13150_v13  ;;  %v1888_v43 = vadd.f32 %v1856_v9, %v1810_v39  ;;  %v2183_v11 = vmul.f32 %v8498_v17, %v13144_v35  ;;  %v13155_v41 = vrot.slane %v13154_v23, 2  ;;  %v13161_v9 = vld [vmem:[#allocation109_spill] sm:$0xff] }
 0x19a   : > { %v1490_v34 = vsel %vm860_vm0, %v13153_v46, %v1489_v40  ;;  %v802_v26 = vmul.f32 %v7559_v1, %v743_v55  ;;  %v2055_v30 = vrot.slane %v1939_v49, 1  ;;  %v1047_v14 = vmul.f32 %v7570_v6, %v743_v55 }
 0x19b   : > { %v1242_v24 = vadd.f32 %v1168_v19, %v997_v29  ;;  %v1567_v21 = vadd.f32 %v1490_v34, %v1318_v56  ;;  %v1734_v61 = vsel %vm1105_vm1, %v13155_v41, %v1733_v8  ;;  %v2299_v62 = vrot.slane %v2183_v11, 2 }
 0x19c   : > { %v1372_v20 = vmul.f32 %v7561_v2, %v743_v55  ;;  %v924_v10 = vrot.slane %v802_v26, 1  ;;  %v1616_v35 = vmul.f32 %v7563_v3, %v743_v55  ;;  %v13158_v56 = vrot.slane %v13157_v32, 1 }
 0x19d   : > { %v1320_v48 = vadd.f32 %v13156_v60, %v1242_v24  ;;  %v1811_v47 = vadd.f32 %v1734_v61, %v1567_v21  ;;  %v13160_v33 = vrot.slane %v13159_v0, 2  ;;  %v1169_v44 = vrot.slane %v1047_v14, 2 }
 0x19e   : > { %v2056_v39 = vsel %vm860_vm0, %v13158_v56, %v2055_v30  ;;  %v1491_v37 = vrot.slane %v1372_v20, 1  ;;  %v925_v42 = vsel %vm860_vm0, %v922_v51, %v924_v10  ;;  %v1735_v49 = vrot.slane %v1616_v35, 2 }
 0x19f   : > { %v2300_v53 = vsel %vm1105_vm1, %v13160_v33, %v2299_v62  ;;  %v9018_v19 = vadd.f32 %v8927_v31, %v1320_v48  ;;  %v1889_v13 = vadd.f32 %v13161_v9, %v1811_v47  ;;  %v2136_v29 = vadd.f32 %v2056_v39, %v1887_v4  ;;  %v13162_v4 = vld [vmem:[#allocation122_spill] sm:$0xff] }
 0x1a0   : > { %v998_v63 = vadd.f32 %v925_v42, %v641_v25  ;;  %v1170_v46 = vsel %vm1105_vm1, %v1167_v28, %v1169_v44  ;;  %v1492_v34 = vsel %vm860_vm0, %v1489_v40, %v1491_v37  ;;  %v1940_v23 = vmul.f32 %v7581_v16, %v743_v55  ;;  %v13163_v42 = vld [vmem:[#allocation125_spill] sm:$0xff] }
 0x1a1   : > { %v2138_v11 = vadd.f32 %v8940_v52, %v1889_v13  ;;  %v2380_v24 = vadd.f32 %v2300_v53, %v2136_v29  ;;  %v1568_v21 = vadd.f32 %v1492_v34, %v1319_v22  ;;  %v1736_v31 = vsel %vm1105_vm1, %v1733_v8, %v1735_v49  ;;  %v758_v8 = vpop.permute.xlu1 %757 }
 0x1a2   : > { %v1243_v41 = vadd.f32 %v1170_v46, %v998_v63  ;;  %v2184_v61 = vmul.f32 %v8498_v17, %v743_v55  ;;  %v9030_v51 = vmul.f32 %v7561_v2, %v13162_v4  ;;  %v2057_v26 = vrot.slane %v1940_v23, 1 }
 0x1a3   : > { %v2382_v25 = vadd.f32 %v8948_v58, %v2138_v11  ;;  %v2418_v28 = vadd.f32 %v8882_v50, %v2380_v24  ;;  %v1812_v40 = vadd.f32 %v1736_v31, %v1568_v21  ;;  %v1948_v20 = vmul.f32 %v7581_v16, %v13162_v4  ;;  %v13165_v24 = vld [vmem:[#allocation126_spill] sm:$0xff] }
 0x1a4   : > { %v1321_v52 = vadd.f32 %v1289_v54, %v1243_v41  ;;  %v2301_v14 = vrot.slane %v2184_v61, 2  ;;  %v1504_v22 = vrot.slane %v9030_v51, 1  ;;  %v2058_v47 = vsel %vm860_vm0, %v2055_v30, %v2057_v26  ;;  %v13167_v41 = vld [vmem:[#allocation112_spill] sm:$0xff] }
 0x1a5   : > { %v2420_v55 = vadd.f32 %v8882_v50, %v2382_v25  ;;  %v2450_v60 = vmax.f32 %v2418_v28, 0.0  ;;  %v1890_v48 = vadd.f32 %v1858_v38, %v1812_v40  ;;  %v2137_v10 = vadd.f32 %v2058_v47, %v1888_v43 }
 0x1a6   : > { %v1570_v58 = vadd.f32 %v8953_v59, %v1321_v52  ;;  %v2302_v35 = vsel %vm1105_vm1, %v2299_v62, %v2301_v14  ;;  %v2070_v32 = vrot.slane %v1948_v20, 1  ;;  %v2192_v39 = vmul.f32 %v8498_v17, %v13162_v4  ;;  %v13168_v14 = vld [vmem:[#allocation116_spill] sm:$0xff] }
 0x1a7   : > { %v2452_v54 = vmax.f32 %v2420_v55, 0.0  ;;  %2483 = vst.msk [vmem:[#allocation2 + $0x109] sm:$0xff] %vm403_vm2, %v2450_v60  ;;  %v2139_v56 = vadd.f32 %v8965_v57, %v1890_v48  ;;  %v9046_v0 = vmul.f32 %v7559_v1, %v758_v8  ;;  %v2381_v38 = vadd.f32 %v2302_v35, %v2137_v10  ;;  %v753_v10 = vpop.permute.xlu0 %752 }
 0x1a8   : > { %v9049_v30 = vmul.f32 %v7570_v6, %v758_v8  ;;  %v1381_v59 = vmul.f32 %v7561_v2, %v758_v8  ;;  %v9053_v43 = vmul.f32 %v7563_v3, %v758_v8  ;;  %v2314_v57 = vrot.slane %v2192_v39, 2 }
 0x1a9   : > { %2485 = vst.msk [vmem:[#allocation2 + $0x121] sm:$0xff] %vm403_vm2, %v2452_v54  ;;  %v2383_v62 = vadd.f32 %v8974_v15, %v2139_v56  ;;  %v939_v33 = vrot.slane %v9046_v0, 1  ;;  %v1949_v53 = vmul.f32 %v7581_v16, %v758_v8  ;;  %v2419_v44 = vadd.f32 %v8882_v50, %v2381_v38 }
 0x1aa   : > { %v1184_v37 = vrot.slane %v9049_v30, 2  ;;  %v1506_v9 = vrot.slane %v1381_v59, 1  ;;  %v1750_v13 = vrot.slane %v9053_v43, 2  ;;  %v13164_v63 = vrot.slane %v13163_v42, 1  ;;  %v13169_v59 = vld [vmem:[#allocation119_spill] sm:$0xff] }
 0x1ab   : > { %v2421_v29 = vadd.f32 %v8882_v50, %v2383_v62  ;;  %v2072_v34 = vrot.slane %v1949_v53, 1  ;;  %v2193_v15 = vmul.f32 %v8498_v17, %v758_v8  ;;  %v2451_v49 = vmax.f32 %v2419_v44, 0.0  ;;  %v13172_v44 = vld [vmem:[#allocation118_spill] sm:$0xff] }
 0x1ac   : > { %v2071_v46 = vsel %vm860_vm0, %v13164_v63, %v2070_v32  ;;  %v9070_v11 = vsel %vm860_vm0, %v1504_v22, %v1506_v9  ;;  %v13166_v21 = vrot.slane %v13165_v24, 2  ;;  %v645_v31 = vmul.f32 %v7568_v5, %v13167_v41 }
 0x1ad   : > { %v2453_v61 = vmax.f32 %v2421_v29, 0.0  ;;  %v9078_v25 = vsel %vm860_vm0, %v2070_v32, %v2072_v34  ;;  %v2316_v28 = vrot.slane %v2193_v15, 2  ;;  %v9082_v40 = vmul.f32 %v7559_v1, %v13167_v41  ;;  %2484 = vst.msk [vmem:[#allocation2 + $0x111] sm:$0xff] %vm403_vm2, %v2451_v49 }
 0x1ae   : > { %v2315_v23 = vsel %vm1105_vm1, %v13166_v21, %v2314_v57  ;;  %v9087_v26 = vmul.f32 %v7570_v6, %v13167_v41  ;;  %v1291_v52 = vmul.f32 %v7572_v7, %v13167_v41  ;;  %v1322_v20 = vadd.f32 %v13168_v14, %v8921_v36 }
 0x1af   : > { %v1377_v8 = vmul.f32 %v7561_v2, %v13167_v41  ;;  %2486 = vst.msk [vmem:[#allocation2 + $0x129] sm:$0xff] %vm403_vm2, %v2453_v61  ;;  %v9097_v55 = vsel %vm1105_vm1, %v2314_v57, %v2316_v28  ;;  %v932_v60 = vrot.slane %v9082_v40, 1  ;;  %v1621_v48 = vmul.f32 %v7563_v3, %v13167_v41  ;;  %v13170_v57 = vld [vmem:[#allocation117_spill] sm:$0xff] }
 0x1b0   : > { %v1813_v47 = vadd.f32 %v8934_v18, %v9018_v19  ;;  %v1177_v35 = vrot.slane %v9087_v26, 2  ;;  %v1323_v36 = vadd.f32 %v1291_v52, %v8950_v45  ;;  %v1814_v54 = vadd.f32 %v8958_v27, %v1570_v58 }
 0x1b1   : > { %v1499_v32 = vrot.slane %v1377_v8, 1  ;;  %v1743_v56 = vrot.slane %v1621_v48, 2  ;;  %v1860_v39 = vmul.f32 %v7576_v12, %v13167_v41  ;;  %v1862_v38 = vmul.f32 %v7576_v12, %v13162_v4 }
 0x1b2   : > { %v1891_v62 = vadd.f32 %v13169_v59, %v1813_v47  ;;  %v13171_v53 = vrot.slane %v13170_v57, 1  ;;  %v1945_v19 = vmul.f32 %v7581_v16, %v13167_v41  ;;  %v2189_v45 = vmul.f32 %v8498_v17, %v13167_v41  ;;  %v13174_v41 = vld [vmem:[#allocation120_spill] sm:$0xff] }
 0x1b3   : > { %v808_v27 = vmul.f32 %v7559_v1, %v753_v10  ;;  %v13173_v9 = vrot.slane %v13172_v44, 2  ;;  %v1892_v42 = vadd.f32 %v1860_v39, %v1814_v54  ;;  %v1053_v63 = vmul.f32 %v7570_v6, %v753_v10  ;;  %v13178_v39 = vld [vmem:[#allocation124_spill] sm:$0xff] }
 0x1b4   : > { %v1500_v18 = vsel %vm860_vm0, %v13171_v53, %v1499_v32  ;;  %v2065_v34 = vrot.slane %v1945_v19, 1  ;;  %v2309_v15 = vrot.slane %v2189_v45, 2  ;;  %v1378_v24 = vmul.f32 %v7561_v2, %v753_v10 }
 0x1b5   : > { %v1571_v58 = vadd.f32 %v1500_v18, %v1322_v20  ;;  %v1744_v29 = vsel %vm1105_vm1, %v13173_v9, %v1743_v56  ;;  %v934_v49 = vrot.slane %v808_v27, 1  ;;  %v1179_v61 = vrot.slane %v1053_v63, 2  ;;  %v13176_v20 = vld [vmem:[#allocation121_spill] sm:$0xff] }
 0x1b6   : > { %v1622_v28 = vmul.f32 %v7563_v3, %v753_v10  ;;  %v1946_v17 = vmul.f32 %v7581_v16, %v753_v10  ;;  %v13175_v52 = vrot.slane %v13174_v41, 1  ;;  %v13177_v8 = vrot.slane %v13176_v20, 2 }
 0x1b7   : > { %v1815_v21 = vadd.f32 %v1744_v29, %v1571_v58  ;;  %v935_v47 = vsel %vm860_vm0, %v932_v60, %v934_v49  ;;  %v1501_v54 = vrot.slane %v1378_v24, 1  ;;  %v1180_v18 = vsel %vm1105_vm1, %v1177_v35, %v1179_v61  ;;  %v9144_v58 = vld [vmem:[%s12631_s2 + $0x8] ss:$0 sm:$0xff] }
 0x1b8   : > { %v2066_v14 = vsel %vm860_vm0, %v13175_v52, %v2065_v34  ;;  %v2310_v48 = vsel %vm1105_vm1, %v13177_v8, %v2309_v15  ;;  %v1002_v53 = vadd.f32 %v935_v47, %v645_v31  ;;  %v1745_v45 = vrot.slane %v1622_v28, 2 }
 0x1b9   : > { %v1893_v59 = vadd.f32 %v13178_v39, %v1815_v21  ;;  %v2140_v57 = vadd.f32 %v2066_v14, %v1891_v62  ;;  %v1502_v19 = vsel %vm860_vm0, %v1499_v32, %v1501_v54  ;;  %v2067_v27 = vrot.slane %v1946_v17, 1  ;;  %v9149_v62 = vpop.permute.xlu1 %1257  ;;  %v13179_v39 = vld [vmem:[#allocation113_spill] sm:$0xff] }
 0x1ba   : > { %v2190_v44 = vmul.f32 %v9144_v58, %v753_v10  ;;  %v9147_v63 = vadd.f32 %v1180_v18, %v1002_v53  ;;  %v1572_v31 = vadd.f32 %v1502_v19, %v1323_v36  ;;  %v1746_v49 = vsel %vm1105_vm1, %v1743_v56, %v1745_v45 }
 0x1bb   : > { %v2142_v9 = vadd.f32 %v2071_v46, %v1893_v59  ;;  %v2384_v29 = vadd.f32 %v2310_v48, %v2140_v57  ;;  %v2068_v32 = vsel %vm860_vm0, %v2065_v34, %v2067_v27  ;;  %v7371_v41 = vmov 0.0   ;;  %v13180_v57 = vld [vmem:[#allocation114_spill] sm:$0xff] }
 0x1bc   : > { %v2311_v24 = vrot.slane %v2190_v44, 2  ;;  %v1816_v28 = vadd.f32 %v1746_v49, %v1572_v31  ;;  %v2141_v17 = vadd.f32 %v2068_v32, %v1892_v42  ;;  %404 = vst.msk [vmem:[#allocation2] sm:$0xff] %vm403_vm2, %v7371_v41  ;;  %405 = vst.msk [vmem:[#allocation2 + $0x8] sm:$0xff] %vm403_vm2, %v7371_v41  ;;  %v9206_v34 = vmul.f32 %v7563_v3, %v9149_v62  ;;  %v13182_v44 = vld [vmem:[#allocation115_spill] sm:$0xff] }
 0x1bd   : > { %v2386_v21 = vadd.f32 %v2315_v23, %v2142_v9  ;;  %v2422_v61 = vadd.f32 %v8882_v50, %v2384_v29  ;;  %409 = vst.msk [vmem:[#allocation2 + $0x198] sm:$0xff] %vm403_vm2, %v7371_v41  ;;  %410 = vst.msk [vmem:[#allocation2 + $0x1a0] sm:$0xff] %vm403_vm2, %v7371_v41  ;;  %v9161_v23 = vmul.f32 %v7572_v7, %v9149_v62  ;;  %v13181_v53 = vrot.slane %v13180_v57, 1 }
 0x1be   : > { %v2312_v46 = vsel %vm1105_vm1, %v2309_v15, %v2311_v24  ;;  %v1894_v56 = vadd.f32 %v1862_v38, %v1816_v28  ;;  %407 = vst.msk [vmem:[#allocation2 + $0x10] sm:$0x3] %vm406_vm3, %v7371_v41  ;;  %411 = vst.msk [vmem:[#allocation2 + $0x1a8] sm:$0x3] %vm406_vm3, %v7371_v41  ;;  %v9202_v38 = vmul.f32 %v7561_v2, %v9149_v62  ;;  %v13183_v9 = vrot.slane %v13182_v44, 2 }
 0x1bf   : > { %v2424_v10 = vadd.f32 %v8882_v50, %v2386_v21  ;;  %v2454_v36 = vmax.f32 %v2422_v61, 0.0  ;;  %v2385_v42 = vadd.f32 %v2312_v46, %v2141_v17  ;;  %413 = vst.msk [vmem:[#allocation2] sm:$0x1] %vm412_vm4, %v7371_v41  ;;  %414 = vst.msk [vmem:[#allocation2 + $0x18] sm:$0x1] %vm412_vm4, %v7371_v41  ;;  %v9210_v15 = vmul.f32 %v7576_v12, %v9149_v62 }
 0x1c0   : > { %415 = vst.msk [vmem:[#allocation2 + $0x30] sm:$0x1] %vm412_vm4, %v7371_v41  ;;  %416 = vst.msk [vmem:[#allocation2 + $0x48] sm:$0x1] %vm412_vm4, %v7371_v41  ;;  %v9214_v52 = vmul.f32 %v7581_v16, %v9149_v62  ;;  %v2143_v20 = vadd.f32 %v9078_v25, %v1894_v56  ;;  %v9221_v48 = vmul.f32 %v9144_v58, %v9149_v62  ;;  %v1509_v47 = vrot.slane %v9202_v38, 1  ;;  %v1253_v25 = vpop.permute.xlu0 %1252  ;;  %v13184_v62 = vld [vmem:[#allocation123_spill] sm:$0xff] }
 0x1c1   : > { %417 = vst.msk [vmem:[#allocation2 + $0x60] sm:$0x1] %vm412_vm4, %v7371_v41  ;;  %418 = vst.msk [vmem:[#allocation2 + $0x78] sm:$0x1] %vm412_vm4, %v7371_v41  ;;  %v2456_v14 = vmax.f32 %v2424_v10, 0.0  ;;  %v2423_v8 = vadd.f32 %v8882_v50, %v2385_v42  ;;  %v644_v59 = vmul.f32 %v7568_v5, %v13179_v39  ;;  %v933_v18 = vsel %vm860_vm0, %v13181_v53, %v932_v60 }
 0x1c2   : > { %419 = vst.msk [vmem:[#allocation2 + $0x90] sm:$0x1] %vm412_vm4, %v7371_v41  ;;  %420 = vst.msk [vmem:[#allocation2 + $0xa8] sm:$0x1] %vm412_vm4, %v7371_v41  ;;  %v2075_v54 = vrot.slane %v9214_v52, 1  ;;  %v2387_v19 = vadd.f32 %v9097_v55, %v2143_v20  ;;  %v2319_v27 = vrot.slane %v9221_v48, 2  ;;  %v1178_v29 = vsel %vm1105_vm1, %v13183_v9, %v1177_v35 }
 0x1c3   : > { %421 = vst.msk [vmem:[#allocation2 + $0xc0] sm:$0x1] %vm412_vm4, %v7371_v41  ;;  %422 = vst.msk [vmem:[#allocation2 + $0xd8] sm:$0x1] %vm412_vm4, %v7371_v41  ;;  %v2455_v45 = vmax.f32 %v2423_v8, 0.0  ;;  %v2496_v31 = vld [vmem:[#allocation2 + $0x8] sm:$0xff]  ;;  %v1001_v40 = vadd.f32 %v933_v18, %v644_v59  ;;  %v1292_v49 = vmul.f32 %v7572_v7, %v13184_v62  ;;  %v1379_v60 = vmul.f32 %v7561_v2, %v13184_v62 }
 0x1c4   : > { %423 = vst.msk [vmem:[#allocation2 + $0xf0] sm:$0x1] %vm412_vm4, %v7371_v41  ;;  %424 = vst.msk [vmem:[#allocation2 + $0x108] sm:$0x1] %vm412_vm4, %v7371_v41  ;;  %v1623_v55 = vmul.f32 %v7563_v3, %v13184_v62  ;;  %v2425_v32 = vadd.f32 %v8882_v50, %v2387_v19  ;;  %v2598_v26 = vrot.slane %v2496_v31, 1  ;;  %v9250_v24 = vmul.f32 %v7563_v3, %v13162_v4 }
 0x1c5   : > { %425 = vst.msk [vmem:[#allocation2 + $0x120] sm:$0x1] %vm412_vm4, %v7371_v41  ;;  %426 = vst.msk [vmem:[#allocation2 + $0x138] sm:$0x1] %vm412_vm4, %v7371_v41  ;;  %v9253_v35 = vmul.f32 %v7572_v7, %v1253_v25  ;;  %v1246_v61 = vadd.f32 %v1178_v29, %v1001_v40  ;;  %v1503_v28 = vrot.slane %v1379_v60, 1  ;;  %v1626_v42 = vmul.f32 %v7563_v3, %v1253_v25 }
 0x1c6   : > { %427 = vst.msk [vmem:[#allocation2 + $0x150] sm:$0x1] %vm412_vm4, %v7371_v41  ;;  %428 = vst.msk [vmem:[#allocation2 + $0x168] sm:$0x1] %vm412_vm4, %v7371_v41  ;;  %v2495_v21 = vld [vmem:[#allocation2] sm:$0xff]  ;;  %v1747_v17 = vrot.slane %v1623_v55, 2  ;;  %v1863_v53 = vmul.f32 %v7576_v12, %v1253_v25  ;;  %v1950_v18 = vmul.f32 %v7581_v16, %v1253_v25  ;;  %v2194_v44 = vmul.f32 %v9144_v58, %v1253_v25 }
 0x1c7   : > { %429 = vst.msk [vmem:[#allocation2 + $0x180] sm:$0x1] %vm412_vm4, %v7371_v41  ;;  %432 = vst.msk [vmem:[#allocation2 + $0x29] sm:$0x1] %vm412_vm4, %v7371_v41  ;;  %v2457_v46 = vmax.f32 %v2425_v32, 0.0  ;;  %v1748_v56 = vrot.slane %v9250_v24, 2  ;;  %v1324_v20 = vadd.f32 %v1292_v49, %v1246_v61  ;;  %v1505_v8 = vsel %vm860_vm0, %v1503_v28, %v1504_v22 }
 0x1c8   : > { %433 = vst.msk [vmem:[#allocation2 + $0x41] sm:$0x1] %vm412_vm4, %v7371_v41  ;;  %434 = vst.msk [vmem:[#allocation2 + $0x59] sm:$0x1] %vm412_vm4, %v7371_v41  ;;  %v2773_v9 = vrot.slane %v2495_v21, 2  ;;  %v2074_v29 = vrot.slane %v1950_v18, 1  ;;  %v9270_v55 = vmul.f32 %v7559_v1, %v13162_v4  ;;  %v9274_v32 = vmul.f32 %v7570_v6, %v13162_v4 }
 0x1c9   : > { %435 = vst.msk [vmem:[#allocation2 + $0x71] sm:$0x1] %vm412_vm4, %v7371_v41  ;;  %436 = vst.msk [vmem:[#allocation2 + $0x89] sm:$0x1] %vm412_vm4, %v7371_v41  ;;  %v1749_v57 = vsel %vm1105_vm1, %v1747_v17, %v1748_v56  ;;  %v2774_v22 = vrot.slane %v2496_v31, 2  ;;  %v2318_v60 = vrot.slane %v2194_v44, 2 }
 0x1ca   : > { %437 = vst.msk [vmem:[#allocation2 + $0xa1] sm:$0x1] %vm412_vm4, %v7371_v41  ;;  %438 = vst.msk [vmem:[#allocation2 + $0xb9] sm:$0x1] %vm412_vm4, %v7371_v41  ;;  %v1753_v24 = vrot.slane %v9206_v34, 2  ;;  %v9315_v44 = vld [vmem:[#allocation2 + $0x18] sm:$0xff] }
 0x1cb   : > { %439 = vst.msk [vmem:[#allocation2 + $0xd1] sm:$0x1] %vm412_vm4, %v7371_v41  ;;  %440 = vst.msk [vmem:[#allocation2 + $0xe9] sm:$0x1] %vm412_vm4, %v7371_v41  ;;  %v2775_v31 = vsel %vm1105_vm1, %v2773_v9, %v2774_v22  ;;  %v2320_v28 = vsel %vm1105_vm1, %v2318_v60, %v2319_v27 }
 0x1cc   : > { %441 = vst.msk [vmem:[#allocation2 + $0x101] sm:$0x1] %vm412_vm4, %v7371_v41  ;;  %442 = vst.msk [vmem:[#allocation2 + $0x119] sm:$0x1] %vm412_vm4, %v7371_v41 }
 0x1cd   : > { %443 = vst.msk [vmem:[#allocation2 + $0x131] sm:$0x1] %vm412_vm4, %v7371_v41  ;;  %444 = vst.msk [vmem:[#allocation2 + $0x149] sm:$0x1] %vm412_vm4, %v7371_v41 }
 0x1ce   : > { %445 = vst.msk [vmem:[#allocation2 + $0x161] sm:$0x1] %vm412_vm4, %v7371_v41  ;;  %446 = vst.msk [vmem:[#allocation2 + $0x179] sm:$0x1] %vm412_vm4, %v7371_v41 }
 0x1cf   : > { %447 = vst.msk [vmem:[#allocation2 + $0x191] sm:$0x1] %vm412_vm4, %v7371_v41  ;;  %430 = vst.msk [vmem:[#allocation2 + $0x198] sm:$0x1] %vm412_vm4, %v7371_v41 }
 0x1d0   : > { %431 = vst.msk [vmem:[#allocation2 + $0x11] sm:$0x1] %vm412_vm4, %v7371_v41  ;;  %448 = vst.msk [vmem:[#allocation2 + $0x1a9] sm:$0x1] %vm412_vm4, %v7371_v41  ;;  %v1382_v41 = vmul.f32 %v7561_v2, %v1253_v25  ;;  %v2076_v25 = vsel %vm860_vm0, %v2074_v29, %v2075_v54 }
 0x1d1   : > { %2487 = vst.msk [vmem:[#allocation2 + $0x139] sm:$0xff] %vm403_vm2, %v2454_v36  ;;  %2489 = vst.msk [vmem:[#allocation2 + $0x151] sm:$0xff] %vm403_vm2, %v2456_v14  ;;  %v2597_v36 = vrot.slane %v2495_v21, 1  ;;  %v1824_v21 = vpop.permute.xlu1 %1823 }
 0x1d2   : > { %2488 = vst.msk [vmem:[#allocation2 + $0x141] sm:$0xff] %vm403_vm2, %v2455_v45  ;;  %v1508_v39 = vrot.slane %v1382_v41, 1  ;;  %2490 = vst.msk [vmem:[#allocation2 + $0x159] sm:$0xff] %vm403_vm2, %v2457_v46  ;;  %v1573_v45 = vadd.f32 %v1505_v8, %v1324_v20  ;;  %v937_v41 = vrot.slane %v9270_v55, 1  ;;  %v1182_v46 = vrot.slane %v9274_v32, 2  ;;  %v9399_v55 = vld [vmem:[#allocation2 + $0x68] sm:$0xff] }
 0x1d3   : > { %v2599_v59 = vsel %vm860_vm0, %v2597_v36, %v2598_v26  ;;  %v809_v36 = vmul.f32 %v7559_v1, %v13184_v62  ;;  %v9305_v1 = vmul.f32 %v9144_v58, %v1824_v21 }
 0x1d4   : > { %v1817_v49 = vadd.f32 %v1749_v57, %v1573_v45  ;;  %v1510_v8 = vsel %vm860_vm0, %v1508_v39, %v1509_v47  ;;  %v9298_v57 = vmul.f32 %v7576_v12, %v1824_v21  ;;  %v1293_v39 = vmul.f32 %v7572_v7, %v13162_v4 }
 0x1d5   : > { %v1751_v45 = vsel %vm1105_vm1, %v1748_v56, %v1750_v13  ;;  %v9328_v56 = vld [vmem:[#allocation2 + $0x20] sm:$0xff] }
 0x1d6   : > { %v1895_v61 = vadd.f32 %v1863_v53, %v1817_v49  ;;  %v936_v53 = vrot.slane %v809_v36, 1  ;;  %v1325_v43 = vadd.f32 %v1293_v39, %v9147_v63 }
 0x1d7   : > { %v2497_v10 = vld [vmem:[#allocation2 + $0x10] sm:$0x3] }
 0x1d8   : > { %v2600_v14 = vrot.slane %v2497_v10, 1  ;;  %v2776_v40 = vrot.slane %v2497_v10, 2  ;;  %v646_v10 = vmul.f32 %v7568_v5, %v13184_v62  ;;  %v2144_v20 = vadd.f32 %v2076_v25, %v1895_v61 }
 0x1d9   : > { %v938_v9 = vsel %vm860_vm0, %v936_v53, %v937_v41  ;;  %v1574_v63 = vadd.f32 %v9070_v11, %v1325_v43  ;;  %v1902_v11 = vpop.permute.xlu1 %1901 }
 0x1da   : > { %v2601_v19 = vsel %vm860_vm0, %v2598_v26, %v2600_v14  ;;  %v2777_v26 = vsel %vm1105_vm1, %v2774_v22, %v2776_v40  ;;  %v1054_v14 = vmul.f32 %v7570_v6, %v13184_v62  ;;  %v1331_v6 = vpop.permute.xlu0 %1330  ;;  %v2388_v62 = vadd.f32 %v2320_v28, %v2144_v20  ;;  %v9342_v20 = vld [vmem:[#allocation2 + $0x40] sm:$0x3] }
 0x1db   : > { %v5960_v51 = vpack.i.bf16 %v2601_v19, %v2599_v59  ;;  %v5965_v17 = vpack.i.bf16 %v2777_v26, %v2775_v31  ;;  %v1752_v59 = vrot.slane %v1626_v42, 2  ;;  %v9302_v19 = vmul.f32 %v7581_v16, %v1824_v21  ;;  %v9333_v31 = vld [vmem:[#allocation2 + $0x28] sm:$0x3]  ;;  %v9336_v21 = vld [vmem:[#allocation2 + $0x30] sm:$0xff] }
 0x1dc   : > { %v1181_v18 = vrot.slane %v1054_v14, 2  ;;  %v2323_v22 = vrot.slane %v9305_v1, 2  ;;  %v2426_v7 = vadd.f32 %v8882_v50, %v2388_v62  ;;  %v1003_v40 = vadd.f32 %v938_v9, %v646_v10 }
 0x1dd   : > { %5961 = vrot.lane.b32.xlu0 %v5960_v51, %s7372_s27  ;;  %v1754_v42 = vsel %vm1105_vm1, %v1752_v59, %v1753_v24  ;;  %v2079_v29 = vrot.slane %v9302_v19, 1  ;;  %v1384_v13 = vmul.f32 %v7561_v2, %v1331_v6  ;;  %v1628_v49 = vmul.f32 %v7563_v3, %v1331_v6  ;;  %v9339_v2 = vld [vmem:[#allocation2 + $0x38] sm:$0xff]  ;;  %v9437_v19 = vld [vmem:[#allocation2 + $0xa0] sm:$0x3] }
 0x1de   : > { %v1183_v51 = vsel %vm1105_vm1, %v1181_v18, %v1182_v46  ;;  %v1952_v60 = vmul.f32 %v7581_v16, %v1331_v6  ;;  %v2196_v25 = vmul.f32 %v9144_v58, %v1331_v6  ;;  %v2602_v26 = vrot.slane %v9315_v44, 1 }
 0x1df   : > { %v2458_v61 = vmax.f32 %v2426_v7, 0.0  ;;  %v1248_v28 = vadd.f32 %v1183_v51, %v1003_v40  ;;  %v1755_v10 = vrot.slane %v1628_v49, 2  ;;  %v2603_v14 = vrot.slane %v9328_v56, 1 }
 0x1e0   : > { %v2077_v36 = vrot.slane %v1952_v60, 1  ;;  %v2321_v3 = vrot.slane %v2196_v25, 2  ;;  %v1818_v53 = vadd.f32 %v1751_v45, %v1574_v63  ;;  %v2605_v18 = vrot.slane %v9333_v31, 1  ;;  %v1829_v60 = vpop.permute.xlu0 %1828 }
 0x1e1   : > { %5966 = vrot.lane.b32.xlu0 %v5965_v17, %s7373_s28  ;;  %v1511_v17 = vrot.slane %v1384_v13, 1  ;;  %2491 = vst.msk [vmem:[#allocation2 + $0x169] sm:$0xff] %vm403_vm2, %v2458_v61  ;;  %v1326_v59 = vadd.f32 %v9253_v35, %v1248_v28  ;;  %v2607_v6 = vrot.slane %v9336_v21, 1  ;;  %v2604_v9 = vsel %vm860_vm0, %v2602_v26, %v2603_v14  ;;  %v9376_v26 = vld [vmem:[#allocation2 + $0x48] sm:$0xff] }
 0x1e2   : > { %v2078_v62 = vsel %vm860_vm0, %v2075_v54, %v2077_v36  ;;  %v2322_v39 = vsel %vm1105_vm1, %v2319_v27, %v2321_v3  ;;  %v2608_v51 = vrot.slane %v9339_v2, 1  ;;  %v1896_v35 = vadd.f32 %v9210_v15, %v1818_v53  ;;  %v9384_v3 = vld [vmem:[#allocation2 + $0x50] sm:$0xff] }
 0x1e3   : > { %v1575_v7 = vadd.f32 %v1510_v8, %v1326_v59  ;;  %v2606_v45 = vsel %vm860_vm0, %v2603_v14, %v2605_v18  ;;  %v2610_v40 = vrot.slane %v9342_v20, 1  ;;  %v1955_v54 = vmul.f32 %v7581_v16, %v1902_v11  ;;  %v9405_v14 = vld [vmem:[#allocation2 + $0x70] sm:$0x3] }
 0x1e4   : > { %v9359_v43 = vpack.i.bf16 %v2606_v45, %v2604_v9  ;;  %v2609_v52 = vsel %vm860_vm0, %v2607_v6, %v2608_v51  ;;  %v2145_v13 = vadd.f32 %v2078_v62, %v1896_v35  ;;  %v2199_v49 = vmul.f32 %v9144_v58, %v1902_v11  ;;  %v9415_v6 = vld [vmem:[#allocation2 + $0x78] sm:$0xff]  ;;  %v9417_v11 = vld [vmem:[#allocation2 + $0x80] sm:$0xff]  ;;  %v9419_v62 = vld [vmem:[#allocation2 + $0x88] sm:$0x3] }
 0x1e5   : > { %v1819_v48 = vadd.f32 %v1754_v42, %v1575_v7  ;;  %v2611_v27 = vsel %vm860_vm0, %v2608_v51, %v2610_v40  ;;  %v2082_v8 = vrot.slane %v1955_v54, 1  ;;  %v647_v25 = vmul.f32 %v7568_v5, %v13162_v4  ;;  %v9386_v5 = vld [vmem:[#allocation2 + $0x58] sm:$0x3]  ;;  %v9388_v4 = vld [vmem:[#allocation2 + $0x60] sm:$0xff]  ;;  %v9430_v7 = vld [vmem:[#allocation2 + $0x90] sm:$0xff] }
 0x1e6   : > { %5971 = vrot.lane.b32.xlu1 %v9359_v43, %s7372_s27  ;;  %v9367_v15 = vpack.i.bf16 %v2611_v27, %v2609_v52  ;;  %v940_v42 = vsel %vm860_vm0, %v937_v41, %v939_v33  ;;  %v2389_v28 = vadd.f32 %v2322_v39, %v2145_v13  ;;  %v2326_v63 = vrot.slane %v2199_v49, 2  ;;  %v9435_v54 = vld [vmem:[#allocation2 + $0x98] sm:$0xff]  ;;  %v9443_v13 = vld [vmem:[#allocation2 + $0xa8] sm:$0xff] }
 0x1e7   : > { %v1897_v61 = vadd.f32 %v9298_v57, %v1819_v48  ;;  %v1185_v36 = vsel %vm1105_vm1, %v1182_v46, %v1184_v37  ;;  %v1004_v0 = vadd.f32 %v940_v42, %v647_v25  ;;  %v1512_v33 = vsel %vm860_vm0, %v1509_v47, %v1511_v17  ;;  %v9450_v25 = vld [vmem:[#allocation2 + $0xb0] sm:$0xff]  ;;  %v9452_v42 = vld [vmem:[#allocation2 + $0xb8] sm:$0x3] }
 0x1e8   : > { %13185 = vst [vmem:[#allocation7_spill] sm:$0xff] %v9367_v15  ;;  %5976 = vrot.lane.b32.xlu0 %v9367_v15, %s7372_s27  ;;  %v1756_v30 = vsel %vm1105_vm1, %v1753_v24, %v1755_v10  ;;  %v1866_v37 = vmul.f32 %v7576_v12, %v1829_v60  ;;  %v2427_v32 = vadd.f32 %v8882_v50, %v2389_v28  ;;  %v2612_v57 = vrot.slane %v9376_v26, 1 }
 0x1e9   : > { %v1954_v41 = vmul.f32 %v7581_v16, %v1829_v60  ;;  %v2198_v46 = vmul.f32 %v9144_v58, %v1829_v60  ;;  %v1249_v38 = vadd.f32 %v1185_v36, %v1004_v0  ;;  %v2613_v47 = vrot.slane %v9384_v3, 1  ;;  %v9458_v0 = vld [vmem:[#allocation2 + $0xc0] sm:$0xff] }
 0x1ea   : > { %v2615_v34 = vrot.slane %v9386_v5, 1  ;;  %v2617_v24 = vrot.slane %v9388_v4, 1  ;;  %v2459_v12 = vmax.f32 %v2427_v32, 0.0  ;;  %v2618_v59 = vrot.slane %v9399_v55, 1 }
 0x1eb   : > { %v2080_v17 = vrot.slane %v1954_v41, 1  ;;  %v2324_v10 = vrot.slane %v2198_v46, 2  ;;  %v1327_v16 = vadd.f32 %v9161_v23, %v1249_v38  ;;  %v2614_v58 = vsel %vm860_vm0, %v2612_v57, %v2613_v47  ;;  %v9466_v46 = vld [vmem:[#allocation2 + $0xc8] sm:$0xff]  ;;  %v9468_v57 = vld [vmem:[#allocation2 + $0xd0] sm:$0x3] }
 0x1ec   : > { %v2616_v53 = vsel %vm860_vm0, %v2613_v47, %v2615_v34  ;;  %v2620_v18 = vrot.slane %v9405_v14, 1  ;;  %2492 = vst.msk [vmem:[#allocation2 + $0x171] sm:$0xff] %vm403_vm2, %v2459_v12  ;;  %v2619_v52 = vsel %vm860_vm0, %v2617_v24, %v2618_v59  ;;  %v2622_v1 = vrot.slane %v9415_v6, 1  ;;  %v9476_v24 = vld [vmem:[#allocation2 + $0xe0] sm:$0xff] }
 0x1ed   : > { %v2081_v39 = vsel %vm860_vm0, %v2079_v29, %v2080_v17  ;;  %v2083_v23 = vsel %vm860_vm0, %v2080_v17, %v2082_v8  ;;  %v2325_v9 = vsel %vm1105_vm1, %v2323_v22, %v2324_v10  ;;  %v2327_v51 = vsel %vm1105_vm1, %v2324_v10, %v2326_v63 }
 0x1ee   : > { %v1576_v35 = vadd.f32 %v1512_v33, %v1327_v16  ;;  %v2146_v45 = vadd.f32 %v2081_v39, %v1897_v61  ;;  %v9432_v40 = vpack.i.bf16 %v2616_v53, %v2614_v58  ;;  %v2621_v29 = vsel %vm860_vm0, %v2618_v59, %v2620_v18  ;;  %v9483_v16 = vld [vmem:[#allocation2 + $0xe8] sm:$0x3]  ;;  %v9485_v58 = vld [vmem:[#allocation2 + $0xf0] sm:$0xff] }
 0x1ef   : > { %v2623_v22 = vrot.slane %v9417_v11, 1  ;;  %v2625_v48 = vrot.slane %v9419_v62, 1  ;;  %v9447_v60 = vpack.i.bf16 %v2621_v29, %v2619_v52  ;;  %v2627_v8 = vrot.slane %v9430_v7, 1 }
 0x1f0   : > { %v1820_v27 = vadd.f32 %v1756_v30, %v1576_v35  ;;  %v2390_v49 = vadd.f32 %v2325_v9, %v2146_v45  ;;  %5981 = vrot.lane.b32.xlu1 %v9432_v40, %s7372_s27  ;;  %v2628_v63 = vrot.slane %v9435_v54, 1  ;;  %v2630_v36 = vrot.slane %v9437_v19, 1  ;;  %v9491_v9 = vld [vmem:[#allocation2 + $0xf8] sm:$0xff] }
 0x1f1   : > { %13186 = vst [vmem:[#allocation17_spill] sm:$0xff] %v9447_v60  ;;  %v2624_v61 = vsel %vm860_vm0, %v2622_v1, %v2623_v22  ;;  %v2626_v28 = vsel %vm860_vm0, %v2623_v22, %v2625_v48  ;;  %5986 = vrot.lane.b32.xlu0 %v9447_v60, %s7372_s27  ;;  %v2632_v41 = vrot.slane %v9443_v13, 1  ;;  %v2633_v34 = vrot.slane %v9450_v25, 1  ;;  %v9500_v1 = vld [vmem:[#allocation2 + $0x100] sm:$0x3]  ;;  %v9502_v22 = vld [vmem:[#allocation2 + $0x108] sm:$0xff] }
 0x1f2   : > { %v1898_v33 = vadd.f32 %v1866_v37, %v1820_v27  ;;  %v2428_v30 = vadd.f32 %v8882_v50, %v2390_v49  ;;  %v9463_v32 = vpack.i.bf16 %v2626_v28, %v2624_v61  ;;  %v2629_v38 = vsel %vm860_vm0, %v2627_v8, %v2628_v63  ;;  %v9474_v50 = vld [vmem:[#allocation2 + $0xd8] sm:$0xff]  ;;  %v9504_v48 = vld [vmem:[#allocation2 + $0x110] sm:$0xff]  ;;  %v7252_v28 = vld [vmem:[%s12632_s3] ss:$0 sm:$0xff] }
 0x1f3   : > { %v2631_v47 = vsel %vm860_vm0, %v2628_v63, %v2630_v36  ;;  %v2635_v37 = vrot.slane %v9452_v42, 1  ;;  %v2637_v59 = vrot.slane %v9458_v0, 1  ;;  %v2634_v53 = vsel %vm860_vm0, %v2632_v41, %v2633_v34  ;;  %v9510_v61 = vld [vmem:[#allocation2 + $0x118] sm:$0x3]  ;;  %v9521_v41 = vld [vmem:[#allocation2 + $0x120] sm:$0xff] }
 0x1f4   : > { %13187 = vst [vmem:[#allocation8_spill] sm:$0xff] %v9463_v32  ;;  %v2147_v12 = vadd.f32 %v2083_v23, %v1898_v33  ;;  %v2460_v17 = vmax.f32 %v2428_v30, 0.0  ;;  %5991 = vrot.lane.b32.xlu1 %v9463_v32, %s7372_s27  ;;  %v9480_v10 = vpack.i.bf16 %v2631_v47, %v2629_v38  ;;  %v2638_v39 = vrot.slane %v9466_v46, 1  ;;  %v9523_v38 = vld [vmem:[#allocation2 + $0x128] sm:$0xff]  ;;  %v9580_v60 = vld [vmem:[#allocation2 + $0x178] sm:$0x3] }
 0x1f5   : > { %v2636_v18 = vsel %vm860_vm0, %v2633_v34, %v2635_v37  ;;  %v2640_v23 = vrot.slane %v9468_v57, 1  ;;  %v2642_v52 = vrot.slane %v9474_v50, 1  ;;  %v2643_v29 = vrot.slane %v9476_v24, 1 }
 0x1f6   : > { %13188 = vst [vmem:[#allocation9_spill] sm:$0xff] %v9480_v10  ;;  %v2391_v35 = vadd.f32 %v2327_v51, %v2147_v12  ;;  %2493 = vst.msk [vmem:[#allocation2 + $0x181] sm:$0xff] %vm403_vm2, %v2460_v17  ;;  %5996 = vrot.lane.b32.xlu0 %v9480_v10, %s7372_s27  ;;  %v9496_v45 = vpack.i.bf16 %v2636_v18, %v2634_v53  ;;  %v2639_v27 = vsel %vm860_vm0, %v2637_v59, %v2638_v39  ;;  %v9529_v17 = vld [vmem:[#allocation2 + $0x130] sm:$0x3]  ;;  %v9531_v59 = vld [vmem:[#allocation2 + $0x138] sm:$0xff] }
 0x1f7   : > { %v2641_v51 = vsel %vm860_vm0, %v2638_v39, %v2640_v23  ;;  %v2645_v49 = vrot.slane %v9483_v16, 1  ;;  %v2647_v8 = vrot.slane %v9485_v58, 1  ;;  %v2644_v33 = vsel %vm860_vm0, %v2642_v52, %v2643_v29  ;;  %v9541_v52 = vld [vmem:[#allocation2 + $0x148] sm:$0x3] }
 0x1f8   : > { %13189 = vst [vmem:[#allocation11_spill] sm:$0xff] %v9496_v45  ;;  %v2429_v63 = vadd.f32 %v7252_v28, %v2391_v35  ;;  %6001 = vrot.lane.b32.xlu1 %v9496_v45, %s7372_s27  ;;  %v9517_v36 = vpack.i.bf16 %v2641_v51, %v2639_v27  ;;  %v2648_v30 = vrot.slane %v9491_v9, 1  ;;  %v2650_v34 = vrot.slane %v9500_v1, 1  ;;  %v9539_v35 = vld [vmem:[#allocation2 + $0x140] sm:$0xff]  ;;  %v9547_v28 = vld [vmem:[#allocation2 + $0x150] sm:$0xff] }
 0x1f9   : > { %v2646_v47 = vsel %vm860_vm0, %v2643_v29, %v2645_v49  ;;  %v2652_v37 = vrot.slane %v9502_v22, 1  ;;  %v2653_v12 = vrot.slane %v9504_v48, 1  ;;  %v2655_v23 = vrot.slane %v9510_v61, 1 }
 0x1fa   : > { %13190 = vst [vmem:[#allocation16_spill] sm:$0xff] %v9517_v36  ;;  %v2461_v53 = vmax.f32 %v2429_v63, 0.0  ;;  %6006 = vrot.lane.b32.xlu0 %v9517_v36, %s7372_s27  ;;  %v9535_v18 = vpack.i.bf16 %v2646_v47, %v2644_v33  ;;  %v2649_v39 = vsel %vm860_vm0, %v2647_v8, %v2648_v30  ;;  %v2651_v29 = vsel %vm860_vm0, %v2648_v30, %v2650_v34  ;;  %v9549_v63 = vld [vmem:[#allocation2 + $0x158] sm:$0xff]  ;;  %v9551_v33 = vld [vmem:[#allocation2 + $0x160] sm:$0x3] }
 0x1fb   : > { %v2654_v27 = vsel %vm860_vm0, %v2652_v37, %v2653_v12  ;;  %v2657_v51 = vrot.slane %v9521_v41, 1  ;;  %v2658_v49 = vrot.slane %v9523_v38, 1  ;;  %v9556_v8 = vpack.i.bf16 %v2651_v29, %v2649_v39  ;;  %v9572_v29 = vld [vmem:[#allocation2 + $0x168] sm:$0xff] }
 0x1fc   : > { %13191 = vst [vmem:[#allocation24_spill] sm:$0xff] %v9535_v18  ;;  %2494 = vst.msk [vmem:[#allocation2 + $0x189] sm:$0xff] %vm403_vm2, %v2461_v53  ;;  %6011 = vrot.lane.b32.xlu1 %v9535_v18, %s7372_s27  ;;  %v2656_v30 = vsel %vm860_vm0, %v2653_v12, %v2655_v23  ;;  %v2660_v47 = vrot.slane %v9529_v17, 1  ;;  %v2662_v34 = vrot.slane %v9531_v59, 1  ;;  %v2663_v10 = vrot.slane %v9539_v35, 1 }
 0x1fd   : > { %13192 = vst [vmem:[#allocation23_spill] sm:$0xff] %v9556_v8  ;;  %v9561_v37 = vpack.i.bf16 %v2656_v30, %v2654_v27  ;;  %v2659_v36 = vsel %vm860_vm0, %v2657_v51, %v2658_v49  ;;  %v2665_v45 = vrot.slane %v9541_v52, 1  ;;  %v2667_v39 = vrot.slane %v9547_v28, 1  ;;  %v9574_v27 = vld [vmem:[#allocation2 + $0x170] sm:$0xff] }
 0x1fe   : > { %6016 = vrot.lane.b32.xlu0 %v9556_v8, %s7372_s27  ;;  %v2661_v53 = vsel %vm860_vm0, %v2658_v49, %v2660_v47  ;;  %v2668_v12 = vrot.slane %v9549_v63, 1  ;;  %v2670_v23 = vrot.slane %v9551_v33, 1  ;;  %v2664_v30 = vsel %vm860_vm0, %v2662_v34, %v2663_v10 }
 0x1ff   : > { %13193 = vst [vmem:[#allocation25_spill] sm:$0xff] %v9561_v37  ;;  %v9576_v51 = vpack.i.bf16 %v2661_v53, %v2659_v36  ;;  %v2666_v18 = vsel %vm860_vm0, %v2663_v10, %v2665_v45  ;;  %v2784_v32 = vrot.slane %v9339_v2, 2  ;;  %v2783_v36 = vrot.slane %v9336_v21, 2 }
 0x200   : > { %6021 = vrot.lane.b32.xlu1 %v9561_v37, %s7372_s27  ;;  %v9584_v49 = vpack.i.bf16 %v2666_v18, %v2664_v30  ;;  %v2669_v47 = vsel %vm860_vm0, %v2667_v39, %v2668_v12  ;;  %v2671_v8 = vsel %vm860_vm0, %v2668_v12, %v2670_v23  ;;  %v2786_v53 = vrot.slane %v9342_v20, 2 }
 0x201   : > { %13194 = vst [vmem:[#allocation28_spill] sm:$0xff] %v9576_v51  ;;  %v2672_v34 = vrot.slane %v9572_v29, 1  ;;  %v2673_v10 = vrot.slane %v9574_v27, 1  ;;  %v9595_v45 = vpack.i.bf16 %v2671_v8, %v2669_v47  ;;  %v2675_v18 = vrot.slane %v9580_v60, 1 }
 0x202   : > { %13195 = vst [vmem:[#allocation29_spill] sm:$0xff] %v9584_v49  ;;  %6026 = vrot.lane.b32.xlu0 %v9576_v51, %s7372_s27  ;;  %v2785_v39 = vsel %vm1105_vm1, %v2783_v36, %v2784_v32  ;;  %v2794_v23 = vrot.slane %v9399_v55, 2  ;;  %v2778_v30 = vrot.slane %v9315_v44, 2  ;;  %v2779_v37 = vrot.slane %v9328_v56, 2 }
 0x203   : > { %v2674_v12 = vsel %vm860_vm0, %v2672_v34, %v2673_v10  ;;  %v2676_v20 = vsel %vm860_vm0, %v2673_v10, %v2675_v18  ;;  %v2787_v8 = vsel %vm1105_vm1, %v2784_v32, %v2786_v53  ;;  %v2796_v51 = vrot.slane %v9405_v14, 2 }
 0x204   : > { %6031 = vrot.lane.b32.xlu1 %v9584_v49, %s7372_s27  ;;  %v9607_v47 = vpack.i.bf16 %v2676_v20, %v2674_v12  ;;  %v2781_v36 = vrot.slane %v9333_v31, 2  ;;  %v2780_v34 = vsel %vm1105_vm1, %v2778_v30, %v2779_v37  ;;  %v2793_v10 = vrot.slane %v9388_v4, 2 }
 0x205   : > { %v2789_v49 = vrot.slane %v9384_v3, 2  ;;  %v2791_v15 = vrot.slane %v9386_v5, 2  ;;  %v9618_v32 = vpack.i.bf16 %v2787_v8, %v2785_v39  ;;  %v2804_v31 = vrot.slane %v9435_v54, 2 }
 0x206   : > { %6036 = vrot.lane.b32.xlu0 %v9595_v45, %s7372_s27  ;;  %v2782_v18 = vsel %vm1105_vm1, %v2779_v37, %v2781_v36  ;;  %v2795_v53 = vsel %vm1105_vm1, %v2793_v10, %v2794_v23  ;;  %v2797_v12 = vsel %vm1105_vm1, %v2794_v23, %v2796_v51  ;;  %v2806_v20 = vrot.slane %v9437_v19, 2 }
 0x207   : > { %v9622_v14 = vpack.i.bf16 %v2782_v18, %v2780_v34  ;;  %v2788_v37 = vrot.slane %v9376_v26, 2  ;;  %v2803_v5 = vrot.slane %v9430_v7, 2  ;;  %v2792_v30 = vsel %vm1105_vm1, %v2789_v49, %v2791_v15 }
 0x208   : > { %6041 = vrot.lane.b32.xlu1 %v9607_v47, %s7372_s27  ;;  %v2799_v8 = vrot.slane %v9417_v11, 2  ;;  %v2801_v36 = vrot.slane %v9419_v62, 2  ;;  %v9636_v34 = vpack.i.bf16 %v2797_v12, %v2795_v53  ;;  %v2807_v51 = vsel %vm1105_vm1, %v2804_v31, %v2806_v20 }
 0x209   : > { %v2790_v39 = vsel %vm1105_vm1, %v2788_v37, %v2789_v49  ;;  %v2805_v19 = vsel %vm1105_vm1, %v2803_v5, %v2804_v31  ;;  %v2814_v23 = vrot.slane %v9466_v46, 2  ;;  %v2816_v10 = vrot.slane %v9468_v57, 2 }
 0x20a   : > { %6051 = vrot.lane.b32.xlu0 %v9618_v32, %s7373_s28  ;;  %v2798_v18 = vrot.slane %v9415_v6, 2  ;;  %v9647_v15 = vpack.i.bf16 %v2792_v30, %v2790_v39  ;;  %v2813_v62 = vrot.slane %v9458_v0, 2  ;;  %v2824_v49 = vrot.slane %v9491_v9, 2 }
 0x20b   : > { %v2826_v53 = vrot.slane %v9500_v1, 2  ;;  %v2802_v31 = vsel %vm1105_vm1, %v2799_v8, %v2801_v36  ;;  %v2809_v20 = vrot.slane %v9450_v25, 2  ;;  %v2811_v57 = vrot.slane %v9452_v42, 2 }
 0x20c   : > { %6046 = vrot.lane.b32.xlu1 %v9622_v14, %s7373_s28  ;;  %v2800_v12 = vsel %vm1105_vm1, %v2798_v18, %v2799_v8  ;;  %v9656_v37 = vpack.i.bf16 %v2807_v51, %v2805_v19  ;;  %v2823_v5 = vrot.slane %v9485_v58, 2  ;;  %v2815_v39 = vsel %vm1105_vm1, %v2813_v62, %v2814_v23 }
 0x20d   : > { %v2817_v30 = vsel %vm1105_vm1, %v2814_v23, %v2816_v10  ;;  %v2808_v1 = vrot.slane %v9443_v13, 2  ;;  %v9666_v8 = vpack.i.bf16 %v2802_v31, %v2800_v12  ;;  %v2827_v36 = vsel %vm1105_vm1, %v2824_v49, %v2826_v53 }
 0x20e   : > { %6061 = vrot.lane.b32.xlu0 %v9636_v34, %s7373_s28  ;;  %13196 = vst [vmem:[#allocation31_spill] sm:$0xff] %v9656_v37  ;;  %v2825_v42 = vsel %vm1105_vm1, %v2823_v5, %v2824_v49  ;;  %v2834_v19 = vrot.slane %v9523_v38, 2  ;;  %v2812_v18 = vsel %vm1105_vm1, %v2809_v20, %v2811_v57  ;;  %v2819_v62 = vrot.slane %v9476_v24, 2 }
 0x20f   : > { %v2810_v51 = vsel %vm1105_vm1, %v2808_v1, %v2809_v20  ;;  %v2821_v23 = vrot.slane %v9483_v16, 2  ;;  %v9675_v10 = vpack.i.bf16 %v2817_v30, %v2815_v39  ;;  %v2836_v12 = vrot.slane %v9529_v17, 2 }
 0x210   : > { %6056 = vrot.lane.b32.xlu1 %v9647_v15, %s7373_s28  ;;  %v2844_v31 = vrot.slane %v9549_v63, 2  ;;  %v2846_v49 = vrot.slane %v9551_v33, 2  ;;  %v2833_v53 = vrot.slane %v9521_v41, 2  ;;  %v2818_v5 = vrot.slane %v9474_v50, 2 }
 0x211   : > { %v2829_v20 = vrot.slane %v9504_v48, 2  ;;  %v2831_v57 = vrot.slane %v9510_v61, 2  ;;  %v9688_v16 = vpack.i.bf16 %v2827_v36, %v2825_v42  ;;  %v9690_v39 = vpack.i.bf16 %v2812_v18, %v2810_v51 }
 0x212   : > { %6071 = vrot.lane.b32.xlu0 %v9656_v37, %s7373_s28  ;;  %v2843_v17 = vrot.slane %v9547_v28, 2  ;;  %v2835_v30 = vsel %vm1105_vm1, %v2833_v53, %v2834_v19  ;;  %v2820_v33 = vsel %vm1105_vm1, %v2818_v5, %v2819_v62  ;;  %v2822_v1 = vsel %vm1105_vm1, %v2819_v62, %v2821_v23 }
 0x213   : > { %v2828_v37 = vrot.slane %v9502_v22, 2  ;;  %v2837_v61 = vsel %vm1105_vm1, %v2834_v19, %v2836_v12  ;;  %v2847_v36 = vsel %vm1105_vm1, %v2844_v31, %v2846_v49  ;;  %v2839_v51 = vrot.slane %v9539_v35, 2 }
 0x214   : > { %6066 = vrot.lane.b32.xlu1 %v9666_v8, %s7373_s28  ;;  %v2845_v42 = vsel %vm1105_vm1, %v2843_v17, %v2844_v31  ;;  %v2832_v53 = vsel %vm1105_vm1, %v2829_v20, %v2831_v57  ;;  %v2841_v5 = vrot.slane %v9541_v52, 2  ;;  %v9708_v62 = vpack.i.bf16 %v2822_v1, %v2820_v33  ;;  %v2544_v1 = vld [vmem:[#allocation2 + $0x188] sm:$0xff] }
 0x215   : > { %v2830_v18 = vsel %vm1105_vm1, %v2828_v37, %v2829_v20  ;;  %v2838_v23 = vrot.slane %v9531_v59, 2  ;;  %v9711_v19 = vpack.i.bf16 %v2837_v61, %v2835_v30  ;;  %v9713_v12 = vpack.i.bf16 %v2847_v36, %v2845_v42  ;;  %v2545_v61 = vld [vmem:[#allocation2 + $0x190] sm:$0x3]  ;;  %v2543_v42 = vld [vmem:[#allocation2 + $0x180] sm:$0xff] }
 0x216   : > { %6081 = vrot.lane.b32.xlu0 %v9675_v10, %s7373_s28  ;;  %v9717_v31 = vpack.i.bf16 %v2832_v53, %v2830_v18  ;;  %v2849_v52 = vrot.slane %v9574_v27, 2  ;;  %v2842_v49 = vsel %vm1105_vm1, %v2839_v51, %v2841_v5  ;;  %v2851_v20 = vrot.slane %v9580_v60, 2 }
 0x217   : > { %v2840_v37 = vsel %vm1105_vm1, %v2838_v23, %v2839_v51  ;;  %v2848_v57 = vrot.slane %v9572_v29, 2  ;;  %v6115_v60 = vpack.i.bf16 %v9328_v56, %v9315_v44  ;;  %v3049_v51 = vrot.slane %v2544_v1, 1 }
 0x218   : > { %6076 = vrot.lane.b32.xlu1 %v9690_v39, %s7373_s28  ;;  %v9728_v17 = vpack.i.bf16 %v2842_v49, %v2840_v37  ;;  %v2852_v33 = vsel %vm1105_vm1, %v2849_v52, %v2851_v20  ;;  %v3051_v18 = vrot.slane %v2545_v61, 1  ;;  %v3150_v53 = vrot.slane %v2544_v1, 2  ;;  %v13206_v20 = vld [vmem:[#allocation29_spill] sm:$0xff] }
 0x219   : > { %v2850_v30 = vsel %vm1105_vm1, %v2848_v57, %v2849_v52  ;;  %v3152_v5 = vrot.slane %v2545_v61, 2  ;;  %v9743_v23 = vpack.i.bf16 %v9384_v3, %v9376_v26  ;;  %v3048_v44 = vrot.slane %v2543_v42, 1 }
 0x21a   : > { %6091 = vrot.lane.b32.xlu0 %v9688_v16, %s7373_s28  ;;  %v9738_v36 = vpack.i.bf16 %v2852_v33, %v2850_v30  ;;  %v3149_v56 = vrot.slane %v2543_v42, 2  ;;  %v9749_v37 = vpack.i.bf16 %v9417_v11, %v9415_v6  ;;  %v9753_v52 = vpack.i.bf16 %v9339_v2, %v9336_v21  ;;  %v13207_v30 = vld [vmem:[#allocation28_spill] sm:$0xff] }
 0x21b   : > { %v9757_v49 = vpack.i.bf16 %v9450_v25, %v9443_v13  ;;  %v9763_v26 = vpack.i.bf16 %v9399_v55, %v9388_v4  ;;  %v3050_v3 = vsel %vm860_vm0, %v3048_v44, %v3049_v51  ;;  %v3052_v6 = vsel %vm860_vm0, %v3049_v51, %v3051_v18  ;;  %v13208_v44 = vld [vmem:[#allocation31_spill] sm:$0xff] }
 0x21c   : > { %6086 = vrot.lane.b32.xlu1 %v9708_v62, %s7373_s28  ;;  %v3151_v11 = vsel %vm1105_vm1, %v3149_v56, %v3150_v53  ;;  %v3153_v21 = vsel %vm1105_vm1, %v3150_v53, %v3152_v5  ;;  %v9779_v2 = vpack.i.bf16 %v9435_v54, %v9430_v7  ;;  %v9781_v4 = vpack.i.bf16 %v3052_v6, %v3050_v3 }
 0x21d   : > { %v9783_v55 = vpack.i.bf16 %v3153_v21, %v3151_v11  ;;  %v9787_v13 = vpack.i.bf16 %v9476_v24, %v9474_v50  ;;  %v9795_v25 = vpack.i.bf16 %v9466_v46, %v9458_v0  ;;  %v9799_v7 = vpack.i.bf16 %v9504_v48, %v9502_v22  ;;  %v13198_v22 = vld [vmem:[#allocation8_spill] sm:$0xff]  ;;  %v13199_v48 = vld [vmem:[#allocation17_spill] sm:$0xff] }
 0x21e   : > { %6101 = vrot.lane.b32.xlu0 %v9711_v19, %s7373_s28  ;;  %v9807_v54 = vpack.i.bf16 %v9491_v9, %v9485_v58  ;;  %v9811_v50 = vpack.i.bf16 %v9539_v35, %v9531_v59  ;;  %v9819_v0 = vpack.i.bf16 %v9523_v38, %v9521_v41  ;;  %v9823_v46 = vpack.i.bf16 %v9574_v27, %v9572_v29  ;;  %v13197_v9 = vld [vmem:[#allocation7_spill] sm:$0xff]  ;;  %v13201_v38 = vld [vmem:[#allocation9_spill] sm:$0xff]  ;;  %v13202_v59 = vld [vmem:[#allocation24_spill] sm:$0xff] }
 0x21f   : > { %v9831_v24 = vpack.i.bf16 %v9549_v63, %v9547_v28  ;;  %v9837_v58 = vpack.i.bf16 %v2544_v1, %v2543_v42  ;;  %v13200_v41 = vld [vmem:[#allocation11_spill] sm:$0xff]  ;;  %v13203_v35 = vld [vmem:[#allocation16_spill] sm:$0xff]  ;;  %v13204_v63 = vld [vmem:[#allocation25_spill] sm:$0xff] }
 0x220   : > { %6096 = vrot.lane.b32.xlu1 %v9717_v31, %s7373_s28  ;;  %v13205_v29 = vld [vmem:[#allocation23_spill] sm:$0xff] }
 0x222   : > { %6111 = vrot.lane.b32.xlu0 %v9713_v12, %s7373_s28 }
 0x224   : > { %6106 = vrot.lane.b32.xlu1 %v9728_v17, %s7373_s28 }
 0x226   : > { %6116 = vrot.lane.b32.xlu0 %v6115_v60, %s7374_s16 }
 0x228   : > { %6121 = vrot.lane.b32.xlu1 %v9738_v36, %s7373_s28 }
 0x22a   : > { %6131 = vrot.lane.b32.xlu0 %v9743_v23, %s7374_s16 }
 0x22c   : > { %6126 = vrot.lane.b32.xlu1 %v9753_v52, %s7374_s16 }
 0x22e   : > { %6141 = vrot.lane.b32.xlu0 %v9749_v37, %s7374_s16 }
 0x230   : > { %6136 = vrot.lane.b32.xlu1 %v9763_v26, %s7374_s16 }
 0x232   : > { %6151 = vrot.lane.b32.xlu0 %v9757_v49, %s7374_s16 }
 0x234   : > { %6146 = vrot.lane.b32.xlu1 %v9779_v2, %s7374_s16 }
 0x236   : > { %6161 = vrot.lane.b32.xlu0 %v9787_v13, %s7374_s16 }
 0x238   : > { %6156 = vrot.lane.b32.xlu1 %v9795_v25, %s7374_s16 }
 0x23a   : > { %6171 = vrot.lane.b32.xlu0 %v9799_v7, %s7374_s16 }
 0x23c   : > { %6166 = vrot.lane.b32.xlu1 %v9807_v54, %s7374_s16 }
 0x23e   : > { %6181 = vrot.lane.b32.xlu0 %v9811_v50, %s7374_s16 }
 0x240   : > { %6176 = vrot.lane.b32.xlu1 %v9819_v0, %s7374_s16 }
 0x242   : > { %6191 = vrot.lane.b32.xlu0 %v9823_v46, %s7374_s16 }
 0x244   : > { %6186 = vrot.lane.b32.xlu1 %v9831_v24, %s7374_s16 }
 0x246   : > { %6201 = vrot.lane.b32.xlu0 %v9359_v43, %s7375_s17 }
 0x248   : > { %6196 = vrot.lane.b32.xlu1 %v9837_v58, %s7374_s16 }
 0x24a   : > { %6211 = vrot.lane.b32.xlu0 %v9432_v40, %s7375_s17 }
 0x24c   : > { %6206 = vrot.lane.b32.xlu1 %v13197_v9, %s7375_s17 }
 0x24e   : > { %6221 = vrot.lane.b32.xlu0 %v13198_v22, %s7375_s17 }
 0x24f   : > { %v9851_v43 = vpop.permute.xlu0 %5961 }
 0x250   : > { %6216 = vrot.lane.b32.xlu1 %v13199_v48, %s7375_s17 }
 0x252   : > { %6231 = vrot.lane.b32.xlu0 %v13200_v41, %s7375_s17 }
 0x253   : > { %v9859_v28 = vpop.permute.xlu0 %5966 }
 0x254   : > { %6226 = vrot.lane.b32.xlu1 %v13201_v38, %s7375_s17 }
 0x256   : > { %6241 = vrot.lane.b32.xlu0 %v13202_v59, %s7375_s17 }
 0x258   : > { %6236 = vrot.lane.b32.xlu1 %v13203_v35, %s7375_s17  ;;  %v9865_v27 = vpop.permute.xlu1 %5971 }
 0x25a   : > { %6251 = vrot.lane.b32.xlu0 %v13204_v63, %s7375_s17  ;;  %v9869_v57 = vpop.permute.xlu0 %5976 }
 0x25c   : > { %6246 = vrot.lane.b32.xlu1 %v13205_v29, %s7375_s17 }
 0x25e   : > { %6261 = vrot.lane.b32.xlu0 %v13206_v20, %s7375_s17 }
 0x260   : > { %6256 = vrot.lane.b32.xlu1 %v13207_v30, %s7375_s17 }
 0x262   : > { %6271 = vrot.lane.b32.xlu0 %v9607_v47, %s7375_s17  ;;  %v9875_v33 = vpop.permute.xlu1 %5981 }
 0x263   : > { %v9877_v1 = vpop.permute.xlu0 %5986 }
 0x264   : > { %6266 = vrot.lane.b32.xlu1 %v9595_v45, %s7375_s17 }
 0x266   : > { %6281 = vrot.lane.b32.xlu0 %v9622_v14, %s7376_s22  ;;  %v9883_v61 = vpop.permute.xlu1 %5991 }
 0x268   : > { %v9885_v60 = vpop.permute.xlu0 %5996  ;;  %6276 = vrot.lane.b32.xlu1 %v9781_v4, %s7375_s17 }
 0x26a   : > { %6291 = vrot.lane.b32.xlu0 %v9647_v15, %s7376_s22  ;;  %v9891_v42 = vpop.permute.xlu1 %6001 }
 0x26c   : > { %v9893_v51 = vpop.permute.xlu0 %6006  ;;  %6286 = vrot.lane.b32.xlu1 %v9618_v32, %s7376_s22 }
 0x26e   : > { %6301 = vrot.lane.b32.xlu0 %v9666_v8, %s7376_s22  ;;  %v9899_v14 = vpop.permute.xlu1 %6011 }
 0x270   : > { %v9901_v18 = vpop.permute.xlu0 %6016  ;;  %6296 = vrot.lane.b32.xlu1 %v9636_v34, %s7376_s22 }
 0x272   : > { %6311 = vrot.lane.b32.xlu0 %v9690_v39, %s7376_s22  ;;  %v9907_v53 = vpop.permute.xlu1 %6021 }
 0x274   : > { %v9909_v5 = vpop.permute.xlu0 %6026  ;;  %6306 = vrot.lane.b32.xlu1 %v13208_v44, %s7376_s22 }
 0x276   : > { %6321 = vrot.lane.b32.xlu0 %v9708_v62, %s7376_s22  ;;  %v9915_v56 = vpop.permute.xlu1 %6031 }
 0x277   : > { %13209 = vst [vmem:[#allocation32_spill] sm:$0xff] %v9915_v56 }
 0x278   : > { %v9917_v3 = vpop.permute.xlu0 %6036  ;;  %6316 = vrot.lane.b32.xlu1 %v9675_v10, %s7376_s22 }
 0x279   : > { %13210 = vst [vmem:[#allocation10_spill] sm:$0xff] %v9917_v3 }
 0x27a   : > { %6331 = vrot.lane.b32.xlu0 %v9717_v31, %s7376_s22  ;;  %v9923_v6 = vpop.permute.xlu1 %6041 }
 0x27b   : > { %13211 = vst [vmem:[#allocation15_spill] sm:$0xff] %v9923_v6 }
 0x27c   : > { %v9925_v11 = vpop.permute.xlu0 %6051  ;;  %6326 = vrot.lane.b32.xlu1 %v9688_v16, %s7376_s22 }
 0x27d   : > { %13212 = vst [vmem:[#allocation13_spill] sm:$0xff] %v9925_v11 }
 0x27e   : > { %6341 = vrot.lane.b32.xlu0 %v9728_v17, %s7376_s22  ;;  %v9931_v21 = vpop.permute.xlu1 %6046 }
 0x27f   : > { %13213 = vst [vmem:[#allocation14_spill] sm:$0xff] %v9931_v21 }
 0x280   : > { %v9933_v56 = vpop.permute.xlu0 %6061  ;;  %6336 = vrot.lane.b32.xlu1 %v9711_v19, %s7376_s22 }
 0x281   : > { %13214 = vst [vmem:[#allocation12_spill] sm:$0xff] %v9933_v56 }
 0x282   : > { %6351 = vrot.lane.b32.xlu0 %v9738_v36, %s7376_s22  ;;  %v9939_v3 = vpop.permute.xlu1 %6056 }
 0x283   : > { %13215 = vst [vmem:[#allocation20_spill] sm:$0xff] %v9939_v3 }
 0x284   : > { %v9941_v6 = vpop.permute.xlu0 %6071  ;;  %6346 = vrot.lane.b32.xlu1 %v9713_v12, %s7376_s22 }
 0x285   : > { %13216 = vst [vmem:[#allocation18_spill] sm:$0xff] %v9941_v6  ;;  %v7240_v6 = vld [vmem:[%s12633_s4 + $0x30] sm:$0x3f]  }
 0x286   : > { %6361 = vrot.lane.b32.xlu0 %v9753_v52, %s7377_s23  ;;  %v9947_v21 = vpop.permute.xlu1 %6066  ;;  %5895 = vmatprep.subr.msk.bf16.mxu0 %vm1105_vm1, %v7240_v6 }
 0x288   : > { %v9949_v56 = vpop.permute.xlu0 %6081  ;;  %6356 = vrot.lane.b32.xlu1 %v9783_v55, %s7376_s22 }
 0x289   : > { %13217 = vst [vmem:[#allocation19_spill] sm:$0xff] %v9949_v56 }
 0x28a   : > { %6371 = vrot.lane.b32.xlu0 %v9763_v26, %s7377_s23  ;;  %v9955_v3 = vpop.permute.xlu1 %6076  ;;  %v3942_v26 = vsel %vm1105_vm1, %v7240_v6, 0 }
 0x28b   : > { %13218 = vst [vmem:[#allocation26_spill] sm:$0xff] %v9955_v3  ;;  %5850 = vmatpush3.bf16.msra.mxu0 %v3942_v26  ;;  %v7241_v3 = vld [vmem:[%s12633_s4 + $0x28] sm:$0xff]  }
 0x28c   : > { %v9960_v11 = vpop.permute.xlu0 %6091  ;;  %6366 = vrot.lane.b32.xlu1 %v9743_v23, %s7377_s23  ;;  %5851 = vmatprep.subr.bf16.mxu0 %v7241_v3 }
 0x28e   : > { %6381 = vrot.lane.b32.xlu0 %v9779_v2, %s7377_s23  ;;  %v9967_v52 = vpop.permute.xlu1 %6086  ;;  %v7242_v2 = vld [vmem:[%s12633_s4 + $0x20] sm:$0xff]  }
 0x28f   : > { %5852 = vmatpush3.bf16.msra.mxu0 %v7241_v3 }
 0x290   : > { %v9973_v56 = vpop.permute.xlu0 %6101  ;;  %6376 = vrot.lane.b32.xlu1 %v9749_v37, %s7377_s23  ;;  %5853 = vmatprep.subr.bf16.mxu0 %v7242_v2  ;;  %v7243_v37 = vld [vmem:[%s12633_s4 + $0x18] sm:$0xff]  }
 0x292   : > { %6391 = vrot.lane.b32.xlu0 %v9795_v25, %s7377_s23  ;;  %v9979_v23 = vpop.permute.xlu1 %6096 }
 0x293   : > { %5854 = vmatpush3.bf16.msra.mxu0 %v7242_v2  ;;  %v7245_v2 = vld [vmem:[%s12633_s4 + $0x8] sm:$0xff]  }
 0x294   : > { %v9984_v6 = vpop.permute.xlu0 %6111  ;;  %6386 = vrot.lane.b32.xlu1 %v9757_v49, %s7377_s23  ;;  %5855 = vmatprep.subr.bf16.mxu0 %v7243_v37  ;;  %v7244_v49 = vld [vmem:[%s12633_s4 + $0x10] sm:$0xff]  }
 0x296   : > { %6401 = vrot.lane.b32.xlu0 %v9807_v54, %s7377_s23  ;;  %v9993_v25 = vpop.permute.xlu1 %6106 }
 0x297   : > { %5856 = vmatpush3.bf16.msra.mxu0 %v7243_v37 }
 0x298   : > { %v9995_v3 = vpop.permute.xlu0 %6116  ;;  %6396 = vrot.lane.b32.xlu1 %v9787_v13, %s7377_s23  ;;  %5857 = vmatprep.subr.bf16.mxu0 %v7244_v49 }
 0x29a   : > { %6411 = vrot.lane.b32.xlu0 %v9819_v0, %s7377_s23  ;;  %v10004_v26 = vpop.permute.xlu1 %6121 }
 0x29b   : > { %5858 = vmatpush3.bf16.msra.mxu0 %v7244_v49 }
 0x29c   : > { %v10006_v54 = vpop.permute.xlu0 %6131  ;;  %6406 = vrot.lane.b32.xlu1 %v9799_v7, %s7377_s23  ;;  %5859 = vmatprep.subr.bf16.mxu0 %v7245_v2 }
 0x29e   : > { %6421 = vrot.lane.b32.xlu0 %v9831_v24, %s7377_s23  ;;  %v10012_v13 = vpop.permute.xlu1 %6126  ;;  %v7246_v24 = vld [vmem:[%s12633_s4] sm:$0xff]  }
 0x29f   : > { %5860 = vmatpush3.bf16.msra.mxu0 %v7245_v2 }
 0x2a0   : > { %v10017_v0 = vpop.permute.xlu0 %6141  ;;  %6416 = vrot.lane.b32.xlu1 %v9811_v50, %s7377_s23  ;;  %5861 = vmatprep.subr.bf16.mxu0 %v7246_v24 }
 0x2a2   : > { %6431 = vrot.lane.b32.xlu0 %v13197_v9, %s7378_s26  ;;  %v10023_v7 = vpop.permute.xlu1 %6136 }
 0x2a3   : > { %5862 = vmatpush3.bf16.msra.mxu0 %v7246_v24 }
 0x2a4   : > { %v10028_v37 = vpop.permute.xlu0 %6151  ;;  %6426 = vrot.lane.b32.xlu1 %v9823_v46, %s7377_s23 }
 0x2a5   : > { %13219 = vst [vmem:[#allocation21_spill] sm:$0xff] %v10028_v37 }
 0x2a6   : > { %6441 = vrot.lane.b32.xlu0 %v9618_v32, %s7379_s24  ;;  %v10034_v50 = vpop.permute.xlu1 %6146 }
 0x2a7   : > { %13220 = vst [vmem:[#allocation22_spill] sm:$0xff] %v10034_v50 }
 0x2a8   : > { %v10036_v9 = vpop.permute.xlu0 %6161  ;;  %6436 = vrot.lane.b32.xlu1 %v9432_v40, %s7378_s26 }
 0x2a9   : > { %13221 = vst [vmem:[#allocation30_spill] sm:$0xff] %v10036_v9  ;;  %v7280_v9 = vld [vmem:[#allocation2 + $0x138] sm:$0xff] }
 0x2aa   : > { %6451 = vrot.lane.b32.xlu0 %v13199_v48, %s7378_s26  ;;  %v10042_v49 = vpop.permute.xlu1 %6156 }
 0x2ab   : > { %13222 = vst [vmem:[#allocation37_spill] sm:$0xff] %v10042_v49 }
 0x2ac   : > { %v10044_v2 = vpop.permute.xlu0 %6171  ;;  %6446 = vrot.lane.b32.xlu1 %v9647_v15, %s7379_s24 }
 0x2ad   : > { %13223 = vst [vmem:[#allocation44_spill] sm:$0xff] %v10044_v2 }
 0x2ae   : > { %6461 = vrot.lane.b32.xlu0 %v9636_v34, %s7379_s24  ;;  %v10050_v32 = vpop.permute.xlu1 %6166 }
 0x2af   : > { %13224 = vst [vmem:[#allocation43_spill] sm:$0xff] %v10050_v32 }
 0x2b0   : > { %v10052_v46 = vpop.permute.xlu0 %6181  ;;  %6456 = vrot.lane.b32.xlu1 %v13198_v22, %s7378_s26 }
 0x2b1   : > { %13225 = vst [vmem:[#allocation45_spill] sm:$0xff] %v10052_v46  ;;  %v13261_v46 = vld [vmem:[#allocation14_spill] sm:$0xff] }
 0x2b2   : > { %6471 = vrot.lane.b32.xlu0 %v13201_v38, %s7378_s26  ;;  %v10058_v40 = vpop.permute.xlu1 %6176  ;;  %v6049_v32 = vunpack.i.h.bf16 %v13261_v46 }
 0x2b3   : > { %13226 = vst [vmem:[#allocation47_spill] sm:$0xff] %v10058_v40 }
 0x2b4   : > { %v10060_v48 = vpop.permute.xlu0 %6191  ;;  %6466 = vrot.lane.b32.xlu1 %v9666_v8, %s7379_s24 }
 0x2b5   : > { %13227 = vst [vmem:[#allocation49_spill] sm:$0xff] %v10060_v48 }
 0x2b6   : > { %6481 = vrot.lane.b32.xlu0 %v13208_v44, %s7379_s24  ;;  %v10066_v34 = vpop.permute.xlu1 %6186 }
 0x2b7   : > { %13228 = vst [vmem:[#allocation51_spill] sm:$0xff] %v10066_v34  ;;  %v13260_v34 = vld [vmem:[#allocation13_spill] sm:$0xff] }
 0x2b8   : > { %v10068_v15 = vpop.permute.xlu0 %6201  ;;  %6476 = vrot.lane.b32.xlu1 %v13200_v41, %s7378_s26  ;;  %v6053_v40 = vunpack.i.l.bf16 %v13260_v34 }
 0x2b9   : > { %13229 = vst [vmem:[#allocation52_spill] sm:$0xff] %v10068_v15 }
 0x2ba   : > { %6491 = vrot.lane.b32.xlu0 %v13203_v35, %s7378_s26  ;;  %v10074_v22 = vpop.permute.xlu1 %6196 }
 0x2bb   : > { %13230 = vst [vmem:[#allocation27_spill] sm:$0xff] %v10074_v22  ;;  %v7253_v22 = vld [vmem:[#allocation2] sm:$0xff] }
 0x2bc   : > { %v10076_v38 = vpop.permute.xlu0 %6211  ;;  %6486 = vrot.lane.b32.xlu1 %v9690_v39, %s7379_s24 }
 0x2bd   : > { %13231 = vst [vmem:[#allocation36_spill] sm:$0xff] %v10076_v38  ;;  %v7268_v38 = vld [vmem:[#allocation2 + $0xa8] sm:$0xff] }
 0x2be   : > { %6501 = vrot.lane.b32.xlu0 %v9675_v10, %s7379_s24  ;;  %v10082_v8 = vpop.permute.xlu1 %6206 }
 0x2bf   : > { %13232 = vst [vmem:[#allocation34_spill] sm:$0xff] %v10082_v8  ;;  %v7267_v8 = vld [vmem:[#allocation2 + $0xb0] sm:$0xff] }
 0x2c0   : > { %v10084_v44 = vpop.permute.xlu0 %6221  ;;  %6496 = vrot.lane.b32.xlu1 %v13202_v59, %s7378_s26 }
 0x2c1   : > { %13233 = vst [vmem:[#allocation33_spill] sm:$0xff] %v10084_v44 }
 0x2c2   : > { %6511 = vrot.lane.b32.xlu0 %v13205_v29, %s7378_s26  ;;  %v10090_v41 = vpop.permute.xlu1 %6216 }
 0x2c3   : > { %13234 = vst [vmem:[#allocation35_spill] sm:$0xff] %v10090_v41  ;;  %v7258_v41 = vld [vmem:[#allocation2 + $0x30] sm:$0xff] }
 0x2c4   : > { %v10092_v35 = vpop.permute.xlu0 %6231  ;;  %6506 = vrot.lane.b32.xlu1 %v9708_v62, %s7379_s24 }
 0x2c5   : > { %13235 = vst [vmem:[#allocation40_spill] sm:$0xff] %v10092_v35 }
 0x2c6   : > { %6521 = vrot.lane.b32.xlu0 %v9688_v16, %s7379_s24  ;;  %v10098_v10 = vpop.permute.xlu1 %6226 }
 0x2c7   : > { %13236 = vst [vmem:[#allocation38_spill] sm:$0xff] %v10098_v10 }
 0x2c8   : > { %v10100_v39 = vpop.permute.xlu0 %6241  ;;  %6516 = vrot.lane.b32.xlu1 %v13204_v63, %s7378_s26  ;;  %v5963_v63 = vunpack.i.l.bf16 %v9851_v43 }
 0x2c9   : > { %13237 = vst [vmem:[#allocation39_spill] sm:$0xff] %v10100_v39  ;;  %v5979_v39 = vunpack.i.h.bf16 %v9869_v57 }
 0x2ca   : > { %6531 = vrot.lane.b32.xlu0 %v13207_v30, %s7378_s26  ;;  %v10106_v59 = vpop.permute.xlu1 %6236  ;;  %v5964_v30 = vunpack.i.h.bf16 %v9851_v43  ;;  %v5974_v43 = vunpack.i.h.bf16 %v9865_v27 }
 0x2cb   : > { %13238 = vst [vmem:[#allocation46_spill] sm:$0xff] %v10106_v59  ;;  %v7254_v59 = vld [vmem:[#allocation2 + $0x8] sm:$0xff] }
 0x2cc   : > { %v10108_v29 = vpop.permute.xlu0 %6251  ;;  %6526 = vrot.lane.b32.xlu1 %v9717_v31, %s7379_s24  ;;  %v5968_v31 = vunpack.i.l.bf16 %v9859_v28 }
 0x2cd   : > { %13239 = vst [vmem:[#allocation41_spill] sm:$0xff] %v10108_v29  ;;  %v10137_v29 = vld [vmem:[#allocation2 + $0x1a8] sm:$0x3] }
 0x2ce   : > { %6541 = vrot.lane.b32.xlu0 %v9711_v19, %s7379_s24  ;;  %v10114_v16 = vpop.permute.xlu1 %6246 }
 0x2cf   : > { %13240 = vst [vmem:[#allocation42_spill] sm:$0xff] %v10114_v16  ;;  %v5973_v16 = vunpack.i.l.bf16 %v9865_v27  ;;  %v5983_v27 = vunpack.i.l.bf16 %v9875_v33 }
 0x2d0   : > { %v10116_v62 = vpop.permute.xlu0 %6261  ;;  %6536 = vrot.lane.b32.xlu1 %v13206_v20, %s7378_s26  ;;  %v3551_v20 = vsel %vm403_vm2, %v7253_v22, %v5963_v63  ;;  %v5984_v22 = vunpack.i.h.bf16 %v9875_v33 }
 0x2d1   : > { %13241 = vst [vmem:[#allocation50_spill] sm:$0xff] %v10116_v62  ;;  %v5969_v62 = vunpack.i.h.bf16 %v9859_v28  ;;  %v10149_v63 = vsel %vm3583_vm5, %v3551_v20, %v5968_v31  ;;  %v7256_v31 = vld [vmem:[#allocation2 + $0x18] sm:$0xff] }
 0x2d2   : > { %6551 = vrot.lane.b32.xlu0 %v9595_v45, %s7378_s26  ;;  %v10124_v24 = vpop.permute.xlu1 %6256  ;;  %v10135_v45 = vld [vmem:[#allocation2 + $0x198] sm:$0xff]  ;;  %v10166_v20 = vsel %vm403_vm2, %v7256_v31, %v5973_v16  ;;  %v7259_v16 = vld [vmem:[#allocation2 + $0x50] sm:$0xff]  ;;  %v7260_v31 = vld [vmem:[#allocation2 + $0x48] sm:$0xff] }
 0x2d3   : > { %13242 = vst [vmem:[#allocation59_spill] sm:$0xff] %v10124_v24  ;;  %v2547_v24 = vld [vmem:[#allocation2 + $0x1a0] sm:$0xff] }
 0x2d4   : > { %v10127_v19 = vpop.permute.xlu0 %6271  ;;  %6546 = vrot.lane.b32.xlu1 %v9728_v17, %s7379_s24  ;;  %v5978_v17 = vunpack.i.l.bf16 %v9869_v57  ;;  %v3349_v57 = vrot.slane %v10135_v45, 1 }
 0x2d5   : > { %13243 = vst [vmem:[#allocation64_spill] sm:$0xff] %v10127_v19  ;;  %v3552_v19 = vsel %vm403_vm2, %v7254_v59, %v5964_v30  ;;  %v10155_v59 = vrot.slane %v2547_v24, 1 }
 0x2d6   : > { %6561 = vrot.lane.b32.xlu0 %v9713_v12, %s7379_s24  ;;  %v10144_v28 = vpop.permute.xlu1 %6266  ;;  %v3352_v12 = vrot.slane %v10137_v29, 1  ;;  %v10160_v30 = vsel %vm3583_vm5, %v3552_v19, %v5969_v62  ;;  %v10173_v48 = vsel %vm403_vm2, %v7258_v41, %v5978_v17  ;;  %v5988_v62 = vunpack.i.l.bf16 %v9877_v1 }
 0x2d7   : > { %13244 = vst [vmem:[#allocation63_spill] sm:$0xff] %v10144_v28  ;;  %13246 = vst [vmem:[#allocation67_spill] sm:$0xff] %v10155_v59  ;;  %v7255_v28 = vld [vmem:[#allocation2 + $0x20] sm:$0xff]  ;;  %v5994_v41 = vunpack.i.h.bf16 %v9883_v61  ;;  %v10190_v17 = vpack.i.bf16 %v2547_v24, %v10135_v45 }
 0x2d8   : > { %v10151_v10 = vpop.permute.xlu0 %6281  ;;  %6556 = vrot.lane.b32.xlu1 %v9607_v47, %s7378_s26  ;;  %v10163_v33 = vsel %vm403_vm2, %v7255_v28, %v5974_v43  ;;  %v7257_v47 = vld [vmem:[#allocation2 + $0x38] sm:$0xff]  ;;  %v10180_v43 = vrot.slane %v2547_v24, 2  ;;  %v10183_v28 = vsel %vm403_vm2, %v7259_v16, %v5984_v22  ;;  %v10199_v22 = vsel %vm860_vm0, %v3349_v57, %v10155_v59  ;;  %v7261_v16 = vld [vmem:[#allocation2 + $0x68] sm:$0xff] }
 0x2d9   : > { %13245 = vst [vmem:[#allocation65_spill] sm:$0xff] %v10151_v10  ;;  %v5989_v10 = vunpack.i.h.bf16 %v9877_v1  ;;  %v10170_v35 = vsel %vm403_vm2, %v7257_v47, %v5979_v39  ;;  %v10186_v39 = vsel %vm403_vm2, %v7260_v31, %v5983_v27  ;;  %13250 = vst [vmem:[#allocation48_spill] sm:$0xff] %v10199_v22  ;;  %v3353_v27 = vsel %vm860_vm0, %v10155_v59, %v3352_v12 }
 0x2da   : > { %6571 = vrot.lane.b32.xlu0 %v9837_v58, %s7377_s23  ;;  %v10178_v19 = vpop.permute.xlu1 %6276  ;;  %13248 = vst [vmem:[#allocation71_spill] sm:$0xff] %v10180_v43  ;;  %v3450_v58 = vrot.slane %v10135_v45, 2  ;;  %v3453_v47 = vrot.slane %v10137_v29, 2  ;;  %v5993_v31 = vunpack.i.l.bf16 %v9883_v61  ;;  %v7262_v45 = vld [vmem:[#allocation2 + $0x60] sm:$0xff]  ;;  %v6004_v57 = vunpack.i.h.bf16 %v9891_v42 }
 0x2db   : > { %13247 = vst [vmem:[#allocation68_spill] sm:$0xff] %v10178_v19  ;;  %v10205_v24 = vsel %vm403_vm2, %v7261_v16, %v5989_v10  ;;  %v5999_v19 = vunpack.i.h.bf16 %v9885_v60  ;;  %v6003_v12 = vunpack.i.l.bf16 %v9891_v42  ;;  %v6009_v29 = vunpack.i.h.bf16 %v9893_v51  ;;  %v7263_v61 = vld [vmem:[#allocation2 + $0x80] sm:$0xff] }
 0x2dc   : > { %v10192_v1 = vpop.permute.xlu0 %6291  ;;  %6566 = vrot.lane.b32.xlu1 %v9738_v36, %s7379_s24  ;;  %v5998_v36 = vunpack.i.l.bf16 %v9885_v60  ;;  %v10221_v16 = vsel %vm403_vm2, %v7263_v61, %v5994_v41  ;;  %v6008_v60 = vunpack.i.l.bf16 %v9893_v51  ;;  %v6013_v59 = vunpack.i.l.bf16 %v9899_v14  ;;  %v7264_v41 = vld [vmem:[#allocation2 + $0x78] sm:$0xff] }
 0x2dd   : > { %13249 = vst [vmem:[#allocation72_spill] sm:$0xff] %v10192_v1  ;;  %v10211_v1 = vsel %vm403_vm2, %v7262_v45, %v5988_v62  ;;  %v6014_v62 = vunpack.i.h.bf16 %v9899_v14  ;;  %v6585_v45 = vpack.i.bf16 %v3353_v27, %v10199_v22  ;;  %v6019_v42 = vunpack.i.h.bf16 %v9901_v18  ;;  %v7265_v27 = vld [vmem:[#allocation2 + $0x98] sm:$0xff]  ;;  %v7266_v22 = vld [vmem:[#allocation2 + $0x90] sm:$0xff] }
 0x2de   : > { %6581 = vrot.lane.b32.xlu0 %v9781_v4, %s7378_s26  ;;  %v10218_v10 = vpop.permute.xlu1 %6286  ;;  %v10234_v4 = vsel %vm1105_vm1, %v3450_v58, %v10180_v43  ;;  %v3454_v51 = vsel %vm1105_vm1, %v10180_v43, %v3453_v47  ;;  %v10239_v61 = vsel %vm403_vm2, %v7264_v41, %v5993_v31  ;;  %v10242_v14 = vsel %vm403_vm2, %v7265_v27, %v5999_v19  ;;  %v7269_v31 = vld [vmem:[#allocation2 + $0xc8] sm:$0xff] }
 0x2df   : > { %13251 = vst [vmem:[#allocation56_spill] sm:$0xff] %v10218_v10  ;;  %13253 = vst [vmem:[#allocation55_spill] sm:$0xff] %v10234_v4  ;;  %v6018_v10 = vunpack.i.l.bf16 %v9901_v18  ;;  %v10249_v58 = vsel %vm403_vm2, %v7267_v8, %v6004_v57  ;;  %v10252_v47 = vsel %vm403_vm2, %v7268_v38, %v6003_v12  ;;  %v10255_v41 = vsel %vm403_vm2, %v7269_v31, %v6009_v29  ;;  %v7270_v18 = vld [vmem:[#allocation2 + $0xc0] sm:$0xff]  ;;  %v7272_v29 = vld [vmem:[#allocation2 + $0xd8] sm:$0xff] }
 0x2e0   : > { %v10228_v44 = vpop.permute.xlu0 %6301  ;;  %6576 = vrot.lane.b32.xlu1 %v10190_v17, %s7377_s23  ;;  %v6024_v19 = vunpack.i.h.bf16 %v9907_v53  ;;  %v7271_v8 = vld [vmem:[#allocation2 + $0xe0] sm:$0xff]  ;;  %v6023_v38 = vunpack.i.l.bf16 %v9907_v53  ;;  %v6595_v12 = vpack.i.bf16 %v3454_v51, %v10234_v4  ;;  %v10271_v27 = vsel %vm403_vm2, %v7272_v29, %v6013_v59  ;;  %v7273_v31 = vld [vmem:[#allocation2 + $0xf8] sm:$0xff]  ;;  %v13257_v29 = vld [vmem:[#allocation10_spill] sm:$0xff] }
 0x2e1   : > { %13252 = vst [vmem:[#allocation54_spill] sm:$0xff] %v10228_v44  ;;  %v10245_v44 = vsel %vm403_vm2, %v7266_v22, %v5998_v36  ;;  %v10263_v36 = vsel %vm403_vm2, %v7270_v18, %v6008_v60  ;;  %v10266_v57 = vsel %vm403_vm2, %v7271_v8, %v6014_v62  ;;  %v6029_v43 = vunpack.i.h.bf16 %v9909_v5  ;;  %v7274_v62 = vld [vmem:[#allocation2 + $0xf0] sm:$0xff]  ;;  %v13256_v51 = vld [vmem:[#allocation32_spill] sm:$0xff] }
 0x2e2   : > { %6591 = vrot.lane.b32.xlu0 %v9783_v55, %s7379_s24  ;;  %v10260_v22 = vpop.permute.xlu1 %6296  ;;  %v10274_v55 = vsel %vm403_vm2, %v7273_v31, %v6019_v42  ;;  %v6028_v60 = vunpack.i.l.bf16 %v9909_v5  ;;  %v10282_v53 = vsel %vm403_vm2, %v7274_v62, %v6018_v10  ;;  %v6034_v8 = vunpack.i.h.bf16 %v13256_v51  ;;  %v7275_v42 = vld [vmem:[#allocation2 + $0x110] sm:$0xff]  ;;  %v7276_v10 = vld [vmem:[#allocation2 + $0x108] sm:$0xff] }
 0x2e3   : > { %13254 = vst [vmem:[#allocation53_spill] sm:$0xff] %v10260_v22  ;;  %v6033_v59 = vunpack.i.l.bf16 %v13256_v51  ;;  %v6039_v4 = vunpack.i.h.bf16 %v13257_v29  ;;  %v10288_v31 = vsel %vm403_vm2, %v7275_v42, %v6024_v19  ;;  %v6038_v5 = vunpack.i.l.bf16 %v13257_v29  ;;  %v13258_v22 = vld [vmem:[#allocation15_spill] sm:$0xff]  ;;  %v7277_v19 = vld [vmem:[#allocation2 + $0x128] sm:$0xff]  ;;  %v7278_v29 = vld [vmem:[#allocation2 + $0x120] sm:$0xff] }
 0x2e4   : > { %v10278_v18 = vpop.permute.xlu0 %6311  ;;  %6586 = vrot.lane.b32.xlu1 %v6585_v45, %s7378_s26  ;;  %v6043_v45 = vunpack.i.l.bf16 %v13258_v22  ;;  %v10296_v62 = vsel %vm403_vm2, %v7276_v10, %v6023_v38  ;;  %v6054_v51 = vunpack.i.h.bf16 %v13260_v34  ;;  %v10302_v42 = vsel %vm403_vm2, %v7277_v19, %v6029_v43  ;;  %v7279_v10 = vld [vmem:[#allocation2 + $0x140] sm:$0xff]  ;;  %v7281_v19 = vld [vmem:[#allocation2 + $0x158] sm:$0xff] }
 0x2e5   : > { %13255 = vst [vmem:[#allocation60_spill] sm:$0xff] %v10278_v18  ;;  %v6044_v18 = vunpack.i.h.bf16 %v13258_v22  ;;  %v10305_v2 = vsel %vm403_vm2, %v7278_v29, %v6028_v60  ;;  %v6048_v22 = vunpack.i.l.bf16 %v13261_v46  ;;  %v10313_v34 = vsel %vm403_vm2, %v7279_v10, %v6034_v8  ;;  %v7282_v29 = vld [vmem:[#allocation2 + $0x150] sm:$0xff]  ;;  %v7284_v8 = vld [vmem:[#allocation2 + $0x168] sm:$0xff] }
 0x2e6   : > { %v10293_v15 = vpop.permute.xlu1 %6306  ;;  %v10316_v43 = vsel %vm403_vm2, %v7280_v9, %v6033_v59  ;;  %v10319_v60 = vsel %vm403_vm2, %v7281_v19, %v6039_v4  ;;  %v10323_v50 = vsel %vm403_vm2, %v7282_v29, %v6038_v5  ;;  %v10329_v10 = vsel %vm403_vm2, %v7284_v8, %v6043_v45  ;;  %v13264_v9 = vld [vmem:[#allocation20_spill] sm:$0xff]  ;;  %v13267_v29 = vld [vmem:[#allocation26_spill] sm:$0xff] }
 0x2e7   : > { %13259 = vst [vmem:[#allocation57_spill] sm:$0xff] %v10293_v15  ;;  %v13262_v15 = vld [vmem:[#allocation12_spill] sm:$0xff]  ;;  %v6059_v59 = vunpack.i.h.bf16 %v13264_v9  ;;  %v10336_v4 = vsel %vm3583_vm5, %v10173_v48, %v6053_v40  ;;  %v6058_v5 = vunpack.i.l.bf16 %v13264_v9  ;;  %v10349_v45 = vsel %vm3583_vm5, %v10166_v20, %v6048_v22  ;;  %v13265_v40 = vld [vmem:[#allocation18_spill] sm:$0xff] }
 0x2e8   : > { %v6063_v49 = vunpack.i.l.bf16 %v13262_v15  ;;  %v10309_v38 = vpop.permute.xlu0 %6321  ;;  %6596 = vrot.lane.b32.xlu1 %v6595_v12, %s7379_s24  ;;  %v6064_v46 = vunpack.i.h.bf16 %v13262_v15  ;;  %v10340_v15 = vsel %vm3583_vm5, %v10170_v35, %v6054_v51  ;;  %v6074_v48 = vunpack.i.h.bf16 %v13265_v40  ;;  %v13266_v51 = vld [vmem:[#allocation19_spill] sm:$0xff] }
 0x2e9   : > { %13263 = vst [vmem:[#allocation58_spill] sm:$0xff] %v10309_v38  ;;  %v7283_v38 = vld [vmem:[#allocation2 + $0x170] sm:$0xff]  ;;  %v6073_v19 = vunpack.i.l.bf16 %v13265_v40  ;;  %v6068_v20 = vunpack.i.l.bf16 %v9947_v21  ;;  %v6084_v22 = vunpack.i.h.bf16 %v13266_v51  ;;  %v6079_v8 = vunpack.i.h.bf16 %v13267_v29 }
 0x2ea   : > { %v10326_v12 = vsel %vm403_vm2, %v7283_v38, %v6044_v18  ;;  %v10332_v37 = vpop.permute.xlu1 %6316  ;;  %v10344_v18 = vsel %vm3583_vm5, %v10163_v33, %v6049_v32  ;;  %v10353_v38 = vsel %vm3583_vm5, %v10211_v1, %v6063_v49  ;;  %v10363_v32 = vsel %vm3583_vm5, %v10205_v24, %v6064_v46 }
 0x2eb   : > { %v6069_v33 = vunpack.i.h.bf16 %v9947_v21  ;;  %v6083_v49 = vunpack.i.l.bf16 %v13266_v51  ;;  %v10370_v1 = vsel %vm3583_vm5, %v10183_v28, %v6059_v59  ;;  %v10379_v24 = vsel %vm3583_vm5, %v10186_v39, %v6058_v5 }
 0x2ec   : > { %v10357_v35 = vpop.permute.xlu0 %6331  ;;  %6611 = vrot.lane.b32.xlu1 %v10190_v17, %s7377_s23  ;;  %v6078_v17 = vunpack.i.l.bf16 %v13267_v29  ;;  %v6094_v21 = vunpack.i.h.bf16 %v9960_v11  ;;  %v6093_v46 = vunpack.i.l.bf16 %v9960_v11  ;;  %v6089_v28 = vunpack.i.h.bf16 %v9967_v52 }
 0x2ed   : > { %v10386_v59 = vsel %vm3583_vm5, %v10245_v44, %v6073_v19  ;;  %v10390_v40 = vsel %vm3583_vm5, %v10242_v14, %v6074_v48  ;;  %v6088_v51 = vunpack.i.l.bf16 %v9967_v52  ;;  %v6103_v29 = vunpack.i.l.bf16 %v9973_v56 }
 0x2ee   : > { %v10375_v9 = vpop.permute.xlu1 %6326  ;;  %v10398_v5 = vsel %vm3583_vm5, %v10221_v16, %v6069_v33  ;;  %v10402_v11 = vsel %vm3583_vm5, %v10239_v61, %v6068_v20  ;;  %v10406_v44 = vsel %vm3583_vm5, %v10263_v36, %v6083_v49  ;;  %v6104_v14 = vunpack.i.h.bf16 %v9973_v56 }
 0x2ef   : > { %v10411_v52 = vsel %vm3583_vm5, %v10255_v41, %v6084_v22  ;;  %v10415_v48 = vsel %vm3583_vm5, %v10249_v58, %v6079_v8  ;;  %v10419_v16 = vsel %vm3583_vm5, %v10252_v47, %v6078_v17  ;;  %v6099_v61 = vunpack.i.h.bf16 %v9979_v23 }
 0x2f0   : > { %v10394_v39 = vpop.permute.xlu0 %6341  ;;  %v10426_v36 = vsel %vm3583_vm5, %v10282_v53, %v6093_v46  ;;  %v10430_v56 = vsel %vm3583_vm5, %v10274_v55, %v6094_v21  ;;  %v10434_v58 = vsel %vm3583_vm5, %v10266_v57, %v6089_v28  ;;  %v6098_v41 = vunpack.i.l.bf16 %v9979_v23 }
 0x2f1   : > { %v10439_v47 = vsel %vm3583_vm5, %v10271_v27, %v6088_v51  ;;  %v10443_v33 = vsel %vm3583_vm5, %v10305_v2, %v6103_v29  ;;  %v6114_v53 = vunpack.i.h.bf16 %v9984_v6  ;;  %v6113_v20 = vunpack.i.l.bf16 %v9984_v6 }
 0x2f2   : > { %v10422_v19 = vpop.permute.xlu1 %6336  ;;  %v10451_v57 = vsel %vm3583_vm5, %v10302_v42, %v6104_v14  ;;  %v6109_v23 = vunpack.i.h.bf16 %v9993_v25  ;;  %v6108_v49 = vunpack.i.l.bf16 %v9993_v25  ;;  %v6118_v27 = vunpack.i.l.bf16 %v9995_v3 }
 0x2f3   : > { %v10458_v2 = vsel %vm3583_vm5, %v10288_v31, %v6099_v61  ;;  %v6119_v22 = vunpack.i.h.bf16 %v9995_v3  ;;  %v6124_v6 = vunpack.i.h.bf16 %v10004_v26  ;;  %v6123_v8 = vunpack.i.l.bf16 %v10004_v26 }
 0x2f4   : > { %v10447_v55 = vpop.permute.xlu0 %6351  ;;  %v10467_v42 = vsel %vm3583_vm5, %v10296_v62, %v6098_v41  ;;  %v6134_v25 = vunpack.i.h.bf16 %v10006_v54  ;;  %v6133_v21 = vunpack.i.l.bf16 %v10006_v54  ;;  %v6128_v46 = vunpack.i.l.bf16 %v10012_v13 }
 0x2f5   : > { %13268 = vst [vmem:[#allocation66_spill] sm:$0xff] %v10447_v55  ;;  %v10474_v31 = vsel %vm3583_vm5, %v10323_v50, %v6113_v20  ;;  %v10478_v3 = vsel %vm3583_vm5, %v10319_v60, %v6114_v53  ;;  %v6129_v26 = vunpack.i.h.bf16 %v10012_v13  ;;  %v6143_v28 = vunpack.i.l.bf16 %v10017_v0  ;;  %v13277_v20 = vld [vmem:[#allocation22_spill] sm:$0xff]  ;;  %v13296_v55 = vld [vmem:[#allocation41_spill] sm:$0xff] }
 0x2f6   : > { %v10463_v17 = vpop.permute.xlu1 %6346  ;;  %13270 = vst [vmem:[#allocation62_spill] sm:$0xff] %v10474_v31  ;;  %13271 = vst [vmem:[#allocation69_spill] sm:$0xff] %v10478_v3  ;;  %v10486_v51 = vsel %vm3583_vm5, %v10313_v34, %v6109_v23  ;;  %v10490_v54 = vsel %vm3583_vm5, %v10316_v43, %v6108_v49  ;;  %v10494_v50 = vsel %vm3616_vm6, %v10149_v63, %v6118_v27  ;;  %v6144_v60 = vunpack.i.h.bf16 %v10017_v0  ;;  %v13298_v31 = vld [vmem:[#allocation50_spill] sm:$0xff] }
 0x2f7   : > { %13269 = vst [vmem:[#allocation61_spill] sm:$0xff] %v10463_v17  ;;  %13272 = vst [vmem:[#allocation80_spill] sm:$0xff] %v10486_v51  ;;  %v10499_v13 = vsel %vm3616_vm6, %v10160_v30, %v6119_v22  ;;  %v10503_v29 = vsel %vm3583_vm5, %v10329_v10, %v6123_v8  ;;  %v10507_v34 = vsel %vm3583_vm5, %v10326_v12, %v6124_v6  ;;  %v6138_v43 = vunpack.i.l.bf16 %v10023_v7  ;;  %v13279_v22 = vld [vmem:[#allocation37_spill] sm:$0xff] }
 0x2f8   : > { %v10482_v62 = vpop.permute.xlu0 %6361  ;;  %13273 = vst [vmem:[#allocation84_spill] sm:$0xff] %v10503_v29  ;;  %13274 = vst [vmem:[#allocation83_spill] sm:$0xff] %v10507_v34  ;;  %v10514_v63 = vsel %vm3616_vm6, %v10336_v4, %v6133_v21  ;;  %v10518_v0 = vsel %vm3616_vm6, %v10340_v15, %v6134_v25  ;;  %v10522_v30 = vsel %vm3616_vm6, %v10349_v45, %v6128_v46  ;;  %v6139_v10 = vunpack.i.h.bf16 %v10023_v7  ;;  %v13276_v4 = vld [vmem:[#allocation21_spill] sm:$0xff]  ;;  %v13280_v21 = vld [vmem:[#allocation44_spill] sm:$0xff] }
 0x2f9   : > { %v10527_v12 = vsel %vm3616_vm6, %v10344_v18, %v6129_v26  ;;  %v10531_v61 = vsel %vm3616_vm6, %v10353_v38, %v6143_v28  ;;  %v6154_v41 = vunpack.i.h.bf16 %v13276_v4  ;;  %v6153_v53 = vunpack.i.l.bf16 %v13276_v4  ;;  %v13278_v18 = vld [vmem:[#allocation30_spill] sm:$0xff]  ;;  %v13281_v28 = vld [vmem:[#allocation43_spill] sm:$0xff] }
 0x2fa   : > { %v10510_v14 = vpop.permute.xlu1 %6356  ;;  %v10539_v45 = vsel %vm3616_vm6, %v10363_v32, %v6144_v60  ;;  %v6149_v7 = vunpack.i.h.bf16 %v13277_v20  ;;  %v6148_v23 = vunpack.i.l.bf16 %v13277_v20  ;;  %v6163_v49 = vunpack.i.l.bf16 %v13278_v18  ;;  %v13282_v20 = vld [vmem:[#allocation45_spill] sm:$0xff]  ;;  %v13291_v34 = vld [vmem:[#allocation35_spill] sm:$0xff] }
 0x2fb   : > { %13275 = vst [vmem:[#allocation85_spill] sm:$0xff] %v10510_v14  ;;  %v10546_v38 = vsel %vm3616_vm6, %v10379_v24, %v6138_v43  ;;  %v6164_v27 = vunpack.i.h.bf16 %v13278_v18  ;;  %v6159_v6 = vunpack.i.h.bf16 %v13279_v22  ;;  %v6158_v8 = vunpack.i.l.bf16 %v13279_v22 }
 0x2fc   : > { %v10535_v15 = vpop.permute.xlu0 %6371  ;;  %v3624_v32 = vsel %vm3616_vm6, %v10370_v1, %v6139_v10  ;;  %v6174_v46 = vunpack.i.h.bf16 %v13280_v21  ;;  %v6173_v26 = vunpack.i.l.bf16 %v13280_v21  ;;  %v6168_v60 = vunpack.i.l.bf16 %v13281_v28 }
 0x2fd   : > { %v10560_v24 = vsel %vm3616_vm6, %v10386_v59, %v6153_v53  ;;  %v10564_v43 = vsel %vm3616_vm6, %v10390_v40, %v6154_v41  ;;  %v6169_v4 = vunpack.i.h.bf16 %v13281_v28  ;;  %v6183_v18 = vunpack.i.l.bf16 %v13282_v20 }
 0x2fe   : > { %v10551_v25 = vpop.permute.xlu1 %6366  ;;  %v10572_v1 = vsel %vm3616_vm6, %v10402_v11, %v6148_v23  ;;  %v10576_v10 = vsel %vm3616_vm6, %v10398_v5, %v6149_v7  ;;  %v10580_v59 = vsel %vm3616_vm6, %v10406_v44, %v6163_v49  ;;  %v6184_v40 = vunpack.i.h.bf16 %v13282_v20  ;;  %v13283_v5 = vld [vmem:[#allocation47_spill] sm:$0xff] }
 0x2ff   : > { %v10585_v41 = vsel %vm3616_vm6, %v10411_v52, %v6164_v27  ;;  %v10589_v53 = vsel %vm3616_vm6, %v10419_v16, %v6158_v8  ;;  %v10593_v11 = vsel %vm3616_vm6, %v10415_v48, %v6159_v6  ;;  %v6178_v7 = vunpack.i.l.bf16 %v13283_v5  ;;  %v13285_v8 = vld [vmem:[#allocation52_spill] sm:$0xff] }
 0x300   : > { %v10568_v22 = vpop.permute.xlu0 %6381  ;;  %v10600_v44 = vsel %vm3616_vm6, %v10426_v36, %v6173_v26  ;;  %v10604_v52 = vsel %vm3616_vm6, %v10430_v56, %v6174_v46  ;;  %v10608_v16 = vsel %vm3616_vm6, %v10439_v47, %v6168_v60  ;;  %v6179_v49 = vunpack.i.h.bf16 %v13283_v5  ;;  %v13284_v36 = vld [vmem:[#allocation51_spill] sm:$0xff]  ;;  %v13286_v26 = vld [vmem:[#allocation36_spill] sm:$0xff]  ;;  %v13287_v60 = vld [vmem:[#allocation34_spill] sm:$0xff] }
 0x301   : > { %v10613_v48 = vsel %vm3616_vm6, %v10434_v58, %v6169_v4  ;;  %v10617_v27 = vsel %vm3616_vm6, %v10443_v33, %v6183_v18  ;;  %v6188_v6 = vunpack.i.l.bf16 %v13284_v36  ;;  %v6203_v21 = vunpack.i.l.bf16 %v13285_v8  ;;  %v13288_v18 = vld [vmem:[#allocation33_spill] sm:$0xff] }
 0x302   : > { %v10596_v23 = vpop.permute.xlu1 %6376  ;;  %v10625_v47 = vsel %vm3616_vm6, %v10451_v57, %v6184_v40  ;;  %v6204_v46 = vunpack.i.h.bf16 %v13285_v8  ;;  %v6214_v28 = vunpack.i.h.bf16 %v13286_v26  ;;  %v6213_v58 = vunpack.i.l.bf16 %v13286_v26 }
 0x303   : > { %v10632_v33 = vsel %vm3616_vm6, %v10467_v42, %v6178_v7  ;;  %v6209_v4 = vunpack.i.h.bf16 %v13287_v60  ;;  %v6208_v20 = vunpack.i.l.bf16 %v13287_v60  ;;  %v6223_v5 = vunpack.i.l.bf16 %v13288_v18 }
 0x304   : > { %v10621_v56 = vpop.permute.xlu0 %6391  ;;  %v10641_v57 = vsel %vm3616_vm6, %v10458_v2, %v6179_v49  ;;  %v10648_v42 = vsel %vm3616_vm6, %v10490_v54, %v6188_v6  ;;  %v10652_v7 = vsel %vm3649_vm7, %v10494_v50, %v6203_v21  ;;  %v6224_v60 = vunpack.i.h.bf16 %v13288_v18 }
 0x305   : > { %13290 = vst [vmem:[#allocation87_spill] sm:$0xff] %v10648_v42  ;;  %v6219_v3 = vunpack.i.h.bf16 %v13291_v34  ;;  %v10660_v49 = vsel %vm3649_vm7, %v10499_v13, %v6204_v46  ;;  %v10664_v8 = vsel %vm3649_vm7, %v10514_v63, %v6213_v58  ;;  %v10668_v54 = vsel %vm3649_vm7, %v10518_v0, %v6214_v28  ;;  %v13292_v63 = vld [vmem:[#allocation40_spill] sm:$0xff]  ;;  %v13293_v28 = vld [vmem:[#allocation38_spill] sm:$0xff] }
 0x306   : > { %v10637_v29 = vpop.permute.xlu1 %6386  ;;  %v6218_v50 = vunpack.i.l.bf16 %v13291_v34  ;;  %v10673_v6 = vsel %vm3649_vm7, %v10527_v12, %v6209_v4  ;;  %v10677_v21 = vsel %vm3649_vm7, %v10522_v30, %v6208_v20  ;;  %v10681_v13 = vsel %vm3649_vm7, %v10531_v61, %v6223_v5  ;;  %v13294_v12 = vld [vmem:[#allocation39_spill] sm:$0xff]  ;;  %v13295_v5 = vld [vmem:[#allocation46_spill] sm:$0xff] }
 0x307   : > { %v6233_v46 = vunpack.i.l.bf16 %v13292_v63  ;;  %v6234_v0 = vunpack.i.h.bf16 %v13292_v63  ;;  %v6229_v34 = vunpack.i.h.bf16 %v13293_v28  ;;  %v6228_v18 = vunpack.i.l.bf16 %v13293_v28 }
 0x308   : > { %v10656_v2 = vpop.permute.xlu0 %6401  ;;  %v6243_v4 = vunpack.i.l.bf16 %v13294_v12  ;;  %v10692_v30 = vsel %vm3649_vm7, %v10539_v45, %v6224_v60  ;;  %v10695_v61 = vsel %vm3649_vm7, %v3624_v32, %v6219_v3  ;;  %v6244_v20 = vunpack.i.h.bf16 %v13294_v12  ;;  %v13297_v32 = vld [vmem:[#allocation42_spill] sm:$0xff] }
 0x309   : > { %v6239_v26 = vunpack.i.h.bf16 %v13295_v5  ;;  %v10703_v63 = vsel %vm3649_vm7, %v10546_v38, %v6218_v50  ;;  %v6238_v28 = vunpack.i.l.bf16 %v13295_v5  ;;  %v6254_v42 = vunpack.i.h.bf16 %v13296_v55 }
 0x30a   : > { %v10684_v58 = vpop.permute.xlu1 %6396  ;;  %v6253_v45 = vunpack.i.l.bf16 %v13296_v55  ;;  %v10710_v3 = vsel %vm3649_vm7, %v10560_v24, %v6233_v46  ;;  %v6249_v60 = vunpack.i.h.bf16 %v13297_v32  ;;  %v6248_v12 = vunpack.i.l.bf16 %v13297_v32  ;;  %v13304_v32 = vld [vmem:[#allocation54_spill] sm:$0xff] }
 0x30b   : > { %v6263_v40 = vunpack.i.l.bf16 %v13298_v31  ;;  %v10719_v38 = vsel %vm3649_vm7, %v10564_v43, %v6234_v0  ;;  %v10723_v55 = vsel %vm3649_vm7, %v10576_v10, %v6229_v34  ;;  %v10727_v24 = vsel %vm3649_vm7, %v10572_v1, %v6228_v18  ;;  %v13299_v0 = vld [vmem:[#allocation59_spill] sm:$0xff] }
 0x30c   : > { %v10699_v14 = vpop.permute.xlu0 %6411  ;;  %v10731_v50 = vsel %vm3649_vm7, %v10580_v59, %v6243_v4  ;;  %v10735_v46 = vsel %vm3649_vm7, %v10585_v41, %v6244_v20  ;;  %v10739_v43 = vsel %vm3649_vm7, %v10593_v11, %v6239_v26  ;;  %v6264_v10 = vunpack.i.h.bf16 %v13298_v31 }
 0x30d   : > { %v6259_v34 = vunpack.i.h.bf16 %v13299_v0  ;;  %v10747_v1 = vsel %vm3649_vm7, %v10589_v53, %v6238_v28  ;;  %v10751_v59 = vsel %vm3649_vm7, %v10600_v44, %v6253_v45  ;;  %v10755_v41 = vsel %vm3649_vm7, %v10604_v52, %v6254_v42  ;;  %v13300_v44 = vld [vmem:[#allocation65_spill] sm:$0xff]  ;;  %v13301_v42 = vld [vmem:[#allocation72_spill] sm:$0xff] }
 0x30e   : > { %v10715_v51 = vpop.permute.xlu1 %6406  ;;  %v6258_v11 = vunpack.i.l.bf16 %v13299_v0  ;;  %v10760_v31 = vsel %vm3649_vm7, %v10613_v48, %v6249_v60  ;;  %v10764_v26 = vsel %vm3649_vm7, %v10608_v16, %v6248_v12  ;;  %v10768_v53 = vsel %vm3649_vm7, %v10617_v27, %v6263_v40  ;;  %v13302_v48 = vld [vmem:[#allocation56_spill] sm:$0xff] }
 0x30f   : > { %v6283_v18 = vunpack.i.l.bf16 %v13300_v44  ;;  %v6284_v52 = vunpack.i.h.bf16 %v13300_v44  ;;  %v6294_v20 = vunpack.i.h.bf16 %v13301_v42  ;;  %v6293_v28 = vunpack.i.l.bf16 %v13301_v42  ;;  %v13306_v44 = vld [vmem:[#allocation63_spill] sm:$0xff] }
 0x310   : > { %v10743_v5 = vpop.permute.xlu0 %6421  ;;  %v6289_v45 = vunpack.i.h.bf16 %v13302_v48  ;;  %v10779_v16 = vsel %vm3649_vm7, %v10625_v47, %v6264_v10  ;;  %v10783_v27 = vsel %vm3649_vm7, %v10641_v57, %v6259_v34  ;;  %v6288_v40 = vunpack.i.l.bf16 %v13302_v48 }
 0x311   : > { %13303 = vst [vmem:[#allocation88_spill] sm:$0xff] %v10783_v27  ;;  %v6303_v60 = vunpack.i.l.bf16 %v13304_v32  ;;  %v10789_v0 = vsel %vm3649_vm7, %v10632_v33, %v6258_v11  ;;  %v6364_v36 = vunpack.i.h.bf16 %v10482_v62  ;;  %v6363_v47 = vunpack.i.l.bf16 %v10482_v62 }
 0x312   : > { %v10771_v4 = vpop.permute.xlu1 %6416  ;;  %13305 = vst [vmem:[#allocation91_spill] sm:$0xff] %v10789_v0  ;;  %v3683_v10 = vsel %vm3682_vm8, %v10652_v7, %v6283_v18  ;;  %v6304_v57 = vunpack.i.h.bf16 %v13304_v32  ;;  %v3684_v27 = vsel %vm3682_vm8, %v10660_v49, %v6284_v52  ;;  %v3687_v33 = vsel %vm3682_vm8, %v10664_v8, %v6293_v28  ;;  %v13308_v32 = vld [vmem:[#allocation53_spill] sm:$0xff] }
 0x313   : > { %v3688_v11 = vsel %vm3682_vm8, %v10668_v54, %v6294_v20  ;;  %v3686_v62 = vsel %vm3682_vm8, %v10673_v6, %v6289_v45  ;;  %v3685_v7 = vsel %vm3682_vm8, %v10677_v21, %v6288_v40  ;;  %v10811_v18 = vsel %vm3682_vm8, %v10681_v13, %v6303_v60 }
 0x314   : > { %v6432_v12 = vpop.permute.xlu0 %6431  ;;  %v6298_v49 = vunpack.i.l.bf16 %v13308_v32  ;;  %v3716_v28 = vsel %vm3715_vm9, %v3683_v10, %v6363_v47  ;;  %v3717_v54 = vsel %vm3715_vm9, %v3684_v27, %v6364_v36  ;;  %v10819_v6 = vsel %vm3682_vm8, %v10692_v30, %v6304_v57 }
 0x315   : > { %v6434_v34 = vunpack.i.h.bf16 %v6432_v12  ;;  %v6433_v48 = vunpack.i.l.bf16 %v6432_v12  ;;  %v6299_v12 = vunpack.i.h.bf16 %v13308_v32  ;;  %v6374_v21 = vunpack.i.h.bf16 %v10535_v15 }
 0x316   : > { %v10797_v17 = vpop.permute.xlu1 %6426  ;;  %v6369_v40 = vunpack.i.h.bf16 %v10551_v25  ;;  %v6368_v60 = vunpack.i.l.bf16 %v10551_v25  ;;  %v6373_v36 = vunpack.i.l.bf16 %v10535_v15 }
 0x317   : > { %13307 = vst [vmem:[#allocation92_spill] sm:$0xff] %v10797_v17  ;;  %v3749_v13 = vsel %vm3748_vm10, %v3716_v28, %v6433_v48  ;;  %v3750_v45 = vsel %vm3748_vm10, %v3717_v54, %v6434_v34  ;;  %v3689_v34 = vsel %vm3682_vm8, %v10703_v63, %v6298_v49  ;;  %v13309_v48 = vld [vmem:[#allocation60_spill] sm:$0xff]  ;;  %v13310_v54 = vld [vmem:[#allocation57_spill] sm:$0xff]  ;;  %v3721_v49 = vsel %vm3715_vm9, %v3688_v11, %v6374_v21 }
 0x318   : > { %v6442_v52 = vpop.permute.xlu0 %6441  ;;  %v6314_v28 = vunpack.i.h.bf16 %v13309_v48  ;;  %v6313_v25 = vunpack.i.l.bf16 %v13309_v48  ;;  %v3720_v63 = vsel %vm3715_vm9, %v3687_v33, %v6373_v36  ;;  %v6379_v11 = vunpack.i.h.bf16 %v10596_v23 }
 0x319   : > { %v6444_v42 = vunpack.i.h.bf16 %v6442_v52  ;;  %v6443_v8 = vunpack.i.l.bf16 %v6442_v52  ;;  %v3690_v52 = vsel %vm3682_vm8, %v10695_v61, %v6299_v12  ;;  %v3719_v61 = vsel %vm3715_vm9, %v3686_v62, %v6369_v40 }
 0x31a   : > { %v6437_v20 = vpop.permute.xlu1 %6436  ;;  %v6378_v21 = vunpack.i.l.bf16 %v10596_v23 }
 0x31b   : > { %v3782_v32 = vsel %vm3781_vm11, %v3749_v13, %v6443_v8  ;;  %v3783_v47 = vsel %vm3781_vm11, %v3750_v45, %v6444_v42  ;;  %v6439_v27 = vunpack.i.h.bf16 %v6437_v20  ;;  %v6438_v30 = vunpack.i.l.bf16 %v6437_v20 }
 0x31c   : > { %v6452_v10 = vpop.permute.xlu0 %6451  ;;  %v3814_v57 = vpack.c.bf16 %v3783_v47, %v3782_v32  ;;  %v6309_v8 = vunpack.i.h.bf16 %v13310_v54  ;;  %v6308_v42 = vunpack.i.l.bf16 %v13310_v54  ;;  %v3718_v45 = vsel %vm3715_vm9, %v3685_v7, %v6368_v60 }
 0x31d   : > { %v6454_v13 = vunpack.i.h.bf16 %v6452_v10  ;;  %v6453_v15 = vunpack.i.l.bf16 %v6452_v10  ;;  %v3751_v47 = vsel %vm3748_vm10, %v3718_v45, %v6438_v30  ;;  %v3752_v48 = vsel %vm3748_vm10, %v3719_v61, %v6439_v27 }
 0x31e   : > { %5863 = vmatprep.mubr.msk.bf16.mxu0 %vm3892_vm12, %v3814_v57  ;;  %v6447_v20 = vpop.permute.xlu1 %6446  ;;  %v6384_v7 = vunpack.i.h.bf16 %v10568_v22  ;;  %v6383_v30 = vunpack.i.l.bf16 %v10568_v22  ;;  %v3694_v23 = vsel %vm3682_vm8, %v10723_v55, %v6309_v8 }
 0x31f   : > { %v6449_v12 = vunpack.i.h.bf16 %v6447_v20  ;;  %v6448_v32 = vunpack.i.l.bf16 %v6447_v20  ;;  %v3753_v62 = vsel %vm3748_vm10, %v3720_v63, %v6453_v15  ;;  %v3754_v40 = vsel %vm3748_vm10, %v3721_v49, %v6454_v13 }
 0x320   : > { %v6462_v54 = vpop.permute.xlu0 %6461  ;;  %v3695_v13 = vsel %vm3682_vm8, %v10710_v3, %v6313_v25  ;;  %v3722_v3 = vsel %vm3715_vm9, %v3689_v34, %v6378_v21  ;;  %v3723_v25 = vsel %vm3715_vm9, %v3690_v52, %v6379_v11  ;;  %v3724_v55 = vsel %vm3715_vm9, %v10811_v18, %v6383_v30 }
 0x321   : > { %v3784_v10 = vsel %vm3781_vm11, %v3751_v47, %v6448_v32  ;;  %v3785_v57 = vsel %vm3781_vm11, %v3752_v48, %v6449_v12  ;;  %v6464_v17 = vunpack.i.h.bf16 %v6462_v54  ;;  %v6463_v0 = vunpack.i.l.bf16 %v6462_v54 }
 0x322   : > { %v6457_v33 = vpop.permute.xlu1 %6456  ;;  %v3815_v60 = vpack.c.bf16 %v3785_v57, %v3784_v10  ;;  %v3696_v12 = vsel %vm3682_vm8, %v10719_v38, %v6314_v28  ;;  %v6394_v52 = vunpack.i.h.bf16 %v10621_v56  ;;  %v6393_v21 = vunpack.i.l.bf16 %v10621_v56 }
 0x323   : > { %v3786_v36 = vsel %vm3781_vm11, %v3753_v62, %v6463_v0  ;;  %v3787_v27 = vsel %vm3781_vm11, %v3754_v40, %v6464_v17  ;;  %v6459_v20 = vunpack.i.h.bf16 %v6457_v33  ;;  %v6458_v45 = vunpack.i.l.bf16 %v6457_v33  ;;  %v13311_v0 = vld [vmem:[#allocation58_spill] sm:$0xff] }
 0x324   : > { %v6472_v61 = vpop.permute.xlu0 %6471  ;;  %5864 = vmatmul.mubr.msk.bf16.vlgmr.msra.gmra.mxu0 %vm3892_vm12, %v3815_v60  ;;  %v3816_v15 = vpack.c.bf16 %v3787_v27, %v3786_v36  ;;  %v3693_v17 = vsel %vm3682_vm8, %v10727_v24, %v6308_v42  ;;  %v6324_v22 = vunpack.i.h.bf16 %v13311_v0  ;;  %v6323_v32 = vunpack.i.l.bf16 %v13311_v0 }
 0x325   : > { %v6474_v63 = vunpack.i.h.bf16 %v6472_v61  ;;  %v6473_v49 = vunpack.i.l.bf16 %v6472_v61  ;;  %v3725_v24 = vsel %vm3715_vm9, %v10819_v6, %v6384_v7  ;;  %v3755_v8 = vsel %vm3748_vm10, %v3722_v3, %v6458_v45 }
 0x326   : > { %5867 = vmatprep.mubr.msk.bf16.mxu0 %vm3892_vm12, %v3816_v15  ;;  %v6467_v47 = vpop.permute.xlu1 %6466  ;;  %v3756_v42 = vsel %vm3748_vm10, %v3723_v25, %v6459_v20  ;;  %v6389_v6 = vunpack.i.h.bf16 %v10637_v29  ;;  %v6388_v7 = vunpack.i.l.bf16 %v10637_v29  ;;  %v3699_v45 = vsel %vm3682_vm8, %v10731_v50, %v6323_v32 }
 0x327   : > { %v6469_v38 = vunpack.i.h.bf16 %v6467_v47  ;;  %v6468_v28 = vunpack.i.l.bf16 %v6467_v47  ;;  %v3757_v62 = vsel %vm3748_vm10, %v3724_v55, %v6473_v49  ;;  %v3758_v18 = vsel %vm3748_vm10, %v3725_v24, %v6474_v63 }
 0x328   : > { %v6482_v48 = vpop.permute.xlu0 %6481  ;;  %v3700_v61 = vsel %vm3682_vm8, %v10735_v46, %v6324_v22  ;;  %v6319_v29 = vunpack.i.h.bf16 %v10332_v37  ;;  %v6318_v15 = vunpack.i.l.bf16 %v10332_v37  ;;  %v6334_v0 = vunpack.i.h.bf16 %v10357_v35 }
 0x329   : > { %v3788_v54 = vsel %vm3781_vm11, %v3755_v8, %v6468_v28  ;;  %v3789_v10 = vsel %vm3781_vm11, %v3756_v42, %v6469_v38  ;;  %v6484_v34 = vunpack.i.h.bf16 %v6482_v48  ;;  %v6483_v57 = vunpack.i.l.bf16 %v6482_v48 }
 0x32a   : > { %v6477_v40 = vpop.permute.xlu1 %6476  ;;  %v3817_v33 = vpack.c.bf16 %v3789_v10, %v3788_v54  ;;  %v6333_v56 = vunpack.i.l.bf16 %v10357_v35  ;;  %v3726_v3 = vsel %vm3715_vm9, %v3693_v17, %v6388_v7  ;;  %v3727_v50 = vsel %vm3715_vm9, %v3694_v23, %v6389_v6 }
 0x32b   : > { %v3790_v60 = vsel %vm3781_vm11, %v3757_v62, %v6483_v57  ;;  %v3791_v11 = vsel %vm3781_vm11, %v3758_v18, %v6484_v34  ;;  %v6479_v36 = vunpack.i.h.bf16 %v6477_v40  ;;  %v6478_v27 = vunpack.i.l.bf16 %v6477_v40 }
 0x32c   : > { %v6492_v30 = vpop.permute.xlu0 %6491  ;;  %5868 = vmatmul.mubr.msk.bf16.gmra.mxu0 %vm3892_vm12, %v3817_v33  ;;  %v3818_v20 = vpack.c.bf16 %v3791_v11, %v3790_v60  ;;  %v3728_v46 = vsel %vm3715_vm9, %v3695_v13, %v6393_v21  ;;  %v3729_v22 = vsel %vm3715_vm9, %v3696_v12, %v6394_v52  ;;  %v6404_v17 = vunpack.i.h.bf16 %v10656_v2 }
 0x32d   : > { %v6494_v63 = vunpack.i.h.bf16 %v6492_v30  ;;  %v6493_v49 = vunpack.i.l.bf16 %v6492_v30  ;;  %v3759_v37 = vsel %vm3748_vm10, %v3726_v3, %v6478_v27  ;;  %v3760_v38 = vsel %vm3748_vm10, %v3727_v50, %v6479_v36 }
 0x32e   : > { %5871 = vmatprep.mubr.msk.bf16.mxu0 %vm3892_vm12, %v3818_v20  ;;  %v6487_v47 = vpop.permute.xlu1 %6486  ;;  %v6399_v12 = vunpack.i.h.bf16 %v10684_v58  ;;  %v6398_v54 = vunpack.i.l.bf16 %v10684_v58  ;;  %v6403_v57 = vunpack.i.l.bf16 %v10656_v2  ;;  %v3698_v33 = vsel %vm3682_vm8, %v10739_v43, %v6319_v29 }
 0x32f   : > { %v6489_v32 = vunpack.i.h.bf16 %v6487_v47  ;;  %v6488_v25 = vunpack.i.l.bf16 %v6487_v47  ;;  %v3761_v23 = vsel %vm3748_vm10, %v3728_v46, %v6493_v49  ;;  %v3762_v42 = vsel %vm3748_vm10, %v3729_v22, %v6494_v63 }
 0x330   : > { %v6502_v35 = vpop.permute.xlu0 %6501  ;;  %v3697_v6 = vsel %vm3682_vm8, %v10747_v1, %v6318_v15  ;;  %v3703_v58 = vsel %vm3682_vm8, %v10751_v59, %v6333_v56  ;;  %v3704_v7 = vsel %vm3682_vm8, %v10755_v41, %v6334_v0  ;;  %v6329_v2 = vunpack.i.h.bf16 %v10375_v9 }
 0x331   : > { %v3792_v28 = vsel %vm3781_vm11, %v3759_v37, %v6488_v25  ;;  %v3793_v55 = vsel %vm3781_vm11, %v3760_v38, %v6489_v32  ;;  %v6504_v24 = vunpack.i.h.bf16 %v6502_v35  ;;  %v6503_v8 = vunpack.i.l.bf16 %v6502_v35 }
 0x332   : > { %v6497_v13 = vpop.permute.xlu1 %6496  ;;  %v3819_v48 = vpack.c.bf16 %v3793_v55, %v3792_v28  ;;  %v6328_v60 = vunpack.i.l.bf16 %v10375_v9  ;;  %v3730_v43 = vsel %vm3715_vm9, %v3697_v6, %v6398_v54  ;;  %v3731_v27 = vsel %vm3715_vm9, %v3698_v33, %v6399_v12 }
 0x333   : > { %v3794_v10 = vsel %vm3781_vm11, %v3761_v23, %v6503_v8  ;;  %v3795_v34 = vsel %vm3781_vm11, %v3762_v42, %v6504_v24  ;;  %v6499_v52 = vunpack.i.h.bf16 %v6497_v13  ;;  %v6498_v62 = vunpack.i.l.bf16 %v6497_v13 }
 0x334   : > { %v6512_v18 = vpop.permute.xlu0 %6511  ;;  %5872 = vmatmul.mubr.msk.bf16.gmra.mxu0 %vm3892_vm12, %v3819_v48  ;;  %v3820_v40 = vpack.c.bf16 %v3795_v34, %v3794_v10  ;;  %v3732_v59 = vsel %vm3715_vm9, %v3699_v45, %v6403_v57  ;;  %v3733_v20 = vsel %vm3715_vm9, %v3700_v61, %v6404_v17  ;;  %v6414_v49 = vunpack.i.h.bf16 %v10699_v14 }
 0x335   : > { %v6514_v11 = vunpack.i.h.bf16 %v6512_v18  ;;  %v6513_v21 = vunpack.i.l.bf16 %v6512_v18  ;;  %v3763_v41 = vsel %vm3748_vm10, %v3730_v43, %v6498_v62  ;;  %v3764_v29 = vsel %vm3748_vm10, %v3731_v27, %v6499_v52 }
 0x336   : > { %5875 = vmatprep.mubr.msk.bf16.mxu0 %vm3892_vm12, %v3820_v40  ;;  %v6507_v36 = vpop.permute.xlu1 %6506  ;;  %v6409_v61 = vunpack.i.h.bf16 %v10715_v51  ;;  %v6408_v32 = vunpack.i.l.bf16 %v10715_v51  ;;  %v6413_v22 = vunpack.i.l.bf16 %v10699_v14  ;;  %v3702_v55 = vsel %vm3682_vm8, %v10760_v31, %v6329_v2 }
 0x337   : > { %v6509_v1 = vunpack.i.h.bf16 %v6507_v36  ;;  %v6508_v30 = vunpack.i.l.bf16 %v6507_v36  ;;  %v3765_v47 = vsel %vm3748_vm10, %v3732_v59, %v6513_v21  ;;  %v3766_v3 = vsel %vm3748_vm10, %v3733_v20, %v6514_v11 }
 0x338   : > { %v6522_v9 = vpop.permute.xlu0 %6521  ;;  %v3701_v24 = vsel %vm3682_vm8, %v10764_v26, %v6328_v60  ;;  %v6344_v51 = vunpack.i.h.bf16 %v10394_v39  ;;  %v6343_v8 = vunpack.i.l.bf16 %v10394_v39  ;;  %v6339_v17 = vunpack.i.h.bf16 %v10422_v19 }
 0x339   : > { %v3796_v15 = vsel %vm3781_vm11, %v3763_v41, %v6508_v30  ;;  %v3797_v0 = vsel %vm3781_vm11, %v3764_v29, %v6509_v1  ;;  %v6524_v56 = vunpack.i.h.bf16 %v6522_v9  ;;  %v6523_v63 = vunpack.i.l.bf16 %v6522_v9  ;;  %v13312_v41 = vld [vmem:[#allocation88_spill] sm:$0xff]  ;;  %v13313_v9 = vld [vmem:[#allocation91_spill] sm:$0xff] }
 0x33a   : > { %v6517_v45 = vpop.permute.xlu1 %6516  ;;  %v3821_v50 = vpack.c.bf16 %v3797_v0, %v3796_v15  ;;  %v6338_v14 = vunpack.i.l.bf16 %v10422_v19  ;;  %v3734_v48 = vsel %vm3715_vm9, %v3701_v24, %v6408_v32  ;;  %v3735_v31 = vsel %vm3715_vm9, %v3702_v55, %v6409_v61  ;;  %v13314_v15 = vld [vmem:[#allocation61_spill] sm:$0xff] }
 0x33b   : > { %v3798_v25 = vsel %vm3781_vm11, %v3765_v47, %v6523_v63  ;;  %v3799_v46 = vsel %vm3781_vm11, %v3766_v3, %v6524_v56  ;;  %v6519_v37 = vunpack.i.h.bf16 %v6517_v45  ;;  %v6518_v38 = vunpack.i.l.bf16 %v6517_v45 }
 0x33c   : > { %v6532_v35 = vpop.permute.xlu0 %6531  ;;  %5876 = vmatmul.mubr.msk.bf16.gmra.mxu0 %vm3892_vm12, %v3821_v50  ;;  %v3822_v28 = vpack.c.bf16 %v3799_v46, %v3798_v25  ;;  %v3736_v26 = vsel %vm3715_vm9, %v3703_v58, %v6413_v22  ;;  %v3737_v10 = vsel %vm3715_vm9, %v3704_v7, %v6414_v49  ;;  %v6424_v40 = vunpack.i.h.bf16 %v10743_v5 }
 0x33d   : > { %v6534_v23 = vunpack.i.h.bf16 %v6532_v35  ;;  %v6533_v42 = vunpack.i.l.bf16 %v6532_v35  ;;  %v3767_v39 = vsel %vm3748_vm10, %v3734_v48, %v6518_v38  ;;  %v3768_v34 = vsel %vm3748_vm10, %v3735_v31, %v6519_v37  ;;  %v13318_v31 = vld [vmem:[#allocation80_spill] sm:$0xff] }
 0x33e   : > { %5879 = vmatprep.mubr.msk.bf16.mxu0 %vm3892_vm12, %v3822_v28  ;;  %v6527_v13 = vpop.permute.xlu1 %6526  ;;  %v6419_v7 = vunpack.i.h.bf16 %v10771_v4  ;;  %v6418_v60 = vunpack.i.l.bf16 %v10771_v4  ;;  %v6423_v36 = vunpack.i.l.bf16 %v10743_v5  ;;  %v6268_v59 = vunpack.i.l.bf16 %v13306_v44 }
 0x33f   : > { %v6529_v12 = vunpack.i.h.bf16 %v6527_v13  ;;  %v6528_v54 = vunpack.i.l.bf16 %v6527_v13  ;;  %v3769_v33 = vsel %vm3748_vm10, %v3736_v26, %v6533_v42  ;;  %v3770_v6 = vsel %vm3748_vm10, %v3737_v10, %v6534_v23  ;;  %v13316_v13 = vld [vmem:[#allocation51_spill] sm:$0xff] }
 0x340   : > { %v6542_v19 = vpop.permute.xlu0 %6541  ;;  %v3707_v20 = vsel %vm3682_vm8, %v10768_v53, %v6343_v8  ;;  %v3708_v4 = vsel %vm3682_vm8, %v10779_v16, %v6344_v51  ;;  %v3706_v29 = vsel %vm3682_vm8, %v13312_v41, %v6339_v17  ;;  %v3705_v5 = vsel %vm3682_vm8, %v13313_v9, %v6338_v14  ;;  %v13315_v8 = vld [vmem:[#allocation92_spill] sm:$0xff] }
 0x341   : > { %v3800_v57 = vsel %vm3781_vm11, %v3767_v39, %v6528_v54  ;;  %v3801_v52 = vsel %vm3781_vm11, %v3768_v34, %v6529_v12  ;;  %v6544_v62 = vunpack.i.h.bf16 %v6542_v19  ;;  %v6543_v18 = vunpack.i.l.bf16 %v6542_v19  ;;  %v13319_v34 = vld [vmem:[#allocation49_spill] sm:$0xff] }
 0x342   : > { %v6537_v58 = vpop.permute.xlu1 %6536  ;;  %v3823_v2 = vpack.c.bf16 %v3801_v52, %v3800_v57  ;;  %v6349_v0 = vunpack.i.h.bf16 %v13314_v15  ;;  %v3738_v47 = vsel %vm3715_vm9, %v3705_v5, %v6418_v60  ;;  %v3739_v53 = vsel %vm3715_vm9, %v3706_v29, %v6419_v7  ;;  %v13321_v57 = vld [vmem:[#allocation62_spill] sm:$0xff] }
 0x343   : > { %v3802_v11 = vsel %vm3781_vm11, %v3769_v33, %v6543_v18  ;;  %v3803_v21 = vsel %vm3781_vm11, %v3770_v6, %v6544_v62  ;;  %v6539_v43 = vunpack.i.h.bf16 %v6537_v58  ;;  %v6538_v27 = vunpack.i.l.bf16 %v6537_v58  ;;  %v13322_v62 = vld [vmem:[#allocation27_spill] sm:$0xff] }
 0x344   : > { %v6552_v1 = vpop.permute.xlu0 %6551  ;;  %5880 = vmatmul.mubr.msk.bf16.gmra.mxu0 %vm3892_vm12, %v3823_v2  ;;  %v3824_v30 = vpack.c.bf16 %v3803_v21, %v3802_v11  ;;  %v3740_v16 = vsel %vm3715_vm9, %v3707_v20, %v6423_v36  ;;  %v3741_v50 = vsel %vm3715_vm9, %v3708_v4, %v6424_v40  ;;  %v6348_v35 = vunpack.i.l.bf16 %v13314_v15  ;;  %v13324_v6 = vld [vmem:[#allocation87_spill] sm:$0xff]  ;;  %v13325_v2 = vld [vmem:[#allocation64_spill] sm:$0xff] }
 0x345   : > { %v6554_v56 = vunpack.i.h.bf16 %v6552_v1  ;;  %v6553_v63 = vunpack.i.l.bf16 %v6552_v1  ;;  %v3771_v61 = vsel %vm3748_vm10, %v3738_v47, %v6538_v27  ;;  %v3772_v32 = vsel %vm3748_vm10, %v3739_v53, %v6539_v43 }
 0x346   : > { %5883 = vmatprep.mubr.msk.bf16.mxu0 %vm3892_vm12, %v3824_v30  ;;  %v6547_v49 = vpop.permute.xlu1 %6546  ;;  %v6429_v17 = vunpack.i.h.bf16 %v13315_v8  ;;  %v6428_v14 = vunpack.i.l.bf16 %v13315_v8  ;;  %v13317_v48 = vunpack.i.h.bf16 %v13316_v13  ;;  %v13320_v19 = vunpack.i.l.bf16 %v13319_v34  ;;  %v13326_v30 = vld [vmem:[#allocation66_spill] sm:$0xff] }
 0x347   : > { %v6549_v3 = vunpack.i.h.bf16 %v6547_v49  ;;  %v6548_v45 = vunpack.i.l.bf16 %v6547_v49  ;;  %v3773_v28 = vsel %vm3748_vm10, %v3740_v16, %v6553_v63  ;;  %v3774_v55 = vsel %vm3748_vm10, %v3741_v50, %v6554_v56  ;;  %v13328_v63 = vld [vmem:[#allocation69_spill] sm:$0xff]  ;;  %v13329_v16 = vld [vmem:[#allocation83_spill] sm:$0xff] }
 0x348   : > { %v6562_v25 = vpop.permute.xlu0 %6561  ;;  %v3644_v12 = vsel %vm3616_vm6, %v13318_v31, %v13317_v48  ;;  %v3645_v52 = vsel %vm3616_vm6, %v13321_v57, %v13320_v19  ;;  %v6199_v18 = vunpack.i.h.bf16 %v13322_v62  ;;  %v13323_v40 = vunpack.i.h.bf16 %v13306_v44 }
 0x349   : > { %v3804_v46 = vsel %vm3781_vm11, %v3771_v61, %v6548_v45  ;;  %v3805_v22 = vsel %vm3781_vm11, %v3772_v32, %v6549_v3  ;;  %v6564_v37 = vunpack.i.h.bf16 %v6562_v25  ;;  %v6563_v38 = vunpack.i.l.bf16 %v6562_v25 }
 0x34a   : > { %v6557_v24 = vpop.permute.xlu1 %6556  ;;  %v3825_v51 = vpack.c.bf16 %v3805_v22, %v3804_v46  ;;  %v3677_v33 = vsel %vm3649_vm7, %v3644_v12, %v13323_v40  ;;  %v3676_v58 = vsel %vm3649_vm7, %v13324_v6, %v6268_v59  ;;  %v6274_v7 = vunpack.i.h.bf16 %v13325_v2  ;;  %v13330_v46 = vld [vmem:[#allocation68_spill] sm:$0xff] }
 0x34b   : > { %v3806_v23 = vsel %vm3781_vm11, %v3773_v28, %v6563_v38  ;;  %v3807_v42 = vsel %vm3781_vm11, %v3774_v55, %v6564_v37  ;;  %v6559_v54 = vunpack.i.h.bf16 %v6557_v24  ;;  %v6558_v26 = vunpack.i.l.bf16 %v6557_v24 }
 0x34c   : > { %v6572_v10 = vpop.permute.xlu0 %6571  ;;  %5884 = vmatmul.mubr.msk.bf16.gmra.mxu0 %vm3892_vm12, %v3825_v51  ;;  %v3826_v39 = vpack.c.bf16 %v3807_v42, %v3806_v23  ;;  %v6273_v60 = vunpack.i.l.bf16 %v13325_v2  ;;  %v3710_v11 = vsel %vm3682_vm8, %v3677_v33, %v6349_v0  ;;  %v3709_v21 = vsel %vm3682_vm8, %v3676_v58, %v6348_v35 }
 0x34d   : > { %v3742_v43 = vsel %vm3715_vm9, %v3709_v21, %v6428_v14  ;;  %v3743_v44 = vsel %vm3715_vm9, %v3710_v11, %v6429_v17  ;;  %v6354_v20 = vunpack.i.h.bf16 %v13326_v30  ;;  %v6353_v59 = vunpack.i.l.bf16 %v13326_v30  ;;  %v13331_v17 = vld [vmem:[#allocation85_spill] sm:$0xff] }
 0x34e   : > { %5887 = vmatprep.mubr.msk.bf16.mxu0 %vm3892_vm12, %v3826_v39  ;;  %v6567_v36 = vpop.permute.xlu1 %6566  ;;  %v3775_v4 = vsel %vm3748_vm10, %v3742_v43, %v6558_v26  ;;  %v3776_v41 = vsel %vm3748_vm10, %v3743_v44, %v6559_v54  ;;  %v6574_v9 = vunpack.i.h.bf16 %v6572_v10  ;;  %v6573_v5 = vunpack.i.l.bf16 %v6572_v10  ;;  %v13332_v10 = vld [vmem:[#allocation84_spill] sm:$0xff] }
 0x34f   : > { %v6569_v27 = vunpack.i.h.bf16 %v6567_v36  ;;  %v6568_v1 = vunpack.i.l.bf16 %v6567_v36  ;;  %v13327_v56 = vunpack.i.h.bf16 %v13319_v34  ;;  %v3648_v50 = vsel %vm3616_vm6, %v13329_v16, %v6199_v18  ;;  %v4169_v44 = vld [vmem:[#allocation2] sm:$0xff] }
 0x350   : > { %v6582_v29 = vpop.permute.xlu0 %6581  ;;  %v6198_v61 = vunpack.i.l.bf16 %v13322_v62  ;;  %v3678_v32 = vsel %vm3649_vm7, %v3645_v52, %v6273_v60  ;;  %v6279_v22 = vunpack.i.h.bf16 %v13330_v46  ;;  %v6278_v37 = vunpack.i.l.bf16 %v13330_v46 }
 0x351   : > { %v3808_v15 = vsel %vm3781_vm11, %v3775_v4, %v6568_v1  ;;  %v3809_v0 = vsel %vm3781_vm11, %v3776_v41, %v6569_v27  ;;  %v3646_v49 = vsel %vm3616_vm6, %v13328_v63, %v13327_v56  ;;  %v6584_v47 = vunpack.i.h.bf16 %v6582_v29  ;;  %v4170_v27 = vld [vmem:[#allocation2 + $0x8] sm:$0xff]  ;;  %v4171_v1 = vld [vmem:[#allocation2 + $0x10] sm:$0x3]  ;;  %v13333_v63 = vld [vmem:[#allocation67_spill] sm:$0xff] }
 0x352   : > { %v6583_v53 = vunpack.i.l.bf16 %v6582_v29  ;;  %v6577_v3 = vpop.permute.xlu1 %6576  ;;  %v3827_v45 = vpack.c.bf16 %v3809_v0, %v3808_v15  ;;  %v3679_v25 = vsel %vm3649_vm7, %v3646_v49, %v6274_v7  ;;  %v3711_v38 = vsel %vm3682_vm8, %v3678_v32, %v6353_v59  ;;  %v4222_v4 = vld [vmem:[#allocation2 + $0x1a8] sm:$0x3] }
 0x353   : > { %v3712_v35 = vsel %vm3682_vm8, %v3679_v25, %v6354_v20  ;;  %v3744_v55 = vsel %vm3715_vm9, %v3711_v38, %v6573_v5  ;;  %v6359_v14 = vunpack.i.h.bf16 %v13331_v17  ;;  %v6358_v23 = vunpack.i.l.bf16 %v13331_v17  ;;  %v13336_v25 = vld [vmem:[#allocation55_spill] sm:$0xff] }
 0x354   : > { %v6592_v28 = vpop.permute.xlu0 %6591  ;;  %5888 = vmatmul.mubr.msk.bf16.gmra.mxu0 %vm3892_vm12, %v3827_v45  ;;  %v3745_v24 = vsel %vm3715_vm9, %v3712_v35, %v6574_v9  ;;  %v3777_v42 = vsel %vm3748_vm10, %v3744_v55, %v6583_v53  ;;  %v6579_v31 = vunpack.i.h.bf16 %v6577_v3  ;;  %v6578_v12 = vunpack.i.l.bf16 %v6577_v3 }
 0x355   : > { %v6594_v51 = vunpack.i.h.bf16 %v6592_v28  ;;  %v6593_v8 = vunpack.i.l.bf16 %v6592_v28  ;;  %v3778_v13 = vsel %vm3748_vm10, %v3745_v24, %v6584_v47  ;;  %v3647_v39 = vsel %vm3616_vm6, %v13332_v10, %v6198_v61  ;;  %v13334_v47 = vld [vmem:[#allocation48_spill] sm:$0xff]  ;;  %v13335_v61 = vld [vmem:[#allocation71_spill] sm:$0xff] }
 0x356   : > { %v6587_v48 = vpop.permute.xlu1 %6586  ;;  %v3681_v52 = vsel %vm3649_vm7, %v3648_v50, %v6279_v22  ;;  %v3680_v62 = vsel %vm3649_vm7, %v3647_v39, %v6278_v37  ;;  %v4271_v30 = vrot.slane %v4169_v44, 1  ;;  %v4272_v20 = vrot.slane %v4170_v27, 1  ;;  %v11072_v22 = vld [vmem:[%s12634_s5] ss:$0 sm:$0xff] }
 0x357   : > { %v3810_v54 = vsel %vm3781_vm11, %v3777_v42, %v6593_v8  ;;  %v3811_v26 = vsel %vm3781_vm11, %v3778_v13, %v6594_v51  ;;  %v6589_v34 = vunpack.i.h.bf16 %v6587_v48  ;;  %v6588_v19 = vunpack.i.l.bf16 %v6587_v48 }
 0x358   : > { %v3828_v57 = vpack.c.bf16 %v3811_v26, %v3810_v54  ;;  %v3713_v18 = vsel %vm3682_vm8, %v3680_v62, %v6358_v23  ;;  %v3714_v40 = vsel %vm3682_vm8, %v3681_v52, %v6359_v14  ;;  %v4274_v59 = vrot.slane %v4171_v1, 1 }
 0x359   : > { %v3746_v6 = vsel %vm3715_vm9, %v3713_v18, %v6578_v12  ;;  %v3747_v58 = vsel %vm3715_vm9, %v3714_v40, %v6579_v31  ;;  %v4273_v41 = vsel %vm860_vm0, %v4271_v30, %v4272_v20  ;;  %v5026_v9 = vrot.slane %v4222_v4, 1 }
 0x35a   : > { %5891 = vmatprep.mubr.msk.bf16.mxu0 %vm3892_vm12, %v3828_v57  ;;  %v6597_v33 = vpop.permute.xlu1 %6596  ;;  %v3779_v60 = vsel %vm3748_vm10, %v3746_v6, %v6588_v19  ;;  %v3780_v11 = vsel %vm3748_vm10, %v3747_v58, %v6589_v34  ;;  %v4275_v29 = vsel %vm860_vm0, %v4272_v20, %v4274_v59  ;;  %v4447_v15 = vrot.slane %v4169_v44, 2 }
 0x35b   : > { %v6599_v2 = vunpack.i.h.bf16 %v6597_v33  ;;  %v6598_v7 = vunpack.i.l.bf16 %v6597_v33  ;;  %v6600_v5 = vpack.i.bf16 %v4275_v29, %v4273_v41  ;;  %v4448_v0 = vrot.slane %v4170_v27, 2 }
 0x35c   : > { %v4450_v56 = vrot.slane %v4171_v1, 2  ;;  %v5027_v49 = vsel %vm860_vm0, %v13333_v63, %v5026_v9  ;;  %v5127_v16 = vrot.slane %v4222_v4, 2 }
 0x35d   : > { %v3812_v21 = vsel %vm3781_vm11, %v3779_v60, %v6598_v7  ;;  %v3813_v36 = vsel %vm3781_vm11, %v3780_v11, %v6599_v2  ;;  %6601 = vrot.lane.b32.xlu0 %v6600_v5, %s7372_s27  ;;  %v6615_v53 = vpack.i.bf16 %v5027_v49, %v13334_v47  ;;  %v4449_v3 = vsel %vm1105_vm1, %v4447_v15, %v4448_v0 }
 0x35e   : > { %v3829_v43 = vpack.c.bf16 %v3813_v36, %v3812_v21  ;;  %v4451_v45 = vsel %vm1105_vm1, %v4448_v0, %v4450_v56  ;;  %v5128_v32 = vsel %vm1105_vm1, %v13335_v61, %v5127_v16 }
 0x35f   : > { %v6605_v50 = vpack.i.bf16 %v4451_v45, %v4449_v3  ;;  %6616 = vrot.lane.b32.xlu1 %v6615_v53, %s7378_s26  ;;  %v6620_v46 = vpack.i.bf16 %v5128_v32, %v13336_v25 }
 0x360   : > { %5892 = vmatmul.mubr.msk.bf16.gmra.mxu0 %vm3892_vm12, %v3829_v43 }
 0x361   : > { %6606 = vrot.lane.b32.xlu0 %v6605_v50, %s7373_s28 }
 0x363   : > { %6621 = vrot.lane.b32.xlu1 %v6620_v46, %s7379_s24 }
 0x3e4   : > { %v5865_v37 = vpop.f32.mrf.mxu0 }
 0x3e5   : > { %v3987_v38 = vadd.f32 %v5865_v37, %v11072_v22 }
 0x3e6   : > { %v3978_v35 = vpop.f32.mrf.mxu0 }
 0x3e7   : > { %v4107_v28 = vmax.f32 %v3987_v38, 0.0  ;;  %v3979_v55 = vadd.f32 %v11072_v22, %v3978_v35 }
 0x3e8   : > { %v5866_v24 = vpop.f32.mrf.mxu0 }
 0x3e9   : > { %4139 = vst.msk [vmem:[#allocation2 + $0x31] sm:$0xff] %vm403_vm2, %v4107_v28  ;;  %v4105_v51 = vmax.f32 %v3979_v55, 0.0  ;;  %v3990_v8 = vadd.f32 %v5866_v24, %v11072_v22 }
 0x3ea   : > { %v3981_v17 = vpop.f32.mrf.mxu0 }
 0x3eb   : > { %4137 = vst.msk [vmem:[#allocation2 + $0x19] sm:$0xff] %vm403_vm2, %v4105_v51  ;;  %v4108_v14 = vmax.f32 %v3990_v8, 0.0  ;;  %v3982_v23 = vadd.f32 %v11072_v22, %v3981_v17 }
 0x3ec   : > { %v5869_v42 = vpop.f32.mrf.mxu0 }
 0x3ed   : > { %4140 = vst.msk [vmem:[#allocation2 + $0x39] sm:$0xff] %vm403_vm2, %v4108_v14  ;;  %v4106_v13 = vmax.f32 %v3982_v23, 0.0  ;;  %v4003_v48 = vadd.f32 %v5869_v42, %v11072_v22 }
 0x3ee   : > { %v3994_v31 = vpop.f32.mrf.mxu0 }
 0x3ef   : > { %4138 = vst.msk [vmem:[#allocation2 + $0x21] sm:$0xff] %vm403_vm2, %v4106_v13  ;;  %v4111_v12 = vmax.f32 %v4003_v48, 0.0  ;;  %v3995_v54 = vadd.f32 %v11072_v22, %v3994_v31 }
 0x3f0   : > { %v5870_v26 = vpop.f32.mrf.mxu0  ;;  %v4175_v34 = vld [vmem:[#allocation2 + $0x30] sm:$0xff] }
 0x3f1   : > { %4143 = vst.msk [vmem:[#allocation2 + $0x61] sm:$0xff] %vm403_vm2, %v4111_v12  ;;  %v4109_v10 = vmax.f32 %v3995_v54, 0.0  ;;  %v4006_v39 = vadd.f32 %v5870_v26, %v11072_v22  ;;  %v4281_v58 = vrot.slane %v4175_v34, 1  ;;  %v4457_v45 = vrot.slane %v4175_v34, 2 }
 0x3f2   : > { %v3997_v19 = vpop.f32.mrf.mxu0  ;;  %v4172_v57 = vld [vmem:[#allocation2 + $0x18] sm:$0xff] }
 0x3f3   : > { %4141 = vst.msk [vmem:[#allocation2 + $0x49] sm:$0xff] %vm403_vm2, %v4109_v10  ;;  %v4112_v52 = vmax.f32 %v4006_v39, 0.0  ;;  %v3998_v62 = vadd.f32 %v11072_v22, %v3997_v19  ;;  %v4276_v33 = vrot.slane %v4172_v57, 1  ;;  %v4452_v53 = vrot.slane %v4172_v57, 2 }
 0x3f4   : > { %v5873_v18 = vpop.f32.mrf.mxu0  ;;  %v4176_v40 = vld [vmem:[#allocation2 + $0x38] sm:$0xff]  ;;  %v4177_v6 = vld [vmem:[#allocation2 + $0x40] sm:$0x3] }
 0x3f5   : > { %4144 = vst.msk [vmem:[#allocation2 + $0x69] sm:$0xff] %vm403_vm2, %v4112_v52  ;;  %v4110_v2 = vmax.f32 %v3998_v62, 0.0  ;;  %v4019_v7 = vadd.f32 %v5873_v18, %v11072_v22  ;;  %v6625_v60 = vpack.i.bf16 %v4176_v40, %v4175_v34  ;;  %v4282_v11 = vrot.slane %v4176_v40, 1 }
 0x3f6   : > { %v4010_v21 = vpop.f32.mrf.mxu0  ;;  %v4173_v36 = vld [vmem:[#allocation2 + $0x20] sm:$0xff]  ;;  %v4174_v43 = vld [vmem:[#allocation2 + $0x28] sm:$0x3]  ;;  %v4284_v44 = vrot.slane %v4177_v6, 1  ;;  %v4458_v27 = vrot.slane %v4176_v40, 2  ;;  %v4460_v1 = vrot.slane %v4177_v6, 2 }
 0x3f7   : > { %4142 = vst.msk [vmem:[#allocation2 + $0x51] sm:$0xff] %vm403_vm2, %v4110_v2  ;;  %v4115_v30 = vmax.f32 %v4019_v7, 0.0  ;;  %v4011_v20 = vadd.f32 %v11072_v22, %v4010_v21  ;;  %6626 = vrot.lane.b32.xlu1 %v6625_v60, %s7374_s16  ;;  %v6630_v59 = vpack.i.bf16 %v4173_v36, %v4172_v57  ;;  %v4277_v4 = vrot.slane %v4173_v36, 1 }
 0x3f8   : > { %v5874_v41 = vpop.f32.mrf.mxu0  ;;  %v4279_v29 = vrot.slane %v4174_v43, 1  ;;  %v11094_v9 = vsel %vm860_vm0, %v4281_v58, %v4282_v11  ;;  %v11097_v5 = vsel %vm860_vm0, %v4282_v11, %v4284_v44  ;;  %v4453_v15 = vrot.slane %v4173_v36, 2  ;;  %v4181_v12 = vld [vmem:[#allocation2 + $0x60] sm:$0xff] }
 0x3f9   : > { %4147 = vst.msk [vmem:[#allocation2 + $0x91] sm:$0xff] %vm403_vm2, %v4115_v30  ;;  %v4113_v0 = vmax.f32 %v4011_v20, 0.0  ;;  %v4022_v56 = vadd.f32 %v5874_v41, %v11072_v22  ;;  %6631 = vrot.lane.b32.xlu0 %v6630_v59, %s7374_s16  ;;  %v4278_v63 = vsel %vm860_vm0, %v4276_v33, %v4277_v4  ;;  %v4455_v3 = vrot.slane %v4174_v43, 2 }
 0x3fa   : > { %v4013_v49 = vpop.f32.mrf.mxu0  ;;  %v4280_v47 = vsel %vm860_vm0, %v4277_v4, %v4279_v29  ;;  %v11108_v32 = vpack.i.bf16 %v11097_v5, %v11094_v9  ;;  %v4454_v46 = vsel %vm1105_vm1, %v4452_v53, %v4453_v15  ;;  %v4459_v38 = vsel %vm1105_vm1, %v4457_v45, %v4458_v27  ;;  %v4178_v48 = vld [vmem:[#allocation2 + $0x48] sm:$0xff] }
 0x3fb   : > { %4145 = vst.msk [vmem:[#allocation2 + $0x79] sm:$0xff] %vm403_vm2, %v4113_v0  ;;  %v4116_v16 = vmax.f32 %v4022_v56, 0.0  ;;  %v4014_v50 = vadd.f32 %v11072_v22, %v4013_v49  ;;  %v6645_v61 = vpack.i.bf16 %v4280_v47, %v4278_v63  ;;  %v4456_v37 = vsel %vm1105_vm1, %v4453_v15, %v4455_v3 }
 0x3fc   : > { %13337 = vst [vmem:[#allocation70_spill] sm:$0xff] %v11108_v32  ;;  %v5877_v25 = vpop.f32.mrf.mxu0  ;;  %v4461_v35 = vsel %vm1105_vm1, %v4458_v27, %v4460_v1  ;;  %v11121_v23 = vpack.i.bf16 %v4456_v37, %v4454_v46  ;;  %v11125_v13 = vld [vmem:[#allocation2 + $0x68] sm:$0xff]  ;;  %v4183_v34 = vld [vmem:[#allocation2 + $0x70] sm:$0x3]  ;;  %v4286_v52 = vrot.slane %v4178_v48, 1  ;;  %v4291_v6 = vrot.slane %v4181_v12, 1 }
 0x3fd   : > { %4148 = vst.msk [vmem:[#allocation2 + $0x99] sm:$0xff] %vm403_vm2, %v4116_v16  ;;  %v4114_v28 = vmax.f32 %v4014_v50, 0.0  ;;  %v4035_v55 = vadd.f32 %v5877_v25, %v11072_v22  ;;  %6646 = vrot.lane.b32.xlu1 %v6645_v61, %s7372_s27  ;;  %6636 = vrot.lane.b32.xlu0 %v11108_v32, %s7372_s27  ;;  %v11123_v42 = vpack.i.bf16 %v4461_v35, %v4459_v38  ;;  %v4292_v62 = vrot.slane %v11125_v13, 1 }
 0x3fe   : > { %v4026_v24 = vpop.f32.mrf.mxu0  ;;  %v4179_v51 = vld [vmem:[#allocation2 + $0x50] sm:$0xff]  ;;  %v4180_v8 = vld [vmem:[#allocation2 + $0x58] sm:$0x3]  ;;  %13338 = vst [vmem:[#allocation76_spill] sm:$0xff] %v11121_v23  ;;  %v6660_v57 = vpack.i.bf16 %v11125_v13, %v4181_v12  ;;  %v4294_v11 = vrot.slane %v4183_v34, 1  ;;  %v4462_v43 = vrot.slane %v4178_v48, 2 }
 0x3ff   : > { %4146 = vst.msk [vmem:[#allocation2 + $0x81] sm:$0xff] %vm403_vm2, %v4114_v28  ;;  %v4119_v17 = vmax.f32 %v4035_v55, 0.0  ;;  %v4027_v14 = vadd.f32 %v11072_v22, %v4026_v24  ;;  %v4287_v54 = vrot.slane %v4179_v51, 1  ;;  %v4289_v26 = vrot.slane %v4180_v8, 1 }
 0x400   : > { %v5878_v31 = vpop.f32.mrf.mxu0  ;;  %v4463_v33 = vrot.slane %v4179_v51, 2  ;;  %v4465_v60 = vrot.slane %v4180_v8, 2  ;;  %v6665_v27 = vpack.i.bf16 %v4179_v51, %v4178_v48  ;;  %v11148_v1 = vsel %vm860_vm0, %v4291_v6, %v4292_v62 }
 0x401   : > { %4151 = vst.msk [vmem:[#allocation2 + $0xc1] sm:$0xff] %vm403_vm2, %v4119_v17  ;;  %v4117_v10 = vmax.f32 %v4027_v14, 0.0  ;;  %v4038_v39 = vadd.f32 %v5878_v31, %v11072_v22  ;;  %6651 = vrot.lane.b32.xlu1 %v11121_v23, %s7373_s28  ;;  %6641 = vrot.lane.b32.xlu0 %v11123_v42, %s7373_s28  ;;  %v11138_v2 = vsel %vm860_vm0, %v4286_v52, %v4287_v54  ;;  %v4468_v0 = vrot.slane %v11125_v13, 2  ;;  %v11190_v14 = vld [vmem:[#allocation2 + $0x90] sm:$0xff] }
 0x402   : > { %v4029_v19 = vpop.f32.mrf.mxu0  ;;  %v11141_v7 = vsel %vm860_vm0, %v4287_v54, %v4289_v26  ;;  %v4464_v4 = vsel %vm1105_vm1, %v4462_v43, %v4463_v33  ;;  %v4466_v29 = vsel %vm1105_vm1, %v4463_v33, %v4465_v60  ;;  %v11159_v15 = vsel %vm860_vm0, %v4292_v62, %v4294_v11  ;;  %v11177_v46 = vld [vmem:[#allocation2 + $0x78] sm:$0xff] }
 0x403   : > { %4149 = vst.msk [vmem:[#allocation2 + $0xa9] sm:$0xff] %vm403_vm2, %v4117_v10  ;;  %v4120_v18 = vmax.f32 %v4038_v39, 0.0  ;;  %v4030_v40 = vadd.f32 %v11072_v22, %v4029_v19  ;;  %v11154_v59 = vpack.i.bf16 %v11141_v7, %v11138_v2  ;;  %v4470_v56 = vrot.slane %v4183_v34, 2 }
 0x404   : > { %v5881_v58 = vpop.f32.mrf.mxu0  ;;  %v4467_v45 = vrot.slane %v4181_v12, 2  ;;  %v11175_v25 = vpack.i.bf16 %v11159_v15, %v11148_v1  ;;  %v11179_v38 = vld [vmem:[#allocation2 + $0x98] sm:$0xff]  ;;  %v4296_v13 = vrot.slane %v11177_v46, 1 }
 0x405   : > { %4152 = vst.msk [vmem:[#allocation2 + $0xc9] sm:$0xff] %vm403_vm2, %v4120_v18  ;;  %v4118_v21 = vmax.f32 %v4030_v40, 0.0  ;;  %v4051_v36 = vadd.f32 %v5881_v58, %v11072_v22  ;;  %6661 = vrot.lane.b32.xlu1 %v6660_v57, %s7374_s16  ;;  %6656 = vrot.lane.b32.xlu0 %v6645_v61, %s7375_s17  ;;  %v11171_v61 = vpack.i.bf16 %v4466_v29, %v4464_v4  ;;  %v4472_v18 = vrot.slane %v11177_v46, 2 }
 0x406   : > { %v4042_v44 = vpop.f32.mrf.mxu0  ;;  %v11167_v47 = vld [vmem:[#allocation2 + $0x80] sm:$0xff]  ;;  %v4186_v53 = vld [vmem:[#allocation2 + $0x88] sm:$0x3]  ;;  %v4469_v35 = vsel %vm1105_vm1, %v4467_v45, %v4468_v0  ;;  %v4471_v28 = vsel %vm1105_vm1, %v4468_v0, %v4470_v56  ;;  %v6695_v12 = vpack.i.bf16 %v11179_v38, %v11190_v14 }
 0x407   : > { %4150 = vst.msk [vmem:[#allocation2 + $0xb1] sm:$0xff] %vm403_vm2, %v4118_v21  ;;  %v4123_v30 = vmax.f32 %v4051_v36, 0.0  ;;  %v4043_v20 = vadd.f32 %v11072_v22, %v4042_v44  ;;  %v4297_v55 = vrot.slane %v11167_v47, 1  ;;  %v4299_v24 = vrot.slane %v4186_v53, 1  ;;  %v4189_v56 = vld [vmem:[#allocation2 + $0xa0] sm:$0x3] }
 0x408   : > { %v5882_v41 = vpop.f32.mrf.mxu0  ;;  %v11197_v54 = vpack.i.bf16 %v4471_v28, %v4469_v35  ;;  %v4473_v34 = vrot.slane %v11167_v47, 2  ;;  %v4475_v19 = vrot.slane %v4186_v53, 2  ;;  %v11232_v4 = vld [vmem:[#allocation2 + $0xc0] sm:$0xff]  ;;  %v4302_v35 = vrot.slane %v11179_v38, 1 }
 0x409   : > { %4155 = vst.msk [vmem:[#allocation2 + $0xf1] sm:$0xff] %vm403_vm2, %v4123_v30  ;;  %v4121_v63 = vmax.f32 %v4043_v20, 0.0  ;;  %v4054_v49 = vadd.f32 %v5882_v41, %v11072_v22  ;;  %6686 = vrot.lane.b32.xlu1 %v11154_v59, %s7372_s27  ;;  %6666 = vrot.lane.b32.xlu0 %v6665_v27, %s7374_s16  ;;  %v11200_v10 = vsel %vm860_vm0, %v4296_v13, %v4297_v55 }
 0x40a   : > { %v4045_v3 = vpop.f32.mrf.mxu0  ;;  %v11203_v39 = vsel %vm860_vm0, %v4297_v55, %v4299_v24  ;;  %v4474_v60 = vsel %vm1105_vm1, %v4472_v18, %v4473_v34  ;;  %v4476_v11 = vsel %vm1105_vm1, %v4473_v34, %v4475_v19  ;;  %v4480_v18 = vrot.slane %v4189_v56, 2 }
 0x40b   : > { %4153 = vst.msk [vmem:[#allocation2 + $0xd9] sm:$0xff] %vm403_vm2, %v4121_v63  ;;  %v4124_v16 = vmax.f32 %v4054_v49, 0.0  ;;  %v4046_v50 = vadd.f32 %v11072_v22, %v4045_v3  ;;  %v11216_v6 = vpack.i.bf16 %v11203_v39, %v11200_v10  ;;  %v11230_v20 = vpack.i.bf16 %v4476_v11, %v4474_v60 }
 0x40c   : > { %v5885_v37 = vpop.f32.mrf.mxu0  ;;  %v11226_v43 = vld [vmem:[#allocation2 + $0xc8] sm:$0xff] }
 0x40d   : > { %4156 = vst.msk [vmem:[#allocation2 + $0xf9] sm:$0xff] %vm403_vm2, %v4124_v16  ;;  %v4122_v51 = vmax.f32 %v4046_v50, 0.0  ;;  %v4067_v8 = vadd.f32 %v5885_v37, %v11072_v22  ;;  %6691 = vrot.lane.b32.xlu1 %v11171_v61, %s7373_s28  ;;  %6671 = vrot.lane.b32.xlu0 %v11175_v25, %s7372_s27  ;;  %v12813_v29 = vrot.slane %v11226_v43, 1  ;;  %v11244_v45 = vpack.i.bf16 %v11226_v43, %v11232_v4  ;;  %v11249_v37 = vld [vmem:[#allocation2 + $0xa8] sm:$0xff] }
 0x40e   : > { %v4058_v17 = vpop.f32.mrf.mxu0  ;;  %v11235_v0 = vld [vmem:[#allocation2 + $0xb0] sm:$0xff]  ;;  %v4192_v53 = vld [vmem:[#allocation2 + $0xb8] sm:$0x3]  ;;  %v6705_v16 = vpack.i.bf16 %v11167_v47, %v11177_v46  ;;  %v4311_v50 = vrot.slane %v11232_v4, 1  ;;  %v4301_v46 = vrot.slane %v11190_v14, 1  ;;  %v4306_v13 = vrot.slane %v11249_v37, 1 }
 0x40f   : > { %4154 = vst.msk [vmem:[#allocation2 + $0xe1] sm:$0xff] %vm403_vm2, %v4122_v51  ;;  %v4127_v48 = vmax.f32 %v4067_v8, 0.0  ;;  %v4059_v31 = vadd.f32 %v11072_v22, %v4058_v17  ;;  %v4307_v24 = vrot.slane %v11235_v0, 1  ;;  %v4304_v51 = vrot.slane %v4189_v56, 1 }
 0x410   : > { %v5886_v26 = vpop.f32.mrf.mxu0  ;;  %v11258_v8 = vsel %vm860_vm0, %v4311_v50, %v12813_v29  ;;  %v4309_v47 = vrot.slane %v4192_v53, 1  ;;  %v4483_v34 = vrot.slane %v11235_v0, 2 }
 0x411   : > { %4159 = vst.msk [vmem:[#allocation2 + $0x121] sm:$0xff] %vm403_vm2, %v4127_v48  ;;  %v4125_v57 = vmax.f32 %v4059_v31, 0.0  ;;  %v4070_v52 = vadd.f32 %v5886_v26, %v11072_v22  ;;  %6696 = vrot.lane.b32.xlu1 %v6695_v12, %s7374_s16  ;;  %6676 = vrot.lane.b32.xlu0 %v11197_v54, %s7373_s28  ;;  %v11267_v48 = vsel %vm860_vm0, %v4301_v46, %v4302_v35  ;;  %v11319_v46 = vld [vmem:[#allocation2 + $0xf0] sm:$0xff] }
 0x412   : > { %v4061_v62 = vpop.f32.mrf.mxu0  ;;  %v6795_v31 = vpack.i.bf16 %v11258_v8, %v11094_v9  ;;  %v11276_v26 = vsel %vm860_vm0, %v4302_v35, %v4304_v51  ;;  %13340 = vst [vmem:[#allocation73_spill] sm:$0xff] %v11319_v46 }
 0x413   : > { %4157 = vst.msk [vmem:[#allocation2 + $0x109] sm:$0xff] %vm403_vm2, %v4125_v57  ;;  %v4128_v40 = vmax.f32 %v4070_v52, 0.0  ;;  %v4062_v33 = vadd.f32 %v11072_v22, %v4061_v62  ;;  %v11280_v57 = vsel %vm860_vm0, %v4307_v24, %v4309_v47  ;;  %v4485_v52 = vrot.slane %v4192_v53, 2 }
 0x414   : > { %v5889_v58 = vpop.f32.mrf.mxu0  ;;  %v4478_v62 = vrot.slane %v11179_v38, 2  ;;  %v6715_v38 = vpack.i.bf16 %v11276_v26, %v11267_v48 }
 0x415   : > { %4160 = vst.msk [vmem:[#allocation2 + $0x129] sm:$0xff] %vm403_vm2, %v4128_v40  ;;  %v4126_v21 = vmax.f32 %v4062_v33, 0.0  ;;  %v4083_v36 = vadd.f32 %v5889_v58, %v11072_v22  ;;  %6741 = vrot.lane.b32.xlu1 %v11216_v6, %s7372_s27  ;;  %6681 = vrot.lane.b32.xlu0 %v11197_v54, %s7376_s22  ;;  %v4482_v33 = vrot.slane %v11249_v37, 2  ;;  %v4477_v58 = vrot.slane %v11190_v14, 2 }
 0x416   : > { %v4074_v44 = vpop.f32.mrf.mxu0 }
 0x417   : > { %4158 = vst.msk [vmem:[#allocation2 + $0x111] sm:$0xff] %vm403_vm2, %v4126_v21  ;;  %v4131_v27 = vmax.f32 %v4083_v36, 0.0  ;;  %v4075_v30 = vadd.f32 %v11072_v22, %v4074_v44  ;;  %v4484_v44 = vsel %vm1105_vm1, %v4482_v33, %v4483_v34 }
 0x418   : > { %v5890_v41 = vpop.f32.mrf.mxu0 }
 0x419   : > { %4163 = vst.msk [vmem:[#allocation2 + $0x151] sm:$0xff] %vm403_vm2, %v4131_v27  ;;  %v4129_v63 = vmax.f32 %v4075_v30, 0.0  ;;  %v4086_v49 = vadd.f32 %v5890_v41, %v11072_v22  ;;  %6746 = vrot.lane.b32.xlu1 %v11230_v20, %s7373_s28  ;;  %6701 = vrot.lane.b32.xlu0 %v6695_v12, %s7377_s23  ;;  %v11273_v12 = vsel %vm860_vm0, %v4306_v13, %v4307_v24 }
 0x41a   : > { %v4077_v3 = vpop.f32.mrf.mxu0  ;;  %v11291_v21 = vpack.i.bf16 %v11280_v57, %v11273_v12  ;;  %v4486_v27 = vsel %vm1105_vm1, %v4483_v34, %v4485_v52  ;;  %v4479_v30 = vsel %vm1105_vm1, %v4477_v58, %v4478_v62  ;;  %v4481_v41 = vsel %vm1105_vm1, %v4478_v62, %v4480_v18 }
 0x41b   : > { %4161 = vst.msk [vmem:[#allocation2 + $0x139] sm:$0xff] %vm403_vm2, %v4129_v63  ;;  %v4132_v28 = vmax.f32 %v4086_v49, 0.0  ;;  %v4078_v55 = vadd.f32 %v11072_v22, %v4077_v3  ;;  %v11304_v63 = vld [vmem:[#allocation2 + $0xe0] sm:$0xff]  ;;  %v4198_v49 = vld [vmem:[#allocation2 + $0xe8] sm:$0x3]  ;;  %v11308_v50 = vpack.i.bf16 %v4486_v27, %v4484_v44  ;;  %v6720_v35 = vpack.i.bf16 %v4481_v41, %v4479_v30 }
 0x41c   : > { %v4317_v24 = vrot.slane %v11304_v63, 1  ;;  %v4319_v51 = vrot.slane %v4198_v49, 1  ;;  %v4493_v34 = vrot.slane %v11304_v63, 2  ;;  %v4206_v52 = vld [vmem:[#allocation2 + $0x128] sm:$0xff]  ;;  %v4207_v62 = vld [vmem:[#allocation2 + $0x130] sm:$0x3] }
 0x41d   : > { %4164 = vst.msk [vmem:[#allocation2 + $0x159] sm:$0xff] %vm403_vm2, %v4132_v28  ;;  %v4130_v17 = vmax.f32 %v4078_v55, 0.0  ;;  %6766 = vrot.lane.b32.xlu1 %v11244_v45, %s7374_s16  ;;  %6706 = vrot.lane.b32.xlu0 %v6705_v16, %s7374_s16  ;;  %v11310_v28 = vld [vmem:[#allocation2 + $0xd8] sm:$0xff]  ;;  %v4334_v44 = vrot.slane %v4207_v62, 1 }
 0x41e   : > { %v11312_v55 = vld [vmem:[#allocation2 + $0xf8] sm:$0xff]  ;;  %v4492_v18 = vrot.slane %v11310_v28, 2 }
 0x41f   : > { %4162 = vst.msk [vmem:[#allocation2 + $0x141] sm:$0xff] %vm403_vm2, %v4130_v17  ;;  %13339 = vst [vmem:[#allocation74_spill] sm:$0xff] %v11312_v55  ;;  %v11325_v17 = vpack.i.bf16 %v11312_v55, %v11319_v46  ;;  %v4322_v32 = vrot.slane %v11312_v55, 1 }
 0x420   : > { %v5893_v19 = vpop.f32.mrf.mxu0  ;;  %v4494_v33 = vsel %vm1105_vm1, %v4492_v18, %v4493_v34  ;;  %v11370_v18 = vld [vmem:[#allocation2 + $0x108] sm:$0xff] }
 0x421   : > { %v4099_v40 = vadd.f32 %v5893_v19, %v11072_v22  ;;  %6796 = vrot.lane.b32.xlu1 %v6795_v31, %s7375_s17  ;;  %6711 = vrot.lane.b32.xlu0 %v6705_v16, %s7377_s23  ;;  %v4320_v31 = vsel %vm860_vm0, %v4317_v24, %v4319_v51  ;;  %v4495_v19 = vrot.slane %v4198_v49, 2 }
 0x422   : > { %v4090_v9 = vpop.f32.mrf.mxu0 }
 0x423   : > { %v4135_v60 = vmax.f32 %v4099_v40, 0.0  ;;  %v4091_v11 = vadd.f32 %v11072_v22, %v4090_v9  ;;  %v4205_v9 = vld [vmem:[#allocation2 + $0x120] sm:$0xff]  ;;  %v4496_v58 = vsel %vm1105_vm1, %v4493_v34, %v4495_v19  ;;  %v4204_v19 = vld [vmem:[#allocation2 + $0x118] sm:$0x3] }
 0x424   : > { %v5894_v36 = vpop.f32.mrf.mxu0  ;;  %v4507_v27 = vrot.slane %v4205_v9, 2  ;;  %v11341_v30 = vld [vmem:[#allocation2 + $0x158] sm:$0xff]  ;;  %v11343_v41 = vld [vmem:[#allocation2 + $0x160] sm:$0x3]  ;;  %v11365_v34 = vpack.i.bf16 %v4206_v52, %v4205_v9  ;;  %v4329_v29 = vrot.slane %v4204_v19, 1 }
 0x425   : > { %4167 = vst.msk [vmem:[#allocation2 + $0x181] sm:$0xff] %vm403_vm2, %v4135_v60  ;;  %v4133_v14 = vmax.f32 %v4091_v11, 0.0  ;;  %v4102_v56 = vadd.f32 %v5894_v36, %v11072_v22  ;;  %6816 = vrot.lane.b32.xlu1 %v11291_v21, %s7372_s27  ;;  %6716 = vrot.lane.b32.xlu0 %v6715_v38, %s7372_s27  ;;  %v4508_v60 = vrot.slane %v4206_v52, 2  ;;  %v4510_v11 = vrot.slane %v4207_v62, 2 }
 0x426   : > { %v4093_v53 = vpop.f32.mrf.mxu0  ;;  %v4332_v36 = vrot.slane %v4206_v52, 1 }
 0x427   : > { %4165 = vst.msk [vmem:[#allocation2 + $0x169] sm:$0xff] %vm403_vm2, %v4133_v14  ;;  %v4136_v3 = vmax.f32 %v4102_v56, 0.0  ;;  %v4094_v16 = vadd.f32 %v11072_v22, %v4093_v53  ;;  %v4316_v22 = vrot.slane %v11310_v28, 1  ;;  %v11345_v14 = vpack.i.bf16 %v4496_v58, %v4494_v33  ;;  %v11347_v56 = vld [vmem:[#allocation2 + $0x140] sm:$0xff] }
 0x428   : > { %v4509_v49 = vsel %vm1105_vm1, %v4507_v27, %v4508_v60  ;;  %v4511_v53 = vsel %vm1105_vm1, %v4508_v60, %v4510_v11  ;;  %v4335_v51 = vsel %vm860_vm0, %v4332_v36, %v4334_v44  ;;  %v4201_v44 = vld [vmem:[#allocation2 + $0x100] sm:$0x3] }
 0x429   : > { %4168 = vst.msk [vmem:[#allocation2 + $0x189] sm:$0xff] %vm403_vm2, %v4136_v3  ;;  %v4134_v47 = vmax.f32 %v4094_v16, 0.0  ;;  %6821 = vrot.lane.b32.xlu1 %v11308_v50, %s7373_s28  ;;  %6721 = vrot.lane.b32.xlu0 %v6720_v35, %s7373_s28  ;;  %v4318_v13 = vsel %vm860_vm0, %v4316_v22, %v4317_v24  ;;  %v11351_v3 = vld [vmem:[#allocation2 + $0x150] sm:$0xff]  ;;  %v4518_v16 = vrot.slane %v11341_v30, 2  ;;  %v4520_v24 = vrot.slane %v11343_v41, 2 }
 0x42a   : > { %v11334_v40 = vpack.i.bf16 %v4320_v31, %v4318_v13  ;;  %v4342_v22 = vrot.slane %v11341_v30, 1  ;;  %v12816_v13 = vrot.slane %v11347_v56, 1  ;;  %v4331_v31 = vrot.slane %v4205_v9, 1 }
 0x42b   : > { %4166 = vst.msk [vmem:[#allocation2 + $0x171] sm:$0xff] %vm403_vm2, %v4134_v47  ;;  %v11361_v47 = vld [vmem:[#allocation2 + $0x110] sm:$0xff]  ;;  %v11368_v62 = vpack.i.bf16 %v4511_v53, %v4509_v49  ;;  %v4341_v33 = vrot.slane %v11351_v3, 1  ;;  %v4521_v11 = vsel %vm1105_vm1, %v4518_v16, %v4520_v24  ;;  %v4505_v49 = vrot.slane %v4204_v19, 2 }
 0x42c   : > { %v11375_v60 = vsel %vm860_vm0, %v4331_v31, %v4332_v36  ;;  %v4503_v52 = vrot.slane %v11361_v47, 2  ;;  %v4327_v24 = vrot.slane %v11361_v47, 1  ;;  %v4324_v23 = vrot.slane %v4201_v44, 1 }
 0x42d   : > { %6841 = vrot.lane.b32.xlu1 %v11325_v17, %s7374_s16  ;;  %6726 = vrot.lane.b32.xlu0 %v6720_v35, %s7376_s22  ;;  %v11385_v27 = vpack.i.bf16 %v4335_v51, %v11375_v60  ;;  %v11390_v36 = vsel %vm860_vm0, %v4341_v33, %v4342_v22  ;;  %v4500_v31 = vrot.slane %v4201_v44, 2  ;;  %v4326_v19 = vrot.slane %v11370_v18, 1 }
 0x42e   : > { %v11422_v44 = vsel %vm860_vm0, %v4327_v24, %v4329_v29 }
 0x431   : > { %6866 = vrot.lane.b32.xlu1 %v11334_v40, %s7372_s27  ;;  %6731 = vrot.lane.b32.xlu0 %v6715_v38, %s7378_s26  ;;  %v11356_v38 = vld [vmem:[#allocation2 + $0x138] sm:$0xff] }
 0x432   : > { %v4336_v58 = vrot.slane %v11356_v38, 1 }
 0x434   : > { %v11395_v53 = vsel %vm860_vm0, %v4336_v58, %v12816_v13  ;;  %v4498_v58 = vrot.slane %v11312_v55, 2 }
 0x435   : > { %6871 = vrot.lane.b32.xlu1 %v11345_v14, %s7373_s28  ;;  %6736 = vrot.lane.b32.xlu0 %v6720_v35, %s7379_s24  ;;  %v4517_v35 = vrot.slane %v11351_v3, 2 }
 0x437   : > { %v4519_v9 = vsel %vm1105_vm1, %v4517_v35, %v4518_v16  ;;  %v6910_v16 = vpack.i.bf16 %v11138_v2, %v4335_v51  ;;  %v4502_v35 = vrot.slane %v11370_v18, 2  ;;  %v4325_v51 = vsel %vm860_vm0, %v4322_v32, %v4324_v23 }
 0x438   : > { %v11403_v33 = vpack.i.bf16 %v4521_v11, %v4519_v9  ;;  %v4506_v9 = vsel %vm1105_vm1, %v4503_v52, %v4505_v49  ;;  %v4321_v11 = vrot.slane %v11319_v46, 1  ;;  %v4501_v49 = vsel %vm1105_vm1, %v4498_v58, %v4500_v31 }
 0x439   : > { %6886 = vrot.lane.b32.xlu1 %v11365_v34, %s7374_s16  ;;  %6751 = vrot.lane.b32.xlu0 %v11230_v20, %s7376_s22  ;;  %v4504_v13 = vsel %vm1105_vm1, %v4502_v35, %v4503_v52  ;;  %v6775_v23 = vpack.i.bf16 %v11235_v0, %v11249_v37  ;;  %v13341_v31 = vrot.slane %v11226_v43, 1  ;;  %v4487_v0 = vrot.slane %v11232_v4, 2 }
 0x43a   : > { %v4323_v2 = vsel %vm860_vm0, %v4321_v11, %v4322_v32  ;;  %v11432_v35 = vpack.i.bf16 %v4506_v9, %v4504_v13  ;;  %v4195_v32 = vld [vmem:[#allocation2 + $0xd0] sm:$0x3]  ;;  %v6930_v13 = vpack.i.bf16 %v11341_v30, %v11351_v3  ;;  %v4344_v9 = vrot.slane %v11343_v41, 1  ;;  %v11480_v41 = vpop.permute.xlu1 %6611 }
 0x43b   : > { %v11471_v11 = vpack.i.bf16 %v11347_v56, %v11356_v38  ;;  %13342 = vst [vmem:[#allocation75_spill] sm:$0xff] %v11480_v41 }
 0x43d   : > { %6911 = vrot.lane.b32.xlu1 %v6910_v16, %s7375_s17  ;;  %6756 = vrot.lane.b32.xlu0 %v11216_v6, %s7378_s26  ;;  %v4497_v16 = vrot.slane %v11319_v46, 2  ;;  %v11419_v6 = vsel %vm860_vm0, %v4326_v19, %v4327_v24  ;;  %v11438_v24 = vpack.i.bf16 %v4325_v51, %v4323_v2  ;;  %v4490_v2 = vrot.slane %v4195_v32, 2 }
 0x43e   : > { %v11436_v29 = vpack.i.bf16 %v11422_v44, %v11419_v6  ;;  %v11487_v30 = vpop.permute.xlu1 %6616 }
 0x43f   : > { %v4499_v52 = vsel %vm1105_vm1, %v4497_v16, %v4498_v58  ;;  %13343 = vst [vmem:[#allocation79_spill] sm:$0xff] %v11487_v30 }
 0x440   : > { %v11440_v19 = vpack.i.bf16 %v4501_v49, %v4499_v52  ;;  %v4345_v52 = vsel %vm860_vm0, %v4342_v22, %v4344_v9  ;;  %v4210_v22 = vld [vmem:[#allocation2 + $0x148] sm:$0x3] }
 0x441   : > { %6916 = vrot.lane.b32.xlu1 %v11368_v62, %s7376_s22  ;;  %6761 = vrot.lane.b32.xlu0 %v11230_v20, %s7379_s24  ;;  %v4314_v20 = vrot.slane %v4195_v32, 1  ;;  %v11490_v49 = vpack.i.bf16 %v4345_v52, %v11390_v36  ;;  %v4339_v32 = vrot.slane %v4210_v22, 1 }
 0x443   : > { %v11456_v58 = vsel %vm860_vm0, %v13341_v31, %v4314_v20  ;;  %v13346_v20 = vrot.slane %v11347_v56, 1  ;;  %v4513_v31 = vrot.slane %v11347_v56, 2 }
 0x444   : > { %v6785_v37 = vpack.i.bf16 %v11456_v58, %v11258_v8  ;;  %v6965_v8 = vpack.i.bf16 %v11200_v10, %v4345_v52  ;;  %v11497_v10 = vpop.permute.xlu1 %6621 }
 0x445   : > { %6921 = vrot.lane.b32.xlu1 %v11436_v29, %s7372_s27  ;;  %6771 = vrot.lane.b32.xlu0 %v11244_v45, %s7377_s23  ;;  %v4488_v45 = vrot.slane %v11226_v43, 2  ;;  %13345 = vst [vmem:[#allocation78_spill] sm:$0xff] %v11497_v10 }
 0x447   : > { %v4489_v51 = vsel %vm1105_vm1, %v4487_v0, %v4488_v45  ;;  %v4491_v3 = vsel %vm1105_vm1, %v4488_v45, %v4490_v2  ;;  %v4515_v45 = vrot.slane %v4210_v22, 2  ;;  %v4512_v2 = vrot.slane %v11356_v38, 2 }
 0x448   : > { %v6790_v16 = vpack.i.bf16 %v4491_v3, %v4489_v51 }
 0x449   : > { %6926 = vrot.lane.b32.xlu1 %v11432_v35, %s7373_s28  ;;  %6776 = vrot.lane.b32.xlu0 %v6775_v23, %s7374_s16  ;;  %v4514_v51 = vsel %vm1105_vm1, %v4512_v2, %v4513_v31  ;;  %v4516_v3 = vsel %vm1105_vm1, %v4513_v31, %v4515_v45 }
 0x44a   : > { %v6990_v52 = vpack.i.bf16 %v4516_v3, %v4514_v51 }
 0x44d   : > { %6931 = vrot.lane.b32.xlu1 %v6930_v13, %s7374_s16  ;;  %6781 = vrot.lane.b32.xlu0 %v6775_v23, %s7377_s23  ;;  %v11492_v23 = vpop.permute.xlu0 %6601 }
 0x44e   : > { %13344 = vst [vmem:[#allocation77_spill] sm:$0xff] %v11492_v23 }
 0x451   : > { %6936 = vrot.lane.b32.xlu1 %v6930_v13, %s7377_s23  ;;  %6786 = vrot.lane.b32.xlu0 %v6785_v37, %s7372_s27  ;;  %v4340_v13 = vsel %vm860_vm0, %v13346_v20, %v4339_v32  ;;  %v11508_v0 = vpop.permute.xlu0 %6606  ;;  %v6845_v20 = vpack.i.bf16 %v11304_v63, %v11310_v28  ;;  %v4218_v28 = vld [vmem:[#allocation2 + $0x188] sm:$0xff] }
 0x452   : > { %13347 = vst [vmem:[#allocation86_spill] sm:$0xff] %v11508_v0  ;;  %v7000_v32 = vpack.i.bf16 %v11148_v1, %v4340_v13 }
 0x455   : > { %6946 = vrot.lane.b32.xlu1 %v11471_v11, %s7377_s23  ;;  %6791 = vrot.lane.b32.xlu0 %v6790_v16, %s7373_s28 }
 0x459   : > { %6966 = vrot.lane.b32.xlu1 %v6965_v8, %s7375_s17  ;;  %6801 = vrot.lane.b32.xlu0 %v6790_v16, %s7376_s22 }
 0x45d   : > { %6971 = vrot.lane.b32.xlu1 %v11403_v33, %s7376_s22  ;;  %6806 = vrot.lane.b32.xlu0 %v6785_v37, %s7378_s26  ;;  %v6985_v37 = vpack.i.bf16 %v4340_v13, %v11395_v53  ;;  %v4217_v13 = vld [vmem:[#allocation2 + $0x180] sm:$0xff] }
 0x45e   : > { %v7020_v3 = vpack.i.bf16 %v4218_v28, %v4217_v13  ;;  %v4823_v23 = vrot.slane %v4217_v13, 2 }
 0x461   : > { %6976 = vrot.lane.b32.xlu1 %v11490_v49, %s7378_s26  ;;  %6811 = vrot.lane.b32.xlu0 %v6790_v16, %s7379_s24 }
 0x465   : > { %6981 = vrot.lane.b32.xlu1 %v11403_v33, %s7379_s24  ;;  %6826 = vrot.lane.b32.xlu0 %v11308_v50, %s7376_s22 }
 0x469   : > { %6986 = vrot.lane.b32.xlu1 %v6985_v37, %s7372_s27  ;;  %v11514_v9 = vpop.permute.xlu1 %6626  ;;  %6831 = vrot.lane.b32.xlu0 %v11291_v21, %s7378_s26 }
 0x46a   : > { %13348 = vst [vmem:[#allocation81_spill] sm:$0xff] %v11514_v9  ;;  %v11568_v9 = vld [vmem:[#allocation2 + $0x168] sm:$0xff] }
 0x46b   : > { %v11518_v16 = vpop.permute.xlu0 %6631  ;;  %13358 = vst [vmem:[#allocation111_spill] sm:$0xff] %v11568_v9 }
 0x46c   : > { %13349 = vst [vmem:[#allocation82_spill] sm:$0xff] %v11518_v16 }
 0x46d   : > { %6991 = vrot.lane.b32.xlu1 %v6990_v52, %s7373_s28  ;;  %6836 = vrot.lane.b32.xlu0 %v11308_v50, %s7379_s24 }
 0x46f   : > { %v11523_v8 = vpop.permute.xlu1 %6646  ;;  %v11525_v22 = vpop.permute.xlu0 %6636 }
 0x470   : > { %13350 = vst [vmem:[#allocation89_spill] sm:$0xff] %v11523_v8  ;;  %13351 = vst [vmem:[#allocation101_spill] sm:$0xff] %v11525_v22 }
 0x471   : > { %7001 = vrot.lane.b32.xlu1 %v7000_v32, %s7375_s17  ;;  %6846 = vrot.lane.b32.xlu0 %v6845_v20, %s7374_s16 }
 0x473   : > { %v11532_v21 = vpop.permute.xlu1 %6651  ;;  %v11534_v31 = vpop.permute.xlu0 %6641 }
 0x474   : > { %13352 = vst [vmem:[#allocation104_spill] sm:$0xff] %v11532_v21  ;;  %13353 = vst [vmem:[#allocation103_spill] sm:$0xff] %v11534_v31  ;;  %v11580_v21 = vpack.i.bf16 %v11361_v47, %v11370_v18 }
 0x475   : > { %7006 = vrot.lane.b32.xlu1 %v6990_v52, %s7376_s22  ;;  %6851 = vrot.lane.b32.xlu0 %v6845_v20, %s7377_s23 }
 0x477   : > { %v11538_v50 = vpop.permute.xlu1 %6661  ;;  %v11540_v45 = vpop.permute.xlu0 %6656 }
 0x478   : > { %13354 = vst [vmem:[#allocation105_spill] sm:$0xff] %v11540_v45  ;;  %v4723_v45 = vrot.slane %v4218_v28, 1 }
 0x479   : > { %7011 = vrot.lane.b32.xlu1 %v6985_v37, %s7378_s26  ;;  %6856 = vrot.lane.b32.xlu0 %v11438_v24, %s7372_s27  ;;  %v4219_v37 = vld [vmem:[#allocation2 + $0x190] sm:$0x3] }
 0x47a   : > { %v4826_v0 = vrot.slane %v4219_v37, 2 }
 0x47b   : > { %v11545_v1 = vpop.permute.xlu1 %6686  ;;  %v11547_v63 = vpop.permute.xlu0 %6666 }
 0x47c   : > { %13355 = vst [vmem:[#allocation107_spill] sm:$0xff] %v11547_v63  ;;  %v4725_v63 = vrot.slane %v4219_v37, 1 }
 0x47d   : > { %7016 = vrot.lane.b32.xlu1 %v6990_v52, %s7379_s24  ;;  %6861 = vrot.lane.b32.xlu0 %v11440_v19, %s7373_s28  ;;  %v11563_v52 = vld [vmem:[#allocation2 + $0x170] sm:$0xff] }
 0x47e   : > { %13357 = vst [vmem:[#allocation110_spill] sm:$0xff] %v11563_v52  ;;  %v11576_v22 = vpack.i.bf16 %v11563_v52, %v11568_v9  ;;  %v4726_v8 = vsel %vm860_vm0, %v4723_v45, %v4725_v63  ;;  %v4722_v63 = vrot.slane %v4217_v13, 1  ;;  %v4347_v13 = vrot.slane %v11563_v52, 1 }
 0x47f   : > { %v11552_v2 = vpop.permute.xlu1 %6691  ;;  %v11554_v51 = vpop.permute.xlu0 %6671  ;;  %v7045_v55 = vpack.i.bf16 %v11273_v12, %v4726_v8  ;;  %v4216_v12 = vld [vmem:[#allocation2 + $0x178] sm:$0x3] }
 0x481   : > { %7021 = vrot.lane.b32.xlu1 %v7020_v3, %s7374_s16  ;;  %6876 = vrot.lane.b32.xlu0 %v11334_v40, %s7378_s26 }
 0x483   : > { %v11559_v32 = vpop.permute.xlu1 %6696  ;;  %v11561_v20 = vpop.permute.xlu0 %6676 }
 0x484   : > { %13356 = vst [vmem:[#allocation108_spill] sm:$0xff] %v11559_v32 }
 0x485   : > { %7026 = vrot.lane.b32.xlu1 %v7020_v3, %s7377_s23  ;;  %6881 = vrot.lane.b32.xlu0 %v11345_v14, %s7379_s24  ;;  %v4824_v3 = vrot.slane %v4218_v28, 2 }
 0x487   : > { %v11570_v31 = vpop.permute.xlu1 %6741  ;;  %v11572_v16 = vpop.permute.xlu0 %6681  ;;  %v4827_v10 = vsel %vm1105_vm1, %v4824_v3, %v4826_v0 }
 0x488   : > { %13359 = vst [vmem:[#allocation90_spill] sm:$0xff] %v11570_v31  ;;  %v4825_v31 = vsel %vm1105_vm1, %v4823_v23, %v4824_v3  ;;  %v4349_v3 = vrot.slane %v4216_v12, 1 }
 0x489   : > { %7036 = vrot.lane.b32.xlu1 %v11576_v22, %s7377_s23  ;;  %6891 = vrot.lane.b32.xlu0 %v11580_v21, %s7374_s16  ;;  %v7050_v30 = vpack.i.bf16 %v4827_v10, %v4825_v31  ;;  %v13364_v10 = vpack.i.bf16 %v11375_v60, %v11159_v15  ;;  %v4346_v31 = vrot.slane %v11568_v9, 1  ;;  %v4522_v15 = vrot.slane %v11568_v9, 2  ;;  %v11816_v9 = vld [vmem:[#allocation2 + $0x30] sm:$0xff] }
 0x48a   : > { %13373 = vst [vmem:[#allocation102_spill] sm:$0xff] %v11816_v9 }
 0x48b   : > { %v11587_v32 = vpop.permute.xlu1 %6746  ;;  %v11589_v46 = vpop.permute.xlu0 %6701 }
 0x48c   : > { %13360 = vst [vmem:[#allocation96_spill] sm:$0xff] %v11587_v32  ;;  %13361 = vst [vmem:[#allocation94_spill] sm:$0xff] %v11589_v46  ;;  %v4724_v32 = vsel %vm860_vm0, %v4722_v63, %v4723_v45  ;;  %v4525_v46 = vrot.slane %v4216_v12, 2 }
 0x48d   : > { %7046 = vrot.lane.b32.xlu1 %v7045_v55, %s7375_s17  ;;  %6896 = vrot.lane.b32.xlu0 %v11385_v27, %s7372_s27  ;;  %v7055_v0 = vpack.i.bf16 %v4726_v8, %v4724_v32  ;;  %v4350_v8 = vsel %vm860_vm0, %v4347_v13, %v4349_v3 }
 0x48f   : > { %v11597_v28 = vpop.permute.xlu1 %6766  ;;  %v11599_v37 = vpop.permute.xlu0 %6706 }
 0x490   : > { %13362 = vst [vmem:[#allocation95_spill] sm:$0xff] %v11597_v28  ;;  %v4523_v28 = vrot.slane %v11563_v52, 2  ;;  %v7295_v52 = vld [vmem:[#allocation2 + $0x98] sm:$0xff] }
 0x491   : > { %7051 = vrot.lane.b32.xlu1 %v7050_v30, %s7376_s22  ;;  %6901 = vrot.lane.b32.xlu0 %v11368_v62, %s7373_s28 }
 0x493   : > { %v11605_v23 = vpop.permute.xlu1 %6796  ;;  %v11607_v55 = vpop.permute.xlu0 %6711 }
 0x494   : > { %13363 = vst [vmem:[#allocation93_spill] sm:$0xff] %v11605_v23  ;;  %v4348_v23 = vsel %vm860_vm0, %v4346_v31, %v4347_v13  ;;  %v4526_v31 = vsel %vm1105_vm1, %v4523_v28, %v4525_v46  ;;  %v7085_v46 = vpack.i.bf16 %v11267_v48, %v4350_v8 }
 0x495   : > { %7056 = vrot.lane.b32.xlu1 %v7055_v0, %s7378_s26  ;;  %6906 = vrot.lane.b32.xlu0 %v13364_v10, %s7375_s17  ;;  %v7065_v10 = vpack.i.bf16 %v4350_v8, %v4348_v23  ;;  %v7040_v8 = vpack.i.bf16 %v4724_v32, %v11456_v58  ;;  %v7080_v58 = vpack.i.bf16 %v11419_v6, %v11141_v7 }
 0x497   : > { %v11616_v45 = vpop.permute.xlu1 %6816  ;;  %v11618_v63 = vpop.permute.xlu0 %6716 }
 0x498   : > { %13365 = vst [vmem:[#allocation99_spill] sm:$0xff] %v11618_v63  ;;  %v4524_v63 = vsel %vm1105_vm1, %v4522_v15, %v4523_v28 }
 0x499   : > { %7061 = vrot.lane.b32.xlu1 %v7050_v30, %s7379_s24  ;;  %6941 = vrot.lane.b32.xlu0 %v11471_v11, %s7374_s16  ;;  %v7070_v11 = vpack.i.bf16 %v4526_v31, %v4524_v63  ;;  %v7075_v31 = vpack.i.bf16 %v4348_v23, %v11280_v57 }
 0x49b   : > { %v11627_v60 = vpop.permute.xlu1 %6821  ;;  %v11629_v0 = vpop.permute.xlu0 %6721 }
 0x49c   : > { %v6824_v41 = vunpack.i.h.bf16 %v11627_v60 }
 0x49d   : > { %7066 = vrot.lane.b32.xlu1 %v7065_v10, %s7372_s27  ;;  %6951 = vrot.lane.b32.xlu0 %v11490_v49, %s7372_s27  ;;  %v13368_v49 = vpack.i.bf16 %v11390_v36, %v11276_v26  ;;  %s336_s27 = sand.u32 1, %s7360_s10  }
 0x49f   : > { %v11636_v30 = vpop.permute.xlu1 %6841  ;;  %v11638_v12 = vpop.permute.xlu0 %6726 }
 0x4a0   : > { %13366 = vst [vmem:[#allocation97_spill] sm:$0xff] %v11636_v30  ;;  %v7288_v30 = vld [vmem:[#allocation2 + $0x48] sm:$0xff] }
 0x4a1   : > { %7071 = vrot.lane.b32.xlu1 %v7070_v11, %s7373_s28  ;;  %6956 = vrot.lane.b32.xlu0 %v11403_v33, %s7373_s28  ;;  %v13370_v33 = vpack.i.bf16 %v11395_v53, %v11203_v39  ;;  %s5904_s28 = smul.u32 48, %s336_s27 }
 0x4a3   : > { %v11643_v13 = vpop.permute.xlu1 %6866  ;;  %v11645_v3 = vpop.permute.xlu0 %6731  ;;  %s338_s21 = scalar_lea.vmem [#allocation3], %s5904_s28 }
 0x4a4   : > { %13367 = vst [vmem:[#allocation98_spill] sm:$0xff] %v11643_v13 }
 0x4a5   : > { %7086 = vrot.lane.b32.xlu1 %v7085_v46, %s7375_s17  ;;  %6961 = vrot.lane.b32.xlu0 %v13368_v49, %s7375_s17 }
 0x4a7   : > { %v11653_v28 = vpop.permute.xlu1 %6871  ;;  %v11655_v63 = vpop.permute.xlu0 %6736 }
 0x4a8   : > { %13369 = vst [vmem:[#allocation106_spill] sm:$0xff] %v11653_v28 }
 0x4a9   : > { %7091 = vrot.lane.b32.xlu1 %v7070_v11, %s7376_s22  ;;  %6996 = vrot.lane.b32.xlu0 %v13370_v33, %s7375_s17 }
 0x4ab   : > { %v6887_v15 = vpop.permute.xlu1 %6886  ;;  %v11662_v48 = vpop.permute.xlu0 %6751 }
 0x4ac   : > { %v6889_v49 = vunpack.i.h.bf16 %v6887_v15  ;;  %v6888_v33 = vunpack.i.l.bf16 %v6887_v15 }
 0x4ad   : > { %7096 = vrot.lane.b32.xlu1 %v7065_v10, %s7378_s26  ;;  %7031 = vrot.lane.b32.xlu0 %v11576_v22, %s7374_s16  ;;  %v7105_v10 = vpack.i.bf16 %v11097_v5, %v11422_v44  ;;  %s5906_s16 = smul.u32 768, %s7454_s13  ;;  %s12589_s13 = scalar_lea.sflag [#allocation4], %s336_s27 }
 0x4af   : > { %v11667_v26 = vpop.permute.xlu1 %6911  ;;  %v11669_v36 = vpop.permute.xlu0 %6756 }
 0x4b0   : > { %13371 = vst [vmem:[#allocation100_spill] sm:$0xff] %v11667_v26 }
 0x4b1   : > { %7101 = vrot.lane.b32.xlu1 %v7070_v11, %s7379_s24  ;;  %7041 = vrot.lane.b32.xlu0 %v7040_v8, %s7375_s17 }
 0x4b3   : > { %v11674_v39 = vpop.permute.xlu1 %6916  ;;  %v11676_v53 = vpop.permute.xlu0 %6761 }
 0x4b5   : > { %7106 = vrot.lane.b32.xlu1 %v7105_v10, %s7375_s17  ;;  %7076 = vrot.lane.b32.xlu0 %v7075_v31, %s7375_s17  ;;  %v6913_v31 = vunpack.i.l.bf16 %v11667_v26 }
 0x4b7   : > { %v6922_v22 = vpop.permute.xlu1 %6921  ;;  %v11683_v46 = vpop.permute.xlu0 %6771 }
 0x4b8   : > { %v6924_v32 = vunpack.i.h.bf16 %v6922_v22  ;;  %v6923_v11 = vunpack.i.l.bf16 %v6922_v22 }
 0x4b9   : > { %7116 = vrot.lane.b32.xlu1 %v11432_v35, %s7376_s22  ;;  %7081 = vrot.lane.b32.xlu0 %v7080_v58, %s7375_s17  ;;  %v11708_v58 = vld [vmem:[#allocation2 + $0x68] sm:$0xff] }
 0x4ba   : > { %v5248_v8 = vsel %vm403_vm2, %v11361_v47, %v6924_v32  ;;  %v5247_v7 = vsel %vm403_vm2, %v11370_v18, %v6923_v11  ;;  %v7286_v18 = vld [vmem:[#allocation2 + $0x60] sm:$0xff]  ;;  %v6919_v11 = vunpack.i.h.bf16 %v11674_v39 }
 0x4bb   : > { %v6927_v5 = vpop.permute.xlu1 %6926  ;;  %v11690_v44 = vpop.permute.xlu0 %6776 }
 0x4bc   : > { %v6929_v57 = vunpack.i.h.bf16 %v6927_v5  ;;  %v6928_v23 = vunpack.i.l.bf16 %v6927_v5 }
 0x4bd   : > { %7126 = vrot.lane.b32.xlu1 %v11365_v34, %s7377_s23  ;;  %7111 = vrot.lane.b32.xlu0 %v11171_v61, %s7376_s22  ;;  %v7120_v34 = vpack.i.bf16 %v11708_v58, %v7286_v18 }
 0x4be   : > { %v5279_v6 = vsel %vm3583_vm5, %v5247_v7, %v6928_v23  ;;  %v5280_v10 = vsel %vm3583_vm5, %v5248_v8, %v6929_v57 }
 0x4bf   : > { %v5312_v15 = vsel %vm3616_vm6, %v5280_v10, %v6889_v49  ;;  %v11704_v22 = vpop.permute.xlu1 %6931  ;;  %v11706_v47 = vpop.permute.xlu0 %6781  ;;  %v11712_v32 = vsel %vm3616_vm6, %v5279_v6, %v6888_v33  ;;  %v6673_v33 = vunpack.i.l.bf16 %v11554_v51  ;;  %v6678_v10 = vunpack.i.l.bf16 %v11561_v20 }
 0x4c0   : > { %v5344_v5 = vsel %vm3649_vm7, %v5312_v15, %v6913_v31  ;;  %v6934_v26 = vunpack.i.h.bf16 %v11704_v22  ;;  %v6933_v13 = vunpack.i.l.bf16 %v11704_v22  ;;  %v11818_v22 = vld [vmem:[#allocation2 + $0x38] sm:$0xff] }
 0x4c1   : > { %7136 = vrot.lane.b32.xlu1 %v11385_v27, %s7378_s26  ;;  %7121 = vrot.lane.b32.xlu0 %v7120_v34, %s7377_s23  ;;  %v5376_v57 = vsel %vm3682_vm8, %v5344_v5, %v6919_v11  ;;  %v6708_v11 = vunpack.i.l.bf16 %v11599_v37  ;;  %13374 = vst [vmem:[#allocation109_spill] sm:$0xff] %v11818_v22 }
 0x4c3   : > { %v11720_v23 = vpop.permute.xlu1 %6936  ;;  %v6787_v49 = vpop.permute.xlu0 %6786 }
 0x4c4   : > { %v6789_v8 = vunpack.i.h.bf16 %v6787_v49  ;;  %v6788_v7 = vunpack.i.l.bf16 %v6787_v49 }
 0x4c5   : > { %7146 = vrot.lane.b32.xlu1 %v11368_v62, %s7379_s24  ;;  %7131 = vrot.lane.b32.xlu0 %v11175_v25, %s7378_s26 }
 0x4c6   : > { %v5242_v5 = vsel %vm403_vm2, %v11226_v43, %v6789_v8  ;;  %v5241_v62 = vsel %vm403_vm2, %v11232_v4, %v6788_v7  ;;  %v5233_v43 = vsel %vm403_vm2, %v7286_v18, %v6673_v33  ;;  %v11754_v7 = vld [vmem:[#allocation2 + $0x50] sm:$0xff] }
 0x4c7   : > { %v11727_v27 = vpop.permute.xlu1 %6946  ;;  %v6792_v6 = vpop.permute.xlu0 %6791 }
 0x4c8   : > { %v6949_v31 = vunpack.i.h.bf16 %v11727_v27  ;;  %v6794_v15 = vunpack.i.h.bf16 %v6792_v6  ;;  %v6793_v34 = vunpack.i.l.bf16 %v6792_v6 }
 0x4c9   : > { %7156 = vrot.lane.b32.xlu1 %v11123_v42, %s7376_s22  ;;  %7141 = vrot.lane.b32.xlu0 %v11197_v54, %s7379_s24  ;;  %v7165_v54 = vpack.i.bf16 %v11754_v7, %v7288_v30 }
 0x4ca   : > { %v11741_v25 = vsel %vm3715_vm9, %v5376_v57, %v6949_v31  ;;  %v11744_v49 = vsel %vm3583_vm5, %v5241_v62, %v6793_v34  ;;  %v11747_v6 = vsel %vm3583_vm5, %v5242_v5, %v6794_v15  ;;  %v5265_v57 = vsel %vm3583_vm5, %v5233_v43, %v6678_v10 }
 0x4cb   : > { %v11750_v8 = vpop.permute.xlu1 %6966  ;;  %v11752_v4 = vpop.permute.xlu0 %6801  ;;  %v5297_v34 = vsel %vm3616_vm6, %v5265_v57, %v6708_v11  ;;  %v6753_v15 = vunpack.i.l.bf16 %v11662_v48 }
 0x4cc   : > { %v6969_v31 = vunpack.i.h.bf16 %v11750_v8 }
 0x4cd   : > { %7166 = vrot.lane.b32.xlu1 %v7165_v54, %s7377_s23  ;;  %7151 = vrot.lane.b32.xlu0 %v11438_v24, %s7375_s17 }
 0x4ce   : > { %v5329_v18 = vsel %vm3649_vm7, %v5297_v34, %v6969_v31  ;;  %v6688_v31 = vunpack.i.l.bf16 %v11545_v1 }
 0x4cf   : > { %v11766_v33 = vsel %vm3682_vm8, %v5329_v18, %v6753_v15  ;;  %v11768_v5 = vpop.permute.xlu1 %6971  ;;  %v11770_v62 = vpop.permute.xlu0 %6806 }
 0x4d1   : > { %7176 = vrot.lane.b32.xlu1 %v11154_v59, %s7378_s26  ;;  %7161 = vrot.lane.b32.xlu0 %v11440_v19, %s7376_s22 }
 0x4d3   : > { %v11776_v10 = vpop.permute.xlu1 %6976  ;;  %v11778_v11 = vpop.permute.xlu0 %6811 }
 0x4d5   : > { %7186 = vrot.lane.b32.xlu1 %v11171_v61, %s7379_s24  ;;  %7171 = vrot.lane.b32.xlu0 %v11580_v21, %s7377_s23  ;;  %v6693_v21 = vunpack.i.l.bf16 %v11552_v2 }
 0x4d7   : > { %v11784_v43 = vpop.permute.xlu1 %6981  ;;  %v11786_v54 = vpop.permute.xlu0 %6826 }
 0x4d9   : > { %7196 = vrot.lane.b32.xlu1 %v11334_v40, %s7375_s17  ;;  %7181 = vrot.lane.b32.xlu0 %v11436_v29, %s7378_s26  ;;  %v5231_v29 = vsel %vm403_vm2, %v7288_v30, %v6688_v31  ;;  %s5693_s17 = sshll.u32 %s338_s21, 4  ;;  %s12580_s17 = int_to_ptr.vmem [resolvable:$true] %s5693_s17 }
 0x4da   : > { %v5263_v30 = vsel %vm3583_vm5, %v5231_v29, %v6693_v21  ;;  %v6974_v29 = vunpack.i.h.bf16 %v11768_v5  ;;  %s7308_s14 = scalar_lea.vmem %s12580_s17, 768 }
 0x4db   : > { %v6987_v59 = vpop.permute.xlu1 %6986  ;;  %v11792_v57 = vpop.permute.xlu0 %6831  ;;  %p7309_p11 = scmp.ne.s32.totalorder %s12580_s17, %s7308_s14 }
 0x4dc   : > { %v6989_v34 = vunpack.i.h.bf16 %v6987_v59  ;;  %v6988_v61 = vunpack.i.l.bf16 %v6987_v59 }
 0x4dd   : > { %7206 = vrot.lane.b32.xlu1 %v11345_v14, %s7376_s22  ;;  %7191 = vrot.lane.b32.xlu0 %v11432_v35, %s7379_s24  ;;  %v13372_v35 = vld [vmem:[#allocation76_spill] sm:$0xff]  ;;  %p7310_p12 = pnand %p7309_p11, %p7471_p5 }
 0x4de   : > { %v5252_v59 = vsel %vm403_vm2, %v11347_v56, %v6989_v34  ;;  %v5251_v14 = vsel %vm403_vm2, %v11356_v38, %v6988_v61  ;;  %v7210_v56 = vpack.i.bf16 %v11818_v22, %v11816_v9  ;;  %v6663_v38 = vunpack.i.l.bf16 %v11538_v50  ;;  %v13384_v22 = vld [vmem:[#allocation96_spill] sm:$0xff] }
 0x4df   : > { %v6992_v15 = vpop.permute.xlu1 %6991  ;;  %v11800_v40 = vpop.permute.xlu0 %6836  ;;  %p7311_p13 = pneg %p7310_p12 }
 0x4e0   : > { %v6994_v18 = vunpack.i.h.bf16 %v6992_v15  ;;  %v6993_v28 = vunpack.i.l.bf16 %v6992_v15  ;;  %v5295_v9 = vsel %vm3616_vm6, %v5263_v30, %v6663_v38  ;;  %v6713_v30 = vunpack.i.l.bf16 %v11607_v55 }
 0x4e1   : > { %7216 = vrot.lane.b32.xlu1 %v11325_v17, %s7377_s23  ;;  %7201 = vrot.lane.b32.xlu0 %v13372_v35, %s7376_s22  ;;  %v6968_v17 = vunpack.i.l.bf16 %v11750_v8  ;;  %v6683_v35 = vunpack.i.l.bf16 %v11572_v16 }
 0x4e2   : > { %v5283_v31 = vsel %vm3583_vm5, %v5251_v14, %v6993_v28  ;;  %v5284_v15 = vsel %vm3583_vm5, %v5252_v59, %v6994_v18 }
 0x4e3   : > { %v5316_v34 = vsel %vm3616_vm6, %v5284_v15, %v6934_v26  ;;  %v11825_v61 = vpop.permute.xlu1 %7001  ;;  %v6847_v21 = vpop.permute.xlu0 %6846  ;;  %v11828_v28 = vsel %vm3616_vm6, %v5283_v31, %v6933_v13 }
 0x4e4   : > { %13375 = vst [vmem:[#allocation122_spill] sm:$0xff] %v11828_v28  ;;  %v7004_v18 = vunpack.i.h.bf16 %v11825_v61  ;;  %v6849_v59 = vunpack.i.h.bf16 %v6847_v21  ;;  %v6848_v14 = vunpack.i.l.bf16 %v6847_v21  ;;  %v5348_v26 = vsel %vm3649_vm7, %v5316_v34, %v6968_v17  ;;  %v5501_v21 = vld [vmem:[%s12636_s7 + $0x8] sm:$0xff]  ;;  %v7292_v28 = vld [vmem:[#allocation2 + $0x80] sm:$0xff] }
 0x4e5   : > { %7226 = vrot.lane.b32.xlu1 %v11438_v24, %s7378_s26  ;;  %7211 = vrot.lane.b32.xlu0 %v7210_v56, %s7377_s23  ;;  %v11848_v15 = vsel %vm3682_vm8, %v5348_v26, %v6974_v29  ;;  %v6689_v34 = vunpack.i.h.bf16 %v11545_v1 }
 0x4e6   : > { %v5327_v13 = vsel %vm3649_vm7, %v5295_v9, %v7004_v18  ;;  %v11841_v8 = vsel %vm3616_vm6, %v11744_v49, %v6848_v14  ;;  %v11845_v31 = vsel %vm3616_vm6, %v11747_v6, %v6849_v59  ;;  %13378 = vst [vmem:[#allocation112_spill] sm:$0xff] %v11848_v15  ;;  %v6758_v9 = vunpack.i.l.bf16 %v11669_v36  ;;  %v13379_v6 = vld [vmem:[#allocation70_spill] sm:$0xff] }
 0x4e7   : > { %13376 = vst [vmem:[#allocation125_spill] sm:$0xff] %v11841_v8  ;;  %13377 = vst [vmem:[#allocation126_spill] sm:$0xff] %v11845_v31  ;;  %v5359_v24 = vsel %vm3682_vm8, %v5327_v13, %v6683_v35  ;;  %v11852_v56 = vpop.permute.xlu1 %7006  ;;  %v11854_v38 = vpop.permute.xlu0 %6851  ;;  %v6763_v49 = vunpack.i.l.bf16 %v11676_v53  ;;  %v6694_v18 = vunpack.i.h.bf16 %v11552_v2  ;;  %v6674_v59 = vunpack.i.h.bf16 %v11554_v51  ;;  %v7247_v2 = vld [vmem:[%s12635_s6] sm:$0xff]  }
 0x4e8   : > { %v5391_v17 = vsel %vm3715_vm9, %v5359_v24, %v6713_v30  ;;  %v5232_v1 = vsel %vm403_vm2, %v11754_v7, %v6689_v34  ;;  %5845 = vmatprep.mubr.msk.bf16.mxu1 %vm3892_vm12, %v7247_v2  ;;  %v6679_v7 = vunpack.i.h.bf16 %v11561_v20  ;;  %v13383_v34 = vld [vmem:[#allocation90_spill] sm:$0xff]  ;;  %v6749_v2 = vunpack.i.h.bf16 %v13384_v22 }
 0x4e9   : > { %7236 = vrot.lane.b32.xlu1 %v11440_v19, %s7379_s24  ;;  %7221 = vrot.lane.b32.xlu0 %v13379_v6, %s7378_s26  ;;  %v5423_v29 = vsel %vm3748_vm10, %v5391_v17, %v6758_v9  ;;  %v5632_v6 = vld [vmem:[%s12637_s8] sm:$0xff]  ;;  %v6818_v9 = vunpack.i.l.bf16 %v11616_v45  ;;  %s12585_s26 = scalar_lea.hbm %s12638_s9, %s5906_s16 }
 0x4ea   : > { %v11873_v35 = vsel %vm3781_vm11, %v5423_v29, %v6763_v49  ;;  %v6664_v29 = vunpack.i.h.bf16 %v11538_v50  ;;  %v5234_v50 = vsel %vm403_vm2, %v11708_v58, %v6674_v59  ;;  %v6743_v49 = vunpack.i.l.bf16 %v13383_v34  ;;  %v13386_v59 = vld [vmem:[#allocation73_spill] sm:$0xff] }
 0x4eb   : > { %v11870_v14 = vpop.permute.xlu1 %7011  ;;  %v6857_v19 = vpop.permute.xlu0 %6856  ;;  %13380 = vst [vmem:[#allocation116_spill] sm:$0xff] %v11873_v35  ;;  %v6709_v35 = vunpack.i.h.bf16 %v11599_v37 }
 0x4ec   : > { %v7014_v24 = vunpack.i.h.bf16 %v11870_v14  ;;  %v6859_v17 = vunpack.i.h.bf16 %v6857_v19  ;;  %v6858_v8 = vunpack.i.l.bf16 %v6857_v19  ;;  %v6744_v19 = vunpack.i.h.bf16 %v13383_v34 }
 0x4ed   : > { %5510 = vperm.xlu1 %5959, %v5501_v21   ;;  %7231 = vrot.lane.b32.xlu0 %v11123_v42, %s7379_s24  ;;  %v5500_v21 = vld [vmem:[%s12636_s7] sm:$0xff]  ;;  %v5264_v42 = vsel %vm3583_vm5, %v5232_v1, %v6694_v18  ;;  %v6748_v18 = vunpack.i.l.bf16 %v13384_v22  ;;  %v13385_v1 = vld [vmem:[#allocation74_spill] sm:$0xff]  ;;  %s7380_s24 = smov [#allocation3]  }
 0x4ee   : > { %v5440_v30 = vsel %vm3748_vm10, %v11741_v25, %v7014_v24  ;;  %v5246_v58 = vsel %vm403_vm2, %v13385_v1, %v6859_v17  ;;  %v5245_v20 = vsel %vm403_vm2, %v13386_v59, %v6858_v8  ;;  %v5634_v22 = vld [vmem:[%s12637_s8 + $0x10] sm:$0xff]  ;;  %v7291_v59 = vld [vmem:[#allocation2 + $0x78] sm:$0xff]  ;;  %s7312_s25 = sshll.u32 %s7380_s24, 4  ;;  %s7313_s25 = int_to_ptr.vmem [resolvable:$false] %s7312_s25 }
 0x4ef   : > { %v11904_v25 = vpop.permute.xlu1 %7016  ;;  %v6862_v24 = vpop.permute.xlu0 %6861  ;;  %v5502_v8 = vld [vmem:[%s12636_s7 + $0x10] sm:$0xff]  ;;  %p7315_p0 = scmp.lt.s32.totalorder %s12580_s17, %s7313_s25 }
 0x4f0   : > { %v7019_v51 = vunpack.i.h.bf16 %v11904_v25  ;;  %v6864_v26 = vunpack.i.h.bf16 %v6862_v24  ;;  %v6863_v31 = vunpack.i.l.bf16 %v6862_v24 }
 0x4f1   : > { %5637 = vperm.xlu1 %5959, %v5632_v6   ;;  %5505 = vperm.xlu0 %5958, %v5500_v21   ;;  %v13388_v6 = vld [vmem:[#allocation108_spill] sm:$0xff]  ;;  %v6819_v21 = vunpack.i.h.bf16 %v11616_v45  ;;  %v5236_v45 = vsel %vm403_vm2, %v7292_v28, %v6744_v19  ;;  %v5633_v28 = vld [vmem:[%s12637_s8 + $0x8] sm:$0xff]  ;;  %v7294_v19 = vld [vmem:[#allocation2 + $0xb0] sm:$0xff] }
 0x4f2   : > { %v11916_v34 = vsel %vm3781_vm11, %v5440_v30, %v7019_v51  ;;  %v11919_v13 = vsel %vm3583_vm5, %v5245_v20, %v6863_v31  ;;  %v11922_v24 = vsel %vm3583_vm5, %v5246_v58, %v6864_v26  ;;  %v6699_v17 = vunpack.i.h.bf16 %v13388_v6 }
 0x4f3   : > { %13387 = vst [vmem:[#allocation119_spill] sm:$0xff] %v11916_v34  ;;  %v6823_v30 = vunpack.i.l.bf16 %v11627_v60  ;;  %v11933_v51 = vpop.permute.xlu1 %7021  ;;  %v11935_v31 = vpop.permute.xlu0 %6876  ;;  %v11938_v26 = vsel %vm3616_vm6, %v5264_v42, %v6664_v29  ;;  %v6698_v1 = vunpack.i.l.bf16 %v13388_v6  ;;  %v5266_v58 = vsel %vm3583_vm5, %v5234_v50, %v6679_v7  ;;  %v7293_v42 = vld [vmem:[#allocation2 + $0xa8] sm:$0xff]  ;;  %v13389_v7 = vld [vmem:[#allocation99_spill] sm:$0xff]  ;;  %v13391_v6 = vld [vmem:[#allocation94_spill] sm:$0xff] }
 0x4f4   : > { %v5235_v20 = vsel %vm403_vm2, %v7291_v59, %v6743_v49  ;;  %v5268_v29 = vsel %vm3583_vm5, %v5236_v45, %v6749_v2  ;;  %v5239_v50 = vsel %vm403_vm2, %v7293_v42, %v6818_v9  ;;  %v6719_v49 = vunpack.i.h.bf16 %v13389_v7  ;;  %v13392_v45 = vld [vmem:[#allocation95_spill] sm:$0xff] }
 0x4f5   : > { %v5267_v15 = vsel %vm3583_vm5, %v5235_v20, %v6748_v18  ;;  %5647 = vperm.xlu1 %5959, %v5634_v22   ;;  %5515 = vperm.xlu0 %5958, %v5502_v8   ;;  %v6718_v60 = vunpack.i.l.bf16 %v13389_v7  ;;  %v5240_v18 = vsel %vm403_vm2, %v7294_v19, %v6819_v21  ;;  %v5271_v37 = vsel %vm3583_vm5, %v5239_v50, %v6823_v30  ;;  %v13393_v19 = vld [vmem:[#allocation93_spill] sm:$0xff] }
 0x4f6   : > { %v6724_v22 = vunpack.i.h.bf16 %v11629_v0  ;;  %v6723_v2 = vunpack.i.l.bf16 %v11629_v0  ;;  %v6703_v20 = vunpack.i.l.bf16 %v13391_v6  ;;  %v6768_v42 = vunpack.i.l.bf16 %v13392_v45 }
 0x4f7   : > { %v11959_v8 = vpop.permute.xlu1 %7026  ;;  %v11961_v9 = vpop.permute.xlu0 %6881  ;;  %v5272_v7 = vsel %vm3583_vm5, %v5240_v18, %v6824_v41  ;;  %v6769_v21 = vunpack.i.h.bf16 %v13392_v45  ;;  %v11969_v30 = vsel %vm3616_vm6, %v5266_v58, %v6709_v35  ;;  %v11972_v0 = vsel %vm3616_vm6, %v5267_v15, %v6698_v1 }
 0x4f8   : > { %13390 = vst [vmem:[#allocation117_spill] sm:$0xff] %v11959_v8  ;;  %v11975_v50 = vsel %vm3616_vm6, %v5268_v29, %v6699_v17  ;;  %v6799_v59 = vunpack.i.h.bf16 %v13393_v19  ;;  %v5238_v6 = vsel %vm403_vm2, %v7295_v52, %v6719_v49  ;;  %v7296_v8 = vld [vmem:[#allocation2 + $0x90] sm:$0xff]  ;;  %v5303_v18 = vsel %vm3616_vm6, %v5271_v37, %v6768_v42 }
 0x4f9   : > { %5642 = vperm.xlu0 %5958, %v5633_v28   ;;  %v5237_v41 = vsel %vm403_vm2, %v7296_v8, %v6718_v60  ;;  %v5270_v15 = vsel %vm3583_vm5, %v5238_v6, %v6724_v22  ;;  %v11987_v29 = vsel %vm3616_vm6, %v5272_v7, %v6769_v21  ;;  %v6779_v8 = vunpack.i.h.bf16 %v11690_v44 }
 0x4fa   : > { %v5269_v58 = vsel %vm3583_vm5, %v5237_v41, %v6723_v2  ;;  %v6778_v2 = vunpack.i.l.bf16 %v11690_v44  ;;  %v5335_v22 = vsel %vm3649_vm7, %v5303_v18, %v6799_v59  ;;  %v6733_v6 = vunpack.i.l.bf16 %v11645_v3 }
 0x4fb   : > { %v11984_v1 = vpop.permute.xlu1 %7036  ;;  %v6892_v17 = vpop.permute.xlu0 %6891  ;;  %v6918_v44 = vunpack.i.l.bf16 %v11674_v39  ;;  %v12019_v37 = vsel %vm3616_vm6, %v5270_v15, %v6779_v8  ;;  %v6828_v21 = vunpack.i.l.bf16 %v11786_v54  ;;  %v5393_v59 = vsel %vm3715_vm9, %v11766_v33, %v6703_v20 }
 0x4fc   : > { %v6894_v49 = vunpack.i.h.bf16 %v6892_v17  ;;  %v6893_v60 = vunpack.i.l.bf16 %v6892_v17  ;;  %v6808_v33 = vunpack.i.l.bf16 %v11770_v62  ;;  %v7009_v52 = vunpack.i.h.bf16 %v11852_v56 }
 0x4fd   : > { %v7018_v15 = vunpack.i.l.bf16 %v11904_v25 }
 0x4fe   : > { %v11999_v42 = vsel %vm3616_vm6, %v11919_v13, %v6893_v60  ;;  %v12003_v7 = vsel %vm3616_vm6, %v11922_v24, %v6894_v49  ;;  %v6773_v13 = vunpack.i.l.bf16 %v11683_v46  ;;  %v6803_v60 = vunpack.i.l.bf16 %v11752_v4 }
 0x4ff   : > { %13394 = vst [vmem:[#allocation118_spill] sm:$0xff] %v12003_v7  ;;  %v12009_v18 = vpop.permute.xlu1 %7046  ;;  %v12011_v17 = vpop.permute.xlu0 %6896  ;;  %v5301_v49 = vsel %vm3616_vm6, %v5269_v58, %v6778_v2  ;;  %v6948_v58 = vunpack.i.l.bf16 %v11727_v27  ;;  %v6813_v27 = vunpack.i.l.bf16 %v11778_v11 }
 0x500   : > { %v7049_v24 = vunpack.i.h.bf16 %v12009_v18  ;;  %v5367_v28 = vsel %vm3682_vm8, %v5335_v22, %v6803_v60 }
 0x502   : > { %v5333_v45 = vsel %vm3649_vm7, %v5301_v49, %v7049_v24  ;;  %v6853_v24 = vunpack.i.l.bf16 %v11854_v38 }
 0x503   : > { %v5365_v8 = vsel %vm3682_vm8, %v5333_v45, %v6828_v21  ;;  %v12032_v2 = vpop.permute.xlu1 %7051  ;;  %v12034_v39 = vpop.permute.xlu0 %6901  ;;  %v12044_v45 = vsel %vm3748_vm10, %v5393_v59, %v6733_v6  ;;  %v7013_v59 = vunpack.i.l.bf16 %v11870_v14 }
 0x504   : > { %v5397_v49 = vsel %vm3715_vm9, %v5365_v8, %v6773_v13  ;;  %v6899_v8 = vunpack.i.h.bf16 %v12011_v17  ;;  %v6904_v41 = vunpack.i.h.bf16 %v12034_v39  ;;  %v5399_v14 = vsel %vm3715_vm9, %v5367_v28, %v6853_v24 }
 0x505   : > { %v5429_v60 = vsel %vm3748_vm10, %v5397_v49, %v6808_v33  ;;  %v7003_v49 = vunpack.i.l.bf16 %v11825_v61  ;;  %v13395_v61 = vunpack.i.h.bf16 %v11572_v16  ;;  %v7024_v28 = vunpack.i.h.bf16 %v11933_v51 }
 0x506   : > { %v12056_v6 = vsel %vm3781_vm11, %v5429_v60, %v6813_v27 }
 0x507   : > { %v12053_v20 = vpop.permute.xlu1 %7056  ;;  %v6907_v13 = vpop.permute.xlu0 %6906 }
 0x508   : > { %v6909_v21 = vunpack.i.h.bf16 %v6907_v13  ;;  %v6908_v22 = vunpack.i.l.bf16 %v6907_v13  ;;  %v7054_v13 = vunpack.i.h.bf16 %v12032_v2 }
 0x50a   : > { %v5328_v27 = vsel %vm3649_vm7, %v11938_v26, %v6908_v22  ;;  %v5343_v60 = vsel %vm3649_vm7, %v11712_v32, %v6909_v21  ;;  %v7297_v26 = vld [vmem:[#allocation2 + $0x128] sm:$0xff] }
 0x50b   : > { %v5360_v33 = vsel %vm3682_vm8, %v5328_v27, %v13395_v61  ;;  %v5375_v35 = vsel %vm3682_vm8, %v5343_v60, %v6918_v44  ;;  %v12076_v19 = vpop.permute.xlu1 %7061  ;;  %v12078_v7 = vpop.permute.xlu0 %6941  ;;  %v5250_v22 = vsel %vm403_vm2, %v7297_v26, %v6899_v8  ;;  %v13396_v44 = vunpack.i.h.bf16 %v11607_v55 }
 0x50c   : > { %v5407_v32 = vsel %vm3715_vm9, %v5375_v35, %v6948_v58  ;;  %v6944_v21 = vunpack.i.h.bf16 %v12078_v7  ;;  %v5282_v16 = vsel %vm3583_vm5, %v5250_v22, %v6904_v41  ;;  %v6878_v61 = vunpack.i.l.bf16 %v11935_v31 }
 0x50d   : > { %v5439_v27 = vsel %vm3748_vm10, %v5407_v32, %v7013_v59  ;;  %v5392_v60 = vsel %vm3715_vm9, %v5360_v33, %v13396_v44  ;;  %v13398_v35 = vunpack.i.h.bf16 %v11669_v36  ;;  %v13399_v33 = vunpack.i.h.bf16 %v11676_v53 }
 0x50e   : > { %v5314_v25 = vsel %vm3616_vm6, %v5282_v16, %v6944_v21  ;;  %v12093_v8 = vsel %vm3781_vm11, %v5439_v27, %v7018_v15  ;;  %v6883_v36 = vunpack.i.l.bf16 %v11961_v9  ;;  %v7039_v22 = vunpack.i.h.bf16 %v11984_v1  ;;  %v13407_v15 = vld [vmem:[#allocation110_spill] sm:$0xff] }
 0x50f   : > { %13397 = vst [vmem:[#allocation120_spill] sm:$0xff] %v12093_v8  ;;  %v5424_v58 = vsel %vm3748_vm10, %v5392_v60, %v13398_v35  ;;  %v5346_v41 = vsel %vm3649_vm7, %v5314_v25, %v7003_v49  ;;  %v7067_v24 = vpop.permute.xlu1 %7066  ;;  %v12100_v59 = vpop.permute.xlu0 %6951  ;;  %v6898_v49 = vunpack.i.l.bf16 %v12011_v17  ;;  %v13401_v16 = vunpack.i.h.bf16 %v11720_v23  ;;  %v13403_v25 = vld [vmem:[#allocation117_spill] sm:$0xff] }
 0x510   : > { %v12107_v26 = vsel %vm3781_vm11, %v5424_v58, %v13399_v33  ;;  %v5378_v32 = vsel %vm3682_vm8, %v5346_v41, %v7009_v52  ;;  %v7069_v21 = vunpack.i.h.bf16 %v7067_v24  ;;  %v5431_v58 = vsel %vm3748_vm10, %v5399_v14, %v6878_v61  ;;  %v13406_v14 = vld [vmem:[#allocation112_spill] sm:$0xff] }
 0x511   : > { %13400 = vst [vmem:[#allocation121_spill] sm:$0xff] %v12107_v26  ;;  %v5410_v27 = vsel %vm3715_vm9, %v5378_v32, %v13401_v16  ;;  %v13404_v33 = vunpack.i.h.bf16 %v11776_v10  ;;  %v6903_v55 = vunpack.i.l.bf16 %v12034_v39  ;;  %v13405_v53 = vunpack.i.h.bf16 %v11784_v43  ;;  %v7298_v39 = vld [vmem:[#allocation2 + $0x120] sm:$0xff] }
 0x512   : > { %v12136_v61 = vsel %vm3715_vm9, %v13406_v14, %v7039_v22  ;;  %v7048_v41 = vunpack.i.l.bf16 %v12009_v18  ;;  %v5249_v17 = vsel %vm403_vm2, %v7298_v39, %v6898_v49  ;;  %v6943_v35 = vunpack.i.l.bf16 %v12078_v7 }
 0x513   : > { %v5442_v52 = vsel %vm3748_vm10, %v5410_v27, %v13404_v33  ;;  %v7072_v32 = vpop.permute.xlu1 %7071  ;;  %v6957_v16 = vpop.permute.xlu0 %6956  ;;  %v12139_v33 = vsel %vm3781_vm11, %v5431_v58, %v6883_v36  ;;  %v7068_v22 = vunpack.i.l.bf16 %v7067_v24  ;;  %v5281_v36 = vsel %vm3583_vm5, %v5249_v17, %v6903_v55  ;;  %v13408_v17 = vld [vmem:[#allocation111_spill] sm:$0xff]  ;;  %v13409_v58 = vld [vmem:[#allocation122_spill] sm:$0xff] }
 0x514   : > { %v12131_v60 = vsel %vm3781_vm11, %v5442_v52, %v13405_v53  ;;  %v7074_v27 = vunpack.i.h.bf16 %v7072_v32  ;;  %v5256_v53 = vsel %vm403_vm2, %v13407_v15, %v7069_v21  ;;  %v6954_v49 = vunpack.i.h.bf16 %v12100_v59 }
 0x515   : > { %v6953_v26 = vunpack.i.l.bf16 %v12100_v59  ;;  %v7073_v7 = vunpack.i.l.bf16 %v7072_v32  ;;  %v6959_v24 = vunpack.i.h.bf16 %v6957_v16  ;;  %v6958_v8 = vunpack.i.l.bf16 %v6957_v16 }
 0x516   : > { %v5288_v14 = vsel %vm3583_vm5, %v5256_v53, %v7074_v27  ;;  %v5313_v55 = vsel %vm3616_vm6, %v5281_v36, %v6943_v35  ;;  %v5255_v53 = vsel %vm403_vm2, %v13408_v17, %v7068_v22  ;;  %v13411_v35 = vunpack.i.l.bf16 %v11768_v5 }
 0x517   : > { %v7087_v39 = vpop.permute.xlu1 %7086  ;;  %v6962_v44 = vpop.permute.xlu0 %6961  ;;  %v5320_v15 = vsel %vm3616_vm6, %v5288_v14, %v7024_v28  ;;  %v13410_v28 = vunpack.i.l.bf16 %v11638_v12 }
 0x518   : > { %v7089_v21 = vunpack.i.h.bf16 %v7087_v39  ;;  %v6964_v52 = vunpack.i.h.bf16 %v6962_v44  ;;  %v6963_v27 = vunpack.i.l.bf16 %v6962_v44  ;;  %v5352_v59 = vsel %vm3649_vm7, %v5320_v15, %v7048_v41 }
 0x519   : > { %v5384_v17 = vsel %vm3682_vm8, %v5352_v59, %v7054_v13  ;;  %v13418_v13 = vunpack.i.l.bf16 %v11800_v40  ;;  %v7088_v59 = vunpack.i.l.bf16 %v7087_v39 }
 0x51a   : > { %v5331_v18 = vsel %vm3649_vm7, %v11972_v0, %v7089_v21  ;;  %v5347_v34 = vsel %vm3649_vm7, %v13409_v58, %v6964_v52  ;;  %v5332_v44 = vsel %vm3649_vm7, %v11975_v50, %v6963_v27  ;;  %v7299_v0 = vld [vmem:[#allocation2 + $0x158] sm:$0xff]  ;;  %v7300_v52 = vld [vmem:[#allocation2 + $0x150] sm:$0xff]  ;;  %v13412_v58 = vunpack.i.h.bf16 %v11638_v12 }
 0x51b   : > { %v5363_v32 = vsel %vm3682_vm8, %v5331_v18, %v13410_v28  ;;  %v5379_v16 = vsel %vm3682_vm8, %v5347_v34, %v13411_v35  ;;  %v12171_v22 = vpop.permute.xlu1 %7091  ;;  %v6997_v14 = vpop.permute.xlu0 %6996  ;;  %v5254_v36 = vsel %vm403_vm2, %v7299_v0, %v6954_v49  ;;  %v5253_v41 = vsel %vm403_vm2, %v7300_v52, %v6953_v26 }
 0x51c   : > { %v5364_v18 = vsel %vm3682_vm8, %v5332_v44, %v13412_v58  ;;  %v6999_v15 = vunpack.i.h.bf16 %v6997_v14  ;;  %v5287_v50 = vsel %vm3583_vm5, %v5255_v53, %v7073_v7  ;;  %v5285_v5 = vsel %vm3583_vm5, %v5253_v41, %v6958_v8 }
 0x51d   : > { %v5286_v34 = vsel %vm3583_vm5, %v5254_v36, %v6959_v24  ;;  %v13413_v21 = vunpack.i.l.bf16 %v11706_v47  ;;  %v13414_v26 = vunpack.i.h.bf16 %v11706_v47  ;;  %v13415_v28 = vunpack.i.l.bf16 %v11792_v57 }
 0x51e   : > { %v5345_v49 = vsel %vm3649_vm7, %v5313_v55, %v6999_v15  ;;  %v6998_v53 = vunpack.i.l.bf16 %v6997_v14  ;;  %v13416_v8 = vunpack.i.l.bf16 %v11852_v56  ;;  %v13419_v0 = vunpack.i.l.bf16 %v11720_v23 }
 0x51f   : > { %v5395_v27 = vsel %vm3715_vm9, %v5363_v32, %v13413_v21  ;;  %v5396_v12 = vsel %vm3715_vm9, %v5364_v18, %v13414_v26  ;;  %v7097_v44 = vpop.permute.xlu1 %7096  ;;  %v7032_v35 = vpop.permute.xlu0 %7031  ;;  %v13417_v32 = vunpack.i.h.bf16 %v11792_v57  ;;  %v13420_v56 = vunpack.i.l.bf16 %v11933_v51  ;;  %v13423_v21 = vld [vmem:[#allocation75_spill] sm:$0xff] }
 0x520   : > { %v5427_v7 = vsel %vm3748_vm10, %v5395_v27, %v13415_v28  ;;  %v5377_v24 = vsel %vm3682_vm8, %v5345_v49, %v13416_v8  ;;  %v7099_v36 = vunpack.i.h.bf16 %v7097_v44  ;;  %v7098_v41 = vunpack.i.l.bf16 %v7097_v44 }
 0x521   : > { %v5428_v55 = vsel %vm3748_vm10, %v5396_v12, %v13417_v32  ;;  %v12201_v47 = vsel %vm3781_vm11, %v5427_v7, %v13418_v13  ;;  %v5409_v14 = vsel %vm3715_vm9, %v5377_v24, %v13419_v0  ;;  %v5319_v52 = vsel %vm3616_vm6, %v5287_v50, %v13420_v56  ;;  %v13427_v0 = vld [vmem:[#allocation79_spill] sm:$0xff] }
 0x522   : > { %v7034_v58 = vunpack.i.h.bf16 %v7032_v35  ;;  %v13421_v57 = vunpack.i.h.bf16 %v11800_v40  ;;  %v13422_v15 = vunpack.i.l.bf16 %v11776_v10  ;;  %v7094_v23 = vunpack.i.h.bf16 %v12171_v22 }
 0x523   : > { %v13424_v27 = vunpack.i.h.bf16 %v13423_v21  ;;  %v13425_v50 = vunpack.i.l.bf16 %v11784_v43  ;;  %v5330_v26 = vsel %vm3649_vm7, %v11969_v30, %v6998_v53  ;;  %v13426_v10 = vunpack.i.l.bf16 %v11984_v1  ;;  %v7102_v7 = vpop.permute.xlu1 %7101  ;;  %v7042_v8 = vpop.permute.xlu0 %7041 }
 0x524   : > { %v12212_v18 = vsel %vm3781_vm11, %v5428_v55, %v13421_v57  ;;  %v5441_v39 = vsel %vm3748_vm10, %v5409_v14, %v13422_v15  ;;  %v5318_v28 = vsel %vm3616_vm6, %v5286_v34, %v7034_v58  ;;  %v7104_v43 = vunpack.i.h.bf16 %v7102_v7 }
 0x525   : > { %v5416_v49 = vsel %vm3715_vm9, %v5384_v17, %v13424_v27  ;;  %v5486_v51 = vpack.c.bf16 %v12212_v18, %v12201_v47  ;;  %v12226_v40 = vsel %vm3781_vm11, %v5441_v39, %v13425_v50  ;;  %v5411_v12 = vsel %vm3715_vm9, %v5379_v16, %v13426_v10  ;;  %v13463_v18 = vld [vmem:[#allocation98_spill] sm:$0xff] }
 0x526   : > { %v5493_v17 = vpack.c.bf16 %v12131_v60, %v12226_v40  ;;  %v5350_v24 = vsel %vm3649_vm7, %v5318_v28, %v7088_v59  ;;  %v7103_v44 = vunpack.i.l.bf16 %v7102_v7  ;;  %v7044_v32 = vunpack.i.h.bf16 %v7042_v8 }
 0x527   : > { %v5443_v55 = vsel %vm3748_vm10, %v5411_v12, %v7098_v41  ;;  %v5444_v30 = vsel %vm3748_vm10, %v12136_v61, %v7099_v36  ;;  %v7033_v1 = vunpack.i.l.bf16 %v7032_v35  ;;  %v7043_v53 = vunpack.i.l.bf16 %v7042_v8  ;;  %v12258_v58 = vpop.permute.xlu1 %7106  ;;  %v7077_v57 = vpop.permute.xlu0 %7076 }
 0x528   : > { %v12241_v16 = vsel %vm3781_vm11, %v5443_v55, %v7103_v44  ;;  %v12244_v34 = vsel %vm3781_vm11, %v5444_v30, %v7104_v43  ;;  %v5351_v13 = vsel %vm3649_vm7, %v5319_v52, %v7044_v32  ;;  %v13428_v59 = vunpack.i.h.bf16 %v13427_v0  ;;  %v13436_v43 = vld [vmem:[#allocation78_spill] sm:$0xff] }
 0x529   : > { %v5382_v56 = vsel %vm3682_vm8, %v5350_v24, %v7094_v23  ;;  %v5494_v41 = vpack.c.bf16 %v12244_v34, %v12241_v16  ;;  %v5336_v61 = vsel %vm3649_vm7, %v11987_v29, %v7043_v53  ;;  %v13429_v35 = vunpack.i.l.bf16 %v12032_v2 }
 0x52a   : > { %v5448_v14 = vsel %vm3748_vm10, %v5416_v49, %v13428_v59  ;;  %v7093_v52 = vunpack.i.l.bf16 %v12171_v22  ;;  %v13430_v15 = vunpack.i.h.bf16 %v11662_v48  ;;  %v13431_v23 = vunpack.i.h.bf16 %v11752_v4 }
 0x52b   : > { %v5383_v36 = vsel %vm3682_vm8, %v5351_v13, %v13429_v35  ;;  %v7079_v49 = vunpack.i.h.bf16 %v7077_v57  ;;  %v5317_v29 = vsel %vm3616_vm6, %v5285_v5, %v7033_v1  ;;  %v7078_v50 = vunpack.i.l.bf16 %v7077_v57  ;;  %v12285_v24 = vpop.permute.xlu0 %7081 }
 0x52c   : > { %v5362_v39 = vsel %vm3682_vm8, %v5330_v26, %v13430_v15  ;;  %v5368_v27 = vsel %vm3682_vm8, %v5336_v61, %v13431_v23  ;;  %v13432_v2 = vunpack.i.l.bf16 %v13423_v21  ;;  %v13433_v12 = vunpack.i.h.bf16 %v11854_v38  ;;  %v7117_v38 = vpop.permute.xlu1 %7116 }
 0x52d   : > { %v7063_v48 = vunpack.i.l.bf16 %v12076_v19  ;;  %v5349_v26 = vsel %vm3649_vm7, %v5317_v29, %v7079_v49  ;;  %v13434_v4 = vunpack.i.l.bf16 %v13427_v0  ;;  %v13435_v7 = vunpack.i.h.bf16 %v13403_v25 }
 0x52e   : > { %v5415_v10 = vsel %vm3715_vm9, %v5383_v36, %v13432_v2  ;;  %v5400_v22 = vsel %vm3715_vm9, %v5368_v27, %v13433_v12  ;;  %v5334_v21 = vsel %vm3649_vm7, %v12019_v37, %v7078_v50  ;;  %v5381_v8 = vsel %vm3682_vm8, %v5349_v26, %v7093_v52 }
 0x52f   : > { %v5447_v28 = vsel %vm3748_vm10, %v5415_v10, %v13434_v4  ;;  %v5414_v5 = vsel %vm3715_vm9, %v5382_v56, %v13435_v7  ;;  %v13437_v44 = vunpack.i.l.bf16 %v13436_v43  ;;  %v13438_v55 = vunpack.i.h.bf16 %v11935_v31  ;;  %v13442_v56 = vld [vmem:[#allocation94_spill] sm:$0xff]  ;;  %v12322_v50 = vpop.permute.xlu0 %7111 }
 0x530   : > { %v13439_v1 = vunpack.i.h.bf16 %v11786_v54  ;;  %v13440_v13 = vunpack.i.l.bf16 %v13403_v25  ;;  %v13441_v0 = vunpack.i.h.bf16 %v13436_v43  ;;  %v13443_v61 = vunpack.i.h.bf16 %v13442_v56  ;;  %v7127_v29 = vpop.permute.xlu1 %7126 }
 0x531   : > { %v5479_v32 = vsel %vm3781_vm11, %v5447_v28, %v13437_v44  ;;  %v5432_v30 = vsel %vm3748_vm10, %v5400_v22, %v13438_v55  ;;  %v7084_v31 = vunpack.i.h.bf16 %v12285_v24  ;;  %v13444_v57 = vunpack.i.h.bf16 %v11961_v9 }
 0x532   : > { %v5366_v53 = vsel %vm3682_vm8, %v5334_v21, %v13439_v1  ;;  %v5413_v37 = vsel %vm3715_vm9, %v5381_v8, %v13440_v13  ;;  %v5480_v59 = vsel %vm3781_vm11, %v5448_v14, %v13441_v0  ;;  %v5394_v35 = vsel %vm3715_vm9, %v5362_v39, %v13443_v61  ;;  %v13452_v1 = vld [vmem:[#allocation118_spill] sm:$0xff] }
 0x533   : > { %v5496_v36 = vpack.c.bf16 %v5480_v59, %v5479_v32  ;;  %v5464_v54 = vsel %vm3781_vm11, %v5432_v30, %v13444_v57  ;;  %v13445_v52 = vunpack.i.h.bf16 %v12053_v20  ;;  %v7064_v15 = vunpack.i.h.bf16 %v12076_v19  ;;  %v12349_v43 = vpop.permute.xlu0 %7121  ;;  %v13451_v30 = vld [vmem:[#allocation77_spill] sm:$0xff] }
 0x534   : > { %v5488_v23 = vpack.c.bf16 %v5464_v54, %v12139_v33  ;;  %v13446_v14 = vunpack.i.l.bf16 %v12053_v20  ;;  %v13447_v39 = vunpack.i.h.bf16 %v11683_v46  ;;  %v6814_v9 = vunpack.i.h.bf16 %v11778_v11  ;;  %v7137_v8 = vpop.permute.xlu1 %7136 }
 0x535   : > { %v5446_v25 = vsel %vm3748_vm10, %v5414_v5, %v13445_v52  ;;  %5896 = vmatprep.subr.msk.bf16.mxu1 %vm3892_vm12, %v5496_v36  ;;  %v13448_v19 = vunpack.i.h.bf16 %v11770_v62  ;;  %v13449_v20 = vunpack.i.h.bf16 %v11645_v3  ;;  %v6739_v46 = vunpack.i.h.bf16 %v11655_v63  ;;  %v13453_v36 = vld [vmem:[#allocation86_spill] sm:$0xff] }
 0x536   : > { %v5445_v27 = vsel %vm3748_vm10, %v5413_v37, %v13446_v14  ;;  %v5398_v49 = vsel %vm3715_vm9, %v5366_v53, %v13447_v39  ;;  %v5554_v12 = vsel %vm3892_vm12, %v5488_v23, 0  ;;  %v5478_v11 = vsel %vm3781_vm11, %v5446_v25, %v7064_v15  ;;  %v7301_v25 = vld [vmem:[#allocation2] sm:$0xff]  ;;  %v13454_v23 = vld [vmem:[#allocation89_spill] sm:$0xff] }
 0x537   : > { %v5477_v2 = vsel %vm3781_vm11, %v5445_v27, %v7063_v48  ;;  %v5430_v33 = vsel %vm3748_vm10, %v5398_v49, %v13448_v19  ;;  %v5426_v10 = vsel %vm3748_vm10, %v5394_v35, %v13449_v20  ;;  %v5341_v22 = vsel %vm3649_vm7, %v11999_v42, %v7084_v31  ;;  %5830 = vmatpush3.bf16.xpose.msra.mxu1 %v5554_v12  ;;  %v12360_v59 = vpop.permute.xlu0 %7131 }
 0x538   : > { %v5495_v26 = vpack.c.bf16 %v5478_v11, %v5477_v2  ;;  %v5462_v48 = vsel %vm3781_vm11, %v5430_v33, %v6814_v9  ;;  %v13450_v62 = vunpack.i.l.bf16 %v11655_v63  ;;  %v7108_v4 = vunpack.i.l.bf16 %v12258_v58  ;;  %v7147_v0 = vpop.permute.xlu1 %7146 }
 0x539   : > { %v7118_v28 = vunpack.i.l.bf16 %v7117_v38  ;;  %v5487_v7 = vpack.c.bf16 %v5462_v48, %v12056_v6  ;;  %v12346_v5 = vsel %vm3781_vm11, %v5426_v10, %v6739_v46  ;;  %v7119_v21 = vunpack.i.h.bf16 %v7117_v38  ;;  %v7302_v10 = vld [vmem:[#allocation2 + $0x8] sm:$0xff]  ;;  %v7303_v48 = vld [vmem:[#allocation2 + $0x18] sm:$0xff] }
 0x53a   : > { %v12341_v3 = vsel %vm3781_vm11, %v12044_v45, %v13450_v62  ;;  %v7128_v42 = vunpack.i.l.bf16 %v7127_v29  ;;  %5897 = vmatprep.subr.msk.bf16.mxu1 %vm3892_vm12, %v5495_v26  ;;  %v7129_v45 = vunpack.i.h.bf16 %v7127_v29  ;;  %v7139_v32 = vunpack.i.h.bf16 %v7137_v8  ;;  %v13455_v29 = vld [vmem:[#allocation104_spill] sm:$0xff] }
 0x53b   : > { %v5485_v63 = vpack.c.bf16 %v12346_v5, %v12341_v3  ;;  %v5373_v44 = vsel %vm3682_vm8, %v5341_v22, %v7118_v28  ;;  %v7138_v55 = vunpack.i.l.bf16 %v7137_v8  ;;  %v6603_v6 = vunpack.i.l.bf16 %v13451_v30  ;;  %v12386_v20 = vpop.permute.xlu0 %7141  ;;  %v13457_v22 = vld [vmem:[#allocation82_spill] sm:$0xff]  ;;  %v13468_v3 = vld [vmem:[#allocation119_spill] sm:$0xff]  ;;  %v13469_v5 = vld [vmem:[#allocation120_spill] sm:$0xff] }
 0x53c   : > { %v5342_v53 = vsel %vm3649_vm7, %v13452_v1, %v7108_v4  ;;  %v6604_v38 = vunpack.i.h.bf16 %v13451_v30  ;;  %v5405_v37 = vsel %vm3715_vm9, %v5373_v44, %v7128_v42  ;;  %v7149_v61 = vunpack.i.h.bf16 %v7147_v0  ;;  %v12384_v33 = vpop.permute.xlu1 %7156  ;;  %v13458_v4 = vld [vmem:[#allocation103_spill] sm:$0xff]  ;;  %v13459_v42 = vld [vmem:[#allocation81_spill] sm:$0xff] }
 0x53d   : > { %v5374_v13 = vsel %vm3682_vm8, %v5342_v53, %v7119_v21  ;;  %v7148_v35 = vunpack.i.l.bf16 %v7147_v0  ;;  %v5551_v31 = vsel %vm3892_vm12, %v5487_v7, 0  ;;  %v6608_v57 = vunpack.i.l.bf16 %v13453_v36  ;;  %v13460_v1 = vld [vmem:[#allocation107_spill] sm:$0xff] }
 0x53e   : > { %v5406_v56 = vsel %vm3715_vm9, %v5374_v13, %v7129_v45  ;;  %v5437_v54 = vsel %vm3748_vm10, %v5405_v37, %v7138_v55  ;;  %v5225_v15 = vsel %vm403_vm2, %v7301_v25, %v6603_v6  ;;  %v6648_v14 = vunpack.i.l.bf16 %v13454_v23  ;;  %v7304_v45 = vld [vmem:[#allocation2 + $0x20] sm:$0xff] }
 0x53f   : > { %v5438_v52 = vsel %vm3748_vm10, %v5406_v56, %v7139_v32  ;;  %5832 = vmatpush3.bf16.xpose.msra.mxu1 %v5551_v31  ;;  %v12370_v27 = vsel %vm3781_vm11, %v5437_v54, %v7148_v35  ;;  %v6609_v49 = vunpack.i.h.bf16 %v13453_v36  ;;  %v6649_v9 = vunpack.i.h.bf16 %v13454_v23  ;;  %v12405_v30 = vpop.permute.xlu0 %7151  ;;  %v13461_v56 = vld [vmem:[#allocation109_spill] sm:$0xff]  ;;  %v13462_v35 = vld [vmem:[#allocation102_spill] sm:$0xff]  ;;  %v13464_v25 = vld [vmem:[#allocation100_spill] sm:$0xff] }
 0x540   : > { %v12373_v39 = vsel %vm3781_vm11, %v5438_v52, %v7149_v61  ;;  %5898 = vmatprep.subr.msk.bf16.mxu1 %vm3892_vm12, %v5494_v41  ;;  %v6653_v2 = vunpack.i.l.bf16 %v13455_v29  ;;  %v5226_v46 = vsel %vm403_vm2, %v7302_v10, %v6604_v38  ;;  %v6654_v16 = vunpack.i.h.bf16 %v13455_v29  ;;  %v13456_v41 = vld [vmem:[#allocation101_spill] sm:$0xff]  ;;  %v12403_v55 = vpop.permute.xlu1 %7166 }
 0x541   : > { %v5491_v19 = vpack.c.bf16 %v12373_v39, %v12370_v27  ;;  %v12391_v34 = vsel %vm3583_vm5, %v5225_v15, %v6608_v57  ;;  %v6639_v12 = vunpack.i.h.bf16 %v13456_v41  ;;  %v6638_v11 = vunpack.i.l.bf16 %v13456_v41 }
 0x542   : > { %v6634_v26 = vunpack.i.h.bf16 %v13457_v22  ;;  %v5227_v62 = vsel %vm403_vm2, %v7303_v48, %v6648_v14  ;;  %v6644_v28 = vunpack.i.h.bf16 %v13458_v4  ;;  %v6643_v7 = vunpack.i.l.bf16 %v13458_v4 }
 0x543   : > { %v5258_v21 = vsel %vm3583_vm5, %v5226_v46, %v6609_v49  ;;  %v6629_v8 = vunpack.i.h.bf16 %v13459_v42  ;;  %v5228_v44 = vsel %vm403_vm2, %v7304_v45, %v6649_v9  ;;  %v5259_v32 = vsel %vm3583_vm5, %v5227_v62, %v6653_v2  ;;  %v12436_v49 = vpop.permute.xlu0 %7161  ;;  %v13465_v2 = vld [vmem:[#allocation93_spill] sm:$0xff] }
 0x544   : > { %v5260_v6 = vsel %vm3583_vm5, %v5228_v44, %v6654_v16  ;;  %v6669_v53 = vunpack.i.h.bf16 %v13460_v1  ;;  %v6668_v38 = vunpack.i.l.bf16 %v13460_v1  ;;  %v5548_v13 = vsel %vm3892_vm12, %v5486_v51, 0  ;;  %v12434_v14 = vpop.permute.xlu1 %7176 }
 0x545   : > { %v6628_v37 = vunpack.i.l.bf16 %v13459_v42  ;;  %v6633_v0 = vunpack.i.l.bf16 %v13457_v22  ;;  %v5230_v61 = vsel %vm403_vm2, %v13461_v56, %v6639_v12  ;;  %v5229_v31 = vsel %vm403_vm2, %v13462_v35, %v6638_v11  ;;  %v13467_v12 = vld [vmem:[#allocation97_spill] sm:$0xff] }
 0x546   : > { %v12421_v36 = vsel %vm3616_vm6, %v5258_v21, %v6634_v26  ;;  %v5261_v57 = vsel %vm3583_vm5, %v5229_v31, %v6643_v7  ;;  %v5262_v47 = vsel %vm3583_vm5, %v5230_v61, %v6644_v28  ;;  %v6869_v51 = vunpack.i.h.bf16 %v13463_v18  ;;  %v7305_v26 = vld [vmem:[#allocation2 + $0xe0] sm:$0xff]  ;;  %v7306_v28 = vld [vmem:[#allocation2 + $0xd8] sm:$0xff] }
 0x547   : > { %5834 = vmatpush3.bf16.xpose.msra.mxu1 %v5548_v13  ;;  %v5291_v54 = vsel %vm3616_vm6, %v5259_v32, %v6628_v37  ;;  %v6868_v52 = vunpack.i.l.bf16 %v13463_v18  ;;  %v6914_v15 = vunpack.i.h.bf16 %v13464_v25  ;;  %v5292_v23 = vsel %vm3616_vm6, %v5260_v6, %v6629_v8 }
 0x548   : > { %5899 = vmatprep.subr.msk.bf16.mxu1 %vm3892_vm12, %v5493_v17  ;;  %v5294_v9 = vsel %vm3616_vm6, %v5262_v47, %v6669_v53  ;;  %v5293_v29 = vsel %vm3616_vm6, %v5261_v57, %v6668_v38  ;;  %v6798_v60 = vunpack.i.l.bf16 %v13465_v2  ;;  %v7083_v40 = vunpack.i.l.bf16 %v12285_v24  ;;  %v13466_v17 = vld [vmem:[#allocation106_spill] sm:$0xff]  ;;  %v12454_v8 = vpop.permute.xlu1 %7186  ;;  %v13472_v2 = vld [vmem:[#allocation116_spill] sm:$0xff] }
 0x549   : > { %v6874_v10 = vunpack.i.h.bf16 %v13466_v17  ;;  %v6873_v46 = vunpack.i.l.bf16 %v13466_v17  ;;  %v7114_v16 = vunpack.i.h.bf16 %v12322_v50  ;;  %v7113_v41 = vunpack.i.l.bf16 %v12322_v50  ;;  %v7172_v50 = vpop.permute.xlu0 %7171 }
 0x54a   : > { %v6843_v11 = vunpack.i.l.bf16 %v13467_v12  ;;  %v5244_v48 = vsel %vm403_vm2, %v7305_v26, %v6869_v51  ;;  %v7124_v62 = vunpack.i.h.bf16 %v12349_v43  ;;  %v7123_v4 = vunpack.i.l.bf16 %v12349_v43 }
 0x54b   : > { %v5243_v24 = vsel %vm403_vm2, %v7306_v28, %v6868_v52  ;;  %v5325_v7 = vsel %vm3649_vm7, %v5293_v29, %v6914_v15  ;;  %v7134_v21 = vunpack.i.h.bf16 %v12360_v59  ;;  %v7133_v42 = vunpack.i.l.bf16 %v12360_v59  ;;  %v13471_v29 = vld [vmem:[#allocation121_spill] sm:$0xff] }
 0x54c   : > { %v5326_v45 = vsel %vm3649_vm7, %v5294_v9, %v7083_v40  ;;  %v7144_v44 = vunpack.i.h.bf16 %v12386_v20  ;;  %v7143_v32 = vunpack.i.l.bf16 %v12386_v20  ;;  %v5545_v43 = vsel %vm3892_vm12, %v5485_v63, 0 }
 0x54d   : > { %v5275_v6 = vsel %vm3583_vm5, %v5243_v24, %v6873_v46  ;;  %v5276_v1 = vsel %vm3583_vm5, %v5244_v48, %v6874_v10  ;;  %v5357_v59 = vsel %vm3682_vm8, %v5325_v7, %v7113_v41  ;;  %v5358_v53 = vsel %vm3682_vm8, %v5326_v45, %v7114_v16  ;;  %v7182_v57 = vpop.permute.xlu0 %7181 }
 0x54e   : > { %v7109_v38 = vunpack.i.h.bf16 %v12258_v58  ;;  %v5389_v13 = vsel %vm3715_vm9, %v5357_v59, %v7123_v4  ;;  %v5390_v20 = vsel %vm3715_vm9, %v5358_v53, %v7124_v62  ;;  %v7158_v37 = vunpack.i.l.bf16 %v12384_v33  ;;  %v12479_v58 = vpop.permute.xlu1 %7196 }
 0x54f   : > { %5836 = vmatpush3.bf16.xpose.msra.mxu1 %v5545_v43  ;;  %v13470_v63 = vpack.c.bf16 %v13468_v3, %v13469_v5  ;;  %v6844_v56 = vunpack.i.h.bf16 %v13467_v12  ;;  %v5421_v61 = vsel %vm3748_vm10, %v5389_v13, %v7133_v42  ;;  %v5422_v35 = vsel %vm3748_vm10, %v5390_v20, %v7134_v21 }
 0x550   : > { %v7159_v31 = vunpack.i.h.bf16 %v12384_v33  ;;  %v5323_v47 = vsel %vm3649_vm7, %v5291_v54, %v6798_v60  ;;  %v5307_v18 = vsel %vm3616_vm6, %v5275_v6, %v6843_v11  ;;  %v5453_v51 = vsel %vm3781_vm11, %v5421_v61, %v7143_v32 }
 0x551   : > { %5900 = vmatprep.subr.msk.bf16.mxu1 %vm3892_vm12, %v13470_v63  ;;  %v5454_v52 = vsel %vm3781_vm11, %v5422_v35, %v7144_v44  ;;  %v7154_v25 = vunpack.i.h.bf16 %v12405_v30  ;;  %v7153_v15 = vunpack.i.l.bf16 %v12405_v30  ;;  %v5308_v9 = vsel %vm3616_vm6, %v5276_v1, %v6844_v56  ;;  %v7192_v12 = vpop.permute.xlu0 %7191 }
 0x552   : > { %v13473_v33 = vpack.c.bf16 %v13471_v29, %v13472_v2  ;;  %v5324_v17 = vsel %vm3649_vm7, %v5292_v23, %v7109_v38  ;;  %v5355_v54 = vsel %vm3682_vm8, %v5323_v47, %v7158_v37  ;;  %v7164_v60 = vunpack.i.h.bf16 %v12436_v49  ;;  %v7207_v30 = vpop.permute.xlu1 %7206 }
 0x553   : > { %v7163_v10 = vunpack.i.l.bf16 %v12436_v49  ;;  %v5356_v46 = vsel %vm3682_vm8, %v5324_v17, %v7159_v31  ;;  %v7174_v16 = vunpack.i.h.bf16 %v7172_v50  ;;  %v7173_v41 = vunpack.i.l.bf16 %v7172_v50 }
 0x554   : > { %v5542_v40 = vsel %vm3892_vm12, %v13473_v33, 0  ;;  %v5483_v11 = vpack.c.bf16 %v5454_v52, %v5453_v51  ;;  %v7169_v26 = vunpack.i.h.bf16 %v12403_v55  ;;  %v7168_v48 = vunpack.i.l.bf16 %v12403_v55  ;;  %v13475_v51 = vld [vmem:[#allocation126_spill] sm:$0xff] }
 0x555   : > { %v7184_v62 = vunpack.i.h.bf16 %v7182_v57  ;;  %v7183_v4 = vunpack.i.l.bf16 %v7182_v57  ;;  %v5339_v23 = vsel %vm3649_vm7, %v5307_v18, %v7153_v15  ;;  %v5340_v28 = vsel %vm3649_vm7, %v5308_v9, %v7154_v25  ;;  %v7202_v6 = vpop.permute.xlu0 %7201  ;;  %v13476_v25 = vld [vmem:[#allocation125_spill] sm:$0xff] }
 0x556   : > { %v7194_v24 = vunpack.i.h.bf16 %v7192_v12  ;;  %v7193_v49 = vunpack.i.l.bf16 %v7192_v12  ;;  %v7179_v7 = vunpack.i.h.bf16 %v12434_v14  ;;  %v7178_v21 = vunpack.i.l.bf16 %v12434_v14  ;;  %v7217_v43 = vpop.permute.xlu1 %7216 }
 0x557   : > { %5838 = vmatpush3.bf16.xpose.msra.mxu1 %v5542_v40  ;;  %v5371_v42 = vsel %vm3682_vm8, %v5339_v23, %v7163_v10  ;;  %v5372_v50 = vsel %vm3682_vm8, %v5340_v28, %v7164_v60  ;;  %v7189_v55 = vunpack.i.h.bf16 %v12454_v8  ;;  %v7188_v45 = vunpack.i.l.bf16 %v12454_v8 }
 0x558   : > { %5901 = vmatprep.subr.msk.bf16.mxu1 %vm3892_vm12, %v5491_v19  ;;  %v5403_v44 = vsel %vm3715_vm9, %v5371_v42, %v7173_v41  ;;  %v5404_v32 = vsel %vm3715_vm9, %v5372_v50, %v7174_v16  ;;  %v5387_v14 = vsel %vm3715_vm9, %v5355_v54, %v7168_v48  ;;  %v5388_v1 = vsel %vm3715_vm9, %v5356_v46, %v7169_v26 }
 0x559   : > { %v5435_v59 = vsel %vm3748_vm10, %v5403_v44, %v7183_v4  ;;  %v5436_v27 = vsel %vm3748_vm10, %v5404_v32, %v7184_v62  ;;  %v7199_v39 = vunpack.i.h.bf16 %v12479_v58  ;;  %v7198_v19 = vunpack.i.l.bf16 %v12479_v58  ;;  %v7212_v56 = vpop.permute.xlu0 %7211  ;;  %v13474_v58 = vld [vmem:[#allocation105_spill] sm:$0xff] }
 0x55a   : > { %v5467_v8 = vsel %vm3781_vm11, %v5435_v59, %v7193_v49  ;;  %v5468_v53 = vsel %vm3781_vm11, %v5436_v27, %v7194_v24  ;;  %v5419_v38 = vsel %vm3748_vm10, %v5387_v14, %v7178_v21  ;;  %v5420_v13 = vsel %vm3748_vm10, %v5388_v1, %v7179_v7  ;;  %v7227_v63 = vpop.permute.xlu1 %7226  ;;  %v7248_v59 = vld [vmem:[%s12635_s6 + $0x8] ss:$0 sps:$4 sm:$0xff]   ;;  %v7307_v27 = vld [vmem:[%s12635_s6] sm:$0xff]  }
 0x55b   : > { %v7209_v20 = vunpack.i.h.bf16 %v7207_v30  ;;  %v7208_v37 = vunpack.i.l.bf16 %v7207_v30  ;;  %v7219_v3 = vunpack.i.h.bf16 %v7217_v43  ;;  %v7218_v5 = vunpack.i.l.bf16 %v7217_v43 }
 0x55c   : > { %v5451_v61 = vsel %vm3781_vm11, %v5419_v38, %v7188_v45  ;;  %v5452_v35 = vsel %vm3781_vm11, %v5420_v13, %v7189_v55  ;;  %v5289_v31 = vsel %vm3616_vm6, %v12391_v34, %v6633_v0  ;;  %v6659_v57 = vunpack.i.h.bf16 %v13474_v58 }
 0x55d   : > { %v5490_v47 = vpack.c.bf16 %v5468_v53, %v5467_v8  ;;  %v5539_v18 = vsel %vm3892_vm12, %v5483_v11, 0  ;;  %v5338_v52 = vsel %vm3649_vm7, %v13475_v51, %v7199_v39  ;;  %v5337_v15 = vsel %vm3649_vm7, %v13476_v25, %v7198_v19  ;;  %v7222_v10 = vpop.permute.xlu0 %7221  ;;  %v5631_v8 = vld [vmem:[%s347_s29] sm:$0x3]  ;;  %s7314_s29 = scalar_lea.vmem %s7313_s25, 1536 }
 0x55e   : > { %v7229_v9 = vunpack.i.h.bf16 %v7227_v63  ;;  %v7228_v29 = vunpack.i.l.bf16 %v7227_v63  ;;  %v6658_v2 = vunpack.i.l.bf16 %v13474_v58  ;;  %v5369_v22 = vsel %vm3682_vm8, %v5337_v15, %v7208_v37  ;;  %v7237_v60 = vpop.permute.xlu1 %7236  ;;  %p7316_p1 = scmp.lt.s32.totalorder %s7314_s29, %s7308_s14 }
 0x55f   : > { %5840 = vmatpush3.bf16.xpose.msra.mxu1 %v5539_v18  ;;  %v5370_v34 = vsel %vm3682_vm8, %v5338_v52, %v7209_v20  ;;  %v5482_v0 = vpack.c.bf16 %v5452_v35, %v5451_v61  ;;  %v5401_v33 = vsel %vm3715_vm9, %v5369_v22, %v7218_v5  ;;  %v7204_v17 = vunpack.i.h.bf16 %v7202_v6  ;;  %v13477_v20 = vld [vmem:[#allocation6_spill] sm:$0xff] }
 0x560   : > { %5902 = vmatprep.subr.msk.bf16.mxu1 %vm3892_vm12, %v5490_v47  ;;  %v5402_v40 = vsel %vm3715_vm9, %v5370_v34, %v7219_v3  ;;  %v7203_v54 = vunpack.i.l.bf16 %v7202_v6  ;;  %v7214_v46 = vunpack.i.h.bf16 %v7212_v56  ;;  %v7213_v16 = vunpack.i.l.bf16 %v7212_v56  ;;  %p7317_p2 = por %p7316_p1, %p7315_p0 }
 0x561   : > { %v7239_v41 = vunpack.i.h.bf16 %v7237_v60  ;;  %v7238_v30 = vunpack.i.l.bf16 %v7237_v60  ;;  %v5433_v12 = vsel %vm3748_vm10, %v5401_v33, %v7228_v29  ;;  %v5434_v11 = vsel %vm3748_vm10, %v5402_v40, %v7229_v9  ;;  %v7232_v42 = vpop.permute.xlu0 %7231 }
 0x562   : > { %v7224_v26 = vunpack.i.h.bf16 %v7222_v10  ;;  %v7223_v48 = vunpack.i.l.bf16 %v7222_v10  ;;  %v5322_v62 = vsel %vm3649_vm7, %v12421_v36, %v6659_v57  ;;  %v5321_v4 = vsel %vm3649_vm7, %v5289_v31, %v6658_v2  ;;  %p7318_p3 = pnand %p7317_p2, %p7311_p13 }
 0x563   : > { %v5465_v23 = vsel %vm3781_vm11, %v5433_v12, %v7238_v30  ;;  %v5466_v28 = vsel %vm3781_vm11, %v5434_v11, %v7239_v41  ;;  %v5353_v24 = vsel %vm3682_vm8, %v5321_v4, %v7203_v54  ;;  %v5354_v49 = vsel %vm3682_vm8, %v5322_v62, %v7204_v17 }
 0x564   : > { %v5489_v7 = vpack.c.bf16 %v5466_v28, %v5465_v23  ;;  %v5536_v21 = vsel %vm3892_vm12, %v5482_v0, 0  ;;  %v5385_v50 = vsel %vm3715_vm9, %v5353_v24, %v7213_v16  ;;  %v5386_v55 = vsel %vm3715_vm9, %v5354_v49, %v7214_v46 }
 0x565   : > { %v7234_v45 = vunpack.i.h.bf16 %v7232_v42  ;;  %v7233_v36 = vunpack.i.l.bf16 %v7232_v42  ;;  %v5417_v44 = vsel %vm3748_vm10, %v5385_v50, %v7223_v48  ;;  %v5418_v32 = vsel %vm3748_vm10, %v5386_v55, %v7224_v26 }
 0x566   : > { %v13478_v37 = vsub.s32 0, %v13477_v20  ;;  %v13479_v35 = vsub.s32 1, %v13477_v20 }
 0x567   : > { %5842 = vmatpush3.bf16.xpose.msra.mxu1 %v5536_v21  ;;  %v5449_v43 = vsel %vm3781_vm11, %v5417_v44, %v7233_v36  ;;  %v5450_v6 = vsel %vm3781_vm11, %v5418_v32, %v7234_v45 }
 0x568   : > { %5903 = vmatprep.subr.msk.bf16.mxu1 %vm3892_vm12, %v5489_v7  ;;  %v5481_v14 = vpack.c.bf16 %v5450_v6, %v5449_v43  ;;  %v5511_v19 = vpop.permute.xlu1 %5510  ;;  %v5660_v3 = vrot.slane %v5631_v8, %v13478_v37  ;;  %v5664_v31 = vrot.slane %v5631_v8, %v13479_v35 }
 0x56a   : > { %v5533_v1 = vsel %vm3892_vm12, %v5481_v14, 0 }
 0x56c   : > { %v5506_v39 = vpop.permute.xlu0 %5505  ;;  %v5638_v5 = vpop.permute.xlu1 %5637 }
 0x56f   : > { %5844 = vmatpush3.bf16.xpose.msra.mxu1 %v5533_v1 }
 0x570   : > { %v5516_v53 = vpop.permute.xlu0 %5515  ;;  %v5648_v0 = vpop.permute.xlu1 %5647 }
 0x574   : > { %v5643_v51 = vpop.permute.xlu0 %5642 }
 0x576   : > { %5846 = vmatmul.mubr.msk.bf16.vlgmr.msra.gmra.mxu1 %vm3892_vm12, %v7307_v27 }
 0x577   : > { %5847 = vmatprep.mubr.msk.bf16.mxu1 %vm3892_vm12, %v7248_v59 }
 0x57e   : > { %5848 = vmatmul.mubr.msk.bf16.gmra.mxu1 %vm3892_vm12, %v7248_v59 }
 0x636   : > { %v5614_v38 = vpop.f32.mrf.mxu1 }
 0x637   : > { %v5615_v13 = vadd.f32 %v5614_v38, %v5506_v39 }
 0x638   : > { %v5616_v63 = vpop.f32.mrf.mxu1 }
 0x639   : > { %v5650_v56 = vmul.f32 %v5638_v5, %v5615_v13  ;;  %v5617_v61 = vadd.f32 %v5616_v63, %v5506_v39 }
 0x63a   : > { %v5618_v58 = vpop.f32.mrf.mxu1 }
 0x63b   : > { %v5667_v57 = vadd.f32 %v5660_v3, %v5650_v56  ;;  %v5651_v47 = vmul.f32 %v5638_v5, %v5617_v61  ;;  %v5619_v18 = vadd.f32 %v5618_v58, %v5511_v19 }
 0x63c   : > { %v5620_v52 = vpop.f32.mrf.mxu1 }
 0x63d   : > { %5673 = vst [vmem:[%s338_s21] sm:$0xff] %v5667_v57  ;;  %v5668_v25 = vadd.f32 %v5664_v31, %v5651_v47  ;;  %v5652_v15 = vmul.f32 %v5643_v51, %v5619_v18  ;;  %v5621_v9 = vadd.f32 %v5620_v52, %v5511_v19 }
 0x63e   : > { %v5624_v29 = vpop.f32.mrf.mxu1 }
 0x63f   : > { %5674 = vst [vmem:[%s338_s21 + $0x8] sm:$0xff] %v5668_v25  ;;  %v5669_v2 = vadd.f32 %v5660_v3, %v5652_v15  ;;  %v5653_v22 = vmul.f32 %v5643_v51, %v5621_v9  ;;  %v5625_v34 = vadd.f32 %v5624_v29, %v5516_v53 }
 0x640   : > { %v5626_v33 = vpop.f32.mrf.mxu1 }
 0x641   : > { %5675 = vst [vmem:[%s338_s21 + $0x10] sm:$0xff] %v5669_v2  ;;  %v5670_v40 = vadd.f32 %v5664_v31, %v5653_v22  ;;  %v5654_v17 = vmul.f32 %v5648_v0, %v5625_v34  ;;  %v5627_v54 = vadd.f32 %v5626_v33, %v5516_v53 }
 0x642   : > { %v5628_v60 = vpop.f32.mrf.mxu1 }
 0x643   : > { %5676 = vst [vmem:[%s338_s21 + $0x18] sm:$0xff] %v5670_v40  ;;  %v5671_v10 = vadd.f32 %v5660_v3, %v5654_v17  ;;  %v5655_v46 = vmul.f32 %v5648_v0, %v5627_v54 }
 0x644   : > { %v5629_v16 = vpop.f32.mrf.mxu1 }
 0x645   : > { %5677 = vst [vmem:[%s338_s21 + $0x20] sm:$0xff] %v5671_v10  ;;  %v5672_v41 = vadd.f32 %v5664_v31, %v5655_v46 }
 0x647   : > { %5678 = vst [vmem:[%s338_s21 + $0x28] sm:$0xff] %v5672_v41 }
 0x648   : > { %7321 = shalt.err (!%p7318_p3)
}
 0x649   : > { %s7322_s27 = scalar_lea.hbm %s12585_s26, 768  ;;  %s7326_s16 = scalar_lea.hbm %s12638_s9, 1536 }
 0x64a   : > { %p7323_p4 = scmp.ne.s32.totalorder %s12585_s26, %s7322_s27  ;;  %p7327_p9 = scmp.lt.s32.totalorder %s12585_s26, %s12638_s9 }
 0x64b   : > { %p7328_p10 = scmp.lt.s32.totalorder %s7326_s16, %s7322_s27 }
 0x64c   : > { %p7324_p7 = pnand %p7323_p4, %p7471_p5 }
 0x64d   : > { %p7329_p11 = por %p7328_p10, %p7327_p9 }
 0x64e   : > { %p7325_p8 = pneg %p7324_p7 }
 0x650   : > { %p7330_p12 = pnand %p7329_p11, %p7325_p8 }
 0x652   : > { %7333 = shalt.err (!%p7330_p12)
}
 0x653   : > { %s7381_s14 = smov 256   ;;  %s7382_s24 = smov 16  }
 0x654   : > { %5907 = dma.vmem_to_hbm [thread:$0]  (%p7471_p5), %s12580_s17, 768, %s12585_s26, %s12589_s13, %s7381_s14, %s7381_s14, %s7382_s24  }
 0x655 PF: > { %p5913_p13 = scmp.ge.s32.totalorder %s7368_s12, 2  ;;  %s5708_s25 = sand.u32 1, %s7356_s30  }
 0x656   : > { %s5709_s29 = scalar_lea.sflag [#allocation4], %s5708_s25 }
 0x657   : > { %p5910_p0 = pnand %p5913_p13, %p7475_p6 }
 0x659   : > { %p5911_p1 = pneg %p5910_p0 }
 0x65b   : > { %7351 = dma.done.wait (%p5911_p1), %s5709_s29, 768  }
 0x65c   : > { %7353 = vsyncadd (%p5911_p1), %s5709_s29, 4294966528  ;;  %p19_p2 = scmp.ge.s32.totalorder %s7458_s15, 4   ;;  %s13480_s30 = smov %s7360_s10 }
 0x65d   : > { %s13481_s10 = smov %s7364_s11  ;;  %s13482_s11 = smov %s7469_s18 }
 0x65e   : > { %s13483_s12 = smov %s7458_s15  ;;  %21 = sbr.rel (!%p19_p2) target bundleno = 3 (0x3), region = 96 }
 0x663   :  { %5714 = vsyncpa [#allocation4], 1 }
 0x664   :  { %5716 = vsyncpa [#allocation4 + $0x1], 1 }

</bundles_post_ra>
